<compile_context>
chip_gen: v5e
topology: v5e:2x2
jax: 0.10.0
libtpu: 0.0.40
codegen_flags: <defaults>
</compile_context>

<pallas_src>
import functools

import numpy as np
import jax
import jax.numpy as jnp
from jax.experimental import pallas as pl
from jax.experimental.pallas import tpu as pltpu


def _round_up(x, m):
    return (x + m - 1) // m * m


# ------------------------------ fused kernel ------------------------------- #

def _fused_resnet_kernel(
        x_ref, mask_ref, pool_ref,
        w1_ref, b1_ref, g1_ref, be1_ref,
        w2a_ref, b2a_ref, w2b_ref, b2b_ref, g2_ref, be2_ref,
        w3a_ref, b3a_ref, w3b_ref, b3b_ref,
        wfc_ref, bfc_ref,
        out_ref,
        pad_ref,
        *, offsets, guard, rows, inv_count):
    """Whole resnet99_avg forward on VMEM-resident data (single grid point)."""

    mask = mask_ref[...]                                   # [rows, 1] 1.0/0.0

    def conv3x3(src_ref, w_ref, b_ref):
        # 3x3 conv as ONE deep-K matmul: nine spatially shifted copies of the
        # activation are read as static (unaligned-sublane) slices from a
        # guard-padded buffer and concatenated along channels, then contracted
        # against the pre-packed [9*Cin, Cout] weight on the MXU in bf16.
        taps = [src_ref[pl.ds(guard + d, rows), :] for d in offsets]
        x9 = jnp.concatenate(taps, axis=-1).astype(jnp.bfloat16)
        y = jnp.dot(x9, w_ref[...], preferred_element_type=jnp.float32)
        return y + b_ref[...]                              # bias [1, Cout]

    def conv3x3_act(act, w_ref, b_ref):
        # Internal convs: stage the (border-masked) activation into the
        # guard-padded scratch so shifted reads see zeros at image borders.
        pad_ref[pl.ds(guard, rows), :] = act
        return conv3x3(pad_ref, w_ref, b_ref)

    def bn_relu(x, g_ref, be_ref):
        # Train-mode BatchNorm (batch stats, biased var, eps=1e-3) + ReLU.
        # Single reduction pass: var = E[x^2] - mean^2; gamma folded into scale.
        s1 = jnp.sum(x, axis=0, keepdims=True)
        s2 = jnp.sum(x * x, axis=0, keepdims=True)
        mean = s1 * inv_count
        var = s2 * inv_count - mean * mean
        scale = g_ref[...] * jax.lax.rsqrt(var + 1e-3)
        shift = be_ref[...] - mean * scale
        return jnp.maximum(x * scale + shift, 0.0) * mask

    # Zero the staging buffer once (guards + tail rows stay zero afterwards).
    pad_ref[...] = jnp.zeros((guard + rows + guard, 64), dtype=jnp.float32)

    # Layer 1: merged conv1a||conv1b (103 -> 64, padding=0).  The raw input is
    # already guard-padded and channel-padded by the wrapper; masking keeps
    # only the rows that correspond to valid 7x7 output pixels.
    x1 = conv3x3(x_ref, w1_ref, b1_ref) * mask             # [rows, 64]

    # residual block 1
    t = bn_relu(x1, g1_ref, be1_ref)
    t = jnp.maximum(conv3x3_act(t, w2a_ref, b2a_ref), 0.0) * mask
    x1 = x1 + conv3x3_act(t, w2b_ref, b2b_ref) * mask

    # residual block 2
    t = bn_relu(x1, g2_ref, be2_ref)
    t = jnp.maximum(conv3x3_act(t, w3a_ref, b3a_ref), 0.0) * mask
    x1 = x1 + conv3x3_act(t, w3b_ref, b3b_ref) * mask

    # global average pool (tiny per-image pooling matmul) + fc
    pooled = jnp.dot(pool_ref[...], x1,
                     preferred_element_type=jnp.float32)   # [N, 64]
    logits = jnp.dot(pooled.astype(jnp.bfloat16), wfc_ref[...],
                     preferred_element_type=jnp.float32) + bfc_ref[...]
    out_ref[...] = logits.astype(out_ref.dtype)


# ----------------------------- weight packing ------------------------------- #

def _pack_conv(w_oihw, bias, cin_pad):
    """torch OIHW conv weight -> [9*cin_pad, cout] bf16 tap matrix (t = i*3+j)."""
    cout, cin = w_oihw.shape[0], w_oihw.shape[1]
    taps = jnp.transpose(w_oihw, (2, 3, 1, 0)).reshape(9, cin, cout)
    taps = jnp.pad(taps, ((0, 0), (0, cin_pad - cin), (0, 0)))
    return (taps.reshape(9 * cin_pad, cout).astype(jnp.bfloat16),
            bias.reshape(1, -1).astype(jnp.float32))


def _row(v):
    return v.reshape(1, -1).astype(jnp.float32)


# --------------------------------- wrapper ---------------------------------- #

@jax.jit
def resnet99_avg_forward(x_nchw, params):
    n, cin, h, w = x_nchw.shape
    ho, wo = h - 2, w - 2                       # conv1 output spatial dims
    num_classes = params["fc_w"].shape[0]

    rows_real = n * h * w                       # flat padded-spatial rows in use
    rows = _round_up(rows_real, 8)              # sublane-aligned row count
    guard = _round_up(w + 1, 8)                 # >= max |tap shift|, aligned
    cin_pad = _round_up(cin, 128)               # lane-aligned conv1 channels
    # flat-row offset of tap (i, j) relative to the output row
    offsets = tuple((i - 1) * w + (j - 1) for i in range(3) for j in range(3))

    # NCHW -> NHWC -> flat [N*H*W, Cin]; pad channels to 128 lanes and add
    # `guard` zero rows on each side so shifted reads never go out of bounds.
    x_flat = jnp.transpose(x_nchw, (0, 2, 3, 1)).reshape(rows_real, cin)
    x_flat = jnp.pad(x_flat.astype(jnp.float32),
                     ((guard, guard + rows - rows_real), (0, cin_pad - cin)))

    # Valid-row mask [rows, 1] and per-image pooling matrix [N, rows].
    mask_np = np.zeros((rows, 1), np.float32)
    pool_np = np.zeros((n, rows), np.float32)
    for b in range(n):
        for r in range(ho):
            for c in range(wo):
                row = b * h * w + (r + 1) * w + (c + 1)
                mask_np[row, 0] = 1.0
                pool_np[b, row] = 1.0 / (ho * wo)
    mask = jnp.asarray(mask_np)
    pool = jnp.asarray(pool_np)

    # merged conv1a || conv1b (torch.cat order along Cout)
    w1 = jnp.concatenate([params["w1a"], params["w1b"]], axis=0)
    b1 = jnp.concatenate([params["b1a"], params["b1b"]], axis=0)
    w1_k, b1_k = _pack_conv(w1, b1, cin_pad)
    w2a_k, b2a_k = _pack_conv(params["w2a"], params["b2a"], 64)
    w2b_k, b2b_k = _pack_conv(params["w2b"], params["b2b"], 64)
    w3a_k, b3a_k = _pack_conv(params["w3a"], params["b3a"], 64)
    w3b_k, b3b_k = _pack_conv(params["w3b"], params["b3b"], 64)
    wfc_k = params["fc_w"].T.astype(jnp.bfloat16)            # [64, num_classes]
    bfc_k = _row(params["fc_b"])

    kernel = functools.partial(
        _fused_resnet_kernel,
        offsets=offsets, guard=guard, rows=rows,
        inv_count=1.0 / float(n * ho * wo))

    return pl.pallas_call(
        kernel,
        out_shape=jax.ShapeDtypeStruct((n, num_classes), jnp.float32),
        scratch_shapes=[pltpu.VMEM((guard + rows + guard, 64), jnp.float32)],
    )(
        x_flat, mask, pool,
        w1_k, b1_k, _row(params["bn1_g"]), _row(params["bn1_b"]),
        w2a_k, b2a_k, w2b_k, b2b_k, _row(params["bn2_g"]), _row(params["bn2_b"]),
        w3a_k, b3a_k, w3b_k, b3b_k,
        wfc_k, bfc_k,
    )


# ------------------------------ params / ref -------------------------------- #

def init_params(key, num_classes=9):
    """Parameters in torch layout (OIHW conv weights, [out,in] fc weight)."""
    ks = jax.random.split(key, 16)

    def conv_w(k, cout, cin):
        return 0.05 * jax.random.normal(k, (cout, cin, 3, 3), jnp.float32)

    def vec(k, c, s=0.01):
        return s * jax.random.normal(k, (c,), jnp.float32)

    return {
        "w1a": conv_w(ks[0], 32, 103), "b1a": vec(ks[1], 32),
        "w1b": conv_w(ks[2], 32, 103), "b1b": vec(ks[3], 32),
        "bn1_g": 1.0 + 0.1 * jax.random.normal(ks[4], (64,), jnp.float32),
        "bn1_b": 0.1 * jax.random.normal(ks[5], (64,), jnp.float32),
        "w2a": conv_w(ks[6], 64, 64), "b2a": vec(ks[7], 64),
        "w2b": conv_w(ks[8], 64, 64), "b2b": vec(ks[9], 64),
        "bn2_g": 1.0 + 0.1 * jax.random.normal(ks[10], (64,), jnp.float32),
        "bn2_b": 0.1 * jax.random.normal(ks[11], (64,), jnp.float32),
        "w3a": conv_w(ks[12], 64, 64), "b3a": vec(ks[13], 64),
        "w3b": conv_w(ks[14], 64, 64), "b3b": vec(ks[15], 64),
        "fc_w": 0.05 * jax.random.normal(ks[0], (num_classes, 64), jnp.float32),
        "fc_b": vec(ks[1], num_classes),
    }


def _reference_forward(x_nchw, params):
    """Pure-JAX (XLA conv) reference with identical semantics, for self-check."""
    dn = ("NCHW", "OIHW", "NCHW")
    hi = jax.lax.Precision.HIGHEST

    def conv(x, w, b, pad):
        y = jax.lax.conv_general_dilated(x, w, (1, 1), pad,
                                         dimension_numbers=dn, precision=hi)
        return y + b.reshape(1, -1, 1, 1)

    def bn_relu(x, g, b):
        m = jnp.mean(x, axis=(0, 2, 3), keepdims=True)
        v = jnp.mean(jnp.square(x - m), axis=(0, 2, 3), keepdims=True)
        y = (x - m) * jax.lax.rsqrt(v + 1e-3) * g.reshape(1, -1, 1, 1) \
            + b.reshape(1, -1, 1, 1)
        return jnp.maximum(y, 0.0)

    x = x_nchw.astype(jnp.float32)
    xa = conv(x, params["w1a"], params["b1a"], "VALID")
    xb = conv(x, params["w1b"], params["b1b"], "VALID")
    x1 = jnp.concatenate([xa, xb], axis=1)
    t = bn_relu(x1, params["bn1_g"], params["bn1_b"])
    t = jnp.maximum(conv(t, params["w2a"], params["b2a"], "SAME"), 0.0)
    x1 = x1 + conv(t, params["w2b"], params["b2b"], "SAME")
    t = bn_relu(x1, params["bn2_g"], params["bn2_b"])
    t = jnp.maximum(conv(t, params["w3a"], params["b3a"], "SAME"), 0.0)
    x1 = x1 + conv(t, params["w3b"], params["b3b"], "SAME")
    pooled = jnp.mean(x1, axis=(2, 3))
    return pooled @ params["fc_w"].T + params["fc_b"]


if __name__ == "__main__":
    key = jax.random.PRNGKey(0)
    k_x, k_p = jax.random.split(key)
    # Hyperspectral-style patch input: batch=2, 103 bands, 9x9 spatial (NCHW).
    x = jax.random.normal(k_x, (2, 103, 9, 9), jnp.float32)
    params = init_params(k_p, num_classes=9)

    out = jax.block_until_ready(resnet99_avg_forward(x, params))
    assert out.shape == (2, 9), out.shape
    assert bool(jnp.all(jnp.isfinite(out)))

    # Numerical self-check against the pure-JAX reference (kernel matmuls run
    # bf16 x bf16 -> f32, so allow a few percent).
    ref = jax.block_until_ready(_reference_forward(x, params))
    err = float(jnp.max(jnp.abs(out - ref)))
    assert bool(jnp.allclose(out, ref, rtol=5e-2, atol=5e-2)), ("max abs diff", err)
    print("KERNEL_OK")
</pallas_src>

<mosaic_0001>
module attributes {stable_mosaic.version = 11 : i64} {
  func.func @_fused_resnet_kernel(%arg0: memref<200x128xf32, #tpu.memory_space<vmem>>, %arg1: memref<168x1xf32, #tpu.memory_space<vmem>>, %arg2: memref<2x168xf32, #tpu.memory_space<vmem>>, %arg3: memref<1152x64xbf16, #tpu.memory_space<vmem>>, %arg4: memref<1x64xf32, #tpu.memory_space<vmem>>, %arg5: memref<1x64xf32, #tpu.memory_space<vmem>>, %arg6: memref<1x64xf32, #tpu.memory_space<vmem>>, %arg7: memref<576x64xbf16, #tpu.memory_space<vmem>>, %arg8: memref<1x64xf32, #tpu.memory_space<vmem>>, %arg9: memref<576x64xbf16, #tpu.memory_space<vmem>>, %arg10: memref<1x64xf32, #tpu.memory_space<vmem>>, %arg11: memref<1x64xf32, #tpu.memory_space<vmem>>, %arg12: memref<1x64xf32, #tpu.memory_space<vmem>>, %arg13: memref<576x64xbf16, #tpu.memory_space<vmem>>, %arg14: memref<1x64xf32, #tpu.memory_space<vmem>>, %arg15: memref<576x64xbf16, #tpu.memory_space<vmem>>, %arg16: memref<1x64xf32, #tpu.memory_space<vmem>>, %arg17: memref<64x9xbf16, #tpu.memory_space<vmem>>, %arg18: memref<1x9xf32, #tpu.memory_space<vmem>>, %arg19: memref<2x9xf32, #tpu.memory_space<vmem>>, %arg20: memref<200x64xf32, #tpu.memory_space<vmem>>) attributes {dimension_semantics = [], scalar_prefetch = 0 : i64, scratch_operands = 1 : i64, tpu.core_type = #tpu.core_type<tc>} {
    %c0 = arith.constant 0 : index
    %c0_0 = arith.constant 0 : index
    %0 = vector.load %arg1[%c0, %c0_0] : memref<168x1xf32, #tpu.memory_space<vmem>>, vector<168x1xf32>
    %cst = arith.constant 0.000000e+00 : f32
    %1 = vector.broadcast %cst : f32 to vector<200x64xf32>
    %c0_1 = arith.constant 0 : index
    %c0_2 = arith.constant 0 : index
    %2 = vector.load %arg20[%c0_1, %c0_2] : memref<200x64xf32, #tpu.memory_space<vmem>>, vector<200x64xf32>
    tpu.vector_store %arg20[%c0_1, %c0_2], %1 {strides = array<i32>} : memref<200x64xf32, #tpu.memory_space<vmem>>, vector<200x64xf32>,
    %c6 = arith.constant 6 : index
    %c0_3 = arith.constant 0 : index
    %3 = vector.load %arg0[%c6, %c0_3] : memref<200x128xf32, #tpu.memory_space<vmem>>, vector<168x128xf32>
    %c7 = arith.constant 7 : index
    %c0_4 = arith.constant 0 : index
    %4 = vector.load %arg0[%c7, %c0_4] : memref<200x128xf32, #tpu.memory_space<vmem>>, vector<168x128xf32>
    %c8 = arith.constant 8 : index
    %c0_5 = arith.constant 0 : index
    %5 = vector.load %arg0[%c8, %c0_5] : memref<200x128xf32, #tpu.memory_space<vmem>>, vector<168x128xf32>
    %c15 = arith.constant 15 : index
    %c0_6 = arith.constant 0 : index
    %6 = vector.load %arg0[%c15, %c0_6] : memref<200x128xf32, #tpu.memory_space<vmem>>, vector<168x128xf32>
    %c16 = arith.constant 16 : index
    %c0_7 = arith.constant 0 : index
    %7 = vector.load %arg0[%c16, %c0_7] : memref<200x128xf32, #tpu.memory_space<vmem>>, vector<168x128xf32>
    %c17 = arith.constant 17 : index
    %c0_8 = arith.constant 0 : index
    %8 = vector.load %arg0[%c17, %c0_8] : memref<200x128xf32, #tpu.memory_space<vmem>>, vector<168x128xf32>
    %c24 = arith.constant 24 : index
    %c0_9 = arith.constant 0 : index
    %9 = vector.load %arg0[%c24, %c0_9] : memref<200x128xf32, #tpu.memory_space<vmem>>, vector<168x128xf32>
    %c25 = arith.constant 25 : index
    %c0_10 = arith.constant 0 : index
    %10 = vector.load %arg0[%c25, %c0_10] : memref<200x128xf32, #tpu.memory_space<vmem>>, vector<168x128xf32>
    %c26 = arith.constant 26 : index
    %c0_11 = arith.constant 0 : index
    %11 = vector.load %arg0[%c26, %c0_11] : memref<200x128xf32, #tpu.memory_space<vmem>>, vector<168x128xf32>
    %12 = tpu.concatenate %3, %4, %5, %6, %7, %8, %9, %10, %11 in 1 : vector<168x128xf32>, vector<168x128xf32>, vector<168x128xf32>, vector<168x128xf32>, vector<168x128xf32>, vector<168x128xf32>, vector<168x128xf32>, vector<168x128xf32>, vector<168x128xf32> -> vector<168x1152xf32>
    %13 = arith.truncf %12 : vector<168x1152xf32> to vector<168x1152xbf16>
    %c0_12 = arith.constant 0 : index
    %c0_13 = arith.constant 0 : index
    %14 = vector.load %arg3[%c0_12, %c0_13] : memref<1152x64xbf16, #tpu.memory_space<vmem>>, vector<1152x64xbf16>
    %cst_14 = arith.constant dense<0.000000e+00> : vector<168x64xf32>
    %15 = tpu.matmul %13, %14, %cst_14 {dimension_numbers = #tpu.dot_dimension_numbers<[1], [0], [0], [1], [0, 0, 1, 1], [], []>} : vector<168x1152xbf16>, vector<1152x64xbf16>, vector<168x64xf32> -> vector<168x64xf32>
    %c0_15 = arith.constant 0 : index
    %c0_16 = arith.constant 0 : index
    %16 = vector.load %arg4[%c0_15, %c0_16] : memref<1x64xf32, #tpu.memory_space<vmem>>, vector<1x64xf32>
    %17 = vector.broadcast %16 : vector<1x64xf32> to vector<168x64xf32>
    %18 = arith.addf %15, %17 : vector<168x64xf32>
    %19 = vector.broadcast %0 : vector<168x1xf32> to vector<168x64xf32>
    %20 = arith.mulf %18, %19 : vector<168x64xf32>
    %cst_17 = arith.constant dense<0.000000e+00> : vector<64xf32>
    %21 = vector.multi_reduction <add>, %20, %cst_17 [0] : vector<168x64xf32> to vector<64xf32>
    %22 = vector.shape_cast %21 : vector<64xf32> to vector<1x64xf32>
    %23 = arith.mulf %20, %20 : vector<168x64xf32>
    %cst_18 = arith.constant dense<0.000000e+00> : vector<64xf32>
    %24 = vector.multi_reduction <add>, %23, %cst_18 [0] : vector<168x64xf32> to vector<64xf32>
    %25 = vector.shape_cast %24 : vector<64xf32> to vector<1x64xf32>
    %cst_19 = arith.constant 0.0102040814 : f32
    %26 = vector.broadcast %cst_19 : f32 to vector<1x64xf32>
    %27 = arith.mulf %22, %26 : vector<1x64xf32>
    %cst_20 = arith.constant 0.0102040814 : f32
    %28 = vector.broadcast %cst_20 : f32 to vector<1x64xf32>
    %29 = arith.mulf %25, %28 : vector<1x64xf32>
    %30 = arith.mulf %27, %27 : vector<1x64xf32>
    %31 = arith.subf %29, %30 : vector<1x64xf32>
    %c0_21 = arith.constant 0 : index
    %c0_22 = arith.constant 0 : index
    %32 = vector.load %arg5[%c0_21, %c0_22] : memref<1x64xf32, #tpu.memory_space<vmem>>, vector<1x64xf32>
    %cst_23 = arith.constant 1.000000e-03 : f32
    %33 = vector.broadcast %cst_23 : f32 to vector<1x64xf32>
    %34 = arith.addf %31, %33 : vector<1x64xf32>
    %35 = math.rsqrt %34 : vector<1x64xf32>
    %36 = arith.mulf %32, %35 : vector<1x64xf32>
    %c0_24 = arith.constant 0 : index
    %c0_25 = arith.constant 0 : index
    %37 = vector.load %arg6[%c0_24, %c0_25] : memref<1x64xf32, #tpu.memory_space<vmem>>, vector<1x64xf32>
    %38 = arith.mulf %27, %36 : vector<1x64xf32>
    %39 = arith.subf %37, %38 : vector<1x64xf32>
    %40 = vector.broadcast %36 : vector<1x64xf32> to vector<168x64xf32>
    %41 = arith.mulf %20, %40 : vector<168x64xf32>
    %42 = vector.broadcast %39 : vector<1x64xf32> to vector<168x64xf32>
    %43 = arith.addf %41, %42 : vector<168x64xf32>
    %cst_26 = arith.constant 0.000000e+00 : f32
    %44 = vector.broadcast %cst_26 : f32 to vector<168x64xf32>
    %45 = arith.maximumf %43, %44 : vector<168x64xf32>
    %46 = vector.broadcast %0 : vector<168x1xf32> to vector<168x64xf32>
    %47 = arith.mulf %45, %46 : vector<168x64xf32>
    %c16_27 = arith.constant 16 : index
    %c0_28 = arith.constant 0 : index
    %48 = vector.load %arg20[%c16_27, %c0_28] : memref<200x64xf32, #tpu.memory_space<vmem>>, vector<168x64xf32>
    tpu.vector_store %arg20[%c16_27, %c0_28], %47 {strides = array<i32>} : memref<200x64xf32, #tpu.memory_space<vmem>>, vector<168x64xf32>,
    %c6_29 = arith.constant 6 : index
    %c0_30 = arith.constant 0 : index
    %49 = vector.load %arg20[%c6_29, %c0_30] : memref<200x64xf32, #tpu.memory_space<vmem>>, vector<168x64xf32>
    %c7_31 = arith.constant 7 : index
    %c0_32 = arith.constant 0 : index
    %50 = vector.load %arg20[%c7_31, %c0_32] : memref<200x64xf32, #tpu.memory_space<vmem>>, vector<168x64xf32>
    %c8_33 = arith.constant 8 : index
    %c0_34 = arith.constant 0 : index
    %51 = vector.load %arg20[%c8_33, %c0_34] : memref<200x64xf32, #tpu.memory_space<vmem>>, vector<168x64xf32>
    %c15_35 = arith.constant 15 : index
    %c0_36 = arith.constant 0 : index
    %52 = vector.load %arg20[%c15_35, %c0_36] : memref<200x64xf32, #tpu.memory_space<vmem>>, vector<168x64xf32>
    %c16_37 = arith.constant 16 : index
    %c0_38 = arith.constant 0 : index
    %53 = vector.load %arg20[%c16_37, %c0_38] : memref<200x64xf32, #tpu.memory_space<vmem>>, vector<168x64xf32>
    %c17_39 = arith.constant 17 : index
    %c0_40 = arith.constant 0 : index
    %54 = vector.load %arg20[%c17_39, %c0_40] : memref<200x64xf32, #tpu.memory_space<vmem>>, vector<168x64xf32>
    %c24_41 = arith.constant 24 : index
    %c0_42 = arith.constant 0 : index
    %55 = vector.load %arg20[%c24_41, %c0_42] : memref<200x64xf32, #tpu.memory_space<vmem>>, vector<168x64xf32>
    %c25_43 = arith.constant 25 : index
    %c0_44 = arith.constant 0 : index
    %56 = vector.load %arg20[%c25_43, %c0_44] : memref<200x64xf32, #tpu.memory_space<vmem>>, vector<168x64xf32>
    %c26_45 = arith.constant 26 : index
    %c0_46 = arith.constant 0 : index
    %57 = vector.load %arg20[%c26_45, %c0_46] : memref<200x64xf32, #tpu.memory_space<vmem>>, vector<168x64xf32>
    %58 = tpu.concatenate %49, %50, %51, %52, %53, %54, %55, %56, %57 in 1 : vector<168x64xf32>, vector<168x64xf32>, vector<168x64xf32>, vector<168x64xf32>, vector<168x64xf32>, vector<168x64xf32>, vector<168x64xf32>, vector<168x64xf32>, vector<168x64xf32> -> vector<168x576xf32>
    %59 = arith.truncf %58 : vector<168x576xf32> to vector<168x576xbf16>
    %c0_47 = arith.constant 0 : index
    %c0_48 = arith.constant 0 : index
    %60 = vector.load %arg7[%c0_47, %c0_48] : memref<576x64xbf16, #tpu.memory_space<vmem>>, vector<576x64xbf16>
    %cst_49 = arith.constant dense<0.000000e+00> : vector<168x64xf32>
    %61 = tpu.matmul %59, %60, %cst_49 {dimension_numbers = #tpu.dot_dimension_numbers<[1], [0], [0], [1], [0, 0, 1, 1], [], []>} : vector<168x576xbf16>, vector<576x64xbf16>, vector<168x64xf32> -> vector<168x64xf32>
    %c0_50 = arith.constant 0 : index
    %c0_51 = arith.constant 0 : index
    %62 = vector.load %arg8[%c0_50, %c0_51] : memref<1x64xf32, #tpu.memory_space<vmem>>, vector<1x64xf32>
    %63 = vector.broadcast %62 : vector<1x64xf32> to vector<168x64xf32>
    %64 = arith.addf %61, %63 : vector<168x64xf32>
    %cst_52 = arith.constant 0.000000e+00 : f32
    %65 = vector.broadcast %cst_52 : f32 to vector<168x64xf32>
    %66 = arith.maximumf %64, %65 : vector<168x64xf32>
    %67 = vector.broadcast %0 : vector<168x1xf32> to vector<168x64xf32>
    %68 = arith.mulf %66, %67 : vector<168x64xf32>
    %c16_53 = arith.constant 16 : index
    %c0_54 = arith.constant 0 : index
    %69 = vector.load %arg20[%c16_53, %c0_54] : memref<200x64xf32, #tpu.memory_space<vmem>>, vector<168x64xf32>
    tpu.vector_store %arg20[%c16_53, %c0_54], %68 {strides = array<i32>} : memref<200x64xf32, #tpu.memory_space<vmem>>, vector<168x64xf32>,
    %c6_55 = arith.constant 6 : index
    %c0_56 = arith.constant 0 : index
    %70 = vector.load %arg20[%c6_55, %c0_56] : memref<200x64xf32, #tpu.memory_space<vmem>>, vector<168x64xf32>
    %c7_57 = arith.constant 7 : index
    %c0_58 = arith.constant 0 : index
    %71 = vector.load %arg20[%c7_57, %c0_58] : memref<200x64xf32, #tpu.memory_space<vmem>>, vector<168x64xf32>
    %c8_59 = arith.constant 8 : index
    %c0_60 = arith.constant 0 : index
    %72 = vector.load %arg20[%c8_59, %c0_60] : memref<200x64xf32, #tpu.memory_space<vmem>>, vector<168x64xf32>
    %c15_61 = arith.constant 15 : index
    %c0_62 = arith.constant 0 : index
    %73 = vector.load %arg20[%c15_61, %c0_62] : memref<200x64xf32, #tpu.memory_space<vmem>>, vector<168x64xf32>
    %c16_63 = arith.constant 16 : index
    %c0_64 = arith.constant 0 : index
    %74 = vector.load %arg20[%c16_63, %c0_64] : memref<200x64xf32, #tpu.memory_space<vmem>>, vector<168x64xf32>
    %c17_65 = arith.constant 17 : index
    %c0_66 = arith.constant 0 : index
    %75 = vector.load %arg20[%c17_65, %c0_66] : memref<200x64xf32, #tpu.memory_space<vmem>>, vector<168x64xf32>
    %c24_67 = arith.constant 24 : index
    %c0_68 = arith.constant 0 : index
    %76 = vector.load %arg20[%c24_67, %c0_68] : memref<200x64xf32, #tpu.memory_space<vmem>>, vector<168x64xf32>
    %c25_69 = arith.constant 25 : index
    %c0_70 = arith.constant 0 : index
    %77 = vector.load %arg20[%c25_69, %c0_70] : memref<200x64xf32, #tpu.memory_space<vmem>>, vector<168x64xf32>
    %c26_71 = arith.constant 26 : index
    %c0_72 = arith.constant 0 : index
    %78 = vector.load %arg20[%c26_71, %c0_72] : memref<200x64xf32, #tpu.memory_space<vmem>>, vector<168x64xf32>
    %79 = tpu.concatenate %70, %71, %72, %73, %74, %75, %76, %77, %78 in 1 : vector<168x64xf32>, vector<168x64xf32>, vector<168x64xf32>, vector<168x64xf32>, vector<168x64xf32>, vector<168x64xf32>, vector<168x64xf32>, vector<168x64xf32>, vector<168x64xf32> -> vector<168x576xf32>
    %80 = arith.truncf %79 : vector<168x576xf32> to vector<168x576xbf16>
    %c0_73 = arith.constant 0 : index
    %c0_74 = arith.constant 0 : index
    %81 = vector.load %arg9[%c0_73, %c0_74] : memref<576x64xbf16, #tpu.memory_space<vmem>>, vector<576x64xbf16>
    %cst_75 = arith.constant dense<0.000000e+00> : vector<168x64xf32>
    %82 = tpu.matmul %80, %81, %cst_75 {dimension_numbers = #tpu.dot_dimension_numbers<[1], [0], [0], [1], [0, 0, 1, 1], [], []>} : vector<168x576xbf16>, vector<576x64xbf16>, vector<168x64xf32> -> vector<168x64xf32>
    %c0_76 = arith.constant 0 : index
    %c0_77 = arith.constant 0 : index
    %83 = vector.load %arg10[%c0_76, %c0_77] : memref<1x64xf32, #tpu.memory_space<vmem>>, vector<1x64xf32>
    %84 = vector.broadcast %83 : vector<1x64xf32> to vector<168x64xf32>
    %85 = arith.addf %82, %84 : vector<168x64xf32>
    %86 = vector.broadcast %0 : vector<168x1xf32> to vector<168x64xf32>
    %87 = arith.mulf %85, %86 : vector<168x64xf32>
    %88 = arith.addf %20, %87 : vector<168x64xf32>
    %cst_78 = arith.constant dense<0.000000e+00> : vector<64xf32>
    %89 = vector.multi_reduction <add>, %88, %cst_78 [0] : vector<168x64xf32> to vector<64xf32>
    %90 = vector.shape_cast %89 : vector<64xf32> to vector<1x64xf32>
    %91 = arith.mulf %88, %88 : vector<168x64xf32>
    %cst_79 = arith.constant dense<0.000000e+00> : vector<64xf32>
    %92 = vector.multi_reduction <add>, %91, %cst_79 [0] : vector<168x64xf32> to vector<64xf32>
    %93 = vector.shape_cast %92 : vector<64xf32> to vector<1x64xf32>
    %cst_80 = arith.constant 0.0102040814 : f32
    %94 = vector.broadcast %cst_80 : f32 to vector<1x64xf32>
    %95 = arith.mulf %90, %94 : vector<1x64xf32>
    %cst_81 = arith.constant 0.0102040814 : f32
    %96 = vector.broadcast %cst_81 : f32 to vector<1x64xf32>
    %97 = arith.mulf %93, %96 : vector<1x64xf32>
    %98 = arith.mulf %95, %95 : vector<1x64xf32>
    %99 = arith.subf %97, %98 : vector<1x64xf32>
    %c0_82 = arith.constant 0 : index
    %c0_83 = arith.constant 0 : index
    %100 = vector.load %arg11[%c0_82, %c0_83] : memref<1x64xf32, #tpu.memory_space<vmem>>, vector<1x64xf32>
    %cst_84 = arith.constant 1.000000e-03 : f32
    %101 = vector.broadcast %cst_84 : f32 to vector<1x64xf32>
    %102 = arith.addf %99, %101 : vector<1x64xf32>
    %103 = math.rsqrt %102 : vector<1x64xf32>
    %104 = arith.mulf %100, %103 : vector<1x64xf32>
    %c0_85 = arith.constant 0 : index
    %c0_86 = arith.constant 0 : index
    %105 = vector.load %arg12[%c0_85, %c0_86] : memref<1x64xf32, #tpu.memory_space<vmem>>, vector<1x64xf32>
    %106 = arith.mulf %95, %104 : vector<1x64xf32>
    %107 = arith.subf %105, %106 : vector<1x64xf32>
    %108 = vector.broadcast %104 : vector<1x64xf32> to vector<168x64xf32>
    %109 = arith.mulf %88, %108 : vector<168x64xf32>
    %110 = vector.broadcast %107 : vector<1x64xf32> to vector<168x64xf32>
    %111 = arith.addf %109, %110 : vector<168x64xf32>
    %cst_87 = arith.constant 0.000000e+00 : f32
    %112 = vector.broadcast %cst_87 : f32 to vector<168x64xf32>
    %113 = arith.maximumf %111, %112 : vector<168x64xf32>
    %114 = vector.broadcast %0 : vector<168x1xf32> to vector<168x64xf32>
    %115 = arith.mulf %113, %114 : vector<168x64xf32>
    %c16_88 = arith.constant 16 : index
    %c0_89 = arith.constant 0 : index
    %116 = vector.load %arg20[%c16_88, %c0_89] : memref<200x64xf32, #tpu.memory_space<vmem>>, vector<168x64xf32>
    tpu.vector_store %arg20[%c16_88, %c0_89], %115 {strides = array<i32>} : memref<200x64xf32, #tpu.memory_space<vmem>>, vector<168x64xf32>,
    %c6_90 = arith.constant 6 : index
    %c0_91 = arith.constant 0 : index
    %117 = vector.load %arg20[%c6_90, %c0_91] : memref<200x64xf32, #tpu.memory_space<vmem>>, vector<168x64xf32>
    %c7_92 = arith.constant 7 : index
    %c0_93 = arith.constant 0 : index
    %118 = vector.load %arg20[%c7_92, %c0_93] : memref<200x64xf32, #tpu.memory_space<vmem>>, vector<168x64xf32>
    %c8_94 = arith.constant 8 : index
    %c0_95 = arith.constant 0 : index
    %119 = vector.load %arg20[%c8_94, %c0_95] : memref<200x64xf32, #tpu.memory_space<vmem>>, vector<168x64xf32>
    %c15_96 = arith.constant 15 : index
    %c0_97 = arith.constant 0 : index
    %120 = vector.load %arg20[%c15_96, %c0_97] : memref<200x64xf32, #tpu.memory_space<vmem>>, vector<168x64xf32>
    %c16_98 = arith.constant 16 : index
    %c0_99 = arith.constant 0 : index
    %121 = vector.load %arg20[%c16_98, %c0_99] : memref<200x64xf32, #tpu.memory_space<vmem>>, vector<168x64xf32>
    %c17_100 = arith.constant 17 : index
    %c0_101 = arith.constant 0 : index
    %122 = vector.load %arg20[%c17_100, %c0_101] : memref<200x64xf32, #tpu.memory_space<vmem>>, vector<168x64xf32>
    %c24_102 = arith.constant 24 : index
    %c0_103 = arith.constant 0 : index
    %123 = vector.load %arg20[%c24_102, %c0_103] : memref<200x64xf32, #tpu.memory_space<vmem>>, vector<168x64xf32>
    %c25_104 = arith.constant 25 : index
    %c0_105 = arith.constant 0 : index
    %124 = vector.load %arg20[%c25_104, %c0_105] : memref<200x64xf32, #tpu.memory_space<vmem>>, vector<168x64xf32>
    %c26_106 = arith.constant 26 : index
    %c0_107 = arith.constant 0 : index
    %125 = vector.load %arg20[%c26_106, %c0_107] : memref<200x64xf32, #tpu.memory_space<vmem>>, vector<168x64xf32>
    %126 = tpu.concatenate %117, %118, %119, %120, %121, %122, %123, %124, %125 in 1 : vector<168x64xf32>, vector<168x64xf32>, vector<168x64xf32>, vector<168x64xf32>, vector<168x64xf32>, vector<168x64xf32>, vector<168x64xf32>, vector<168x64xf32>, vector<168x64xf32> -> vector<168x576xf32>
    %127 = arith.truncf %126 : vector<168x576xf32> to vector<168x576xbf16>
    %c0_108 = arith.constant 0 : index
    %c0_109 = arith.constant 0 : index
    %128 = vector.load %arg13[%c0_108, %c0_109] : memref<576x64xbf16, #tpu.memory_space<vmem>>, vector<576x64xbf16>
    %cst_110 = arith.constant dense<0.000000e+00> : vector<168x64xf32>
    %129 = tpu.matmul %127, %128, %cst_110 {dimension_numbers = #tpu.dot_dimension_numbers<[1], [0], [0], [1], [0, 0, 1, 1], [], []>} : vector<168x576xbf16>, vector<576x64xbf16>, vector<168x64xf32> -> vector<168x64xf32>
    %c0_111 = arith.constant 0 : index
    %c0_112 = arith.constant 0 : index
    %130 = vector.load %arg14[%c0_111, %c0_112] : memref<1x64xf32, #tpu.memory_space<vmem>>, vector<1x64xf32>
    %131 = vector.broadcast %130 : vector<1x64xf32> to vector<168x64xf32>
    %132 = arith.addf %129, %131 : vector<168x64xf32>
    %cst_113 = arith.constant 0.000000e+00 : f32
    %133 = vector.broadcast %cst_113 : f32 to vector<168x64xf32>
    %134 = arith.maximumf %132, %133 : vector<168x64xf32>
    %135 = vector.broadcast %0 : vector<168x1xf32> to vector<168x64xf32>
    %136 = arith.mulf %134, %135 : vector<168x64xf32>
    %c16_114 = arith.constant 16 : index
    %c0_115 = arith.constant 0 : index
    %137 = vector.load %arg20[%c16_114, %c0_115] : memref<200x64xf32, #tpu.memory_space<vmem>>, vector<168x64xf32>
    tpu.vector_store %arg20[%c16_114, %c0_115], %136 {strides = array<i32>} : memref<200x64xf32, #tpu.memory_space<vmem>>, vector<168x64xf32>,
    %c6_116 = arith.constant 6 : index
    %c0_117 = arith.constant 0 : index
    %138 = vector.load %arg20[%c6_116, %c0_117] : memref<200x64xf32, #tpu.memory_space<vmem>>, vector<168x64xf32>
    %c7_118 = arith.constant 7 : index
    %c0_119 = arith.constant 0 : index
    %139 = vector.load %arg20[%c7_118, %c0_119] : memref<200x64xf32, #tpu.memory_space<vmem>>, vector<168x64xf32>
    %c8_120 = arith.constant 8 : index
    %c0_121 = arith.constant 0 : index
    %140 = vector.load %arg20[%c8_120, %c0_121] : memref<200x64xf32, #tpu.memory_space<vmem>>, vector<168x64xf32>
    %c15_122 = arith.constant 15 : index
    %c0_123 = arith.constant 0 : index
    %141 = vector.load %arg20[%c15_122, %c0_123] : memref<200x64xf32, #tpu.memory_space<vmem>>, vector<168x64xf32>
    %c16_124 = arith.constant 16 : index
    %c0_125 = arith.constant 0 : index
    %142 = vector.load %arg20[%c16_124, %c0_125] : memref<200x64xf32, #tpu.memory_space<vmem>>, vector<168x64xf32>
    %c17_126 = arith.constant 17 : index
    %c0_127 = arith.constant 0 : index
    %143 = vector.load %arg20[%c17_126, %c0_127] : memref<200x64xf32, #tpu.memory_space<vmem>>, vector<168x64xf32>
    %c24_128 = arith.constant 24 : index
    %c0_129 = arith.constant 0 : index
    %144 = vector.load %arg20[%c24_128, %c0_129] : memref<200x64xf32, #tpu.memory_space<vmem>>, vector<168x64xf32>
    %c25_130 = arith.constant 25 : index
    %c0_131 = arith.constant 0 : index
    %145 = vector.load %arg20[%c25_130, %c0_131] : memref<200x64xf32, #tpu.memory_space<vmem>>, vector<168x64xf32>
    %c26_132 = arith.constant 26 : index
    %c0_133 = arith.constant 0 : index
    %146 = vector.load %arg20[%c26_132, %c0_133] : memref<200x64xf32, #tpu.memory_space<vmem>>, vector<168x64xf32>
    %147 = tpu.concatenate %138, %139, %140, %141, %142, %143, %144, %145, %146 in 1 : vector<168x64xf32>, vector<168x64xf32>, vector<168x64xf32>, vector<168x64xf32>, vector<168x64xf32>, vector<168x64xf32>, vector<168x64xf32>, vector<168x64xf32>, vector<168x64xf32> -> vector<168x576xf32>
    %148 = arith.truncf %147 : vector<168x576xf32> to vector<168x576xbf16>
    %c0_134 = arith.constant 0 : index
    %c0_135 = arith.constant 0 : index
    %149 = vector.load %arg15[%c0_134, %c0_135] : memref<576x64xbf16, #tpu.memory_space<vmem>>, vector<576x64xbf16>
    %cst_136 = arith.constant dense<0.000000e+00> : vector<168x64xf32>
    %150 = tpu.matmul %148, %149, %cst_136 {dimension_numbers = #tpu.dot_dimension_numbers<[1], [0], [0], [1], [0, 0, 1, 1], [], []>} : vector<168x576xbf16>, vector<576x64xbf16>, vector<168x64xf32> -> vector<168x64xf32>
    %c0_137 = arith.constant 0 : index
    %c0_138 = arith.constant 0 : index
    %151 = vector.load %arg16[%c0_137, %c0_138] : memref<1x64xf32, #tpu.memory_space<vmem>>, vector<1x64xf32>
    %152 = vector.broadcast %151 : vector<1x64xf32> to vector<168x64xf32>
    %153 = arith.addf %150, %152 : vector<168x64xf32>
    %154 = vector.broadcast %0 : vector<168x1xf32> to vector<168x64xf32>
    %155 = arith.mulf %153, %154 : vector<168x64xf32>
    %156 = arith.addf %88, %155 : vector<168x64xf32>
    %c0_139 = arith.constant 0 : index
    %c0_140 = arith.constant 0 : index
    %157 = vector.load %arg2[%c0_139, %c0_140] : memref<2x168xf32, #tpu.memory_space<vmem>>, vector<2x168xf32>
    %cst_141 = arith.constant dense<0.000000e+00> : vector<2x64xf32>
    %158 = tpu.matmul %157, %156, %cst_141 {dimension_numbers = #tpu.dot_dimension_numbers<[1], [0], [0], [1], [0, 0, 1, 1], [], []>} : vector<2x168xf32>, vector<168x64xf32>, vector<2x64xf32> -> vector<2x64xf32>
    %159 = arith.truncf %158 : vector<2x64xf32> to vector<2x64xbf16>
    %c0_142 = arith.constant 0 : index
    %c0_143 = arith.constant 0 : index
    %160 = vector.load %arg17[%c0_142, %c0_143] : memref<64x9xbf16, #tpu.memory_space<vmem>>, vector<64x9xbf16>
    %cst_144 = arith.constant dense<0.000000e+00> : vector<2x9xf32>
    %161 = tpu.matmul %159, %160, %cst_144 {dimension_numbers = #tpu.dot_dimension_numbers<[1], [0], [0], [1], [0, 0, 1, 1], [], []>} : vector<2x64xbf16>, vector<64x9xbf16>, vector<2x9xf32> -> vector<2x9xf32>
    %c0_145 = arith.constant 0 : index
    %c0_146 = arith.constant 0 : index
    %162 = vector.load %arg18[%c0_145, %c0_146] : memref<1x9xf32, #tpu.memory_space<vmem>>, vector<1x9xf32>
    %163 = vector.broadcast %162 : vector<1x9xf32> to vector<2x9xf32>
    %164 = arith.addf %161, %163 : vector<2x9xf32>
    %c0_147 = arith.constant 0 : index
    %c0_148 = arith.constant 0 : index
    %165 = vector.load %arg19[%c0_147, %c0_148] : memref<2x9xf32, #tpu.memory_space<vmem>>, vector<2x9xf32>
    tpu.vector_store %arg19[%c0_147, %c0_148], %164 {strides = array<i32>} : memref<2x9xf32, #tpu.memory_space<vmem>>, vector<2x9xf32>,
    return
  }
}

</mosaic_0001>

<bundles_post_ra>
// kernel: resnet99_avg_forward.1
= control target key start
LH: loop header
LB: loop body
LE: loop exit
PB: predicated region body
PF: predicated region fallthrough
CT: control target
= control target key end

     0   :  { %s12255_s0 = inlined_call_operand.vmem [shape: f32[200,128], index: 0, kind: input, shape index: {}]   ;;  %s12256_s1 = inlined_call_operand.vmem [shape: f32[168,1], index: 1, kind: input, shape index: {}]   ;;  %s12257_s2 = inlined_call_operand.vmem [shape: f32[2,168], index: 2, kind: input, shape index: {}]   ;;  %s12258_s3 = inlined_call_operand.vmem [shape: bf16[1152,64], index: 3, kind: input, shape index: {}]   ;;  %s12259_s4 = inlined_call_operand.vmem [shape: f32[1,64], index: 4, kind: input, shape index: {}]   ;;  %s12260_s5 = inlined_call_operand.vmem [shape: f32[1,64], index: 5, kind: input, shape index: {}]   ;;  %s12261_s6 = inlined_call_operand.vmem [shape: f32[1,64], index: 6, kind: input, shape index: {}]   ;;  %s12262_s7 = inlined_call_operand.vmem [shape: bf16[576,64], index: 7, kind: input, shape index: {}]   ;;  %s12263_s8 = inlined_call_operand.vmem [shape: f32[1,64], index: 8, kind: input, shape index: {}]   ;;  %s12264_s9 = inlined_call_operand.vmem [shape: bf16[576,64], index: 9, kind: input, shape index: {}]   ;;  %s12265_s10 = inlined_call_operand.vmem [shape: f32[1,64], index: 10, kind: input, shape index: {}]   ;;  %s12266_s11 = inlined_call_operand.vmem [shape: f32[1,64], index: 11, kind: input, shape index: {}]   ;;  %s12267_s12 = inlined_call_operand.vmem [shape: f32[1,64], index: 12, kind: input, shape index: {}]   ;;  %s12268_s13 = inlined_call_operand.vmem [shape: bf16[576,64], index: 13, kind: input, shape index: {}]   ;;  %s12269_s14 = inlined_call_operand.vmem [shape: f32[1,64], index: 14, kind: input, shape index: {}]   ;;  %s12270_s15 = inlined_call_operand.vmem [shape: bf16[576,64], index: 15, kind: input, shape index: {}]   ;;  %s12271_s16 = inlined_call_operand.vmem [shape: f32[1,64], index: 16, kind: input, shape index: {}]   ;;  %s12272_s17 = inlined_call_operand.vmem [shape: bf16[64,9], index: 17, kind: input, shape index: {}]   ;;  %s12273_s18 = inlined_call_operand.vmem [shape: f32[1,9], index: 18, kind: input, shape index: {}]   ;;  %s12274_s19 = inlined_call_operand.hbm [shape: f32[2,9], index: 19, kind: output, shape index: {}]  }
   0x1   :  { %12380 = sst [smem:[#allocation57_spill]] %s12255_s0 }
   0x2   :  { %12381 = sst [smem:[#allocation58_spill]] %s12256_s1 }
   0x3   :  { %12382 = sst [smem:[#allocation59_spill]] %s12257_s2 }
   0x4   :  { %12383 = sst [smem:[#allocation60_spill]] %s12258_s3 }
   0x5   :  { %s12384_s20 = sld [smem:[#allocation60_spill]] }
   0xb   :  { %v7514_v0 = vld [vmem:[%s12384_s20 + $0x38] sm:$0xff]  ;;  %v7513_v1 = vld [vmem:[%s12384_s20 + $0x30] sm:$0xff]  ;;  %v7512_v2 = vld [vmem:[%s12384_s20 + $0x28] sm:$0xff] }
   0xc   :  { %890 = vmatpush.bf16.msra.mxu0 %v7514_v0  ;;  %7727 = vmatpush.bf16.msra.mxu1 %v7514_v0 }
   0xd   :  { %7728 = vmatpush.bf16.msra.mxu2 %v7514_v0  ;;  %7729 = vmatpush.bf16.msra.mxu3 %v7514_v0 }
  0x10   :  { %891 = vmatpush.bf16.msra.mxu0 %v7513_v1  ;;  %7730 = vmatpush.bf16.msra.mxu1 %v7513_v1 }
  0x11   :  { %7731 = vmatpush.bf16.msra.mxu2 %v7513_v1  ;;  %7732 = vmatpush.bf16.msra.mxu3 %v7513_v1 }
  0x12   :  { %24 = vsyncpa [#allocation4], 0  ;;  %v7511_v3 = vld [vmem:[%s12384_s20 + $0x20] sm:$0xff]  ;;  %v7510_v4 = vld [vmem:[%s12384_s20 + $0x18] sm:$0xff]  ;;  %s12385_s22 = sld [smem:[#allocation57_spill]]  ;;  %vm85_vm0 = vcmask 523264  }
  0x13   :  { %v7509_v5 = vld [vmem:[%s12384_s20 + $0x10] sm:$0xff]  ;;  %v7508_v6 = vld [vmem:[%s12384_s20 + $0x8] sm:$0xff]  ;;  %v7507_v7 = vld [vmem:[%s12384_s20] sm:$0xff]  ;;  %s12386_s3 = sld [smem:[#allocation58_spill]]  ;;  %vm6467_vm7 = vcmask 326656   ;;  %vm6563_vm8 = vcmask 66560  }
  0x14   :  { %892 = vmatpush.bf16.msra.mxu0 %v7512_v2  ;;  %7733 = vmatpush.bf16.msra.mxu1 %v7512_v2  ;;  %v7530_v16 = vld [vmem:[%s12384_s20 + $0xb8] sm:$0xff]  ;;  %v7529_v23 = vld [vmem:[%s12384_s20 + $0xb0] sm:$0xff]  ;;  %v7528_v28 = vld [vmem:[%s12384_s20 + $0xa8] sm:$0xff] }
  0x15   :  { %7734 = vmatpush.bf16.msra.mxu2 %v7512_v2  ;;  %7735 = vmatpush.bf16.msra.mxu3 %v7512_v2  ;;  %v7538_v17 = vld [vmem:[%s12384_s20 + $0xf8] sm:$0xff]  ;;  %v7537_v24 = vld [vmem:[%s12384_s20 + $0xf0] sm:$0xff]  ;;  %v7536_v29 = vld [vmem:[%s12384_s20 + $0xe8] sm:$0xff] }
  0x16   :  { %v7522_v22 = vld [vmem:[%s12384_s20 + $0x78] sm:$0xff]  ;;  %v7521_v26 = vld [vmem:[%s12384_s20 + $0x70] sm:$0xff]  ;;  %v7520_v30 = vld [vmem:[%s12384_s20 + $0x68] sm:$0xff] }
  0x17   :  { %v7546_v25 = vld [vmem:[%s12384_s20 + $0x138] sm:$0xff]  ;;  %v7545_v27 = vld [vmem:[%s12384_s20 + $0x130] sm:$0xff]  ;;  %v7544_v31 = vld [vmem:[%s12384_s20 + $0x128] sm:$0xff] }
  0x18   :  { %893 = vmatpush.bf16.msra.mxu0 %v7511_v3  ;;  %7736 = vmatpush.bf16.msra.mxu1 %v7511_v3  ;;  %v111_v8 = vld [vmem:[%s12385_s22 + $0x6] sm:$0xff]  ;;  %v112_v9 = vld [vmem:[%s12385_s22 + $0xe] sm:$0xff]  ;;  %v125_v12 = vld [vmem:[%s12385_s22 + $0x76] sm:$0xff] }
  0x19   :  { %7737 = vmatpush.bf16.msra.mxu2 %v7511_v3  ;;  %7738 = vmatpush.bf16.msra.mxu3 %v7511_v3  ;;  %v119_v10 = vld [vmem:[%s12385_s22 + $0x46] sm:$0xff]  ;;  %v120_v11 = vld [vmem:[%s12385_s22 + $0x4e] sm:$0xff]  ;;  %v126_v13 = vld [vmem:[%s12385_s22 + $0x7e] sm:$0xff]  ;;  %v220_v18 = vpack.c.bf16 %v112_v9, %v111_v8 }
  0x1a   :  { %v129_v14 = vld [vmem:[%s12385_s22 + $0x96] sm:$0xff]  ;;  %v130_v15 = vld [vmem:[%s12385_s22 + $0x9e] sm:$0xff]  ;;  %v253_v19 = vpack.c.bf16 %v120_v11, %v119_v10  ;;  %v277_v20 = vpack.c.bf16 %v126_v13, %v125_v12  ;;  %v127_v38 = vld [vmem:[%s12385_s22 + $0x86] sm:$0xff] }
  0x1b   :  { %v293_v21 = vpack.c.bf16 %v130_v15, %v129_v14  ;;  %v7527_v32 = vld [vmem:[%s12384_s20 + $0xa0] sm:$0xff]  ;;  %v113_v34 = vld [vmem:[%s12385_s22 + $0x16] sm:$0xff]  ;;  %v128_v39 = vld [vmem:[%s12385_s22 + $0x8e] sm:$0xff] }
  0x1c   :  { %894 = vmatpush.bf16.msra.mxu0 %v7510_v4  ;;  %7739 = vmatpush.bf16.msra.mxu1 %v7510_v4  ;;  %v7535_v33 = vld [vmem:[%s12384_s20 + $0xe0] sm:$0xff]  ;;  %v121_v36 = vld [vmem:[%s12385_s22 + $0x56] sm:$0xff]  ;;  %v285_v47 = vpack.c.bf16 %v128_v39, %v127_v38  ;;  %v7524_v55 = vld [vmem:[%s12384_s20 + $0x88] sm:$0xff] }
  0x1d   :  { %7740 = vmatpush.bf16.msra.mxu2 %v7510_v4  ;;  %7741 = vmatpush.bf16.msra.mxu3 %v7510_v4  ;;  %v114_v35 = vld [vmem:[%s12385_s22 + $0x1e] sm:$0xff]  ;;  %v131_v41 = vld [vmem:[%s12385_s22 + $0xa6] sm:$0xff]  ;;  %v7525_v50 = vld [vmem:[%s12384_s20 + $0x90] sm:$0xff] }
  0x1e   :  { %v122_v37 = vld [vmem:[%s12385_s22 + $0x5e] sm:$0xff]  ;;  %v229_v45 = vpack.c.bf16 %v114_v35, %v113_v34  ;;  %v301_v48 = vpack.c.bf16 %v131_v41, %v131_v41  ;;  %v7533_v51 = vld [vmem:[%s12384_s20 + $0xd0] sm:$0xff]  ;;  %v7532_v56 = vld [vmem:[%s12384_s20 + $0xc8] sm:$0xff] }
  0x1f   :  { %v7519_v40 = vld [vmem:[%s12384_s20 + $0x60] sm:$0xff]  ;;  %v7526_v43 = vld [vmem:[%s12384_s20 + $0x98] sm:$0xff]  ;;  %v261_v46 = vpack.c.bf16 %v122_v37, %v121_v36  ;;  %v7517_v53 = vld [vmem:[%s12384_s20 + $0x50] sm:$0xff] }
  0x20   :  { %895 = vmatpush.bf16.msra.mxu0 %v7509_v5  ;;  %7742 = vmatpush.bf16.msra.mxu1 %v7509_v5  ;;  %v7543_v42 = vld [vmem:[%s12384_s20 + $0x120] sm:$0xff]  ;;  %v7534_v44 = vld [vmem:[%s12384_s20 + $0xd8] sm:$0xff]  ;;  %v7541_v54 = vld [vmem:[%s12384_s20 + $0x110] sm:$0xff] }
  0x21   :  { %7743 = vmatpush.bf16.msra.mxu2 %v7509_v5  ;;  %7744 = vmatpush.bf16.msra.mxu3 %v7509_v5  ;;  %v7518_v49 = vld [vmem:[%s12384_s20 + $0x58] sm:$0xff]  ;;  %v7516_v57 = vld [vmem:[%s12384_s20 + $0x48] sm:$0xff]  ;;  %v7523_v60 = vld [vmem:[%s12384_s20 + $0x80] sm:$0xff] }
  0x22   :  { %v7542_v52 = vld [vmem:[%s12384_s20 + $0x118] sm:$0xff]  ;;  %v7540_v58 = vld [vmem:[%s12384_s20 + $0x108] sm:$0xff]  ;;  %v7531_v61 = vld [vmem:[%s12384_s20 + $0xc0] sm:$0xff] }
  0x23   :  { %v115_v59 = vld [vmem:[%s12385_s22 + $0x26] sm:$0xff]  ;;  %v116_v62 = vld [vmem:[%s12385_s22 + $0x2e] sm:$0xff]  ;;  %v134_v5 = vld [vmem:[%s12385_s22 + $0x17] sm:$0xff] }
  0x24   :  { %896 = vmatpush.bf16.msra.mxu0 %v7508_v6  ;;  %7745 = vmatpush.bf16.msra.mxu1 %v7508_v6  ;;  %v123_v63 = vld [vmem:[%s12385_s22 + $0x66] sm:$0xff]  ;;  %v124_v0 = vld [vmem:[%s12385_s22 + $0x6e] sm:$0xff]  ;;  %v117_v11 = vld [vmem:[%s12385_s22 + $0x36] sm:$0xff] }
  0x25   :  { %7746 = vmatpush.bf16.msra.mxu2 %v7508_v6  ;;  %7747 = vmatpush.bf16.msra.mxu3 %v7508_v6  ;;  %v153_v1 = vld [vmem:[%s12385_s22 + $0x8] sm:$0xff]  ;;  %v154_v2 = vld [vmem:[%s12385_s22 + $0x10] sm:$0xff]  ;;  %v7515_v3 = vld [vmem:[%s12384_s20 + $0x40] sm:$0xff]  ;;  %v269_v8 = vpack.c.bf16 %v124_v0, %v123_v63 }
  0x26   :  { %v133_v4 = vld [vmem:[%s12385_s22 + $0xf] sm:$0xff]  ;;  %v7539_v6 = vld [vmem:[%s12384_s20 + $0x100] sm:$0xff]  ;;  %v222_v9 = vpack.c.bf16 %v154_v2, %v153_v1  ;;  %v155_v14 = vld [vmem:[%s12385_s22 + $0x18] sm:$0xff] }
  0x27   :  { %v223_v10 = vpack.c.bf16 %v134_v5, %v133_v4  ;;  %v118_v12 = vld [vmem:[%s12385_s22 + $0x3e] sm:$0xff]  ;;  %v132_v13 = vld [vmem:[%s12385_s22 + $0x7] sm:$0xff]  ;;  %v162_v39 = vld [vmem:[%s12385_s22 + $0x50] sm:$0xff] }
  0x28   :  { %897 = vmatpush.bf16.msra.mxu0 %v7507_v7  ;;  %7748 = vmatpush.bf16.msra.mxu1 %v7507_v7  ;;  %v156_v15 = vld [vmem:[%s12385_s22 + $0x20] sm:$0xff]  ;;  %v161_v38 = vld [vmem:[%s12385_s22 + $0x48] sm:$0xff]  ;;  %v142_v41 = vld [vmem:[%s12385_s22 + $0x57] sm:$0xff] }
  0x29   :  { %7749 = vmatpush.bf16.msra.mxu2 %v7507_v7  ;;  %7750 = vmatpush.bf16.msra.mxu3 %v7507_v7  ;;  %v237_v7 = vpack.c.bf16 %v116_v62, %v115_v59 }
  0x2b   :  { %898 = vmatmul.bf16.vlgmr.msra.gmra.mxu0 %v220_v18  ;;  %918 = vmatmul.bf16.vlgmr.msra.gmra.mxu1 %v253_v19  ;;  %v245_v18 = vpack.c.bf16 %v118_v12, %v117_v11  ;;  %v221_v19 = vpack.c.bf16 %v133_v4, %v132_v13  ;;  %v167_v4 = vld [vmem:[%s12385_s22 + $0x78] sm:$0xff] }
  0x2c   :  { %933 = vmatmul.bf16.vlgmr.msra.gmra.mxu2 %v277_v20  ;;  %943 = vmatmul.bf16.vlgmr.msra.gmra.mxu3 %v293_v21  ;;  %v8473_v20 = vpack.c.bf16 %v156_v15, %v155_v14 }
  0x2d   :  { %1016 = vmatpush.bf16.msrb.mxu2 %v7530_v16  ;;  %1079 = vmatpush.bf16.msrb.mxu3 %v7538_v17  ;;  %v135_v16 = vld [vmem:[%s12385_s22 + $0x1f] sm:$0xff]  ;;  %v136_v17 = vld [vmem:[%s12385_s22 + $0x27] sm:$0xff] }
  0x2e   :  { %953 = vmatpush.bf16.msrb.mxu1 %v7522_v22  ;;  %1142 = vmatpush.bf16.msrb.mxu0 %v7546_v25  ;;  %v231_v21 = vpack.c.bf16 %v136_v17, %v135_v16  ;;  %v157_v22 = vld [vmem:[%s12385_s22 + $0x28] sm:$0xff]  ;;  %v138_v25 = vld [vmem:[%s12385_s22 + $0x37] sm:$0xff] }
  0x2f   :  { %v232_v35 = vpack.c.bf16 %v157_v22, %v156_v15 }
  0x31   :  { %1017 = vmatpush.bf16.msrb.mxu2 %v7529_v23  ;;  %1080 = vmatpush.bf16.msrb.mxu3 %v7537_v24  ;;  %v158_v23 = vld [vmem:[%s12385_s22 + $0x30] sm:$0xff] }
  0x32   :  { %954 = vmatpush.bf16.msrb.mxu1 %v7521_v26  ;;  %1143 = vmatpush.bf16.msrb.mxu0 %v7545_v27  ;;  %v137_v24 = vld [vmem:[%s12385_s22 + $0x2f] sm:$0xff]  ;;  %v224_v26 = vpack.c.bf16 %v155_v14, %v154_v2  ;;  %v230_v27 = vpack.c.bf16 %v135_v16, %v134_v5  ;;  %v8569_v5 = vld [vmem:[%s12385_s22 + $0x80] sm:$0xff] }
  0x33   :  { %v238_v34 = vpack.c.bf16 %v137_v24, %v136_v17  ;;  %v8588_v14 = vpack.c.bf16 %v8569_v5, %v167_v4 }
  0x35   :  { %1018 = vmatpush.bf16.msrb.mxu2 %v7528_v28  ;;  %1081 = vmatpush.bf16.msrb.mxu3 %v7536_v29  ;;  %v8488_v28 = vpack.c.bf16 %v158_v23, %v157_v22  ;;  %v239_v29 = vpack.c.bf16 %v138_v25, %v137_v24  ;;  %v8608_v22 = vld [vmem:[%s12385_s22 + $0x90] sm:$0xff] }
  0x36   :  { %955 = vmatpush.bf16.msrb.mxu1 %v7520_v30  ;;  %1144 = vmatpush.bf16.msrb.mxu0 %v7544_v31  ;;  %v159_v30 = vld [vmem:[%s12385_s22 + $0x38] sm:$0xff]  ;;  %v160_v31 = vld [vmem:[%s12385_s22 + $0x40] sm:$0xff] }
  0x37   :  { %v8503_v36 = vpack.c.bf16 %v160_v31, %v159_v30  ;;  %v8618_v24 = vld [vmem:[%s12385_s22 + $0x97] sm:$0xff] }
  0x39   :  { %1019 = vmatpush.bf16.msrb.mxu2 %v7527_v32  ;;  %1082 = vmatpush.bf16.msrb.mxu3 %v7535_v33  ;;  %v139_v32 = vld [vmem:[%s12385_s22 + $0x3f] sm:$0xff]  ;;  %v140_v33 = vld [vmem:[%s12385_s22 + $0x47] sm:$0xff] }
  0x3a   :  { %956 = vmatpush.bf16.msrb.mxu1 %v7519_v40  ;;  %1145 = vmatpush.bf16.msrb.mxu0 %v7543_v42  ;;  %v247_v37 = vpack.c.bf16 %v140_v33, %v139_v32  ;;  %v141_v40 = vld [vmem:[%s12385_s22 + $0x4f] sm:$0xff]  ;;  %v246_v42 = vpack.c.bf16 %v139_v32, %v138_v25  ;;  %v7562_v25 = vld [vmem:[%s12384_s20 + $0x1b8] sm:$0xff] }
  0x3b   :  { %903 = vmatmul.bf16.gmra.mxu0 %v229_v45  ;;  %923 = vmatmul.bf16.gmra.mxu1 %v261_v46  ;;  %v255_v45 = vpack.c.bf16 %v142_v41, %v141_v40  ;;  %v163_v46 = vld [vmem:[%s12385_s22 + $0x58] sm:$0xff] }
  0x3c   :  { %938 = vmatmul.bf16.gmra.mxu2 %v285_v47  ;;  %948 = vmatmul.bf16.gmra.mxu3 %v301_v48  ;;  %v164_v47 = vld [vmem:[%s12385_s22 + $0x60] sm:$0xff]  ;;  %v256_v59 = vpack.c.bf16 %v163_v46, %v162_v39 }
  0x3d   :  { %1020 = vmatpush.bf16.msrb.mxu2 %v7526_v43  ;;  %1083 = vmatpush.bf16.msrb.mxu3 %v7534_v44  ;;  %v240_v43 = vpack.c.bf16 %v159_v30, %v158_v23  ;;  %v8518_v44 = vpack.c.bf16 %v162_v39, %v161_v38  ;;  %v143_v48 = vld [vmem:[%s12385_s22 + $0x5f] sm:$0xff]  ;;  %v8613_v23 = vld [vmem:[%s12385_s22 + $0x8f] sm:$0xff] }
  0x3e   :  { %957 = vmatpush.bf16.msrb.mxu1 %v7518_v49  ;;  %1146 = vmatpush.bf16.msrb.mxu0 %v7542_v52  ;;  %v144_v49 = vld [vmem:[%s12385_s22 + $0x67] sm:$0xff]  ;;  %v8533_v52 = vpack.c.bf16 %v164_v47, %v163_v46  ;;  %v7569_v39 = vld [vmem:[%s12384_s20 + $0x1f0] sm:$0xff] }
  0x41   :  { %1021 = vmatpush.bf16.msrb.mxu2 %v7525_v50  ;;  %1084 = vmatpush.bf16.msrb.mxu3 %v7533_v51  ;;  %v254_v50 = vpack.c.bf16 %v141_v40, %v140_v33  ;;  %v248_v51 = vpack.c.bf16 %v161_v38, %v160_v31  ;;  %v7561_v38 = vld [vmem:[%s12384_s20 + $0x1b0] sm:$0xff] }
  0x42   :  { %958 = vmatpush.bf16.msrb.mxu1 %v7517_v53  ;;  %1147 = vmatpush.bf16.msrb.mxu0 %v7541_v54  ;;  %v263_v53 = vpack.c.bf16 %v144_v49, %v143_v48  ;;  %v165_v54 = vld [vmem:[%s12385_s22 + $0x68] sm:$0xff]  ;;  %v7553_v40 = vld [vmem:[%s12384_s20 + $0x170] sm:$0xff] }
  0x45   :  { %1022 = vmatpush.bf16.msrb.mxu2 %v7524_v55  ;;  %1085 = vmatpush.bf16.msrb.mxu3 %v7532_v56  ;;  %v166_v55 = vld [vmem:[%s12385_s22 + $0x70] sm:$0xff] }
  0x46   :  { %959 = vmatpush.bf16.msrb.mxu1 %v7516_v57  ;;  %1148 = vmatpush.bf16.msrb.mxu0 %v7540_v58  ;;  %v145_v56 = vld [vmem:[%s12385_s22 + $0x6f] sm:$0xff]  ;;  %v146_v57 = vld [vmem:[%s12385_s22 + $0x77] sm:$0xff]  ;;  %v262_v58 = vpack.c.bf16 %v143_v48, %v142_v41  ;;  %v8552_v62 = vpack.c.bf16 %v166_v55, %v165_v54 }
  0x47   :  { %v271_v63 = vpack.c.bf16 %v146_v57, %v145_v56  ;;  %v7560_v41 = vld [vmem:[%s12384_s20 + $0x1a8] sm:$0xff] }
  0x48   :  { %v7552_v48 = vld [vmem:[%s12384_s20 + $0x168] sm:$0xff] }
  0x49   :  { %1023 = vmatpush.bf16.msrb.mxu2 %v7523_v60  ;;  %1086 = vmatpush.bf16.msrb.mxu3 %v7531_v61 }
  0x4a   :  { %960 = vmatpush.bf16.msrb.mxu1 %v7515_v3  ;;  %1149 = vmatpush.bf16.msrb.mxu0 %v7539_v6  ;;  %v147_v6 = vld [vmem:[%s12385_s22 + $0x7f] sm:$0xff] }
  0x4b   :  { %908 = vmatmul.bf16.gmra.mxu0 %v237_v7  ;;  %928 = vmatmul.bf16.gmra.mxu1 %v269_v8  ;;  %v8577_v7 = vld [vmem:[%s12385_s22 + $0x87] sm:$0xff]  ;;  %v270_v8 = vpack.c.bf16 %v145_v56, %v144_v49 }
  0x4c   :  { %1024 = vmatmul.bf16.vlgmr.msrb.gmra.mxu2 %v222_v9  ;;  %1087 = vmatmul.bf16.vlgmr.msrb.gmra.mxu3 %v223_v10  ;;  %v264_v9 = vpack.c.bf16 %v165_v54, %v164_v47  ;;  %v279_v15 = vpack.c.bf16 %v8577_v7, %v147_v6  ;;  %v7568_v47 = vld [vmem:[%s12384_s20 + $0x1e8] sm:$0xff]  ;;  %v7559_v49 = vld [vmem:[%s12384_s20 + $0x1a0] sm:$0xff] }
  0x4d   :  { %1268 = vmatpush.bf16.msra.mxu2 %v7562_v25  ;;  %v8683_v54 = vld [vmem:[%s12385_s22 + $0xa0] sm:$0xff] }
  0x4e   :  { %v8693_v56 = vld [vmem:[%s12385_s22 + $0xa7] sm:$0xff] }
  0x51   :  { %1269 = vmatpush.bf16.msra.mxu2 %v7561_v38  ;;  %v7577_v38 = vld [vmem:[%s12384_s20 + $0x230] sm:$0xff] }
  0x55   :  { %1270 = vmatpush.bf16.msra.mxu2 %v7560_v41 }
  0x59   :  { %1271 = vmatpush.bf16.msra.mxu2 %v7559_v49  ;;  %v7548_v49 = vld [vmem:[%s12384_s20 + $0x148] sm:$0xff] }
  0x5b   :  { %913 = vmatmul.bf16.gmra.mxu0 %v245_v18  ;;  %961 = vmatmul.bf16.vlgmr.msrb.gmra.mxu1 %v221_v19 }
  0x5c   :  { %1029 = vmatmul.bf16.gmra.mxu2 %v8473_v20  ;;  %1092 = vmatmul.bf16.gmra.mxu3 %v231_v21  ;;  %v8603_v21 = vld [vmem:[%s12385_s22 + $0x88] sm:$0xff] }
  0x5d   :  { %v8631_v33 = vpack.c.bf16 %v8608_v22, %v8603_v21 }
  0x6b   :  { %966 = vmatmul.bf16.gmra.mxu1 %v230_v27  ;;  %1150 = vmatmul.bf16.vlgmr.msrb.gmra.mxu0 %v224_v26  ;;  %v278_v26 = vpack.c.bf16 %v147_v6, %v146_v57  ;;  %v272_v27 = vpack.c.bf16 %v167_v4, %v166_v55  ;;  %v8688_v55 = vld [vmem:[%s12385_s22 + $0x9f] sm:$0xff]  ;;  %v280_v4 = vpack.c.bf16 %v8603_v21, %v8569_v5  ;;  %v7557_v21 = vld [vmem:[%s12384_s20 + $0x190] sm:$0xff] }
  0x6c   :  { %1034 = vmatmul.bf16.gmra.mxu2 %v8488_v28  ;;  %1097 = vmatmul.bf16.gmra.mxu3 %v239_v29  ;;  %v7551_v57 = vld [vmem:[%s12384_s20 + $0x160] sm:$0xff]  ;;  %v7550_v5 = vld [vmem:[%s12384_s20 + $0x158] sm:$0xff] }
  0x7b   :  { %971 = vmatmul.bf16.gmra.mxu1 %v238_v34  ;;  %1155 = vmatmul.bf16.gmra.mxu0 %v232_v35  ;;  %v287_v34 = vpack.c.bf16 %v8618_v24, %v8613_v23  ;;  %v7570_v35 = vld [vmem:[%s12384_s20 + $0x1f8] sm:$0xff] }
  0x7c   :  { %1039 = vmatmul.bf16.gmra.mxu2 %v8503_v36  ;;  %1102 = vmatmul.bf16.gmra.mxu3 %v247_v37  ;;  %v7554_v37 = vld [vmem:[%s12384_s20 + $0x178] sm:$0xff] }
  0x7d   :  { %1331 = vmatpush.bf16.msra.mxu3 %v7570_v35  ;;  %1205 = vmatpush.bf16.msra.mxu1 %v7554_v37  ;;  %v7549_v35 = vld [vmem:[%s12384_s20 + $0x150] sm:$0xff]  ;;  %v7556_v37 = vld [vmem:[%s12384_s20 + $0x188] sm:$0xff] }
  0x81   :  { %1332 = vmatpush.bf16.msra.mxu3 %v7569_v39  ;;  %1206 = vmatpush.bf16.msra.mxu1 %v7553_v40 }
  0x85   :  { %1333 = vmatpush.bf16.msra.mxu3 %v7568_v47  ;;  %1207 = vmatpush.bf16.msra.mxu1 %v7552_v48  ;;  %v7564_v47 = vld [vmem:[%s12384_s20 + $0x1c8] sm:$0xff] }
  0x89   :  { %1208 = vmatpush.bf16.msra.mxu1 %v7551_v57 }
  0x8b   :  { %976 = vmatmul.bf16.gmra.mxu1 %v246_v42  ;;  %1160 = vmatmul.bf16.gmra.mxu0 %v240_v43 }
  0x8c   :  { %1044 = vmatmul.bf16.gmra.mxu2 %v8518_v44  ;;  %1107 = vmatmul.bf16.gmra.mxu3 %v255_v45 }
  0x8d   :  { %1209 = vmatpush.bf16.msra.mxu1 %v7550_v5 }
  0x91   :  { %1210 = vmatpush.bf16.msra.mxu1 %v7549_v35 }
  0x95   :  { %1211 = vmatpush.bf16.msra.mxu1 %v7548_v49 }
  0x9b   :  { %981 = vmatmul.bf16.gmra.mxu1 %v254_v50  ;;  %1165 = vmatmul.bf16.gmra.mxu0 %v248_v51  ;;  %v8670_v50 = vld [vmem:[%s12259_s4] ss:$0 sm:$0xff]  ;;  %v8675_v51 = vld [vmem:[%s12385_s22 + $0x98] sm:$0xff] }
  0x9c   :  { %1049 = vmatmul.bf16.gmra.mxu2 %v8533_v52  ;;  %1112 = vmatmul.bf16.gmra.mxu3 %v263_v53  ;;  %v7567_v53 = vld [vmem:[%s12384_s20 + $0x1e0] sm:$0xff]  ;;  %v8711_v25 = vpack.c.bf16 %v8683_v54, %v8675_v51 }
  0x9d   :  { %1334 = vmatpush.bf16.msra.mxu3 %v7567_v53  ;;  %v7576_v53 = vld [vmem:[%s12384_s20 + $0x228] sm:$0xff] }
  0xa8   :  { %v8548_v60 = vpop.f32.mrf.mxu0  ;;  %v8550_v61 = vpop.f32.mrf.mxu1 }
  0xab   :  { %986 = vmatmul.bf16.gmra.mxu1 %v262_v58  ;;  %1170 = vmatmul.bf16.gmra.mxu0 %v256_v59  ;;  %v7558_v58 = vld [vmem:[%s12384_s20 + $0x198] sm:$0xff]  ;;  %v900_v59 = vadd.f32 %v8670_v50, %v8548_v60 }
  0xac   :  { %1054 = vmatmul.bf16.gmra.mxu2 %v8552_v62  ;;  %1117 = vmatmul.bf16.gmra.mxu3 %v271_v63  ;;  %v286_v63 = vpack.c.bf16 %v8613_v23, %v8577_v7  ;;  %v7566_v60 = vld [vmem:[%s12384_s20 + $0x1d8] sm:$0xff] }
  0xad   :  { %1272 = vmatpush.bf16.msra.mxu2 %v7558_v58  ;;  %1335 = vmatpush.bf16.msra.mxu3 %v7566_v60  ;;  %v7578_v23 = vld [vmem:[%s12384_s20 + $0x238] sm:$0xff]  ;;  %v7563_v58 = vld [vmem:[%s12384_s20 + $0x1c0] sm:$0xff]  ;;  %v294_v60 = vpack.c.bf16 %v8688_v55, %v8618_v24 }
  0xae   :  { %1394 = vmatpush.bf16.msra.mxu0 %v7578_v23 }
  0xaf   :  { %v8555_v0 = vpop.f32.mrf.mxu2  ;;  %v8557_v1 = vpop.f32.mrf.mxu3 }
  0xb0   :  { %v8559_v2 = vpop.f32.mrf.mxu0  ;;  %v8561_v3 = vpop.f32.mrf.mxu1 }
  0xb1   :  { %1273 = vmatpush.bf16.msra.mxu2 %v7557_v21  ;;  %v902_v39 = vadd.f32 %v8670_v50, %v8559_v2  ;;  %v7555_v2 = vld [vmem:[%s12384_s20 + $0x180] sm:$0xff] }
  0xb2   :  { %1395 = vmatpush.bf16.msra.mxu0 %v7577_v38 }
  0xb5   :  { %1274 = vmatpush.bf16.msra.mxu2 %v7556_v37 }
  0xb6   :  { %1396 = vmatpush.bf16.msra.mxu0 %v7576_v53  ;;  %v7571_v53 = vld [vmem:[%s12384_s20 + $0x200] sm:$0xff] }
  0xb7   :  { %v8579_v10 = vpop.f32.mrf.mxu2  ;;  %v8581_v11 = vpop.f32.mrf.mxu3 }
  0xb8   :  { %v8583_v12 = vpop.f32.mrf.mxu0  ;;  %v8585_v13 = vpop.f32.mrf.mxu1 }
  0xb9   :  { %1275 = vmatpush.bf16.msra.mxu2 %v7555_v2  ;;  %v177_v2 = vld [vmem:[%s12385_s22 + $0x19] sm:$0xff] }
  0xbb   :  { %991 = vmatmul.bf16.gmra.mxu1 %v270_v8  ;;  %1175 = vmatmul.bf16.gmra.mxu0 %v264_v9 }
  0xbc   :  { %1059 = vmatmul.bf16.gmra.mxu2 %v8588_v14  ;;  %1122 = vmatmul.bf16.gmra.mxu3 %v279_v15 }
  0xbf   :  { %v8592_v16 = vpop.f32.mrf.mxu2  ;;  %v8594_v17 = vpop.f32.mrf.mxu3 }
  0xc0   :  { %v8596_v18 = vpop.f32.mrf.mxu0  ;;  %v8598_v19 = vpop.f32.mrf.mxu1 }
  0xc7   :  { %v8623_v29 = vpop.f32.mrf.mxu2  ;;  %v951_v30 = vpop.f32.mrf.mxu3 }
  0xc8   :  { %v8625_v31 = vpop.f32.mrf.mxu0  ;;  %v8627_v32 = vpop.f32.mrf.mxu1  ;;  %v7565_v30 = vld [vmem:[%s12384_s20 + $0x1d0] sm:$0xff] }
  0xc9   :  { %1336 = vmatpush.bf16.msra.mxu3 %v7565_v30 }
  0xcb   :  { %996 = vmatmul.bf16.gmra.mxu1 %v278_v26  ;;  %1180 = vmatmul.bf16.gmra.mxu0 %v272_v27  ;;  %v295_v26 = vpack.c.bf16 %v8693_v56, %v8688_v55  ;;  %v907_v55 = vadd.f32 %v8670_v50, %v8596_v18  ;;  %v8802_v18 = vld [vmem:[%s12385_s22 + $0x21] sm:$0xff] }
  0xcc   :  { %1064 = vmatmul.bf16.gmra.mxu2 %v8631_v33  ;;  %1127 = vmatmul.bf16.gmra.mxu3 %v287_v34 }
  0xcd   :  { %1337 = vmatpush.bf16.msra.mxu3 %v7564_v47 }
  0xcf   :  { %v1025_v42 = vpop.f32.mrf.mxu2  ;;  %v1088_v43 = vpop.f32.mrf.mxu3 }
  0xd0   :  { %v8654_v45 = vpop.f32.mrf.mxu0  ;;  %v8656_v46 = vpop.f32.mrf.mxu1 }
  0xd1   :  { %1338 = vmatpush.bf16.msra.mxu3 %v7563_v58 }
  0xd7   :  { %v1027_v6 = vpop.f32.mrf.mxu2  ;;  %v1090_v8 = vpop.f32.mrf.mxu3 }
  0xd8   :  { %v8707_v9 = vpop.f32.mrf.mxu0  ;;  %v962_v15 = vpop.f32.mrf.mxu1 }
  0xd9   :  { %v963_v7 = vadd.f32 %v962_v15, %v900_v59  ;;  %v905_v15 = vadd.f32 %v8670_v50, %v8583_v12  ;;  %v7574_v12 = vld [vmem:[%s12384_s20 + $0x218] sm:$0xff] }
  0xdb   :  { %v1026_v27 = vadd.f32 %v1025_v42, %v963_v7  ;;  %1001 = vmatmul.bf16.gmra.mxu1 %v286_v63  ;;  %1185 = vmatmul.bf16.gmra.mxu0 %v280_v4  ;;  %v8762_v63 = vld [vmem:[%s12385_s22 + $0xa8] sm:$0xff] }
  0xdc   :  { %1069 = vmatmul.bf16.gmra.mxu2 %v8711_v25  ;;  %1132 = vmatmul.bf16.gmra.mxu3 %v295_v26  ;;  %v174_v4 = vld [vmem:[%s12385_s22 + $0xaf] sm:$0xff]  ;;  %v288_v26 = vpack.c.bf16 %v8675_v51, %v8608_v22  ;;  %v296_v58 = vpack.c.bf16 %v8762_v63, %v8683_v54  ;;  %v912_v54 = vadd.f32 %v8670_v50, %v8654_v45 }
  0xdd   :  { %v1089_v34 = vadd.f32 %v1088_v43, %v1026_v27  ;;  %v303_v27 = vpack.c.bf16 %v8762_v63, %v8762_v63  ;;  %v304_v30 = vpack.c.bf16 %v174_v4, %v174_v4  ;;  %v7573_v51 = vld [vmem:[%s12384_s20 + $0x210] sm:$0xff] }
  0xde   :  { %v179_v45 = vld [vmem:[%s12385_s22 + $0x29] sm:$0xff] }
  0xdf   :  { %v1030_v40 = vpop.f32.mrf.mxu2  ;;  %v1093_v41 = vpop.f32.mrf.mxu3 }
  0xe0   :  { %v8742_v42 = vpop.f32.mrf.mxu0  ;;  %v964_v43 = vpop.f32.mrf.mxu1 }
  0xe1   :  { %v965_v48 = vadd.f32 %v964_v43, %v902_v39 }
  0xe3   :  { %v1028_v57 = vadd.f32 %v1027_v6, %v965_v48  ;;  %v7547_v6 = vld [vmem:[%s12384_s20 + $0x140] sm:$0xff] }
  0xe4   :  { %1212 = vmatpush.bf16.msra.mxu1 %v7547_v6 }
  0xe5   :  { %v1091_v59 = vadd.f32 %v1090_v8, %v1028_v57  ;;  %v7575_v8 = vld [vmem:[%s12384_s20 + $0x220] sm:$0xff]  ;;  %v910_v57 = vadd.f32 %v8670_v50, %v8625_v31 }
  0xe6   :  { %1397 = vmatpush.bf16.msra.mxu0 %v7575_v8 }
  0xe7   :  { %v1032_v7 = vpop.f32.mrf.mxu2  ;;  %v1095_v5 = vpop.f32.mrf.mxu3 }
  0xe8   :  { %v967_v21 = vpop.f32.mrf.mxu1  ;;  %v1151_v23 = vpop.f32.mrf.mxu0 }
  0xe9   :  { %v968_v35 = vadd.f32 %v967_v21, %v905_v15  ;;  %v8781_v37 = vadd.f32 %v1151_v23, %v1089_v34 }
  0xea   :  { %1398 = vmatpush.bf16.msra.mxu0 %v7574_v12 }
  0xeb   :  { %v1031_v22 = vadd.f32 %v1030_v40, %v968_v35  ;;  %1006 = vmatmul.bf16.gmra.mxu1 %v294_v60  ;;  %1190 = vmatmul.bf16.gmra.mxu0 %v288_v26  ;;  %v7572_v40 = vld [vmem:[%s12384_s20 + $0x208] sm:$0xff]  ;;  %v227_v26 = vpack.c.bf16 %v8802_v18, %v177_v2 }
  0xec   :  { %1074 = vmatmul.bf16.gmra.mxu2 %v303_v27  ;;  %1137 = vmatmul.bf16.gmra.mxu3 %v304_v30 }
  0xed   :  { %v1094_v24 = vadd.f32 %v1093_v41, %v1031_v22  ;;  %v8824_v22 = vld [vmem:[%s12385_s22 + $0xb0] sm:$0xff] }
  0xee   :  { %1399 = vmatpush.bf16.msra.mxu0 %v7573_v51  ;;  %v8835_v51 = vld [vmem:[%s12385_s22 + $0x31] sm:$0xff] }
  0xef   :  { %v1035_v34 = vpop.f32.mrf.mxu2  ;;  %v1098_v38 = vpop.f32.mrf.mxu3 }
  0xf0   :  { %v969_v39 = vpop.f32.mrf.mxu1  ;;  %v1153_v43 = vpop.f32.mrf.mxu0 }
  0xf1   :  { %v970_v47 = vadd.f32 %v969_v39, %v907_v55  ;;  %v8791_v48 = vadd.f32 %v1153_v43, %v1091_v59  ;;  %v302_v59 = vpack.c.bf16 %v8693_v56, %v8693_v56  ;;  %v8159_v55 = vmov 0  }
  0xf2   :  { %1400 = vmatpush.bf16.msra.mxu0 %v7572_v40  ;;  %7755 = vset.pattern.permute.xlu0 %v8159_v55  ;;  %v64_v40 = vld [vmem:[%s12386_s3] sm:$0xff] }
  0xf3   :  { %v1033_v41 = vadd.f32 %v1032_v7, %v970_v47  ;;  %7756 = vset.pattern.permute.xlu1 %v8159_v55  ;;  %7757 = vset.pattern.permute.xlu2 %v8159_v55 }
  0xf4   :  { %1459 = vperm.xlu0 %7755, %v64_v40  }
  0xf5   :  { %v1096_v49 = vadd.f32 %v1095_v5, %v1033_v41 }
  0xf6   :  { %1401 = vmatpush.bf16.msra.mxu0 %v7571_v53  ;;  %v235_v53 = vpack.c.bf16 %v8835_v51, %v179_v45 }
  0xf7   :  { %v1037_v4 = vpop.f32.mrf.mxu2  ;;  %v1100_v6 = vpop.f32.mrf.mxu3 }
  0xf8   :  { %v972_v8 = vpop.f32.mrf.mxu1  ;;  %v1156_v15 = vpop.f32.mrf.mxu0 }
  0xf9   :  { %v973_v60 = vadd.f32 %v972_v8, %v910_v57  ;;  %v8814_v7 = vadd.f32 %v1156_v15, %v1094_v24  ;;  %v65_v8 = vld [vmem:[%s12386_s3 + $0x8] sm:$0xff] }
  0xfb   :  { %v1036_v5 = vadd.f32 %v1035_v34, %v973_v60  ;;  %1011 = vmatmul.bf16.gmra.mxu1 %v302_v59  ;;  %1195 = vmatmul.bf16.gmra.mxu0 %v296_v58  ;;  %v915_v34 = vadd.f32 %v8670_v50, %v8707_v9  ;;  %v917_v59 = vadd.f32 %v8670_v50, %v8742_v42  ;;  %v200_v42 = vld [vmem:[%s12385_s22 + $0x22] sm:$0xff] }
  0xfc   :  { %1276 = vmatmul.bf16.vlgmr.msra.gmra.mxu2 %v8473_v20  ;;  %1339 = vmatmul.bf16.vlgmr.msra.gmra.mxu3 %v227_v26  ;;  %v176_v20 = vld [vmem:[%s12385_s22 + $0x11] sm:$0xff] }
  0xfd   :  { %v1099_v31 = vadd.f32 %v1098_v38, %v1036_v5  ;;  %v305_v38 = vpack.c.bf16 %v8824_v22, %v8824_v22  ;;  %v225_v39 = vpack.c.bf16 %v177_v2, %v176_v20  ;;  %1464 = vperm.xlu0 %7755, %v65_v8   ;;  %v925_v8 = vadd.f32 %v8670_v50, %v8585_v13 }
  0xfe   :  { %v927_v13 = vadd.f32 %v8670_v50, %v8598_v19  ;;  %v185_v19 = vld [vmem:[%s12385_s22 + $0x59] sm:$0xff] }
  0xff   :  { %v1040_v56 = vpop.f32.mrf.mxu2  ;;  %v1103_v21 = vpop.f32.mrf.mxu3 }
 0x100   :  { %v974_v23 = vpop.f32.mrf.mxu1  ;;  %v1158_v27 = vpop.f32.mrf.mxu0 }
 0x101   :  { %v975_v30 = vadd.f32 %v974_v23, %v912_v54  ;;  %v8819_v35 = vadd.f32 %v1158_v27, %v1096_v49  ;;  %v920_v23 = vadd.f32 %v8670_v50, %v8550_v61  ;;  %v233_v27 = vpack.c.bf16 %v179_v45, %v8802_v18 }
 0x102   :  { %v922_v18 = vadd.f32 %v8670_v50, %v8561_v3  ;;  %v202_v3 = vld [vmem:[%s12385_s22 + $0x32] sm:$0xff] }
 0x103   :  { %v1038_v12 = vadd.f32 %v1037_v4, %v975_v30 }
 0x105   :  { %v1101_v24 = vadd.f32 %v1100_v6, %v1038_v12 }
 0x107   :  { %v1042_v43 = vpop.f32.mrf.mxu2  ;;  %v1105_v47 = vpop.f32.mrf.mxu3 }
 0x108   :  { %v977_v41 = vpop.f32.mrf.mxu1  ;;  %v1161_v49 = vpop.f32.mrf.mxu0 }
 0x109   :  { %v978_v57 = vadd.f32 %v977_v41, %v915_v34  ;;  %v8845_v58 = vadd.f32 %v1161_v49, %v1099_v31  ;;  %v67_v41 = vld [vmem:[%s12386_s3 + $0x18] sm:$0xff] }
 0x10b   :  { %v1041_v9 = vadd.f32 %v1040_v56, %v978_v57  ;;  %1200 = vmatmul.bf16.gmra.mxu0 %v305_v38  ;;  %1213 = vmatmul.bf16.vlgmr.msra.gmra.mxu1 %v225_v39  ;;  %v181_v56 = vld [vmem:[%s12385_s22 + $0x39] sm:$0xff] }
 0x10c   :  { %1281 = vmatmul.bf16.gmra.mxu2 %v8488_v28  ;;  %1344 = vmatmul.bf16.gmra.mxu3 %v235_v53  ;;  %v199_v28 = vld [vmem:[%s12385_s22 + $0x1a] sm:$0xff] }
 0x10d   :  { %v1104_v2 = vadd.f32 %v1103_v21, %v1041_v9  ;;  %v8867_v21 = vld [vmem:[%s12385_s22 + $0x41] sm:$0xff]  ;;  %v228_v30 = vpack.c.bf16 %v200_v42, %v199_v28 }
 0x10e   :  { %v243_v38 = vpack.c.bf16 %v8867_v21, %v181_v56 }
 0x10f   :  { %v1045_v4 = vpop.f32.mrf.mxu2  ;;  %v1108_v6 = vpop.f32.mrf.mxu3 }
 0x110   :  { %v979_v15 = vpop.f32.mrf.mxu1  ;;  %v1163_v26 = vpop.f32.mrf.mxu0 }
 0x111   :  { %v980_v60 = vadd.f32 %v979_v15, %v917_v59  ;;  %v8853_v5 = vadd.f32 %v1163_v26, %v1101_v24  ;;  %v66_v24 = vld [vmem:[%s12386_s3 + $0x10] sm:$0xff]  ;;  %v241_v15 = vpack.c.bf16 %v181_v56, %v8835_v51 }
 0x112   :  { %1469 = vperm.xlu1 %7756, %v66_v24  }
 0x113   :  { %v1043_v31 = vadd.f32 %v1042_v43, %v980_v60 }
 0x115   :  { %v1106_v54 = vadd.f32 %v1105_v47, %v1043_v31 }
 0x117   :  { %v1047_v12 = vpop.f32.mrf.mxu2  ;;  %v1110_v20 = vpop.f32.mrf.mxu3 }
 0x118   :  { %v982_v55 = vpop.f32.mrf.mxu1  ;;  %v1166_v34 = vpop.f32.mrf.mxu0 }
 0x119   :  { %v983_v39 = vadd.f32 %v982_v55, %v920_v23  ;;  %v8876_v43 = vadd.f32 %v1166_v34, %v1104_v2 }
 0x11a   :  { %1474 = vperm.xlu1 %7756, %v67_v41  }
 0x11b   :  { %v1046_v47 = vadd.f32 %v1045_v4, %v983_v39  ;;  %1218 = vmatmul.bf16.gmra.mxu1 %v233_v27  ;;  %1402 = vmatmul.bf16.vlgmr.msra.gmra.mxu0 %v228_v30  ;;  %v183_v4 = vld [vmem:[%s12385_s22 + $0x49] sm:$0xff]  ;;  %v203_v39 = vld [vmem:[%s12385_s22 + $0x3a] sm:$0xff] }
 0x11c   :  { %1286 = vmatmul.bf16.gmra.mxu2 %v8503_v36  ;;  %1349 = vmatmul.bf16.gmra.mxu3 %v243_v38  ;;  %v201_v36 = vld [vmem:[%s12385_s22 + $0x2a] sm:$0xff] }
 0x11d   :  { %v1109_v61 = vadd.f32 %v1108_v6, %v1046_v47  ;;  %v8898_v6 = vld [vmem:[%s12385_s22 + $0x51] sm:$0xff]  ;;  %v236_v26 = vpack.c.bf16 %v202_v3, %v201_v36 }
 0x11f   :  { %v1050_v45 = vpop.f32.mrf.mxu2  ;;  %v1113_v40 = vpop.f32.mrf.mxu3 }
 0x120   :  { %v984_v49 = vpop.f32.mrf.mxu1  ;;  %v1168_v53 = vpop.f32.mrf.mxu0 }
 0x121   :  { %v985_v57 = vadd.f32 %v984_v49, %v922_v18  ;;  %v8884_v9 = vadd.f32 %v1168_v53, %v1106_v54  ;;  %v251_v54 = vpack.c.bf16 %v8898_v6, %v183_v4  ;;  %v930_v18 = vadd.f32 %v8670_v50, %v8627_v32  ;;  %v70_v53 = vld [vmem:[%s12386_s3 + $0x30] sm:$0xff] }
 0x122   :  { %1489 = vperm.xlu0 %7755, %v70_v53  }
 0x123   :  { %v1048_v2 = vadd.f32 %v1047_v12, %v985_v57 }
 0x125   :  { %v1111_v59 = vadd.f32 %v1110_v20, %v1048_v2 }
 0x127   :  { %v1052_v60 = vpop.f32.mrf.mxu2  ;;  %v1115_v31 = vpop.f32.mrf.mxu3 }
 0x128   :  { %v987_v28 = vpop.f32.mrf.mxu1  ;;  %v1171_v42 = vpop.f32.mrf.mxu0 }
 0x129   :  { %v988_v23 = vadd.f32 %v987_v28, %v925_v8  ;;  %v8904_v27 = vadd.f32 %v1171_v42, %v1109_v61  ;;  %v8923_v61 = vld [vmem:[%s12385_s22 + $0x61] sm:$0xff] }
 0x12a   :  { %v259_v36 = vpack.c.bf16 %v8923_v61, %v185_v19 }
 0x12b   :  { %v1051_v30 = vadd.f32 %v1050_v45, %v988_v23  ;;  %1223 = vmatmul.bf16.gmra.mxu1 %v241_v15  ;;  %1407 = vmatmul.bf16.gmra.mxu0 %v236_v26  ;;  %v249_v45 = vpack.c.bf16 %v183_v4, %v8867_v21  ;;  %v932_v21 = vadd.f32 %v8670_v50, %v8656_v46  ;;  %v68_v26 = vld [vmem:[%s12386_s3 + $0x20] sm:$0xff]  ;;  %v205_v46 = vld [vmem:[%s12385_s22 + $0x4a] sm:$0xff]  ;;  %v206_v23 = vld [vmem:[%s12385_s22 + $0x52] sm:$0xff] }
 0x12c   :  { %1291 = vmatmul.bf16.gmra.mxu2 %v8518_v44  ;;  %1354 = vmatmul.bf16.gmra.mxu3 %v251_v54  ;;  %v204_v44 = vld [vmem:[%s12385_s22 + $0x42] sm:$0xff] }
 0x12d   :  { %v1114_v12 = vadd.f32 %v1113_v40, %v1051_v30  ;;  %v244_v40 = vpack.c.bf16 %v204_v44, %v203_v39  ;;  %1479 = vperm.xlu2 %7757, %v68_v26  }
 0x12f   :  { %v1055_v51 = vpop.f32.mrf.mxu2  ;;  %v1118_v56 = vpop.f32.mrf.mxu3 }
 0x130   :  { %v989_v20 = vpop.f32.mrf.mxu1  ;;  %v1173_v24 = vpop.f32.mrf.mxu0 }
 0x131   :  { %v990_v55 = vadd.f32 %v989_v20, %v927_v13  ;;  %v8909_v34 = vadd.f32 %v1173_v24, %v1111_v59  ;;  %v8957_v13 = vld [vmem:[%s12385_s22 + $0x71] sm:$0xff]  ;;  %v252_v20 = vpack.c.bf16 %v206_v23, %v205_v46 }
 0x133   :  { %v1053_v38 = vadd.f32 %v1052_v60, %v990_v55  ;;  %v71_v60 = vld [vmem:[%s12386_s3 + $0x38] sm:$0xff] }
 0x134   :  { %1494 = vperm.xlu1 %7756, %v71_v60  }
 0x135   :  { %v1116_v47 = vadd.f32 %v1115_v31, %v1053_v38  ;;  %v69_v38 = vld [vmem:[%s12386_s3 + $0x28] sm:$0xff] }
 0x136   :  { %1484 = vperm.xlu2 %7757, %v69_v38  }
 0x137   :  { %v1057_v41 = vpop.f32.mrf.mxu2  ;;  %v1120_v49 = vpop.f32.mrf.mxu3 }
 0x138   :  { %v992_v57 = vpop.f32.mrf.mxu1  ;;  %v1176_v2 = vpop.f32.mrf.mxu0 }
 0x139   :  { %v993_v3 = vadd.f32 %v992_v57, %v930_v18  ;;  %v8932_v59 = vadd.f32 %v1176_v2, %v1114_v12  ;;  %v187_v12 = vld [vmem:[%s12385_s22 + $0x69] sm:$0xff] }
 0x13b   :  { %v1056_v8 = vadd.f32 %v1055_v51, %v993_v3  ;;  %1228 = vmatmul.bf16.gmra.mxu1 %v249_v45  ;;  %1412 = vmatmul.bf16.gmra.mxu0 %v244_v40  ;;  %v935_v51 = vadd.f32 %v8670_v50, %v8555_v0 }
 0x13c   :  { %1296 = vmatmul.bf16.gmra.mxu2 %v8533_v52  ;;  %1359 = vmatmul.bf16.gmra.mxu3 %v259_v36 }
 0x13d   :  { %v1119_v32 = vadd.f32 %v1118_v56, %v1056_v8  ;;  %v257_v56 = vpack.c.bf16 %v185_v19, %v8898_v6  ;;  %v937_v6 = vadd.f32 %v8670_v50, %v8579_v10  ;;  %v208_v10 = vld [vmem:[%s12385_s22 + $0x62] sm:$0xff] }
 0x13f   :  { %v1060_v4 = vpop.f32.mrf.mxu2  ;;  %v1123_v15 = vpop.f32.mrf.mxu3 }
 0x140   :  { %v994_v31 = vpop.f32.mrf.mxu1  ;;  %v1178_v28 = vpop.f32.mrf.mxu0 }
 0x141   :  { %v995_v52 = vadd.f32 %v994_v31, %v932_v21  ;;  %v8943_v42 = vadd.f32 %v1178_v28, %v1116_v47  ;;  %v267_v47 = vpack.c.bf16 %v8957_v13, %v187_v12  ;;  %v8988_v21 = vld [vmem:[%s12385_s22 + $0x81] sm:$0xff]  ;;  %v74_v28 = vld [vmem:[%s12386_s3 + $0x50] sm:$0xff] }
 0x142   :  { %1509 = vperm.xlu1 %7756, %v74_v28  }
 0x143   :  { %v1058_v54 = vadd.f32 %v1057_v41, %v995_v52 }
 0x145   :  { %v1121_v30 = vadd.f32 %v1120_v49, %v1058_v54  ;;  %v73_v49 = vld [vmem:[%s12386_s3 + $0x48] sm:$0xff] }
 0x146   :  { %1504 = vperm.xlu0 %7755, %v73_v49  }
 0x147   :  { %v1062_v24 = vpop.f32.mrf.mxu2  ;;  %v1125_v55 = vpop.f32.mrf.mxu3 }
 0x148   :  { %v997_v39 = vpop.f32.mrf.mxu1  ;;  %v1181_v44 = vpop.f32.mrf.mxu0 }
 0x149   :  { %v998_v18 = vadd.f32 %v997_v39, %v935_v51  ;;  %v8966_v45 = vadd.f32 %v1181_v44, %v1119_v32  ;;  %v189_v32 = vld [vmem:[%s12385_s22 + $0x79] sm:$0xff] }
 0x14a   :  { %v275_v46 = vpack.c.bf16 %v8988_v21, %v189_v32 }
 0x14b   :  { %v1061_v40 = vadd.f32 %v1060_v4, %v998_v18  ;;  %1233 = vmatmul.bf16.gmra.mxu1 %v257_v56  ;;  %1417 = vmatmul.bf16.gmra.mxu0 %v252_v20  ;;  %v940_v4 = vadd.f32 %v8670_v50, %v8592_v16  ;;  %v72_v20 = vld [vmem:[%s12386_s3 + $0x40] sm:$0xff]  ;;  %v210_v18 = vld [vmem:[%s12385_s22 + $0x72] sm:$0xff] }
 0x14c   :  { %1301 = vmatmul.bf16.gmra.mxu2 %v8552_v62  ;;  %1364 = vmatmul.bf16.gmra.mxu3 %v267_v47  ;;  %v207_v62 = vld [vmem:[%s12385_s22 + $0x5a] sm:$0xff]  ;;  %v209_v47 = vld [vmem:[%s12385_s22 + $0x6a] sm:$0xff] }
 0x14d   :  { %v1124_v0 = vadd.f32 %v1123_v15, %v1061_v40  ;;  %v265_v15 = vpack.c.bf16 %v187_v12, %v8923_v61  ;;  %v260_v26 = vpack.c.bf16 %v208_v10, %v207_v62  ;;  %v942_v61 = vadd.f32 %v8670_v50, %v8623_v29  ;;  %1499 = vperm.xlu2 %7757, %v72_v20   ;;  %v77_v29 = vld [vmem:[%s12386_s3 + $0x68] sm:$0xff] }
 0x14e   :  { %1524 = vperm.xlu1 %7756, %v77_v29   ;;  %v268_v49 = vpack.c.bf16 %v210_v18, %v209_v47 }
 0x14f   :  { %v1065_v19 = vpop.f32.mrf.mxu2  ;;  %v1128_v41 = vpop.f32.mrf.mxu3 }
 0x150   :  { %v999_v53 = vpop.f32.mrf.mxu1  ;;  %v1183_v57 = vpop.f32.mrf.mxu0 }
 0x151   :  { %v1000_v2 = vadd.f32 %v999_v53, %v937_v6  ;;  %v8974_v36 = vadd.f32 %v1183_v57, %v1121_v30  ;;  %v9025_v6 = vld [vmem:[%s12385_s22 + $0x91] sm:$0xff] }
 0x153   :  { %v1063_v3 = vadd.f32 %v1062_v24, %v1000_v2 }
 0x155   :  { %v1126_v8 = vadd.f32 %v1125_v55, %v1063_v3 }
 0x157   :  { %v1067_v60 = vpop.f32.mrf.mxu2  ;;  %v1130_v31 = vpop.f32.mrf.mxu3 }
 0x158   :  { %v1002_v52 = vpop.f32.mrf.mxu1  ;;  %v1186_v54 = vpop.f32.mrf.mxu0 }
 0x159   :  { %v1003_v23 = vadd.f32 %v1002_v52, %v940_v4  ;;  %v8997_v30 = vadd.f32 %v1186_v54, %v1124_v0  ;;  %v191_v0 = vld [vmem:[%s12385_s22 + $0x89] sm:$0xff] }
 0x15a   :  { %v283_v62 = vpack.c.bf16 %v9025_v6, %v191_v0  ;;  %v281_v20 = vpack.c.bf16 %v191_v0, %v8988_v21  ;;  %v78_v0 = vld [vmem:[%s12386_s3 + $0x70] sm:$0xff] }
 0x15b   :  { %v1066_v51 = vadd.f32 %v1065_v19, %v1003_v23  ;;  %1238 = vmatmul.bf16.gmra.mxu1 %v265_v15  ;;  %1422 = vmatmul.bf16.gmra.mxu0 %v260_v26  ;;  %v945_v19 = vadd.f32 %v8670_v50, %v8557_v1  ;;  %v79_v15 = vld [vmem:[%s12386_s3 + $0x78] sm:$0xff] }
 0x15c   :  { %1306 = vmatmul.bf16.gmra.mxu2 %v8588_v14  ;;  %1369 = vmatmul.bf16.gmra.mxu3 %v275_v46  ;;  %v76_v14 = vld [vmem:[%s12386_s3 + $0x60] sm:$0xff] }
 0x15d   :  { %v1129_v16 = vadd.f32 %v1128_v41, %v1066_v51  ;;  %1519 = vperm.xlu0 %7755, %v76_v14   ;;  %v273_v41 = vpack.c.bf16 %v189_v32, %v8957_v13  ;;  %v80_v13 = vld [vmem:[%s12386_s3 + $0x80] sm:$0xff]  ;;  %v947_v32 = vadd.f32 %v8670_v50, %v8581_v11  ;;  %v75_v14 = vld [vmem:[%s12386_s3 + $0x58] sm:$0xff] }
 0x15e   :  { %1539 = vperm.xlu1 %7756, %v80_v13   ;;  %v211_v23 = vld [vmem:[%s12385_s22 + $0x7a] sm:$0xff]  ;;  %v212_v11 = vld [vmem:[%s12385_s22 + $0x82] sm:$0xff]  ;;  %1514 = vperm.xlu2 %7757, %v75_v14  }
 0x15f   :  { %v1070_v12 = vpop.f32.mrf.mxu2  ;;  %v1133_v56 = vpop.f32.mrf.mxu3 }
 0x160   :  { %v1004_v24 = vpop.f32.mrf.mxu1  ;;  %v1188_v55 = vpop.f32.mrf.mxu0 }
 0x161   :  { %v1005_v38 = vadd.f32 %v1004_v24, %v942_v61  ;;  %v9005_v39 = vadd.f32 %v1188_v55, %v1126_v8  ;;  %v9059_v61 = vld [vmem:[%s12385_s22 + $0xa1] sm:$0xff]  ;;  %v276_v24 = vpack.c.bf16 %v212_v11, %v211_v23 }
 0x162   :  { %v84_v23 = vld [vmem:[%s12386_s3 + $0xa0] sm:$0xff] }
 0x163   :  { %v1068_v44 = vadd.f32 %v1067_v60, %v1005_v38 }
 0x165   :  { %v1131_v40 = vadd.f32 %v1130_v31, %v1068_v44  ;;  %1534 = vperm.xlu0 %7755, %v79_v15  }
 0x166   :  { %1529 = vperm.xlu2 %7757, %v78_v0   ;;  %v217_v0 = vld [vmem:[%s12385_s22 + $0xaa] sm:$0xff] }
 0x167   :  { %v1072_v53 = vpop.f32.mrf.mxu2  ;;  %v1135_v57 = vpop.f32.mrf.mxu3 }
 0x168   :  { %v1007_v2 = vpop.f32.mrf.mxu1  ;;  %v1191_v3 = vpop.f32.mrf.mxu0 }
 0x169   :  { %v1008_v10 = vadd.f32 %v1007_v2, %v945_v19  ;;  %v9031_v8 = vadd.f32 %v1191_v3, %v1129_v16  ;;  %v193_v16 = vld [vmem:[%s12385_s22 + $0x99] sm:$0xff]  ;;  %v195_v2 = vld [vmem:[%s12385_s22 + $0xa9] sm:$0xff]  ;;  %v196_v3 = vld [vmem:[%s12385_s22 + $0xb1] sm:$0xff] }
 0x16a   :  { %v291_v47 = vpack.c.bf16 %v9059_v61, %v193_v16 }
 0x16b   :  { %v1071_v4 = vadd.f32 %v1070_v12, %v1008_v10  ;;  %1243 = vmatmul.bf16.gmra.mxu1 %v273_v41  ;;  %1427 = vmatmul.bf16.gmra.mxu0 %v268_v49  ;;  %v83_v12 = vld [vmem:[%s12386_s3 + $0x98] sm:$0xff] }
 0x16c   :  { %1311 = vmatmul.bf16.gmra.mxu2 %v8631_v33  ;;  %1374 = vmatmul.bf16.gmra.mxu3 %v283_v62  ;;  %v82_v33 = vld [vmem:[%s12386_s3 + $0x90] sm:$0xff]  ;;  %v289_v62 = vpack.c.bf16 %v193_v16, %v9025_v6  ;;  %v198_v16 = vld [vmem:[%s12385_s22 + $0xb9] sm:$0xff] }
 0x16d   :  { %v1134_v1 = vadd.f32 %v1133_v56, %v1071_v4  ;;  %1549 = vperm.xlu0 %7755, %v82_v33   ;;  %1554 = vperm.xlu1 %7756, %v83_v12   ;;  %v950_v56 = vadd.f32 %v8670_v50, %v8594_v17  ;;  %v297_v12 = vpack.c.bf16 %v195_v2, %v9059_v61 }
 0x16f   :  { %v1075_v26 = vpop.f32.mrf.mxu2  ;;  %v1138_v60 = vpop.f32.mrf.mxu3 }
 0x170   :  { %v1009_v31 = vpop.f32.mrf.mxu1  ;;  %v1193_v28 = vpop.f32.mrf.mxu0 }
 0x171   :  { %v1010_v52 = vadd.f32 %v1009_v31, %v947_v32  ;;  %v9042_v54 = vadd.f32 %v1193_v28, %v1131_v40 }
 0x173   :  { %v1073_v46 = vadd.f32 %v1072_v53, %v1010_v52 }
 0x175   :  { %v1136_v51 = vadd.f32 %v1135_v57, %v1073_v46  ;;  %v213_v57 = vld [vmem:[%s12385_s22 + $0x8a] sm:$0xff] }
 0x177   :  { %v1077_v55 = vpop.f32.mrf.mxu2  ;;  %v1140_v38 = vpop.f32.mrf.mxu3 }
 0x178   :  { %v1012_v29 = vpop.f32.mrf.mxu1  ;;  %v1196_v44 = vpop.f32.mrf.mxu0 }
 0x179   :  { %v1013_v18 = vadd.f32 %v1012_v29, %v950_v56  ;;  %v9071_v40 = vadd.f32 %v1196_v44, %v1134_v1  ;;  %v81_v1 = vld [vmem:[%s12386_s3 + $0x88] sm:$0xff]  ;;  %v308_v29 = vpack.c.bf16 %v198_v16, %v198_v16 }
 0x17a   :  { %1544 = vperm.xlu2 %7757, %v81_v1  }
 0x17b   :  { %12387 = vst [vmem:[#allocation6_spill] sm:$0xff] %v9071_v40  ;;  %v1076_v19 = vadd.f32 %v1075_v26, %v1013_v18  ;;  %1248 = vmatmul.bf16.gmra.mxu1 %v281_v20  ;;  %1432 = vmatmul.bf16.gmra.mxu0 %v276_v24  ;;  %v298_v26 = vpack.c.bf16 %v8824_v22, %v8762_v63  ;;  %v216_v22 = vld [vmem:[%s12385_s22 + $0xa2] sm:$0xff] }
 0x17c   :  { %1316 = vmatmul.bf16.gmra.mxu2 %v8711_v25  ;;  %1379 = vmatmul.bf16.gmra.mxu3 %v291_v47  ;;  %v214_v25 = vld [vmem:[%s12385_s22 + $0x92] sm:$0xff] }
 0x17d   :  { %v1139_v17 = vadd.f32 %v1138_v60, %v1076_v19  ;;  %v284_v10 = vpack.c.bf16 %v214_v25, %v213_v57  ;;  %v299_v60 = vpack.c.bf16 %v196_v3, %v195_v2 }
 0x17f   :  { %v1277_v50 = vpop.f32.mrf.mxu2  ;;  %v1340_v21 = vpop.f32.mrf.mxu3 }
 0x180   :  { %v1014_v41 = vpop.f32.mrf.mxu1  ;;  %v1198_v49 = vpop.f32.mrf.mxu0 }
 0x181   :  { %v9077_v53 = vadd.f32 %v1198_v49, %v1136_v51  ;;  %v197_v51 = vld [vmem:[%s12385_s22 + $0xb8] sm:$0xff]  ;;  %v306_v41 = vpack.c.bf16 %v196_v3, %v196_v3 }
 0x182   :  { %1559 = vperm.xlu2 %7757, %v84_v23   ;;  %v307_v14 = vpack.c.bf16 %v197_v51, %v197_v51 }
 0x183   :  { %12388 = vst [vmem:[#allocation7_spill] sm:$0xff] %v9077_v53 }
 0x187   :  { %v9092_v4 = vpop.f32.mrf.mxu2  ;;  %v9094_v15 = vpop.f32.mrf.mxu3 }
 0x188   :  { %v1201_v13 = vpop.f32.mrf.mxu0  ;;  %v1214_v32 = vpop.f32.mrf.mxu1 }
 0x189   :  { %v9101_v31 = vadd.f32 %v1201_v13, %v1139_v17  ;;  %v1215_v6 = vadd.f32 %v1214_v32, %v8781_v37  ;;  %v215_v37 = vld [vmem:[%s12385_s22 + $0x9a] sm:$0xff] }
 0x18a   :  { %v292_v56 = vpack.c.bf16 %v216_v22, %v215_v37 }
 0x18b   :  { %12389 = vst [vmem:[#allocation8_spill] sm:$0xff] %v9101_v31  ;;  %v1278_v28 = vadd.f32 %v1277_v50, %v1215_v6  ;;  %1253 = vmatmul.bf16.gmra.mxu1 %v289_v62  ;;  %1437 = vmatmul.bf16.gmra.mxu0 %v284_v10 }
 0x18c   :  { %1321 = vmatmul.bf16.gmra.mxu2 %v298_v26  ;;  %1384 = vmatmul.bf16.gmra.mxu3 %v299_v60 }
 0x18d   :  { %v1341_v52 = vadd.f32 %v1340_v21, %v1278_v28  ;;  %v219_v28 = vld [vmem:[%s12385_s22 + $0xba] sm:$0xff] }
 0x18f   :  { %v1282_v46 = vpop.f32.mrf.mxu2  ;;  %v1345_v33 = vpop.f32.mrf.mxu3 }
 0x190   :  { %v1203_v11 = vpop.f32.mrf.mxu0  ;;  %v9107_v63 = vpop.f32.mrf.mxu1 }
 0x197   :  { %v9122_v20 = vpop.f32.mrf.mxu2  ;;  %v9124_v24 = vpop.f32.mrf.mxu3 }
 0x198   :  { %v1219_v55 = vpop.f32.mrf.mxu1  ;;  %v1403_v38 = vpop.f32.mrf.mxu0 }
 0x199   :  { %v1220_v44 = vadd.f32 %v1219_v55, %v8814_v7  ;;  %v9127_v47 = vadd.f32 %v1403_v38, %v1341_v52  ;;  %v218_v7 = vld [vmem:[%s12385_s22 + $0xb2] sm:$0xff]  ;;  %v309_v52 = vpack.c.bf16 %v219_v28, %v219_v28  ;;  %s8162_s22 = smov [#allocation3]  }
 0x19a   :  { %v300_v49 = vpack.c.bf16 %v218_v7, %v217_v0  ;;  %s6570_s0 = sshll.u32 %s8162_s22, 4  ;;  %s6571_s0 = int_to_ptr.vmem [resolvable:$true] %s6570_s0 }
 0x19b   :  { %v1283_v18 = vadd.f32 %v1282_v46, %v1220_v44  ;;  %1258 = vmatmul.bf16.gmra.mxu1 %v297_v12  ;;  %1442 = vmatmul.bf16.gmra.mxu0 %v292_v56 }
 0x19c   :  { %1326 = vmatmul.bf16.gmra.mxu2 %v307_v14  ;;  %1389 = vmatmul.bf16.gmra.mxu3 %v308_v29 }
 0x19d   :  { %v1346_v19 = vadd.f32 %v1345_v33, %v1283_v18 }
 0x19f   :  { %v1287_v61 = vpop.f32.mrf.mxu2  ;;  %v1350_v17 = vpop.f32.mrf.mxu3 }
 0x1a0   :  { %v9129_v50 = vpop.f32.mrf.mxu1  ;;  %v9131_v21 = vpop.f32.mrf.mxu0 }
 0x1a7   :  { %v9139_v57 = vpop.f32.mrf.mxu2  ;;  %v9141_v25 = vpop.f32.mrf.mxu3 }
 0x1a8   :  { %v1224_v2 = vpop.f32.mrf.mxu1  ;;  %v1408_v62 = vpop.f32.mrf.mxu0 }
 0x1a9   :  { %v1225_v10 = vadd.f32 %v1224_v2, %v8845_v58  ;;  %v9144_v1 = vadd.f32 %v1408_v62, %v1346_v19 }
 0x1ab   :  { %v1288_v13 = vadd.f32 %v1287_v61, %v1225_v10  ;;  %1263 = vmatmul.bf16.gmra.mxu1 %v306_v41  ;;  %1447 = vmatmul.bf16.gmra.mxu0 %v300_v49 }
 0x1ad   :  { %v1351_v32 = vadd.f32 %v1350_v17, %v1288_v13 }
 0x1af   :  { %v1292_v26 = vpop.f32.mrf.mxu2  ;;  %v1355_v60 = vpop.f32.mrf.mxu3 }
 0x1b0   :  { %v9146_v6 = vpop.f32.mrf.mxu1  ;;  %v9148_v3 = vpop.f32.mrf.mxu0 }
 0x1b7   :  { %v9153_v46 = vpop.f32.mrf.mxu2  ;;  %v9155_v58 = vpop.f32.mrf.mxu3 }
 0x1b8   :  { %v1229_v33 = vpop.f32.mrf.mxu1  ;;  %v1413_v23 = vpop.f32.mrf.mxu0 }
 0x1b9   :  { %v1230_v11 = vadd.f32 %v1229_v33, %v8876_v43  ;;  %v9158_v37 = vadd.f32 %v1413_v23, %v1351_v32 }
 0x1bb   :  { %v1293_v22 = vadd.f32 %v1292_v26, %v1230_v11  ;;  %1452 = vmatmul.bf16.gmra.mxu0 %v309_v52 }
 0x1bd   :  { %v1356_v51 = vadd.f32 %v1355_v60, %v1293_v22 }
 0x1bf   :  { %v1297_v16 = vpop.f32.mrf.mxu2  ;;  %v1360_v12 = vpop.f32.mrf.mxu3 }
 0x1c0   :  { %v9160_v56 = vpop.f32.mrf.mxu1  ;;  %v9162_v55 = vpop.f32.mrf.mxu0 }
 0x1c7   :  { %v9164_v38 = vpop.f32.mrf.mxu2  ;;  %v9166_v14 = vpop.f32.mrf.mxu3 }
 0x1c8   :  { %v1234_v29 = vpop.f32.mrf.mxu1  ;;  %v1418_v44 = vpop.f32.mrf.mxu0 }
 0x1c9   :  { %v1235_v18 = vadd.f32 %v1234_v29, %v8904_v27  ;;  %v9169_v43 = vadd.f32 %v1418_v44, %v1356_v51 }
 0x1cb   :  { %v1298_v19 = vadd.f32 %v1297_v16, %v1235_v18 }
 0x1cd   :  { %v1361_v61 = vadd.f32 %v1360_v12, %v1298_v19 }
 0x1cf   :  { %v1302_v17 = vpop.f32.mrf.mxu2  ;;  %v1365_v0 = vpop.f32.mrf.mxu3 }
 0x1d0   :  { %v9171_v7 = vpop.f32.mrf.mxu1  ;;  %v9173_v41 = vpop.f32.mrf.mxu0 }
 0x1d7   :  { %v9175_v49 = vpop.f32.mrf.mxu2  ;;  %v9177_v2 = vpop.f32.mrf.mxu3 }
 0x1d8   :  { %v1239_v62 = vpop.f32.mrf.mxu1  ;;  %v1423_v10 = vpop.f32.mrf.mxu0 }
 0x1d9   :  { %v1240_v13 = vadd.f32 %v1239_v62, %v8932_v59  ;;  %v9180_v32 = vadd.f32 %v1423_v10, %v1361_v61  ;;  %v9215_v10 = vpop.permute.xlu0 %1459 }
 0x1da   :  { %12391 = vst [vmem:[#allocation10_spill] sm:$0xff] %v9215_v10 }
 0x1db   :  { %v1303_v27 = vadd.f32 %v1302_v17, %v1240_v13  ;;  %v9217_v13 = vpop.permute.xlu1 %1469 }
 0x1dc   :  { %12392 = vst [vmem:[#allocation11_spill] sm:$0xff] %v9217_v13 }
 0x1dd   :  { %v9182_v26 = vadd.f32 %v1365_v0, %v1303_v27 }
 0x1df   :  { %v1307_v60 = vpop.f32.mrf.mxu2  ;;  %v1370_v28 = vpop.f32.mrf.mxu3 }
 0x1e0   :  { %v9184_v52 = vpop.f32.mrf.mxu1  ;;  %v9186_v33 = vpop.f32.mrf.mxu0 }
 0x1e7   :  { %v9188_v23 = vpop.f32.mrf.mxu2  ;;  %v9190_v11 = vpop.f32.mrf.mxu3 }
 0x1e8   :  { %v1244_v22 = vpop.f32.mrf.mxu1  ;;  %v9192_v51 = vpop.f32.mrf.mxu0 }
 0x1e9   :  { %v1245_v59 = vadd.f32 %v1244_v22, %v8966_v45  ;;  %v1217_v45 = vadd.f32 %v9107_v63, %v8791_v48 }
 0x1eb   :  { %v1308_v16 = vadd.f32 %v1307_v60, %v1245_v59  ;;  %v1280_v27 = vadd.f32 %v9092_v4, %v1217_v45  ;;  %v1222_v60 = vadd.f32 %v9129_v50, %v8819_v35  ;;  %v9235_v4 = vpop.permute.xlu0 %1464  ;;  %v1227_v35 = vadd.f32 %v9146_v6, %v8853_v5  ;;  %v9239_v50 = vpop.permute.xlu1 %1474 }
 0x1ec   :  { %12395 = vst [vmem:[#allocation14_spill] sm:$0xff] %v9235_v4 }
 0x1ed   :  { %v9195_v12 = vadd.f32 %v1370_v28, %v1308_v16  ;;  %v9222_v28 = vpop.permute.xlu2 %1479  ;;  %v1343_v48 = vadd.f32 %v9094_v15, %v1280_v27  ;;  %v1285_v63 = vadd.f32 %v9122_v20, %v1222_v60  ;;  %12396 = vst [vmem:[#allocation15_spill] sm:$0xff] %v9239_v50  ;;  %v9252_v20 = vmul.f32 %v9215_v10, %v9127_v47 }
 0x1ee   :  { %12393 = vst [vmem:[#allocation12_spill] sm:$0xff] %v9222_v28 }
 0x1ef   :  { %v9197_v29 = vpop.f32.mrf.mxu2  ;;  %v9199_v44 = vpop.f32.mrf.mxu3  ;;  %v1406_v53 = vadd.f32 %v9131_v21, %v1343_v48  ;;  %v1348_v45 = vadd.f32 %v9124_v24, %v1285_v63  ;;  %12398 = vst [vmem:[#allocation17_spill] sm:$0xff] %v9252_v20  ;;  %v1290_v21 = vadd.f32 %v9139_v57, %v1227_v35  ;;  %v1232_v24 = vadd.f32 %v9160_v56, %v8884_v9 }
 0x1f0   :  { %v9201_v18 = vpop.f32.mrf.mxu1  ;;  %v9203_v19 = vpop.f32.mrf.mxu0  ;;  %v1630_v60 = vmul.f32 %v9252_v20, %v9252_v20 }
 0x1f1   :  { %v1353_v48 = vadd.f32 %v9141_v25, %v1290_v21  ;;  %v1295_v56 = vadd.f32 %v9153_v46, %v1232_v24  ;;  %v1237_v21 = vadd.f32 %v9171_v7, %v8909_v34  ;;  %v1583_v24 = vsel %vm85_vm0, %v9252_v20, 0.0 }
 0x1f3   :  { %v9272_v57 = vpop.permute.xlu0 %1489  ;;  %v1416_v35 = vadd.f32 %v9162_v55, %v1353_v48  ;;  %v1358_v34 = vadd.f32 %v9155_v58, %v1295_v56 }
 0x1f5   :  { %v1421_v58 = vadd.f32 %v9173_v41, %v1358_v34 }
 0x1f7   :  { %v9205_v61 = vpop.f32.mrf.mxu2  ;;  %v9207_v17 = vpop.f32.mrf.mxu3 }
 0x1f8   :  { %12390 = vst [vmem:[#allocation9_spill] sm:$0xff] %v9207_v17  ;;  %v9209_v0 = vpop.f32.mrf.mxu1  ;;  %v9211_v62 = vpop.f32.mrf.mxu0  ;;  %v1411_v17 = vadd.f32 %v9148_v3, %v1348_v45 }
 0x1f9   :  { %v9265_v3 = vpop.permute.xlu2 %1484 }
 0x1fa   :  { %12400 = vst [vmem:[#allocation19_spill] sm:$0xff] %v9265_v3  ;;  %v9270_v47 = vmul.f32 %v9239_v50, %v1411_v17  ;;  %v9286_v17 = vmul.f32 %v9222_v28, %v9158_v37  ;;  %v1651_v37 = vsel %vm85_vm0, %v1630_v60, 0.0  ;;  %v9314_v60 = vmul.f32 %v9265_v3, %v1416_v35 }
 0x1fb   :  { %v9325_v56 = vpop.permute.xlu0 %1504  ;;  %v1242_v35 = vadd.f32 %v9184_v52, %v8943_v42 }
 0x1fc   :  { %12401 = vst [vmem:[#allocation20_spill] sm:$0xff] %v9270_v47  ;;  %v1633_v25 = vmul.f32 %v9270_v47, %v9270_v47  ;;  %v1588_v50 = vsel %vm85_vm0, %v9270_v47, 0.0  ;;  %v1635_v41 = vmul.f32 %v9314_v60, %v9314_v60 }
 0x1fd   :  { %12402 = vst [vmem:[#allocation21_spill] sm:$0xff] %v9286_v17 }
 0x1fe   :  { %12403 = vst [vmem:[#allocation22_spill] sm:$0xff] %v9314_v60 }
 0x1ff   :  { %v9224_v22 = vpop.f32.mrf.mxu2  ;;  %v9226_v59 = vpop.f32.mrf.mxu3  ;;  %12406 = vst [vmem:[#allocation25_spill] sm:$0xff] %v9325_v56 }
 0x200   :  { %12394 = vst [vmem:[#allocation13_spill] sm:$0xff] %v9226_v59  ;;  %v9228_v16 = vpop.f32.mrf.mxu1  ;;  %v9230_v31 = vpop.f32.mrf.mxu0  ;;  %v9243_v59 = vmul.f32 %v9235_v4, %v1406_v53  ;;  %v9261_v53 = vmul.f32 %v9217_v13, %v9144_v1  ;;  %v1634_v13 = vmul.f32 %v9286_v17, %v9286_v17 }
 0x201   :  { %v9277_v1 = vpop.permute.xlu1 %1494 }
 0x202   :  { %12397 = vst [vmem:[#allocation16_spill] sm:$0xff] %v9243_v59  ;;  %v1631_v27 = vmul.f32 %v9243_v59, %v9243_v59  ;;  %v1632_v9 = vmul.f32 %v9261_v53, %v9261_v53  ;;  %v1584_v63 = vsel %vm85_vm0, %v9243_v59, 0.0  ;;  %v1586_v48 = vsel %vm85_vm0, %v9261_v53, 0.0  ;;  %v9316_v59 = vpop.permute.xlu2 %1499 }
 0x203   :  { %12399 = vst [vmem:[#allocation18_spill] sm:$0xff] %v9261_v53  ;;  %v9341_v42 = vmul.f32 %v9277_v1, %v1421_v58 }
 0x204   :  { %v1652_v45 = vsel %vm85_vm0, %v1631_v27, 0.0  ;;  %v1585_v27 = vadd.f32 %v1584_v63, %v1583_v24  ;;  %v1654_v28 = vsel %vm85_vm0, %v1632_v9, 0.0  ;;  %12404 = vst [vmem:[#allocation23_spill] sm:$0xff] %v9316_v59  ;;  %v1656_v63 = vsel %vm85_vm0, %v1633_v25, 0.0 }
 0x205   :  { %v1653_v7 = vadd.f32 %v1652_v45, %v1651_v37  ;;  %v9321_v24 = vmul.f32 %v9272_v57, %v9169_v43  ;;  %v1300_v9 = vadd.f32 %v9164_v38, %v1237_v21  ;;  %v1590_v25 = vsel %vm85_vm0, %v9286_v17, 0.0  ;;  %12408 = vst [vmem:[#allocation27_spill] sm:$0xff] %v9341_v42 }
 0x206   :  { %v1587_v45 = vadd.f32 %v1586_v48, %v1585_v27  ;;  %v1658_v43 = vsel %vm85_vm0, %v1634_v13, 0.0  ;;  %v1592_v38 = vsel %vm85_vm0, %v9314_v60, 0.0  ;;  %v1305_v13 = vadd.f32 %v9175_v49, %v1242_v35 }
 0x207   :  { %v9246_v40 = vpop.f32.mrf.mxu2  ;;  %v9248_v15 = vpop.f32.mrf.mxu3  ;;  %12405 = vst [vmem:[#allocation24_spill] sm:$0xff] %v9321_v24  ;;  %v1655_v37 = vadd.f32 %v1654_v28, %v1653_v7  ;;  %v1636_v28 = vmul.f32 %v9321_v24, %v9321_v24  ;;  %v1363_v52 = vadd.f32 %v9166_v14, %v1300_v9  ;;  %v1247_v48 = vadd.f32 %v9201_v18, %v8974_v36 }
 0x208   :  { %v9255_v5 = vpop.f32.mrf.mxu1  ;;  %v9257_v6 = vpop.f32.mrf.mxu0  ;;  %v1589_v20 = vadd.f32 %v1588_v50, %v1587_v45  ;;  %v8160_v45 = vmov 0.0   ;;  %v1660_v9 = vsel %vm85_vm0, %v1635_v41, 0.0  ;;  %v1250_v49 = vadd.f32 %v9209_v0, %v8997_v30 }
 0x209   :  { %v9329_v3 = vpop.permute.xlu1 %1509  ;;  %v1657_v47 = vadd.f32 %v1656_v63, %v1655_v37  ;;  %v1426_v63 = vadd.f32 %v9186_v33, %v1363_v52  ;;  %108 = vst.msk [vmem:[#allocation2 + $0xb0] sm:$0xff] %vm85_vm0, %v8160_v45  ;;  %v1594_v36 = vsel %vm85_vm0, %v9321_v24, 0.0  ;;  %v1662_v33 = vsel %vm85_vm0, %v1636_v28, 0.0 }
 0x20a   :  { %12407 = vst [vmem:[#allocation26_spill] sm:$0xff] %v9329_v3  ;;  %v1591_v27 = vadd.f32 %v1590_v25, %v1589_v20  ;;  %v9357_v37 = vpop.permute.xlu2 %1514  ;;  %v1637_v18 = vmul.f32 %v9341_v42, %v9341_v42  ;;  %v9370_v20 = vmul.f32 %v9316_v59, %v9180_v32  ;;  %v1368_v30 = vadd.f32 %v9177_v2, %v1305_v13 }
 0x20b   :  { %v1659_v14 = vadd.f32 %v1658_v43, %v1657_v47  ;;  %12409 = vst [vmem:[#allocation28_spill] sm:$0xff] %v9357_v37  ;;  %v9372_v47 = vpop.permute.xlu0 %1519  ;;  %v1429_v0 = vadd.f32 %v9192_v51, %v9182_v26  ;;  %v1310_v35 = vadd.f32 %v9188_v23, %v1247_v48  ;;  %v1252_v43 = vadd.f32 %v9228_v16, %v9005_v39 }
 0x20c   :  { %v1593_v58 = vadd.f32 %v1592_v38, %v1591_v27  ;;  %86 = vst.msk [vmem:[#allocation2] sm:$0xff] %vm85_vm0, %v8160_v45  ;;  %v9387_v41 = vmul.f32 %v9325_v56, %v1426_v63  ;;  %v1431_v2 = vadd.f32 %v9203_v19, %v1368_v30  ;;  %v1313_v23 = vadd.f32 %v9197_v29, %v1250_v49 }
 0x20d   :  { %12410 = vst [vmem:[#allocation29_spill] sm:$0xff] %v9370_v20  ;;  %v1661_v32 = vadd.f32 %v1660_v9, %v1659_v14  ;;  %v1638_v39 = vmul.f32 %v9370_v20, %v9370_v20  ;;  %v1596_v51 = vsel %vm85_vm0, %v9341_v42, 0.0  ;;  %v1255_v38 = vadd.f32 %v9255_v5, %v9031_v8 }
 0x20e   :  { %12411 = vst [vmem:[#allocation30_spill] sm:$0xff] %v9372_v47  ;;  %v1595_v26 = vadd.f32 %v1594_v36, %v1593_v58  ;;  %v9408_v29 = vmul.f32 %v9329_v3, %v1429_v0  ;;  %v1373_v19 = vadd.f32 %v9190_v11, %v1310_v35  ;;  %v1664_v27 = vsel %vm85_vm0, %v1637_v18, 0.0 }
 0x20f   :  { %v9294_v4 = vpop.f32.mrf.mxu2  ;;  %v9296_v46 = vpop.f32.mrf.mxu3  ;;  %87 = vst.msk [vmem:[#allocation2 + $0x8] sm:$0xff] %vm85_vm0, %v8160_v45  ;;  %v1663_v16 = vadd.f32 %v1662_v33, %v1661_v32  ;;  %v1315_v13 = vadd.f32 %v9205_v61, %v1252_v43  ;;  %v1434_v8 = vadd.f32 %v9211_v62, %v9195_v12  ;;  %v1598_v5 = vsel %vm85_vm0, %v9370_v20, 0.0 }
 0x210   :  { %v9301_v10 = vpop.f32.mrf.mxu1  ;;  %v9303_v55 = vpop.f32.mrf.mxu0  ;;  %88 = vst.msk [vmem:[#allocation2 + $0x10] sm:$0xff] %vm85_vm0, %v8160_v45  ;;  %v1639_v14 = vmul.f32 %v9387_v41, %v9387_v41  ;;  %v9426_v61 = vmul.f32 %v9357_v37, %v1431_v2  ;;  %v1597_v58 = vadd.f32 %v1596_v51, %v1595_v26  ;;  %v1376_v9 = vadd.f32 %v9199_v44, %v1313_v23  ;;  %v12423_v51 = vld [vmem:[#allocation13_spill] sm:$0xff] }
 0x211   :  { %v9380_v25 = vpop.permute.xlu1 %1524  ;;  %12413 = vst [vmem:[#allocation32_spill] sm:$0xff] %v9387_v41  ;;  %v1257_v11 = vadd.f32 %v9301_v10, %v9042_v54  ;;  %v1436_v12 = vadd.f32 %v9230_v31, %v1373_v19  ;;  %v1665_v62 = vadd.f32 %v1664_v27, %v1663_v16  ;;  %v1666_v49 = vsel %vm85_vm0, %v1638_v39, 0.0  ;;  %v12416_v54 = vld [vmem:[#allocation6_spill] sm:$0xff]  ;;  %v12418_v31 = vld [vmem:[#allocation9_spill] sm:$0xff]  ;;  %v12424_v19 = vld [vmem:[#allocation7_spill] sm:$0xff] }
 0x212   :  { %12412 = vst [vmem:[#allocation31_spill] sm:$0xff] %v9380_v25  ;;  %v1318_v36 = vadd.f32 %v9224_v22, %v1255_v38  ;;  %v1599_v33 = vadd.f32 %v1598_v5, %v1597_v58  ;;  %v1640_v18 = vmul.f32 %v9408_v29, %v9408_v29  ;;  %v9439_v44 = vpop.permute.xlu2 %1529  ;;  %v1378_v30 = vadd.f32 %v12418_v31, %v1315_v13 }
 0x213   :  { %89 = vst.msk [vmem:[#allocation2 + $0x18] sm:$0xff] %vm85_vm0, %v8160_v45  ;;  %v1439_v0 = vadd.f32 %v9257_v6, %v1376_v9  ;;  %v9446_v22 = vmul.f32 %v9372_v47, %v1434_v8  ;;  %v1668_v35 = vsel %vm85_vm0, %v1639_v14, 0.0  ;;  %v9451_v43 = vpop.permute.xlu0 %1534  ;;  %v1320_v32 = vadd.f32 %v9246_v40, %v1257_v11 }
 0x214   :  { %90 = vst.msk [vmem:[#allocation2 + $0x20] sm:$0xff] %vm85_vm0, %v8160_v45  ;;  %v1641_v6 = vmul.f32 %v9426_v61, %v9426_v61  ;;  %v1667_v2 = vadd.f32 %v1666_v49, %v1665_v62  ;;  %v9459_v26 = vmul.f32 %v9380_v25, %v1436_v12  ;;  %v1441_v39 = vadd.f32 %v9303_v55, %v1378_v30 }
 0x215   :  { %91 = vst.msk [vmem:[#allocation2 + $0x28] sm:$0xff] %vm85_vm0, %v8160_v45  ;;  %v1602_v40 = vsel %vm85_vm0, %v9408_v29, 0.0  ;;  %v1381_v16 = vadd.f32 %v12423_v51, %v1318_v36  ;;  %v1670_v55 = vsel %vm85_vm0, %v1640_v18, 0.0  ;;  %v9475_v11 = vmul.f32 %v9439_v44, %v1439_v0 }
 0x216   :  { %12414 = vst [vmem:[#allocation33_spill] sm:$0xff] %v9408_v29  ;;  %v1669_v14 = vadd.f32 %v1668_v35, %v1667_v2  ;;  %v1383_v12 = vadd.f32 %v9248_v15, %v1320_v32  ;;  %v1672_v36 = vsel %vm85_vm0, %v1641_v6, 0.0  ;;  %v1606_v15 = vsel %vm85_vm0, %v9446_v22, 0.0 }
 0x217   :  { %v9344_v21 = vpop.f32.mrf.mxu2  ;;  %v9346_v50 = vpop.f32.mrf.mxu3  ;;  %92 = vst.msk [vmem:[#allocation2 + $0x30] sm:$0xff] %vm85_vm0, %v8160_v45  ;;  %v1644_v0 = vmul.f32 %v9475_v11, %v9475_v11  ;;  %v1608_v35 = vsel %vm85_vm0, %v9459_v26, 0.0  ;;  %v1610_v51 = vsel %vm85_vm0, %v9475_v11, 0.0 }
 0x218   :  { %v1259_v34 = vpop.f32.mrf.mxu1  ;;  %v9351_v7 = vpop.f32.mrf.mxu0  ;;  %93 = vst.msk [vmem:[#allocation2 + $0x38] sm:$0xff] %vm85_vm0, %v8160_v45  ;;  %v1671_v30 = vadd.f32 %v1670_v55, %v1669_v14 }
 0x219   :  { %12415 = vst [vmem:[#allocation34_spill] sm:$0xff] %v9426_v61  ;;  %v1260_v10 = vadd.f32 %v1259_v34, %v12416_v54  ;;  %v1600_v34 = vsel %vm85_vm0, %v9387_v41, 0.0  ;;  %v9461_v23 = vpop.permute.xlu1 %1539  ;;  %v1444_v62 = vadd.f32 %v9351_v7, %v1381_v16  ;;  %v1643_v54 = vmul.f32 %v9459_v26, %v9459_v26 }
 0x21a   :  { %94 = vst.msk [vmem:[#allocation2 + $0x40] sm:$0xff] %vm85_vm0, %v8160_v45  ;;  %v1601_v5 = vadd.f32 %v1600_v34, %v1599_v33  ;;  %v1673_v32 = vadd.f32 %v1672_v36, %v1671_v30  ;;  %v9514_v2 = vpop.permute.xlu2 %1544 }
 0x21b   :  { %95 = vst.msk [vmem:[#allocation2 + $0x48] sm:$0xff] %vm85_vm0, %v8160_v45  ;;  %v1323_v38 = vadd.f32 %v9294_v4, %v1260_v10  ;;  %v1604_v4 = vsel %vm85_vm0, %v9426_v61, 0.0  ;;  %v9491_v10 = vmul.f32 %v9451_v43, %v1441_v39  ;;  %v1676_v6 = vsel %vm85_vm0, %v1643_v54, 0.0 }
 0x21c   :  { %12417 = vst [vmem:[#allocation6_spill] sm:$0xff] %v9439_v44  ;;  %v1603_v49 = vadd.f32 %v1602_v40, %v1601_v5  ;;  %v9520_v40 = vpop.permute.xlu0 %1549  ;;  %v1678_v5 = vsel %vm85_vm0, %v1644_v0, 0.0 }
 0x21d   :  { %96 = vst.msk [vmem:[#allocation2 + $0x50] sm:$0xff] %vm85_vm0, %v8160_v45  ;;  %v1386_v7 = vadd.f32 %v9296_v46, %v1323_v38  ;;  %v9509_v46 = vmul.f32 %v9461_v23, %v1444_v62  ;;  %v1645_v39 = vmul.f32 %v9491_v10, %v9491_v10 }
 0x21e   :  { %12419 = vst [vmem:[#allocation9_spill] sm:$0xff] %v9446_v22  ;;  %v1605_v31 = vadd.f32 %v1604_v4, %v1603_v49 }
 0x21f   :  { %v9401_v28 = vpop.f32.mrf.mxu2  ;;  %v9403_v52 = vpop.f32.mrf.mxu3  ;;  %12420 = vst [vmem:[#allocation35_spill] sm:$0xff] %v9451_v43  ;;  %v1680_v49 = vsel %vm85_vm0, %v1645_v39, 0.0  ;;  %v1614_v36 = vsel %vm85_vm0, %v9509_v46, 0.0 }
 0x220   :  { %v1261_v48 = vpop.f32.mrf.mxu1  ;;  %v1445_v63 = vpop.f32.mrf.mxu0  ;;  %97 = vst.msk [vmem:[#allocation2 + $0x58] sm:$0xff] %vm85_vm0, %v8160_v45 }
 0x221   :  { %12421 = vst [vmem:[#allocation36_spill] sm:$0xff] %v9459_v26  ;;  %v1262_v27 = vadd.f32 %v1261_v48, %v12424_v19  ;;  %v1642_v48 = vmul.f32 %v9446_v22, %v9446_v22  ;;  %v1446_v33 = vadd.f32 %v1445_v63, %v1383_v12  ;;  %v1607_v63 = vadd.f32 %v1606_v15, %v1605_v31  ;;  %v12431_v19 = vld [vmem:[#allocation8_spill] sm:$0xff]  ;;  %v9543_v62 = vpop.permute.xlu1 %1554 }
 0x222   :  { %12422 = vst [vmem:[#allocation37_spill] sm:$0xff] %v9461_v23 }
 0x223   :  { %98 = vst.msk [vmem:[#allocation2 + $0x60] sm:$0xff] %vm85_vm0, %v8160_v45  ;;  %v1325_v18 = vadd.f32 %v9344_v21, %v1262_v27  ;;  %v1674_v34 = vsel %vm85_vm0, %v1642_v48, 0.0  ;;  %v9525_v16 = vmul.f32 %v9514_v2, %v1446_v33 }
 0x224   :  { %99 = vst.msk [vmem:[#allocation2 + $0x68] sm:$0xff] %vm85_vm0, %v8160_v45 }
 0x225   :  { %12425 = vst [vmem:[#allocation13_spill] sm:$0xff] %v9475_v11  ;;  %v1388_v38 = vadd.f32 %v9346_v50, %v1325_v18  ;;  %v1646_v50 = vmul.f32 %v9509_v46, %v9509_v46  ;;  %v1647_v54 = vmul.f32 %v9525_v16, %v9525_v16  ;;  %v1616_v31 = vsel %vm85_vm0, %v9525_v16, 0.0 }
 0x226   :  { %100 = vst.msk [vmem:[#allocation2 + $0x70] sm:$0xff] %vm85_vm0, %v8160_v45 }
 0x227   :  { %v1329_v13 = vpop.f32.mrf.mxu2  ;;  %v1392_v8 = vpop.f32.mrf.mxu3  ;;  %101 = vst.msk [vmem:[#allocation2 + $0x78] sm:$0xff] %vm85_vm0, %v8160_v45 }
 0x228   :  { %v1264_v58 = vpop.f32.mrf.mxu1  ;;  %v1448_v9 = vpop.f32.mrf.mxu0  ;;  %12426 = vst [vmem:[#allocation7_spill] sm:$0xff] %v9491_v10  ;;  %v1675_v13 = vadd.f32 %v1674_v34, %v1673_v32  ;;  %v1609_v8 = vadd.f32 %v1608_v35, %v1607_v63  ;;  %v1684_v35 = vsel %vm85_vm0, %v1647_v54, 0.0 }
 0x229   :  { %102 = vst.msk [vmem:[#allocation2 + $0x80] sm:$0xff] %vm85_vm0, %v8160_v45  ;;  %v1449_v21 = vadd.f32 %v1448_v9, %v1386_v7  ;;  %v1265_v27 = vadd.f32 %v1264_v58, %v12431_v19  ;;  %v1612_v9 = vsel %vm85_vm0, %v9491_v10, 0.0 }
 0x22a   :  { %103 = vst.msk [vmem:[#allocation2 + $0x88] sm:$0xff] %vm85_vm0, %v8160_v45  ;;  %v1677_v48 = vadd.f32 %v1676_v6, %v1675_v13  ;;  %v1611_v12 = vadd.f32 %v1610_v51, %v1609_v8 }
 0x22b   :  { %104 = vst.msk [vmem:[#allocation2 + $0x90] sm:$0xff] %vm85_vm0, %v8160_v45  ;;  %v9539_v58 = vmul.f32 %v9520_v40, %v1449_v21  ;;  %v1328_v15 = vadd.f32 %v9401_v28, %v1265_v27  ;;  %v9568_v27 = vpop.permute.xlu2 %1559 }
 0x22c   :  { %12427 = vst [vmem:[#allocation38_spill] sm:$0xff] %v9509_v46  ;;  %v1679_v33 = vadd.f32 %v1678_v5, %v1677_v48  ;;  %v1613_v18 = vadd.f32 %v1612_v9, %v1611_v12 }
 0x22d   :  { %105 = vst.msk [vmem:[#allocation2 + $0x98] sm:$0xff] %vm85_vm0, %v8160_v45  ;;  %v1648_v30 = vmul.f32 %v9539_v58, %v9539_v58  ;;  %v1618_v28 = vsel %vm85_vm0, %v9539_v58, 0.0  ;;  %v1391_v21 = vadd.f32 %v9403_v52, %v1328_v15 }
 0x22e   :  { %12428 = vst [vmem:[#allocation39_spill] sm:$0xff] %v9514_v2  ;;  %v1681_v0 = vadd.f32 %v1680_v49, %v1679_v33  ;;  %v1615_v34 = vadd.f32 %v1614_v36, %v1613_v18 }
 0x22f   :  { %106 = vst.msk [vmem:[#allocation2 + $0xa0] sm:$0xff] %vm85_vm0, %v8160_v45  ;;  %v1686_v51 = vsel %vm85_vm0, %v1648_v30, 0.0 }
 0x230   :  { %12429 = vst [vmem:[#allocation40_spill] sm:$0xff] %v9520_v40  ;;  %v1450_v14 = vpop.f32.mrf.mxu0  ;;  %v1266_v55 = vpop.f32.mrf.mxu1  ;;  %v1617_v6 = vadd.f32 %v1616_v31, %v1615_v34 }
 0x231   :  { %12430 = vst [vmem:[#allocation41_spill] sm:$0xff] %v9525_v16  ;;  %v1451_v4 = vadd.f32 %v1450_v14, %v1388_v38 }
 0x232   :  { %107 = vst.msk [vmem:[#allocation2 + $0xa8] sm:$0xff] %vm85_vm0, %v8160_v45  ;;  %v1619_v8 = vadd.f32 %v1618_v28, %v1617_v6 }
 0x233   :  { %109 = vst.msk [vmem:[#allocation2 + $0xb8] sm:$0xff] %vm85_vm0, %v8160_v45  ;;  %v9552_v7 = vmul.f32 %v9543_v62, %v1451_v4 }
 0x234   :  { %12432 = vst [vmem:[#allocation8_spill] sm:$0xff] %v9539_v58 }
 0x235   :  { %110 = vst.msk [vmem:[#allocation2 + $0xc0] sm:$0xff] %vm85_vm0, %v8160_v45  ;;  %v1682_v45 = vsel %vm85_vm0, %v1646_v50, 0.0  ;;  %v1649_v63 = vmul.f32 %v9552_v7, %v9552_v7  ;;  %v1620_v38 = vsel %vm85_vm0, %v9552_v7, 0.0 }
 0x236   :  { %12433 = vst [vmem:[#allocation42_spill] sm:$0xff] %v9543_v62  ;;  %v1683_v32 = vadd.f32 %v1682_v45, %v1681_v0  ;;  %v1621_v55 = vadd.f32 %v1620_v38, %v1619_v8 }
 0x237   :  { %12434 = vst [vmem:[#allocation43_spill] sm:$0xff] %v9552_v7  ;;  %v1688_v5 = vsel %vm85_vm0, %v1649_v63, 0.0 }
 0x238   :  { %v1453_v39 = vpop.f32.mrf.mxu0  ;;  %12435 = vst [vmem:[#allocation44_spill] sm:$0xff] %v9568_v27  ;;  %v1685_v13 = vadd.f32 %v1684_v35, %v1683_v32 }
 0x239   :  { %v1454_v19 = vadd.f32 %v1453_v39, %v1391_v21 }
 0x23a   :  { %v1687_v14 = vadd.f32 %v1686_v51, %v1685_v13 }
 0x23b   :  { %v9572_v52 = vmul.f32 %v9568_v27, %v1454_v19 }
 0x23c   :  { %v1689_v4 = vadd.f32 %v1688_v5, %v1687_v14  ;;  %v1702_v14 = vld [vmem:[%s12260_s5] sm:$0x1]  ;;  %s8161_s5 = smov 64  }
 0x23d   :  { %12436 = vst [vmem:[#allocation45_spill] sm:$0xff] %v9572_v52  ;;  %v1622_v9 = vsel %vm85_vm0, %v9572_v52, 0.0  ;;  %v1650_v50 = vmul.f32 %v9572_v52, %v9572_v52 }
 0x23e   :  { %v1623_v48 = vadd.f32 %v1622_v9, %v1621_v55 }
 0x23f   :  { %v1690_v12 = vsel %vm85_vm0, %v1650_v50, 0.0 }
 0x240   :  { %v1624_v49 = vrot.slane %v1623_v48, 4  ;;  %v1691_v36 = vadd.f32 %v1690_v12, %v1689_v4  ;;  %v1455_v54 = vpop.f32.mrf.mxu0  ;;  %v1715_v4 = vld [vmem:[%s12261_s6] sm:$0x1] }
 0x242   :  { %v1625_v15 = vadd.f32 %v1624_v49, %v1623_v48  ;;  %v1692_v33 = vrot.slane %v1691_v36, 4 }
 0x244   :  { %v1626_v18 = vrot.slane %v1625_v15, 2  ;;  %v1693_v45 = vadd.f32 %v1692_v33, %v1691_v36 }
 0x246   :  { %v1627_v31 = vadd.f32 %v1626_v18, %v1625_v15  ;;  %v1694_v30 = vrot.slane %v1693_v45, 2  ;;  %v12437_v15 = vld [vmem:[#allocation20_spill] sm:$0xff] }
 0x248   :  { %v1628_v0 = vrot.slane %v1627_v31, 1  ;;  %v1695_v34 = vadd.f32 %v1694_v30, %v1693_v45  ;;  %v12438_v45 = vld [vmem:[#allocation17_spill] sm:$0xff]  ;;  %v12439_v30 = vld [vmem:[#allocation16_spill] sm:$0xff] }
 0x24a   :  { %v1629_v35 = vadd.f32 %v1628_v0, %v1627_v31  ;;  %v1696_v28 = vrot.slane %v1695_v34, 1 }
 0x24c   :  { %v1697_v21 = vadd.f32 %v1696_v28, %v1695_v34  ;;  %v1698_v63 = vmul.f32 0.010204081, %v1629_v35 }
 0x24e   :  { %v1699_v32 = vmul.f32 0.010204081, %v1697_v21  ;;  %v1700_v6 = vmul.f32 %v1698_v63, %v1698_v63 }
 0x250   :  { %v1701_v39 = vsub.f32 %v1699_v32, %v1700_v6 }
 0x252   :  { %v1703_v51 = vadd.f32 0.001, %v1701_v39 }
 0x254   :  { %8129 = vrsqrt.f32 %v1703_v51  ;;  %vm1710_vm2 = vweird.f32 %v1703_v51 }
 0x25a   :  { %v8130_v38 = vpop.eup %8129 }
 0x25b   :  { %v1705_v19 = vmul.f32 %v8130_v38, %v1703_v51  ;;  %vm1711_vm1 = vweird.f32 %v8130_v38 }
 0x25c   :  { %vm1712_vm3 = vmor %vm1710_vm2, %vm1711_vm1 }
 0x25d   :  { %v1706_v13 = vmul.f32 %v8130_v38, %v1705_v19 }
 0x25f   :  { %v1707_v8 = vmul.f32 0.5, %v1706_v13 }
 0x261   :  { %v1708_v5 = vsub.f32 1.5, %v1707_v8 }
 0x263   :  { %v1709_v55 = vmul.f32 %v8130_v38, %v1708_v5 }
 0x265   :  { %v1713_v9 = vsel %vm1712_vm3, %v8130_v38, %v1709_v55 }
 0x266   :  { %v1714_v50 = vmul.f32 %v1713_v9, %v1702_v14 }
 0x268   :  { %v1716_v48 = vmul.f32 %v1714_v50, %v1698_v63  ;;  %v9585_v12 = vperm.slane %v1714_v50, 0 }
 0x26a   :  { %v1717_v49 = vsub.f32 %v1715_v4, %v1716_v48  ;;  %v1741_v36 = vmul.f32 %v9585_v12, %v9572_v52  ;;  %v1723_v54 = vmul.f32 %v9585_v12, %v9261_v53  ;;  %v1724_v33 = vmul.f32 %v9585_v12, %v12437_v15 }
 0x26b   :  { %v1725_v18 = vmul.f32 %v9585_v12, %v9286_v17  ;;  %v1721_v31 = vmul.f32 %v9585_v12, %v12438_v45  ;;  %v1722_v0 = vmul.f32 %v9585_v12, %v12439_v30  ;;  %v1729_v35 = vmul.f32 %v9585_v12, %v9370_v20 }
 0x26c   :  { %v9599_v34 = vperm.slane %v1717_v49, 0  ;;  %v1730_v28 = vmul.f32 %v9585_v12, %v9387_v41  ;;  %v1731_v21 = vmul.f32 %v9585_v12, %v9408_v29  ;;  %v1727_v63 = vmul.f32 %v9585_v12, %v9321_v24 }
 0x26d   :  { %v1728_v32 = vmul.f32 %v9585_v12, %v9341_v42  ;;  %v1726_v6 = vmul.f32 %v9585_v12, %v9314_v60  ;;  %v1735_v39 = vmul.f32 %v9585_v12, %v9475_v11 }
 0x26e   :  { %v1765_v51 = vadd.f32 %v9599_v34, %v1741_v36  ;;  %v1747_v38 = vadd.f32 %v9599_v34, %v1723_v54  ;;  %v1748_v19 = vadd.f32 %v9599_v34, %v1724_v33  ;;  %v1749_v13 = vadd.f32 %v9599_v34, %v1725_v18  ;;  %v12440_v18 = vld [vmem:[#allocation11_spill] sm:$0xff] }
 0x26f   :  { %v1745_v8 = vadd.f32 %v9599_v34, %v1721_v31  ;;  %v1746_v5 = vadd.f32 %v9599_v34, %v1722_v0  ;;  %v1753_v14 = vadd.f32 %v9599_v34, %v1729_v35  ;;  %v1754_v55 = vadd.f32 %v9599_v34, %v1730_v28  ;;  %v12441_v31 = vld [vmem:[#allocation15_spill] sm:$0xff]  ;;  %v12442_v35 = vld [vmem:[#allocation12_spill] sm:$0xff] }
 0x270   :  { %v1786_v9 = vmax.f32 %v1765_v51, 0.0  ;;  %v1768_v50 = vmax.f32 %v1747_v38, 0.0  ;;  %v1769_v4 = vmax.f32 %v1748_v19, 0.0  ;;  %v1770_v48 = vmax.f32 %v1749_v13, 0.0  ;;  %v12443_v51 = vld [vmem:[#allocation10_spill] sm:$0xff] }
 0x271   :  { %v1766_v49 = vmax.f32 %v1745_v8, 0.0  ;;  %v1767_v36 = vmax.f32 %v1746_v5, 0.0  ;;  %v1755_v54 = vadd.f32 %v9599_v34, %v1731_v21  ;;  %v1774_v52 = vmax.f32 %v1753_v14, 0.0  ;;  %v12444_v19 = vld [vmem:[#allocation14_spill] sm:$0xff] }
 0x272   :  { %v1807_v33 = vmul.f32 %v1786_v9, %v9568_v27  ;;  %v1789_v11 = vmul.f32 %v1768_v50, %v12440_v18  ;;  %v1790_v29 = vmul.f32 %v1769_v4, %v12441_v31  ;;  %v1736_v0 = vmul.f32 %v9585_v12, %v9491_v10 }
 0x273   :  { %v1791_v28 = vmul.f32 %v1770_v48, %v12442_v35  ;;  %v1787_v38 = vmul.f32 %v1766_v49, %v12443_v51  ;;  %v1788_v13 = vmul.f32 %v1767_v36, %v12444_v19  ;;  %v1775_v8 = vmax.f32 %v1754_v55, 0.0 }
 0x274   :  { %1828 = vst.msk [vmem:[#allocation2 + $0xb0] sm:$0xff] %vm85_vm0, %v1807_v33  ;;  %v1776_v21 = vmax.f32 %v1755_v54, 0.0  ;;  %v1751_v5 = vadd.f32 %v9599_v34, %v1727_v63  ;;  %v1752_v14 = vadd.f32 %v9599_v34, %v1728_v32  ;;  %v1750_v9 = vadd.f32 %v9599_v34, %v1726_v6 }
 0x275   :  { %1810 = vst.msk [vmem:[#allocation2 + $0x20] sm:$0xff] %vm85_vm0, %v1789_v11  ;;  %v1795_v50 = vmul.f32 %v1774_v52, %v9316_v59  ;;  %v1796_v4 = vmul.f32 %v1775_v8, %v9325_v56  ;;  %v1737_v48 = vmul.f32 %v9585_v12, %v9509_v46  ;;  %v1759_v55 = vadd.f32 %v9599_v34, %v1735_v39 }
 0x276   :  { %1811 = vst.msk [vmem:[#allocation2 + $0x28] sm:$0xff] %vm85_vm0, %v1790_v29  ;;  %v1772_v49 = vmax.f32 %v1751_v5, 0.0  ;;  %v1773_v36 = vmax.f32 %v1752_v14, 0.0  ;;  %v1771_v63 = vmax.f32 %v1750_v9, 0.0  ;;  %v1760_v32 = vadd.f32 %v9599_v34, %v1736_v0 }
 0x277   :  { %1812 = vst.msk [vmem:[#allocation2 + $0x30] sm:$0xff] %vm85_vm0, %v1791_v28  ;;  %v1761_v11 = vadd.f32 %v9599_v34, %v1737_v48  ;;  %v1780_v6 = vmax.f32 %v1759_v55, 0.0  ;;  %v1733_v52 = vmul.f32 %v9585_v12, %v9446_v22  ;;  %v1734_v54 = vmul.f32 %v9585_v12, %v9459_v26 }
 0x278   :  { %1808 = vst.msk [vmem:[#allocation2 + $0x10] sm:$0xff] %vm85_vm0, %v1787_v38  ;;  %v1797_v29 = vmul.f32 %v1776_v21, %v9329_v3  ;;  %v1793_v39 = vmul.f32 %v1772_v49, %v9272_v57  ;;  %v1794_v33 = vmul.f32 %v1773_v36, %v9277_v1  ;;  %v1781_v0 = vmax.f32 %v1760_v32, 0.0 }
 0x279   :  { %1809 = vst.msk [vmem:[#allocation2 + $0x18] sm:$0xff] %vm85_vm0, %v1788_v13  ;;  %v1757_v28 = vadd.f32 %v9599_v34, %v1733_v52  ;;  %v1758_v8 = vadd.f32 %v9599_v34, %v1734_v54  ;;  %v1782_v5 = vmax.f32 %v1761_v11, 0.0  ;;  %v1732_v14 = vmul.f32 %v9585_v12, %v9426_v61  ;;  %v12445_v13 = vld [vmem:[#allocation19_spill] sm:$0xff]  ;;  %v1850_v54 = vld [vmem:[#allocation2 + $0x7] sm:$0xff] }
 0x27a   :  { %1816 = vst.msk [vmem:[#allocation2 + $0x50] sm:$0xff] %vm85_vm0, %v1795_v50  ;;  %v1739_v38 = vmul.f32 %v9585_v12, %v9539_v58  ;;  %v1740_v21 = vmul.f32 %v9585_v12, %v9552_v7  ;;  %v1792_v9 = vmul.f32 %v1771_v63, %v12445_v13  ;;  %v1801_v48 = vmul.f32 %v1780_v6, %v9439_v44 }
 0x27b   :  { %1817 = vst.msk [vmem:[#allocation2 + $0x58] sm:$0xff] %vm85_vm0, %v1796_v4  ;;  %v1778_v55 = vmax.f32 %v1757_v28, 0.0  ;;  %v1738_v50 = vmul.f32 %v9585_v12, %v9525_v16  ;;  %v1779_v49 = vmax.f32 %v1758_v8, 0.0  ;;  %v1756_v36 = vadd.f32 %v9599_v34, %v1732_v14 }
 0x27c   :  { %1818 = vst.msk [vmem:[#allocation2 + $0x60] sm:$0xff] %vm85_vm0, %v1797_v29  ;;  %v1763_v32 = vadd.f32 %v9599_v34, %v1739_v38  ;;  %v1764_v11 = vadd.f32 %v9599_v34, %v1740_v21  ;;  %v1802_v4 = vmul.f32 %v1781_v0, %v9451_v43  ;;  %v1803_v12 = vmul.f32 %v1782_v5, %v9461_v23 }
 0x27d   :  { %v1854_v52 = vld [vmem:[#allocation2 + $0x27] sm:$0xff]  ;;  %1814 = vst.msk [vmem:[#allocation2 + $0x40] sm:$0xff] %vm85_vm0, %v1793_v39  ;;  %v1762_v63 = vadd.f32 %v9599_v34, %v1738_v50  ;;  %v1777_v29 = vmax.f32 %v1756_v36, 0.0  ;;  %v1799_v38 = vmul.f32 %v1778_v55, %v9372_v47  ;;  %v1800_v34 = vmul.f32 %v1779_v49, %v9380_v25 }
 0x27e   :  { %v1855_v6 = vld [vmem:[#allocation2 + $0x2f] sm:$0xff]  ;;  %1815 = vst.msk [vmem:[#allocation2 + $0x48] sm:$0xff] %vm85_vm0, %v1794_v33  ;;  %v1784_v28 = vmax.f32 %v1763_v32, 0.0  ;;  %v1785_v21 = vmax.f32 %v1764_v11, 0.0  ;;  %v1833_v17 = vld [vmem:[#allocation2 + $0x26] sm:$0xff] }
 0x27f   :  { %v7768_v8 = vpack.i.bf16 %v1855_v6, %v1854_v52  ;;  %v1851_v14 = vld [vmem:[#allocation2 + $0xf] sm:$0xff]  ;;  %1813 = vst.msk [vmem:[#allocation2 + $0x38] sm:$0xff] %vm85_vm0, %v1792_v9  ;;  %v1783_v0 = vmax.f32 %v1762_v63, 0.0  ;;  %v1798_v5 = vmul.f32 %v1777_v29, %v9357_v37 }
 0x280   :  { %v1852_v7 = vld [vmem:[#allocation2 + $0x17] sm:$0xff]  ;;  %v1853_v39 = vld [vmem:[#allocation2 + $0x1f] sm:$0xff]  ;;  %v7758_v58 = vpack.i.bf16 %v1851_v14, %v1850_v54  ;;  %1822 = vst.msk [vmem:[#allocation2 + $0x80] sm:$0xff] %vm85_vm0, %v1801_v48  ;;  %v1805_v9 = vmul.f32 %v1784_v28, %v9520_v40  ;;  %v1806_v48 = vmul.f32 %v1785_v21, %v9543_v62  ;;  %v1834_v15 = vld [vmem:[#allocation2 + $0x2e] sm:$0xff] }
 0x281   :  { %7769 = vrot.lane.b32.xlu2 %v7768_v8, %s8161_s5  ;;  %v7763_v33 = vpack.i.bf16 %v1853_v39, %v1852_v7  ;;  %1823 = vst.msk [vmem:[#allocation2 + $0x88] sm:$0xff] %vm85_vm0, %v1802_v4  ;;  %v1804_v7 = vmul.f32 %v1783_v0, %v9514_v2  ;;  %v1894_v21 = vld [vmem:[#allocation2 + $0x11] sm:$0xff]  ;;  %v1895_v39 = vld [vmem:[#allocation2 + $0x19] sm:$0xff]  ;;  %v1875_v45 = vld [vmem:[#allocation2 + $0x28] sm:$0xff] }
 0x282   :  { %7759 = vrot.lane.b32.xlu0 %v7758_v58, %s8161_s5  ;;  %1824 = vst.msk [vmem:[#allocation2 + $0x90] sm:$0xff] %vm85_vm0, %v1803_v12  ;;  %v1860_v55 = vld [vmem:[#allocation2 + $0x57] sm:$0xff] }
 0x283   :  { %7764 = vrot.lane.b32.xlu1 %v7763_v33, %s8161_s5  ;;  %1820 = vst.msk [vmem:[#allocation2 + $0x70] sm:$0xff] %vm85_vm0, %v1799_v38  ;;  %v1861_v50 = vld [vmem:[#allocation2 + $0x5f] sm:$0xff]  ;;  %v7808_v33 = vpack.i.bf16 %v1895_v39, %v1894_v21  ;;  %v1876_v53 = vld [vmem:[#allocation2 + $0x30] sm:$0xff] }
 0x284   :  { %1821 = vst.msk [vmem:[#allocation2 + $0x78] sm:$0xff] %vm85_vm0, %v1800_v34  ;;  %v7783_v11 = vpack.i.bf16 %v1861_v50, %v1860_v55  ;;  %v1896_v55 = vld [vmem:[#allocation2 + $0x21] sm:$0xff]  ;;  %v1897_v50 = vld [vmem:[#allocation2 + $0x29] sm:$0xff] }
 0x285   :  { %v1858_v49 = vld [vmem:[#allocation2 + $0x47] sm:$0xff]  ;;  %1819 = vst.msk [vmem:[#allocation2 + $0x68] sm:$0xff] %vm85_vm0, %v1798_v5  ;;  %v1859_v58 = vld [vmem:[#allocation2 + $0x4f] sm:$0xff] }
 0x286   :  { %v1856_v36 = vld [vmem:[#allocation2 + $0x37] sm:$0xff]  ;;  %v1857_v32 = vld [vmem:[#allocation2 + $0x3f] sm:$0xff]  ;;  %1826 = vst.msk [vmem:[#allocation2 + $0xa0] sm:$0xff] %vm85_vm0, %v1805_v9  ;;  %v7778_v54 = vpack.i.bf16 %v1859_v58, %v1858_v49 }
 0x287   :  { %1827 = vst.msk [vmem:[#allocation2 + $0xa8] sm:$0xff] %vm85_vm0, %v1806_v48  ;;  %v7773_v52 = vpack.i.bf16 %v1857_v32, %v1856_v36  ;;  %v1898_v48 = vld [vmem:[#allocation2 + $0x31] sm:$0xff]  ;;  %v1899_v49 = vld [vmem:[#allocation2 + $0x39] sm:$0xff]  ;;  %v1900_v58 = vld [vmem:[#allocation2 + $0x41] sm:$0xff] }
 0x288   :  { %1825 = vst.msk [vmem:[#allocation2 + $0x98] sm:$0xff] %vm85_vm0, %v1804_v7  ;;  %v1866_v4 = vld [vmem:[#allocation2 + $0x87] sm:$0xff]  ;;  %v1902_v32 = vld [vmem:[#allocation2 + $0x51] sm:$0xff]  ;;  %v1836_v44 = vld [vmem:[#allocation2 + $0x3e] sm:$0xff] }
 0x289   :  { %7784 = vrot.lane.b32.xlu2 %v7783_v11, %s8161_s5  ;;  %v1867_v63 = vld [vmem:[#allocation2 + $0x8f] sm:$0xff]  ;;  %v1903_v11 = vld [vmem:[#allocation2 + $0x59] sm:$0xff] }
 0x28a   :  { %7774 = vrot.lane.b32.xlu0 %v7773_v52, %s8161_s5  ;;  %v7798_v8 = vpack.i.bf16 %v1867_v63, %v1866_v4  ;;  %v1901_v7 = vld [vmem:[#allocation2 + $0x49] sm:$0xff]  ;;  %v7600_v39 = vld [vmem:[%s12262_s7 + $0xa8] sm:$0xff] }
 0x28b   :  { %7779 = vrot.lane.b32.xlu1 %v7778_v54, %s8161_s5  ;;  %v1864_v29 = vld [vmem:[#allocation2 + $0x77] sm:$0xff]  ;;  %v1865_v28 = vld [vmem:[#allocation2 + $0x7f] sm:$0xff]  ;;  %v9919_v61 = vld [vmem:[#allocation2 + $0x88] sm:$0xff] }
 0x28c   :  { %v1862_v6 = vld [vmem:[#allocation2 + $0x67] sm:$0xff]  ;;  %v1863_v12 = vld [vmem:[#allocation2 + $0x6f] sm:$0xff]  ;;  %v7793_v38 = vpack.i.bf16 %v1865_v28, %v1864_v29  ;;  %v1907_v63 = vld [vmem:[#allocation2 + $0x79] sm:$0xff] }
 0x28d   :  { %v7788_v14 = vpack.i.bf16 %v1863_v12, %v1862_v6  ;;  %v1904_v36 = vld [vmem:[#allocation2 + $0x61] sm:$0xff]  ;;  %v7586_v52 = vld [vmem:[%s12262_s7 + $0x38] sm:$0xff] }
 0x28e   :  { %v1870_v9 = vld [vmem:[#allocation2 + $0xa7] sm:$0xff]  ;;  %v7594_v54 = vld [vmem:[%s12262_s7 + $0x78] sm:$0xff]  ;;  %2558 = vmatpush.bf16.msrb.mxu1 %v7586_v52 }
 0x28f   :  { %v1868_v34 = vld [vmem:[#allocation2 + $0x97] sm:$0xff]  ;;  %v1869_v0 = vld [vmem:[#allocation2 + $0x9f] sm:$0xff]  ;;  %2621 = vmatpush.bf16.msrb.mxu2 %v7594_v54  ;;  %v1905_v6 = vld [vmem:[#allocation2 + $0x69] sm:$0xff] }
 0x290   :  { %v7803_v5 = vpack.i.bf16 %v1869_v0, %v1868_v34  ;;  %v7602_v4 = vld [vmem:[%s12262_s7 + $0xb8] sm:$0xff]  ;;  %v7585_v29 = vld [vmem:[%s12262_s7 + $0x30] sm:$0xff]  ;;  %v7580_v52 = vld [vmem:[%s12262_s7 + $0x8] sm:$0xff] }
 0x291   :  { %7799 = vrot.lane.b32.xlu2 %v7798_v8, %s8161_s5  ;;  %2684 = vmatpush.bf16.msrb.mxu3 %v7602_v4  ;;  %v1906_v12 = vld [vmem:[#allocation2 + $0x71] sm:$0xff]  ;;  %v7593_v28 = vld [vmem:[%s12262_s7 + $0x70] sm:$0xff]  ;;  %v7588_v54 = vld [vmem:[%s12262_s7 + $0x48] sm:$0xff] }
 0x292   :  { %7789 = vrot.lane.b32.xlu0 %v7788_v14, %s8161_s5  ;;  %v7601_v8 = vld [vmem:[%s12262_s7 + $0xb0] sm:$0xff]  ;;  %2559 = vmatpush.bf16.msrb.mxu1 %v7585_v29  ;;  %v7584_v14 = vld [vmem:[%s12262_s7 + $0x28] sm:$0xff]  ;;  %v1910_v21 = vld [vmem:[#allocation2 + $0x91] sm:$0xff] }
 0x293   :  { %7794 = vrot.lane.b32.xlu1 %v7793_v38, %s8161_s5  ;;  %2622 = vmatpush.bf16.msrb.mxu2 %v7593_v28  ;;  %v7592_v38 = vld [vmem:[%s12262_s7 + $0x68] sm:$0xff]  ;;  %v1909_v0 = vld [vmem:[#allocation2 + $0x89] sm:$0xff]  ;;  %v7587_v29 = vld [vmem:[%s12262_s7 + $0x40] sm:$0xff] }
 0x294   :  { %v1908_v34 = vld [vmem:[#allocation2 + $0x81] sm:$0xff]  ;;  %v7595_v28 = vld [vmem:[%s12262_s7 + $0x80] sm:$0xff]  ;;  %v9917_v22 = vld [vmem:[#allocation2 + $0x90] sm:$0xff] }
 0x295   :  { %2685 = vmatpush.bf16.msrb.mxu3 %v7601_v8  ;;  %v7596_v4 = vld [vmem:[%s12262_s7 + $0x88] sm:$0xff]  ;;  %v7610_v8 = vld [vmem:[%s12262_s7 + $0xf8] sm:$0xff] }
 0x296   :  { %2560 = vmatpush.bf16.msrb.mxu1 %v7584_v14  ;;  %2747 = vmatpush.bf16.msrb.mxu0 %v7610_v8 }
 0x297   :  { %2623 = vmatpush.bf16.msrb.mxu2 %v7592_v38  ;;  %v7609_v38 = vld [vmem:[%s12262_s7 + $0xf0] sm:$0xff] }
 0x299   :  { %7809 = vrot.lane.b32.xlu2 %v7808_v33, %s8161_s5  ;;  %2686 = vmatpush.bf16.msrb.mxu3 %v7600_v39  ;;  %v7583_v33 = vld [vmem:[%s12262_s7 + $0x20] sm:$0xff] }
 0x29a   :  { %7804 = vrot.lane.b32.xlu0 %v7803_v5, %s8161_s5  ;;  %v7591_v5 = vld [vmem:[%s12262_s7 + $0x60] sm:$0xff]  ;;  %2561 = vmatpush.bf16.msrb.mxu1 %v7583_v33 }
 0x29b   :  { %1999 = vrot.lane.b32.xlu1 %v1870_v9, %s8161_s5  ;;  %v7599_v9 = vld [vmem:[%s12262_s7 + $0xa0] sm:$0xff]  ;;  %2624 = vmatpush.bf16.msrb.mxu2 %v7591_v5  ;;  %v7605_v5 = vld [vmem:[%s12262_s7 + $0xd0] sm:$0xff] }
 0x29c   :  { %2748 = vmatpush.bf16.msrb.mxu0 %v7609_v38 }
 0x29d   :  { %2687 = vmatpush.bf16.msrb.mxu3 %v7599_v9  ;;  %v7604_v9 = vld [vmem:[%s12262_s7 + $0xc8] sm:$0xff] }
 0x2a1   :  { %2055 = vrot.lane.b32.xlu2 %v1898_v48, %s8161_s5  ;;  %v7582_v48 = vld [vmem:[%s12262_s7 + $0x18] sm:$0xff] }
 0x2a2   :  { %2051 = vrot.lane.b32.xlu0 %v1896_v55, %s8161_s5  ;;  %v7590_v55 = vld [vmem:[%s12262_s7 + $0x58] sm:$0xff]  ;;  %2562 = vmatpush.bf16.msrb.mxu1 %v7582_v48 }
 0x2a3   :  { %2053 = vrot.lane.b32.xlu1 %v1897_v50, %s8161_s5  ;;  %v1913_v50 = vld [vmem:[#allocation2 + $0xa9] sm:$0xff]  ;;  %2625 = vmatpush.bf16.msrb.mxu2 %v7590_v55 }
 0x2a9   :  { %2061 = vrot.lane.b32.xlu2 %v1901_v7, %s8161_s5  ;;  %v7598_v7 = vld [vmem:[%s12262_s7 + $0x98] sm:$0xff] }
 0x2aa   :  { %2057 = vrot.lane.b32.xlu0 %v1899_v49, %s8161_s5  ;;  %v1911_v49 = vld [vmem:[#allocation2 + $0x99] sm:$0xff]  ;;  %2688 = vmatpush.bf16.msrb.mxu3 %v7598_v7  ;;  %v1829_v7 = vld [vmem:[#allocation2 + $0x6] sm:$0xff] }
 0x2ab   :  { %2059 = vrot.lane.b32.xlu1 %v1900_v58, %s8161_s5  ;;  %v1912_v58 = vld [vmem:[#allocation2 + $0xa1] sm:$0xff] }
 0x2b1   :  { %2067 = vrot.lane.b32.xlu2 %v1904_v36, %s8161_s5  ;;  %v7581_v36 = vld [vmem:[%s12262_s7 + $0x10] sm:$0xff] }
 0x2b2   :  { %2063 = vrot.lane.b32.xlu0 %v1902_v32, %s8161_s5  ;;  %v7589_v32 = vld [vmem:[%s12262_s7 + $0x50] sm:$0xff]  ;;  %2563 = vmatpush.bf16.msrb.mxu1 %v7581_v36  ;;  %v1873_v36 = vld [vmem:[#allocation2 + $0x18] sm:$0xff] }
 0x2b3   :  { %2065 = vrot.lane.b32.xlu1 %v1903_v11, %s8161_s5  ;;  %v7597_v11 = vld [vmem:[%s12262_s7 + $0x90] sm:$0xff]  ;;  %2626 = vmatpush.bf16.msrb.mxu2 %v7589_v32  ;;  %v1872_v32 = vld [vmem:[#allocation2 + $0x10] sm:$0xff] }
 0x2b4   :  { %2689 = vmatpush.bf16.msrb.mxu3 %v7597_v11 }
 0x2b6   :  { %2564 = vmatpush.bf16.msrb.mxu1 %v7580_v52 }
 0x2b7   :  { %2627 = vmatpush.bf16.msrb.mxu2 %v7588_v54 }
 0x2b8   :  { %2690 = vmatpush.bf16.msrb.mxu3 %v7596_v4 }
 0x2b9   :  { %2073 = vrot.lane.b32.xlu2 %v1907_v63, %s8161_s5  ;;  %v1914_v63 = vld [vmem:[#allocation2 + $0xb1] sm:$0xff] }
 0x2ba   :  { %2069 = vrot.lane.b32.xlu0 %v1905_v6, %s8161_s5  ;;  %v1892_v6 = vld [vmem:[#allocation2 + $0xaf] sm:$0xff] }
 0x2bb   :  { %2071 = vrot.lane.b32.xlu1 %v1906_v12, %s8161_s5  ;;  %v7579_v12 = vld [vmem:[%s12262_s7] sm:$0xff]  ;;  %2628 = vmatpush.bf16.msrb.mxu2 %v7587_v29 }
 0x2bc   :  { %2565 = vmatpush.bf16.msrb.mxu1 %v7579_v12  ;;  %2691 = vmatpush.bf16.msrb.mxu3 %v7595_v28  ;;  %v1830_v12 = vld [vmem:[#allocation2 + $0xe] sm:$0xff] }
 0x2c1   :  { %2079 = vrot.lane.b32.xlu2 %v1910_v21, %s8161_s5  ;;  %v7608_v21 = vld [vmem:[%s12262_s7 + $0xe8] sm:$0xff] }
 0x2c2   :  { %2075 = vrot.lane.b32.xlu0 %v1908_v34, %s8161_s5  ;;  %2749 = vmatpush.bf16.msrb.mxu0 %v7608_v21  ;;  %v7607_v34 = vld [vmem:[%s12262_s7 + $0xe0] sm:$0xff] }
 0x2c3   :  { %2077 = vrot.lane.b32.xlu1 %v1909_v0, %s8161_s5  ;;  %v7606_v0 = vld [vmem:[%s12262_s7 + $0xd8] sm:$0xff]  ;;  %v7603_v21 = vld [vmem:[%s12262_s7 + $0xc0] sm:$0xff] }
 0x2c6   :  { %2750 = vmatpush.bf16.msrb.mxu0 %v7607_v34 }
 0x2c9   :  { %2085 = vrot.lane.b32.xlu2 %v1913_v50, %s8161_s5 }
 0x2ca   :  { %2081 = vrot.lane.b32.xlu0 %v1911_v49, %s8161_s5  ;;  %2751 = vmatpush.bf16.msrb.mxu0 %v7606_v0  ;;  %v1871_v49 = vld [vmem:[#allocation2 + $0x8] sm:$0xff] }
 0x2cb   :  { %2083 = vrot.lane.b32.xlu1 %v1912_v58, %s8161_s5 }
 0x2ce   :  { %2752 = vmatpush.bf16.msrb.mxu0 %v7605_v5 }
 0x2d2   :  { %2087 = vrot.lane.b32.xlu0 %v1914_v63, %s8161_s5  ;;  %2753 = vmatpush.bf16.msrb.mxu0 %v7604_v9 }
 0x2d3   :  { %2023 = vrot.lane.b32.xlu1 %v1892_v6, %s8161_s5 }
 0x2d6   :  { %2754 = vmatpush.bf16.msrb.mxu0 %v7603_v21  ;;  %v9855_v21 = vld [vmem:[#allocation2 + $0x60] sm:$0xff] }
 0x2db   :  { %v9801_v14 = vpop.permute.xlu2 %7769 }
 0x2dc   :  { %v7772_v42 = vunpack.i.h.bf16 %v9801_v14 }
 0x2de   :  { %v2139_v23 = vsel %vm85_vm0, %v1875_v45, %v7772_v42 }
 0x2e3   :  { %v9809_v39 = vpop.permute.xlu2 %7784 }
 0x2eb   :  { %v9817_v33 = vpop.permute.xlu2 %7799 }
 0x2ec   :  { %v12448_v10 = vunpack.i.l.bf16 %v9817_v33 }
 0x2f3   :  { %v7810_v48 = vpop.permute.xlu2 %7809 }
 0x2f4   :  { %v7812_v55 = vunpack.i.h.bf16 %v7810_v48  ;;  %v7811_v50 = vunpack.i.l.bf16 %v7810_v48  ;;  %v7760_v58 = vpop.permute.xlu0 %7759 }
 0x2f5   :  { %v7765_v11 = vpop.permute.xlu1 %7764  ;;  %v7762_v52 = vunpack.i.h.bf16 %v7760_v58  ;;  %v7761_v54 = vunpack.i.l.bf16 %v7760_v58 }
 0x2f6   :  { %v9826_v4 = vsel %vm85_vm0, %v1873_v36, %v7812_v55  ;;  %v2156_v63 = vsel %vm85_vm0, %v1872_v32, %v7811_v50  ;;  %v7766_v6 = vunpack.i.l.bf16 %v7765_v11  ;;  %v7767_v55 = vunpack.i.h.bf16 %v7765_v11 }
 0x2f7   :  { %v2180_v29 = vpack.c.bf16 %v9826_v4, %v2156_v63  ;;  %v2135_v28 = vsel %vm85_vm0, %v1871_v49, %v7762_v52  ;;  %v2114_v8 = vsel %vm85_vm0, %v1829_v7, %v7761_v54  ;;  %v2115_v38 = vsel %vm85_vm0, %v1830_v12, %v7762_v52  ;;  %v1832_v52 = vld [vmem:[#allocation2 + $0x1e] sm:$0xff]  ;;  %v9861_v49 = vld [vmem:[#allocation2 + $0x70] sm:$0xff] }
 0x2f8   :  { %v2136_v34 = vsel %vm85_vm0, %v1872_v32, %v7766_v6  ;;  %v2178_v0 = vpack.c.bf16 %v2115_v38, %v2114_v8  ;;  %v12301_v50 = vunpack.i.h.bf16 %v9809_v39  ;;  %v7771_v7 = vunpack.i.l.bf16 %v9801_v14  ;;  %v1831_v32 = vld [vmem:[#allocation2 + $0x16] sm:$0xff]  ;;  %v9884_v8 = vld [vmem:[#allocation2 + $0x80] sm:$0xff] }
 0x2f9   :  { %v2179_v5 = vpack.c.bf16 %v2136_v34, %v2135_v28  ;;  %2692 = vmatmul.bf16.vlgmr.msrb.gmra.mxu3 %v2180_v29  ;;  %v2116_v29 = vsel %vm85_vm0, %v1831_v32, %v7766_v6  ;;  %v2117_v11 = vsel %vm85_vm0, %v1832_v52, %v7767_v55  ;;  %v2137_v38 = vsel %vm85_vm0, %v1873_v36, %v7767_v55  ;;  %v9857_v34 = vld [vmem:[#allocation2 + $0x58] sm:$0xff] }
 0x2fa   :  { %2566 = vmatmul.bf16.vlgmr.msrb.gmra.mxu1 %v2178_v0  ;;  %v9859_v0 = vld [vmem:[#allocation2 + $0x68] sm:$0xff]  ;;  %v9867_v6 = vsel %vm85_vm0, %v9857_v34, %v12301_v50  ;;  %v2183_v32 = vpack.c.bf16 %v2117_v11, %v2116_v29  ;;  %v9882_v28 = vld [vmem:[#allocation2 + $0x78] sm:$0xff]  ;;  %v9906_v50 = vsel %vm85_vm0, %v9884_v8, %v12448_v10  ;;  %v9921_v10 = vld [vmem:[#allocation2 + $0xa0] sm:$0xff]  ;;  %v2118_v27 = vsel %vm85_vm0, %v1833_v17, %v7771_v7 }
 0x2fb   :  { %2629 = vmatmul.bf16.vlgmr.msrb.gmra.mxu2 %v2179_v5  ;;  %v1874_v5 = vld [vmem:[#allocation2 + $0x20] sm:$0xff] }
 0x2fc   :  { %v9837_v9 = vpop.permute.xlu0 %7774  ;;  %v2138_v52 = vsel %vm85_vm0, %v1874_v5, %v7771_v7  ;;  %v2056_v7 = vpop.permute.xlu2 %2055 }
 0x2fd   :  { %v9839_v48 = vpop.permute.xlu1 %7779  ;;  %v2184_v46 = vpack.c.bf16 %v2138_v52, %v2137_v38  ;;  %v12312_v38 = vunpack.i.h.bf16 %v9817_v33  ;;  %v7776_v24 = vunpack.i.l.bf16 %v9837_v9 }
 0x304   :  { %v9844_v58 = vpop.permute.xlu0 %7789 }
 0x305   :  { %v9846_v54 = vpop.permute.xlu1 %7794  ;;  %v12305_v63 = vunpack.i.h.bf16 %v9844_v58  ;;  %v12303_v12 = vunpack.i.l.bf16 %v9844_v58 }
 0x306   :  { %v12446_v16 = vunpack.i.l.bf16 %v9846_v54  ;;  %v12447_v29 = vunpack.i.h.bf16 %v9846_v54 }
 0x307   :  { %v9873_v36 = vsel %vm85_vm0, %v9855_v21, %v12303_v12  ;;  %v9879_v55 = vsel %vm85_vm0, %v9859_v0, %v12305_v63 }
 0x308   :  { %v9892_v12 = vsel %vm85_vm0, %v9861_v49, %v12446_v16  ;;  %v9900_v11 = vsel %vm85_vm0, %v9882_v28, %v12447_v29 }
 0x30a   :  { %2571 = vmatmul.bf16.gmra.mxu1 %v2183_v32  ;;  %v9923_v32 = vld [vmem:[#allocation2 + $0x98] sm:$0xff] }
 0x30b   :  { %2634 = vmatmul.bf16.gmra.mxu2 %v2184_v46  ;;  %v9929_v46 = vsel %vm85_vm0, %v9919_v61, %v12312_v38 }
 0x30c   :  { %v9911_v52 = vpop.permute.xlu0 %7804 }
 0x30d   :  { %v9913_v63 = vpop.permute.xlu1 %1999  ;;  %v12314_v26 = vunpack.i.l.bf16 %v9911_v52  ;;  %v12449_v20 = vunpack.i.h.bf16 %v9911_v52 }
 0x30e   :  { %v9940_v29 = vsel %vm85_vm0, %v9921_v10, %v9913_v63 }
 0x30f   :  { %v9935_v16 = vsel %vm85_vm0, %v9917_v22, %v12314_v26  ;;  %v9948_v38 = vsel %vm85_vm0, %v9923_v32, %v12449_v20  ;;  %v2119_v20 = vsel %vm85_vm0, %v1834_v15, %v7772_v42  ;;  %v2140_v26 = vsel %vm85_vm0, %v1876_v53, %v7776_v24 }
 0x310   :  { %v2188_v2 = vpack.c.bf16 %v2119_v20, %v2118_v27  ;;  %v2189_v43 = vpack.c.bf16 %v2140_v26, %v2139_v23  ;;  %v7781_v15 = vunpack.i.l.bf16 %v9839_v48  ;;  %v1878_v27 = vld [vmem:[#allocation2 + $0x40] sm:$0xff] }
 0x314   :  { %v2052_v60 = vpop.permute.xlu0 %2051 }
 0x315   :  { %v2054_v30 = vpop.permute.xlu1 %2053  ;;  %v2158_v41 = vsel %vm85_vm0, %v1874_v5, %v2052_v60  ;;  %v7777_v60 = vunpack.i.h.bf16 %v9837_v9  ;;  %v1835_v5 = vld [vmem:[#allocation2 + $0x36] sm:$0xff] }
 0x316   :  { %v2159_v62 = vsel %vm85_vm0, %v1875_v45, %v2054_v30  ;;  %v2181_v14 = vpack.c.bf16 %v2158_v41, %v9826_v4  ;;  %v1877_v30 = vld [vmem:[#allocation2 + $0x38] sm:$0xff]  ;;  %v2120_v42 = vsel %vm85_vm0, %v1835_v5, %v7776_v24 }
 0x317   :  { %v2185_v40 = vpack.c.bf16 %v2159_v62, %v2158_v41  ;;  %v2160_v41 = vsel %vm85_vm0, %v1876_v53, %v2056_v7  ;;  %v2121_v26 = vsel %vm85_vm0, %v1836_v44, %v7777_v60  ;;  %v7782_v53 = vunpack.i.h.bf16 %v9839_v48 }
 0x318   :  { %2755 = vmatmul.bf16.vlgmr.msrb.gmra.mxu0 %v2181_v14  ;;  %v2186_v23 = vpack.c.bf16 %v2160_v41, %v2159_v62  ;;  %v2193_v45 = vpack.c.bf16 %v2121_v26, %v2120_v42  ;;  %v2062_v14 = vpop.permute.xlu2 %2061  ;;  %v7786_v44 = vunpack.i.l.bf16 %v9809_v39  ;;  %v1837_v62 = vld [vmem:[#allocation2 + $0x46] sm:$0xff] }
 0x319   :  { %2697 = vmatmul.bf16.gmra.mxu3 %v2185_v40  ;;  %v2122_v7 = vsel %vm85_vm0, %v1837_v62, %v7781_v15 }
 0x31a   :  { %2576 = vmatmul.bf16.gmra.mxu1 %v2188_v2  ;;  %v2142_v2 = vsel %vm85_vm0, %v1878_v27, %v7781_v15 }
 0x31b   :  { %2639 = vmatmul.bf16.gmra.mxu2 %v2189_v43  ;;  %v2141_v43 = vsel %vm85_vm0, %v1877_v30, %v7777_v60  ;;  %v1879_v60 = vld [vmem:[#allocation2 + $0x48] sm:$0xff] }
 0x31c   :  { %v2058_v17 = vpop.permute.xlu0 %2057  ;;  %v2194_v9 = vpack.c.bf16 %v2142_v2, %v2141_v43  ;;  %v2163_v5 = vsel %vm85_vm0, %v1879_v60, %v2062_v14  ;;  %v2143_v42 = vsel %vm85_vm0, %v1879_v60, %v7782_v53  ;;  %v12451_v60 = vpack.c.bf16 %v9873_v36, %v9867_v6 }
 0x31d   :  { %v2161_v4 = vsel %vm85_vm0, %v1877_v30, %v2058_v17  ;;  %v2060_v20 = vpop.permute.xlu1 %2059  ;;  %v1838_v17 = vld [vmem:[#allocation2 + $0x4e] sm:$0xff] }
 0x31e   :  { %v2190_v40 = vpack.c.bf16 %v2161_v4, %v2160_v41  ;;  %v2162_v24 = vsel %vm85_vm0, %v1878_v27, %v2060_v20  ;;  %v2123_v30 = vsel %vm85_vm0, %v1838_v17, %v7782_v53  ;;  %v12450_v53 = vunpack.i.h.bf16 %v9809_v39 }
 0x31f   :  { %v2191_v41 = vpack.c.bf16 %v2162_v24, %v2161_v4  ;;  %v2195_v26 = vpack.c.bf16 %v2163_v5, %v2162_v24  ;;  %v2198_v48 = vpack.c.bf16 %v2123_v30, %v2122_v7  ;;  %v1839_v4 = vld [vmem:[#allocation2 + $0x56] sm:$0xff] }
 0x320   :  { %v2124_v20 = vsel %vm85_vm0, %v1839_v4, %v7786_v44 }
 0x324   :  { %v2064_v2 = vpop.permute.xlu0 %2063 }
 0x328   :  { %2760 = vmatmul.bf16.gmra.mxu0 %v2186_v23  ;;  %v1880_v23 = vld [vmem:[#allocation2 + $0x50] sm:$0xff] }
 0x329   :  { %2702 = vmatmul.bf16.gmra.mxu3 %v2190_v40  ;;  %v2144_v27 = vsel %vm85_vm0, %v1880_v23, %v7786_v44  ;;  %v2066_v40 = vpop.permute.xlu1 %2065  ;;  %v2164_v15 = vsel %vm85_vm0, %v1880_v23, %v2064_v2  ;;  %v1841_v44 = vld [vmem:[#allocation2 + $0x66] sm:$0xff]  ;;  %v1843_v2 = vld [vmem:[#allocation2 + $0x76] sm:$0xff] }
 0x32a   :  { %2581 = vmatmul.bf16.gmra.mxu1 %v2193_v45  ;;  %v2199_v43 = vpack.c.bf16 %v2144_v27, %v2143_v42  ;;  %v2165_v45 = vsel %vm85_vm0, %v9857_v34, %v2066_v40  ;;  %v2196_v24 = vpack.c.bf16 %v2164_v15, %v2163_v5  ;;  %v2068_v34 = vpop.permute.xlu2 %2067  ;;  %v12452_v5 = vunpack.i.l.bf16 %v9844_v58  ;;  %v1844_v40 = vld [vmem:[#allocation2 + $0x7e] sm:$0xff] }
 0x32b   :  { %2644 = vmatmul.bf16.gmra.mxu2 %v2194_v9  ;;  %v1840_v9 = vld [vmem:[#allocation2 + $0x5e] sm:$0xff]  ;;  %v2200_v62 = vpack.c.bf16 %v2165_v45, %v2164_v15  ;;  %v2166_v39 = vsel %vm85_vm0, %v9855_v21, %v2068_v34 }
 0x32c   :  { %v2125_v14 = vsel %vm85_vm0, %v1840_v9, %v12450_v53  ;;  %v2070_v7 = vpop.permute.xlu0 %2069  ;;  %v2126_v42 = vsel %vm85_vm0, %v1841_v44, %v12452_v5  ;;  %v2201_v6 = vpack.c.bf16 %v2166_v39, %v2165_v45  ;;  %v12456_v45 = vunpack.i.h.bf16 %v9846_v54 }
 0x32d   :  { %v2203_v17 = vpack.c.bf16 %v2125_v14, %v2124_v20  ;;  %v2167_v30 = vsel %vm85_vm0, %v9859_v0, %v2070_v7  ;;  %v12454_v0 = vpack.c.bf16 %v9892_v12, %v9879_v55  ;;  %v12459_v7 = vunpack.i.h.bf16 %v9817_v33 }
 0x32e   :  { %v2205_v36 = vpack.c.bf16 %v2167_v30, %v2166_v39  ;;  %v2129_v4 = vsel %vm85_vm0, %v1844_v40, %v12456_v45 }
 0x331   :  { %v2072_v27 = vpop.permute.xlu1 %2071 }
 0x332   :  { %v2074_v21 = vpop.permute.xlu2 %2073 }
 0x333   :  { %v2169_v9 = vsel %vm85_vm0, %v9882_v28, %v2074_v21  ;;  %v1846_v28 = vld [vmem:[#allocation2 + $0x8e] sm:$0xff]  ;;  %v12461_v21 = vunpack.i.l.bf16 %v9911_v52 }
 0x334   :  { %v2076_v53 = vpop.permute.xlu0 %2075  ;;  %v2131_v34 = vsel %vm85_vm0, %v1846_v28, %v12459_v7 }
 0x338   :  { %2765 = vmatmul.bf16.gmra.mxu0 %v2191_v41  ;;  %v1842_v41 = vld [vmem:[#allocation2 + $0x6e] sm:$0xff] }
 0x339   :  { %2707 = vmatmul.bf16.gmra.mxu3 %v2195_v26  ;;  %v12453_v26 = vunpack.i.h.bf16 %v9844_v58  ;;  %v12455_v58 = vunpack.i.l.bf16 %v9846_v54  ;;  %v2078_v14 = vpop.permute.xlu1 %2077  ;;  %v2170_v54 = vsel %vm85_vm0, %v9884_v8, %v2076_v53  ;;  %v10026_v8 = vld [vmem:[%s12263_s8] ss:$0 sm:$0xff]  ;;  %s6572_s8 = sshll.u32 %s12274_s19, 4  ;;  %s6573_s8 = int_to_ptr.hbm [resolvable:$true] %s6572_s8 }
 0x33a   :  { %2586 = vmatmul.bf16.gmra.mxu1 %v2198_v48 }
 0x33b   :  { %2649 = vmatmul.bf16.gmra.mxu2 %v2199_v43  ;;  %v2127_v23 = vsel %vm85_vm0, %v1842_v41, %v12453_v26  ;;  %v2168_v43 = vsel %vm85_vm0, %v9861_v49, %v2072_v27  ;;  %v2128_v15 = vsel %vm85_vm0, %v1843_v2, %v12455_v58  ;;  %v12457_v49 = vpack.c.bf16 %v9906_v50, %v9900_v11  ;;  %v7614_v41 = vld [vmem:[%s12262_s7 + $0x118] sm:$0xff]  ;;  %v7612_v58 = vld [vmem:[%s12262_s7 + $0x108] sm:$0xff] }
 0x33c   :  { %v2208_v48 = vpack.c.bf16 %v2127_v23, %v2126_v42  ;;  %v2206_v12 = vpack.c.bf16 %v2168_v43, %v2167_v30  ;;  %v2210_v55 = vpack.c.bf16 %v2169_v9, %v2168_v43  ;;  %v2213_v20 = vpack.c.bf16 %v2129_v4, %v2128_v15  ;;  %2814 = vmatpush.bf16.msra.mxu1 %v7614_v41  ;;  %v7613_v23 = vld [vmem:[%s12262_s7 + $0x110] sm:$0xff] }
 0x33d   :  { %v2211_v50 = vpack.c.bf16 %v2170_v54, %v2169_v9  ;;  %v12462_v2 = vunpack.i.h.bf16 %v9911_v52  ;;  %v7611_v9 = vld [vmem:[%s12262_s7 + $0x100] sm:$0xff]  ;;  %v12463_v52 = vpack.c.bf16 %v9940_v29, %v9948_v38  ;;  %v1891_v38 = vld [vmem:[#allocation2 + $0xa8] sm:$0xff] }
 0x340   :  { %2815 = vmatpush.bf16.msra.mxu1 %v7613_v23 }
 0x344   :  { %2816 = vmatpush.bf16.msra.mxu1 %v7612_v58 }
 0x348   :  { %2770 = vmatmul.bf16.gmra.mxu0 %v2196_v24  ;;  %v2171_v24 = vsel %vm85_vm0, %v9919_v61, %v2078_v14  ;;  %v12460_v61 = vpack.c.bf16 %v9935_v16, %v9929_v46  ;;  %v2080_v16 = vpop.permute.xlu2 %2079  ;;  %2817 = vmatpush.bf16.msra.mxu1 %v7611_v9  ;;  %v1919_v9 = vld [vmem:[#allocation2 + $0x2a] sm:$0xff] }
 0x349   :  { %2712 = vmatmul.bf16.gmra.mxu3 %v2200_v62  ;;  %v1845_v62 = vld [vmem:[#allocation2 + $0x86] sm:$0xff]  ;;  %v2215_v11 = vpack.c.bf16 %v2171_v24, %v2170_v54  ;;  %v2172_v27 = vsel %vm85_vm0, %v9917_v22, %v2080_v16  ;;  %v1917_v16 = vld [vmem:[#allocation2 + $0x1a] sm:$0xff] }
 0x34a   :  { %2591 = vmatmul.bf16.gmra.mxu1 %v2203_v17  ;;  %v12458_v17 = vunpack.i.l.bf16 %v9817_v33  ;;  %v2216_v15 = vpack.c.bf16 %v2172_v27, %v2171_v24 }
 0x34b   :  { %2654 = vmatmul.bf16.gmra.mxu2 %v12451_v60 }
 0x34c   :  { %v2130_v60 = vsel %vm85_vm0, %v1845_v62, %v12458_v17  ;;  %v1849_v62 = vld [vmem:[#allocation2 + $0xa6] sm:$0xff] }
 0x34d   :  { %v2218_v44 = vpack.c.bf16 %v2131_v34, %v2130_v60  ;;  %v2134_v17 = vsel %vm85_vm0, %v1849_v62, %v9913_v63 }
 0x350   :  { %v2086_v14 = vpop.permute.xlu2 %2085 }
 0x351   :  { %v2175_v29 = vsel %vm85_vm0, %v1891_v38, %v2086_v14 }
 0x358   :  { %2775 = vmatmul.bf16.gmra.mxu0 %v2201_v6  ;;  %v2082_v6 = vpop.permute.xlu0 %2081 }
 0x359   :  { %2717 = vmatmul.bf16.gmra.mxu3 %v2205_v36  ;;  %v2173_v46 = vsel %vm85_vm0, %v9923_v32, %v2082_v6 }
 0x35a   :  { %2596 = vmatmul.bf16.gmra.mxu1 %v2208_v48  ;;  %v1847_v48 = vld [vmem:[#allocation2 + $0x96] sm:$0xff]  ;;  %v2220_v32 = vpack.c.bf16 %v2173_v46, %v2172_v27 }
 0x35b   :  { %2659 = vmatmul.bf16.gmra.mxu2 %v12454_v0  ;;  %v1848_v0 = vld [vmem:[#allocation2 + $0x9e] sm:$0xff]  ;;  %v2132_v43 = vsel %vm85_vm0, %v1847_v48, %v12461_v21 }
 0x35c   :  { %v2133_v40 = vsel %vm85_vm0, %v1848_v0, %v12462_v2 }
 0x35d   :  { %v2223_v22 = vpack.c.bf16 %v2133_v40, %v2132_v43 }
 0x368   :  { %2780 = vmatmul.bf16.gmra.mxu0 %v2206_v12  ;;  %v2084_v12 = vpop.permute.xlu1 %2083 }
 0x369   :  { %2722 = vmatmul.bf16.gmra.mxu3 %v2210_v55  ;;  %v2174_v54 = vsel %vm85_vm0, %v9921_v10, %v2084_v12  ;;  %v1920_v12 = vld [vmem:[#allocation2 + $0x32] sm:$0xff] }
 0x36a   :  { %2601 = vmatmul.bf16.gmra.mxu1 %v2213_v20  ;;  %v2221_v60 = vpack.c.bf16 %v2174_v54, %v2173_v46  ;;  %v1918_v46 = vld [vmem:[#allocation2 + $0x22] sm:$0xff] }
 0x36b   :  { %2664 = vmatmul.bf16.gmra.mxu2 %v12457_v49  ;;  %v2182_v43 = vpack.c.bf16 %v1918_v46, %v1917_v16 }
 0x370   :  { %v2024_v24 = vpop.permute.xlu1 %2023 }
 0x371   :  { %v2155_v7 = vsel %vm85_vm0, %v1891_v38, %v2024_v24 }
 0x372   :  { %v2229_v10 = vpack.c.bf16 %v2155_v7, %v2155_v7 }
 0x377   :  { %v2567_v30 = vpop.f32.mrf.mxu1 }
 0x378   :  { %2785 = vmatmul.bf16.gmra.mxu0 %v2211_v50  ;;  %v2568_v33 = vadd.f32 %v10026_v8, %v2567_v30  ;;  %v2225_v50 = vpack.c.bf16 %v2175_v29, %v2174_v54  ;;  %v2228_v30 = vpack.c.bf16 %v2134_v17, %v2134_v17 }
 0x379   :  { %2727 = vmatmul.bf16.gmra.mxu3 %v2215_v11 }
 0x37a   :  { %2606 = vmatmul.bf16.gmra.mxu1 %v2218_v44 }
 0x37b   :  { %2669 = vmatmul.bf16.gmra.mxu2 %v12460_v61 }
 0x37c   :  { %v2693_v26 = vpop.f32.mrf.mxu3 }
 0x37e   :  { %v2630_v39 = vpop.f32.mrf.mxu2 }
 0x37f   :  { %v2631_v5 = vadd.f32 %v2630_v39, %v2568_v33  ;;  %v10035_v42 = vpop.f32.mrf.mxu1 }
 0x381   :  { %v10040_v36 = vadd.f32 %v2693_v26, %v2631_v5  ;;  %v2088_v5 = vpop.permute.xlu0 %2087  ;;  %v1893_v26 = vld [vmem:[#allocation2 + $0xb0] sm:$0xff] }
 0x382   :  { %v2176_v23 = vsel %vm85_vm0, %v1893_v26, %v2088_v5  ;;  %v1923_v26 = vld [vmem:[#allocation2 + $0x4a] sm:$0xff] }
 0x383   :  { %v2226_v48 = vpack.c.bf16 %v2176_v23, %v2175_v29  ;;  %v2230_v27 = vpack.c.bf16 %v2176_v23, %v2176_v23  ;;  %v1921_v29 = vld [vmem:[#allocation2 + $0x3a] sm:$0xff]  ;;  %v1924_v23 = vld [vmem:[#allocation2 + $0x52] sm:$0xff] }
 0x384   :  { %v10068_v28 = vpop.f32.mrf.mxu3 }
 0x386   :  { %v10055_v45 = vpop.f32.mrf.mxu2 }
 0x387   :  { %v2572_v4 = vpop.f32.mrf.mxu1 }
 0x388   :  { %2790 = vmatmul.bf16.gmra.mxu0 %v2216_v15  ;;  %v2573_v55 = vadd.f32 %v10026_v8, %v2572_v4 }
 0x389   :  { %2732 = vmatmul.bf16.gmra.mxu3 %v2220_v32 }
 0x38a   :  { %2611 = vmatmul.bf16.gmra.mxu1 %v2223_v22 }
 0x38b   :  { %2674 = vmatmul.bf16.gmra.mxu2 %v12463_v52 }
 0x38e   :  { %v2635_v20 = vpop.f32.mrf.mxu2 }
 0x38f   :  { %v2636_v49 = vadd.f32 %v2635_v20, %v2573_v55  ;;  %v10064_v53 = vpop.f32.mrf.mxu1  ;;  %v2187_v20 = vpack.c.bf16 %v1920_v12, %v1919_v9  ;;  %v1925_v9 = vld [vmem:[#allocation2 + $0x5a] sm:$0xff]  ;;  %v1926_v12 = vld [vmem:[#allocation2 + $0x62] sm:$0xff] }
 0x396   :  { %v10074_v34 = vpop.f32.mrf.mxu2 }
 0x397   :  { %v2577_v11 = vpop.f32.mrf.mxu1 }
 0x398   :  { %2795 = vmatmul.bf16.gmra.mxu0 %v2221_v60  ;;  %v2578_v61 = vadd.f32 %v10026_v8, %v2577_v11  ;;  %v1922_v60 = vld [vmem:[#allocation2 + $0x42] sm:$0xff] }
 0x399   :  { %2737 = vmatmul.bf16.gmra.mxu3 %v2225_v50  ;;  %v2192_v11 = vpack.c.bf16 %v1922_v60, %v1921_v29 }
 0x39a   :  { %2616 = vmatmul.bf16.gmra.mxu1 %v2228_v30 }
 0x39b   :  { %2679 = vmatmul.bf16.gmra.mxu2 %v2229_v10 }
 0x39c   :  { %v2698_v44 = vpop.f32.mrf.mxu3 }
 0x39d   :  { %v10077_v63 = vadd.f32 %v2698_v44, %v2636_v49 }
 0x39e   :  { %v2640_v33 = vpop.f32.mrf.mxu2 }
 0x39f   :  { %v2641_v41 = vadd.f32 %v2640_v33, %v2578_v61  ;;  %v10079_v39 = vpop.f32.mrf.mxu1 }
 0x3a4   :  { %v10082_v6 = vpop.f32.mrf.mxu3 }
 0x3a6   :  { %v10084_v0 = vpop.f32.mrf.mxu2 }
 0x3a7   :  { %v2582_v21 = vpop.f32.mrf.mxu1 }
 0x3a8   :  { %2800 = vmatmul.bf16.gmra.mxu0 %v2226_v48  ;;  %v2583_v40 = vadd.f32 %v10026_v8, %v2582_v21  ;;  %v2197_v48 = vpack.c.bf16 %v1924_v23, %v1923_v26 }
 0x3a9   :  { %2742 = vmatmul.bf16.gmra.mxu3 %v2230_v27 }
 0x3aa   :  { %7013 = vmatmul.msk.bf16.vlgmr.msra.gmra.mxu1 %vm85_vm0, %v2182_v43 }
 0x3ac   :  { %v2703_v2 = vpop.f32.mrf.mxu3 }
 0x3ad   :  { %v10088_v58 = vadd.f32 %v2703_v2, %v2641_v41 }
 0x3ae   :  { %v2645_v15 = vpop.f32.mrf.mxu2 }
 0x3af   :  { %v2646_v32 = vadd.f32 %v2645_v15, %v2583_v40  ;;  %v10090_v4 = vpop.f32.mrf.mxu1 }
 0x3b4   :  { %v10092_v22 = vpop.f32.mrf.mxu3 }
 0x3b6   :  { %v10094_v52 = vpop.f32.mrf.mxu2 }
 0x3b7   :  { %v2587_v55 = vpop.f32.mrf.mxu1 }
 0x3b8   :  { %v2588_v14 = vadd.f32 %v10026_v8, %v2587_v55 }
 0x3ba   :  { %7014 = vmatmul.msk.bf16.gmra.mxu1 %vm85_vm0, %v2187_v20 }
 0x3bc   :  { %v2708_v49 = vpop.f32.mrf.mxu3 }
 0x3bd   :  { %v10098_v54 = vadd.f32 %v2708_v49, %v2646_v32  ;;  %v2202_v49 = vpack.c.bf16 %v1926_v12, %v1925_v9  ;;  %v1929_v12 = vld [vmem:[#allocation2 + $0x7a] sm:$0xff] }
 0x3be   :  { %v2650_v24 = vpop.f32.mrf.mxu2 }
 0x3bf   :  { %v2651_v62 = vadd.f32 %v2650_v24, %v2588_v14  ;;  %v10100_v17 = vpop.f32.mrf.mxu1 }
 0x3c4   :  { %v10102_v38 = vpop.f32.mrf.mxu3 }
 0x3c6   :  { %v10104_v7 = vpop.f32.mrf.mxu2 }
 0x3c7   :  { %v2592_v50 = vpop.f32.mrf.mxu1 }
 0x3c8   :  { %v2593_v10 = vadd.f32 %v10026_v8, %v2592_v50 }
 0x3ca   :  { %7015 = vmatmul.msk.bf16.gmra.mxu1 %vm85_vm0, %v2192_v11 }
 0x3cc   :  { %v2713_v30 = vpop.f32.mrf.mxu3 }
 0x3cd   :  { %v10108_v44 = vadd.f32 %v2713_v30, %v2651_v62  ;;  %v1927_v30 = vld [vmem:[#allocation2 + $0x6a] sm:$0xff] }
 0x3ce   :  { %v2655_v61 = vpop.f32.mrf.mxu2 }
 0x3cf   :  { %v2656_v33 = vadd.f32 %v2655_v61, %v2593_v10  ;;  %v10110_v41 = vpop.f32.mrf.mxu1  ;;  %v1928_v10 = vld [vmem:[#allocation2 + $0x72] sm:$0xff] }
 0x3d0   :  { %v2207_v26 = vpack.c.bf16 %v1928_v10, %v1927_v30 }
 0x3d4   :  { %v10112_v5 = vpop.f32.mrf.mxu3 }
 0x3d6   :  { %v10114_v16 = vpop.f32.mrf.mxu2 }
 0x3d7   :  { %v2597_v46 = vpop.f32.mrf.mxu1 }
 0x3d8   :  { %v2598_v21 = vadd.f32 %v10026_v8, %v2597_v46  ;;  %v2756_v46 = vpop.f32.mrf.mxu0 }
 0x3da   :  { %7016 = vmatmul.msk.bf16.gmra.mxu1 %vm85_vm0, %v2197_v48 }
 0x3dc   :  { %v2718_v27 = vpop.f32.mrf.mxu3 }
 0x3dd   :  { %v10118_v43 = vadd.f32 %v2718_v27, %v2656_v33 }
 0x3de   :  { %v2660_v2 = vpop.f32.mrf.mxu2 }
 0x3df   :  { %v2661_v40 = vadd.f32 %v2660_v2, %v2598_v21  ;;  %v10120_v15 = vpop.f32.mrf.mxu1 }
 0x3e4   :  { %v10122_v32 = vpop.f32.mrf.mxu3 }
 0x3e6   :  { %v10124_v55 = vpop.f32.mrf.mxu2 }
 0x3e7   :  { %v2602_v20 = vpop.f32.mrf.mxu1 }
 0x3e8   :  { %v2603_v24 = vadd.f32 %v10026_v8, %v2602_v20  ;;  %v1930_v20 = vld [vmem:[#allocation2 + $0x82] sm:$0xff] }
 0x3ea   :  { %7017 = vmatmul.msk.bf16.gmra.mxu1 %vm85_vm0, %v2202_v49 }
 0x3ec   :  { %v2723_v14 = vpop.f32.mrf.mxu3 }
 0x3ed   :  { %v10128_v62 = vadd.f32 %v2723_v14, %v2661_v40  ;;  %v2758_v14 = vpop.f32.mrf.mxu0 }
 0x3ee   :  { %v2665_v29 = vpop.f32.mrf.mxu2 }
 0x3ef   :  { %v2666_v60 = vadd.f32 %v2665_v29, %v2603_v24  ;;  %v10130_v50 = vpop.f32.mrf.mxu1  ;;  %v2212_v29 = vpack.c.bf16 %v1930_v20, %v1929_v12 }
 0x3f0   :  { %12464 = vst [vmem:[#allocation12_spill] sm:$0xff] %v10130_v50  ;;  %v1934_v50 = vld [vmem:[#allocation2 + $0xa2] sm:$0xff] }
 0x3f4   :  { %v10132_v11 = vpop.f32.mrf.mxu3 }
 0x3f6   :  { %v10134_v61 = vpop.f32.mrf.mxu2 }
 0x3f7   :  { %12465 = vst [vmem:[#allocation46_spill] sm:$0xff] %v10134_v61  ;;  %v2607_v33 = vpop.f32.mrf.mxu1 }
 0x3f8   :  { %v2608_v48 = vadd.f32 %v10026_v8, %v2607_v33 }
 0x3fa   :  { %7018 = vmatmul.msk.bf16.gmra.mxu1 %vm85_vm0, %v2207_v26 }
 0x3fc   :  { %v2728_v23 = vpop.f32.mrf.mxu3 }
 0x3fd   :  { %v10138_v27 = vadd.f32 %v2728_v23, %v2666_v60 }
 0x3fe   :  { %v2670_v21 = vpop.f32.mrf.mxu2 }
 0x3ff   :  { %12466 = vst [vmem:[#allocation47_spill] sm:$0xff] %v10138_v27  ;;  %v2671_v2 = vadd.f32 %v2670_v21, %v2608_v48  ;;  %v10140_v40 = vpop.f32.mrf.mxu1  ;;  %v2761_v48 = vpop.f32.mrf.mxu0 }
 0x400   :  { %12467 = vst [vmem:[#allocation48_spill] sm:$0xff] %v10140_v40  ;;  %v1931_v40 = vld [vmem:[#allocation2 + $0x8a] sm:$0xff] }
 0x404   :  { %v10142_v9 = vpop.f32.mrf.mxu3 }
 0x405   :  { %12468 = vst [vmem:[#allocation49_spill] sm:$0xff] %v10142_v9  ;;  %v1932_v9 = vld [vmem:[#allocation2 + $0x92] sm:$0xff] }
 0x406   :  { %v10144_v49 = vpop.f32.mrf.mxu2  ;;  %v2217_v12 = vpack.c.bf16 %v1932_v9, %v1931_v40  ;;  %v2757_v40 = vadd.f32 %v2756_v46, %v10040_v36 }
 0x407   :  { %12469 = vst [vmem:[#allocation50_spill] sm:$0xff] %v10144_v49  ;;  %v2612_v24 = vpop.f32.mrf.mxu1  ;;  %v2763_v20 = vpop.f32.mrf.mxu0 }
 0x408   :  { %v2613_v10 = vadd.f32 %v10026_v8, %v2612_v24 }
 0x40a   :  { %7019 = vmatmul.msk.bf16.gmra.mxu1 %vm85_vm0, %v2212_v29 }
 0x40c   :  { %v2733_v30 = vpop.f32.mrf.mxu3 }
 0x40d   :  { %v10148_v60 = vadd.f32 %v2733_v30, %v2671_v2 }
 0x40e   :  { %v2675_v33 = vpop.f32.mrf.mxu2 }
 0x40f   :  { %12470 = vst [vmem:[#allocation51_spill] sm:$0xff] %v10148_v60  ;;  %v2676_v26 = vadd.f32 %v2675_v33, %v2613_v10  ;;  %v10150_v23 = vpop.f32.mrf.mxu1  ;;  %v1933_v60 = vld [vmem:[#allocation2 + $0x9a] sm:$0xff] }
 0x410   :  { %12471 = vst [vmem:[#allocation52_spill] sm:$0xff] %v10150_v23 }
 0x414   :  { %v10152_v21 = vpop.f32.mrf.mxu3 }
 0x415   :  { %12472 = vst [vmem:[#allocation53_spill] sm:$0xff] %v10152_v21  ;;  %v2766_v21 = vpop.f32.mrf.mxu0 }
 0x416   :  { %v10154_v49 = vpop.f32.mrf.mxu2 }
 0x417   :  { %12473 = vst [vmem:[#allocation54_spill] sm:$0xff] %v10154_v49  ;;  %v2617_v61 = vpop.f32.mrf.mxu1  ;;  %v2570_v49 = vadd.f32 %v10026_v8, %v10035_v42 }
 0x418   :  { %v2618_v2 = vadd.f32 %v10026_v8, %v2617_v61 }
 0x419   :  { %v2633_v27 = vadd.f32 %v10055_v45, %v2570_v49  ;;  %v2957_v45 = vld [vmem:[#allocation2 + $0x7] sm:$0xff] }
 0x41a   :  { %7020 = vmatmul.msk.bf16.gmra.mxu1 %vm85_vm0, %v2217_v12 }
 0x41c   :  { %v2738_v29 = vpop.f32.mrf.mxu3 }
 0x41d   :  { %v10158_v24 = vadd.f32 %v2738_v29, %v2676_v26  ;;  %v2222_v26 = vpack.c.bf16 %v1934_v50, %v1933_v60  ;;  %v2768_v42 = vpop.f32.mrf.mxu0 }
 0x41e   :  { %v2680_v30 = vpop.f32.mrf.mxu2 }
 0x41f   :  { %12474 = vst [vmem:[#allocation55_spill] sm:$0xff] %v10158_v24  ;;  %v2681_v10 = vadd.f32 %v2680_v30, %v2618_v2  ;;  %v2619_v33 = vpop.f32.mrf.mxu1  ;;  %v2696_v2 = vadd.f32 %v10068_v28, %v2633_v27  ;;  %v2762_v28 = vadd.f32 %v2761_v48, %v10077_v63 }
 0x421   :  { %v2759_v24 = vadd.f32 %v2758_v14, %v2696_v2  ;;  %v2575_v14 = vadd.f32 %v10026_v8, %v10064_v53 }
 0x424   :  { %v10160_v23 = vpop.f32.mrf.mxu3 }
 0x425   :  { %12475 = vst [vmem:[#allocation56_spill] sm:$0xff] %v10160_v23 }
 0x426   :  { %v2682_v9 = vpop.f32.mrf.mxu2 }
 0x427   :  { %v2819_v12 = vpop.f32.mrf.mxu1 }
 0x428   :  { %v2820_v61 = vadd.f32 %v2819_v12, %v2757_v40  ;;  %v1935_v40 = vld [vmem:[#allocation2 + $0xaa] sm:$0xff]  ;;  %v1936_v12 = vld [vmem:[#allocation2 + $0xb2] sm:$0xff] }
 0x42a   :  { %v2873_v29 = vmax.f32 %v2820_v61, 0.0  ;;  %7021 = vmatmul.msk.bf16.gmra.mxu1 %vm85_vm0, %v2222_v26  ;;  %v2771_v26 = vpop.f32.mrf.mxu0 }
 0x42c   :  { %v2894_v30 = vmul.f32 %v2873_v29, %v12443_v51  ;;  %v2743_v33 = vpop.f32.mrf.mxu3  ;;  %v2638_v29 = vadd.f32 %v10074_v34, %v2575_v14  ;;  %v2767_v34 = vadd.f32 %v2766_v21, %v10088_v58 }
 0x42d   :  { %v10169_v23 = vadd.f32 %v2743_v33, %v2681_v10 }
 0x42e   :  { %2915 = vst.msk [vmem:[#allocation2 + $0x10] sm:$0xff] %vm85_vm0, %v2894_v30  ;;  %v2701_v30 = vadd.f32 %v10082_v6, %v2638_v29  ;;  %v2580_v6 = vadd.f32 %v10026_v8, %v10079_v39 }
 0x42f   :  { %v2821_v36 = vpop.f32.mrf.mxu1 }
 0x430   :  { %v2822_v46 = vadd.f32 %v2821_v36, %v2759_v24  ;;  %v2227_v24 = vpack.c.bf16 %v1936_v12, %v1935_v40  ;;  %v2764_v48 = vadd.f32 %v2763_v20, %v2701_v30  ;;  %v2643_v40 = vadd.f32 %v10084_v0, %v2580_v6  ;;  %v7620_v6 = vld [vmem:[%s12264_s9 + $0x28] sm:$0xff] }
 0x432   :  { %v2874_v9 = vmax.f32 %v2822_v46, 0.0  ;;  %v2773_v46 = vpop.f32.mrf.mxu0 }
 0x434   :  { %v2895_v50 = vmul.f32 %v2874_v9, %v12444_v19  ;;  %v2745_v49 = vpop.f32.mrf.mxu3 }
 0x435   :  { %v2958_v60 = vld [vmem:[#allocation2 + $0xf] sm:$0xff] }
 0x436   :  { %2916 = vst.msk [vmem:[#allocation2 + $0x18] sm:$0xff] %vm85_vm0, %v2895_v50  ;;  %v7813_v27 = vpack.i.bf16 %v2958_v60, %v2957_v45 }
 0x437   :  { %v2824_v10 = vpop.f32.mrf.mxu1 }
 0x438   :  { %v2825_v61 = vadd.f32 %v2824_v10, %v2762_v28  ;;  %7814 = vrot.lane.b32.xlu2 %v7813_v27, %s8161_s5  ;;  %v2706_v28 = vadd.f32 %v10092_v22, %v2643_v40  ;;  %v2590_v40 = vadd.f32 %v10026_v8, %v10100_v17  ;;  %v7618_v17 = vld [vmem:[%s12264_s9 + $0x18] sm:$0xff] }
 0x43a   :  { %v2875_v2 = vmax.f32 %v2825_v61, 0.0  ;;  %7022 = vmatmul.msk.bf16.gmra.mxu1 %vm85_vm0, %v2227_v24  ;;  %v2776_v10 = vpop.f32.mrf.mxu0  ;;  %v2769_v14 = vadd.f32 %v2768_v42, %v2706_v28  ;;  %v7619_v28 = vld [vmem:[%s12264_s9 + $0x20] sm:$0xff] }
 0x43c   :  { %v2896_v63 = vmul.f32 %v2875_v2, %v12440_v18  ;;  %v2772_v2 = vadd.f32 %v2771_v26, %v10098_v54  ;;  %v7622_v54 = vld [vmem:[%s12264_s9 + $0x38] sm:$0xff] }
 0x43d   :  { %v2959_v45 = vld [vmem:[#allocation2 + $0x17] sm:$0xff]  ;;  %3665 = vmatpush.bf16.msra.mxu2 %v7622_v54 }
 0x43e   :  { %2917 = vst.msk [vmem:[#allocation2 + $0x20] sm:$0xff] %vm85_vm0, %v2896_v63  ;;  %v2585_v63 = vadd.f32 %v10026_v8, %v10090_v4  ;;  %v7621_v4 = vld [vmem:[%s12264_s9 + $0x30] sm:$0xff] }
 0x43f   :  { %v2826_v33 = vpop.f32.mrf.mxu1 }
 0x440   :  { %v2827_v36 = vadd.f32 %v2826_v33, %v2764_v48  ;;  %v2648_v48 = vadd.f32 %v10094_v52, %v2585_v63  ;;  %v7616_v63 = vld [vmem:[%s12264_s9 + $0x8] sm:$0xff] }
 0x441   :  { %3666 = vmatpush.bf16.msra.mxu2 %v7621_v4 }
 0x442   :  { %v2876_v53 = vmax.f32 %v2827_v36, 0.0  ;;  %v2778_v30 = vpop.f32.mrf.mxu0  ;;  %v2711_v36 = vadd.f32 %v10102_v38, %v2648_v48  ;;  %v2595_v48 = vadd.f32 %v10026_v8, %v10110_v41 }
 0x444   :  { %v2897_v9 = vmul.f32 %v2876_v53, %v12441_v31 }
 0x445   :  { %v2960_v50 = vld [vmem:[#allocation2 + $0x1f] sm:$0xff]  ;;  %3667 = vmatpush.bf16.msra.mxu2 %v7620_v6 }
 0x446   :  { %2918 = vst.msk [vmem:[#allocation2 + $0x28] sm:$0xff] %vm85_vm0, %v2897_v9  ;;  %v7818_v49 = vpack.i.bf16 %v2960_v50, %v2959_v45  ;;  %v2774_v9 = vadd.f32 %v2773_v46, %v2711_v36  ;;  %v7615_v36 = vld [vmem:[%s12264_s9] sm:$0xff] }
 0x447   :  { %v2829_v60 = vpop.f32.mrf.mxu1 }
 0x448   :  { %v2830_v20 = vadd.f32 %v2829_v60, %v2767_v34  ;;  %7819 = vrot.lane.b32.xlu0 %v7818_v49, %s8161_s5  ;;  %v2777_v49 = vadd.f32 %v2776_v10, %v10108_v44  ;;  %v2653_v44 = vadd.f32 %v10104_v7, %v2590_v40  ;;  %v7617_v7 = vld [vmem:[%s12264_s9 + $0x10] sm:$0xff] }
 0x449   :  { %3668 = vmatpush.bf16.msra.mxu2 %v7619_v28 }
 0x44a   :  { %v2877_v12 = vmax.f32 %v2830_v20, 0.0  ;;  %v2781_v52 = vpop.f32.mrf.mxu0 }
 0x44c   :  { %v2898_v27 = vmul.f32 %v2877_v12, %v12442_v35 }
 0x44d   :  { %v2961_v39 = vld [vmem:[#allocation2 + $0x27] sm:$0xff]  ;;  %3669 = vmatpush.bf16.msra.mxu2 %v7618_v17 }
 0x44e   :  { %2919 = vst.msk [vmem:[#allocation2 + $0x30] sm:$0xff] %vm85_vm0, %v2898_v27 }
 0x44f   :  { %v2831_v58 = vpop.f32.mrf.mxu1 }
 0x450   :  { %v2832_v21 = vadd.f32 %v2831_v58, %v2769_v14  ;;  %v2716_v14 = vadd.f32 %v10112_v5, %v2653_v44 }
 0x451   :  { %3670 = vmatpush.bf16.msra.mxu2 %v7617_v7 }
 0x452   :  { %v2878_v61 = vmax.f32 %v2832_v21, 0.0  ;;  %v2783_v10 = vpop.f32.mrf.mxu0  ;;  %v2779_v21 = vadd.f32 %v2778_v30, %v2716_v14  ;;  %v2782_v30 = vadd.f32 %v2781_v52, %v10118_v43  ;;  %v2658_v43 = vadd.f32 %v10114_v16, %v2595_v48  ;;  %v7626_v48 = vld [vmem:[%s12264_s9 + $0x58] sm:$0xff] }
 0x454   :  { %v2899_v24 = vmul.f32 %v2878_v61, %v12445_v13 }
 0x455   :  { %v2962_v29 = vld [vmem:[#allocation2 + $0x2f] sm:$0xff]  ;;  %3671 = vmatpush.bf16.msra.mxu2 %v7616_v63 }
 0x456   :  { %2920 = vst.msk [vmem:[#allocation2 + $0x38] sm:$0xff] %vm85_vm0, %v2899_v24  ;;  %v7823_v0 = vpack.i.bf16 %v2962_v29, %v2961_v39 }
 0x457   :  { %v2834_v22 = vpop.f32.mrf.mxu1 }
 0x458   :  { %v2835_v42 = vadd.f32 %v2834_v22, %v2772_v2  ;;  %7824 = vrot.lane.b32.xlu1 %v7823_v0, %s8161_s5 }
 0x459   :  { %3672 = vmatpush.bf16.msra.mxu2 %v7615_v36  ;;  %v12477_v36 = vld [vmem:[#allocation12_spill] sm:$0xff] }
 0x45a   :  { %v2879_v33 = vmax.f32 %v2835_v42, 0.0  ;;  %v2786_v29 = vpop.f32.mrf.mxu0 }
 0x45c   :  { %v2900_v53 = vmul.f32 %v2879_v33, %v9272_v57 }
 0x45d   :  { %v2963_v34 = vld [vmem:[#allocation2 + $0x37] sm:$0xff] }
 0x45e   :  { %2921 = vst.msk [vmem:[#allocation2 + $0x40] sm:$0xff] %vm85_vm0, %v2900_v53 }
 0x45f   :  { %v2836_v26 = vpop.f32.mrf.mxu1 }
 0x460   :  { %v2837_v45 = vadd.f32 %v2836_v26, %v2774_v9  ;;  %v2721_v9 = vadd.f32 %v10122_v32, %v2658_v43  ;;  %v7630_v32 = vld [vmem:[%s12264_s9 + $0x78] sm:$0xff]  ;;  %v2605_v43 = vadd.f32 %v10026_v8, %v12477_v36 }
 0x461   :  { %3728 = vmatpush.bf16.msra.mxu3 %v7630_v32 }
 0x462   :  { %v2880_v50 = vmax.f32 %v2837_v45, 0.0  ;;  %v2784_v26 = vadd.f32 %v2783_v10, %v2721_v9  ;;  %v2788_v41 = vpop.f32.mrf.mxu0  ;;  %v7625_v9 = vld [vmem:[%s12264_s9 + $0x50] sm:$0xff] }
 0x464   :  { %v2901_v38 = vmul.f32 %v2880_v50, %v9277_v1 }
 0x465   :  { %v2964_v46 = vld [vmem:[#allocation2 + $0x3f] sm:$0xff] }
 0x466   :  { %2922 = vst.msk [vmem:[#allocation2 + $0x48] sm:$0xff] %vm85_vm0, %v2901_v38  ;;  %v7828_v60 = vpack.i.bf16 %v2964_v46, %v2963_v34  ;;  %v2787_v46 = vadd.f32 %v2786_v29, %v10128_v62 }
 0x467   :  { %v2839_v20 = vpop.f32.mrf.mxu1 }
 0x468   :  { %v2840_v12 = vadd.f32 %v2839_v20, %v2777_v49  ;;  %7829 = vrot.lane.b32.xlu2 %v7828_v60, %s8161_s5  ;;  %v2600_v60 = vadd.f32 %v10026_v8, %v10120_v15  ;;  %v7629_v20 = vld [vmem:[%s12264_s9 + $0x70] sm:$0xff]  ;;  %v7628_v15 = vld [vmem:[%s12264_s9 + $0x68] sm:$0xff] }
 0x469   :  { %3729 = vmatpush.bf16.msra.mxu3 %v7629_v20  ;;  %v3002_v20 = vld [vmem:[#allocation2 + $0x19] sm:$0xff] }
 0x46a   :  { %v2881_v27 = vmax.f32 %v2840_v12, 0.0  ;;  %v2791_v62 = vpop.f32.mrf.mxu0  ;;  %v2663_v40 = vadd.f32 %v10124_v55, %v2600_v60  ;;  %v7627_v55 = vld [vmem:[%s12264_s9 + $0x60] sm:$0xff] }
 0x46b   :  { %v7623_v60 = vld [vmem:[%s12264_s9 + $0x40] sm:$0xff] }
 0x46c   :  { %v2902_v58 = vmul.f32 %v2881_v27, %v9316_v59  ;;  %v2726_v28 = vadd.f32 %v10132_v11, %v2663_v40 }
 0x46d   :  { %v2965_v2 = vld [vmem:[#allocation2 + $0x47] sm:$0xff]  ;;  %3730 = vmatpush.bf16.msra.mxu3 %v7628_v15 }
 0x46e   :  { %2923 = vst.msk [vmem:[#allocation2 + $0x50] sm:$0xff] %vm85_vm0, %v2902_v58  ;;  %v2789_v27 = vadd.f32 %v2788_v41, %v2726_v28 }
 0x46f   :  { %v2841_v61 = vpop.f32.mrf.mxu1 }
 0x470   :  { %v2842_v24 = vadd.f32 %v2841_v61, %v2779_v21  ;;  %v2936_v21 = vld [vmem:[#allocation2 + $0x6] sm:$0xff] }
 0x471   :  { %3731 = vmatpush.bf16.msra.mxu3 %v7627_v55 }
 0x472   :  { %v2882_v39 = vmax.f32 %v2842_v24, 0.0  ;;  %v2793_v17 = vpop.f32.mrf.mxu0 }
 0x474   :  { %v2903_v5 = vmul.f32 %v2882_v39, %v9325_v56  ;;  %v2937_v39 = vld [vmem:[#allocation2 + $0xe] sm:$0xff] }
 0x475   :  { %v2966_v0 = vld [vmem:[#allocation2 + $0x4f] sm:$0xff]  ;;  %3732 = vmatpush.bf16.msra.mxu3 %v7626_v48 }
 0x476   :  { %2924 = vst.msk [vmem:[#allocation2 + $0x58] sm:$0xff] %vm85_vm0, %v2903_v5  ;;  %v7833_v22 = vpack.i.bf16 %v2966_v0, %v2965_v2 }
 0x477   :  { %v2844_v42 = vpop.f32.mrf.mxu1 }
 0x478   :  { %v2845_v33 = vadd.f32 %v2844_v42, %v2782_v30  ;;  %7834 = vrot.lane.b32.xlu0 %v7833_v22, %s8161_s5  ;;  %v12476_v30 = vld [vmem:[#allocation47_spill] sm:$0xff] }
 0x479   :  { %v2792_v22 = vadd.f32 %v2791_v62, %v12476_v30  ;;  %3733 = vmatpush.bf16.msra.mxu3 %v7625_v9  ;;  %v12481_v62 = vld [vmem:[#allocation35_spill] sm:$0xff]  ;;  %v12486_v30 = vld [vmem:[#allocation37_spill] sm:$0xff] }
 0x47a   :  { %v2883_v53 = vmax.f32 %v2845_v33, 0.0 }
 0x47c   :  { %v2904_v54 = vmul.f32 %v2883_v53, %v9329_v3 }
 0x47d   :  { %v2967_v38 = vld [vmem:[#allocation2 + $0x57] sm:$0xff] }
 0x47e   :  { %2925 = vst.msk [vmem:[#allocation2 + $0x60] sm:$0xff] %vm85_vm0, %v2904_v54  ;;  %v12478_v54 = vld [vmem:[#allocation46_spill] sm:$0xff] }
 0x47f   :  { %v2846_v45 = vpop.f32.mrf.mxu1 }
 0x480   :  { %v2847_v4 = vadd.f32 %v2846_v45, %v2784_v26  ;;  %v2668_v26 = vadd.f32 %v12478_v54, %v2605_v43  ;;  %v12479_v45 = vld [vmem:[#allocation49_spill] sm:$0xff]  ;;  %v12487_v54 = vld [vmem:[#allocation39_spill] sm:$0xff] }
 0x482   :  { %v2884_v52 = vmax.f32 %v2847_v4, 0.0  ;;  %v2731_v4 = vadd.f32 %v12479_v45, %v2668_v26 }
 0x484   :  { %v2905_v50 = vmul.f32 %v2884_v52, %v9357_v37  ;;  %v12480_v52 = vld [vmem:[#allocation6_spill] sm:$0xff] }
 0x485   :  { %v2968_v34 = vld [vmem:[#allocation2 + $0x5f] sm:$0xff] }
 0x486   :  { %2926 = vst.msk [vmem:[#allocation2 + $0x68] sm:$0xff] %vm85_vm0, %v2905_v50  ;;  %v7838_v16 = vpack.i.bf16 %v2968_v34, %v2967_v38  ;;  %v2796_v38 = vpop.f32.mrf.mxu0  ;;  %v1916_v34 = vld [vmem:[#allocation2 + $0xb9] sm:$0xff] }
 0x487   :  { %v2849_v49 = vpop.f32.mrf.mxu1 }
 0x488   :  { %v2850_v6 = vadd.f32 %v2849_v49, %v2787_v46  ;;  %7839 = vrot.lane.b32.xlu1 %v7838_v16, %s8161_s5  ;;  %v2794_v46 = vadd.f32 %v2793_v17, %v2731_v4  ;;  %v7624_v16 = vld [vmem:[%s12264_s9 + $0x48] sm:$0xff] }
 0x489   :  { %3734 = vmatpush.bf16.msra.mxu3 %v7624_v16 }
 0x48a   :  { %v2885_v12 = vmax.f32 %v2850_v6, 0.0 }
 0x48c   :  { %v2906_v44 = vmul.f32 %v2885_v12, %v9372_v47 }
 0x48d   :  { %v2969_v2 = vld [vmem:[#allocation2 + $0x67] sm:$0xff]  ;;  %3735 = vmatpush.bf16.msra.mxu3 %v7623_v60 }
 0x48e   :  { %2927 = vst.msk [vmem:[#allocation2 + $0x70] sm:$0xff] %vm85_vm0, %v2906_v44  ;;  %v3001_v44 = vld [vmem:[#allocation2 + $0x11] sm:$0xff]  ;;  %v2798_v55 = vpop.f32.mrf.mxu0 }
 0x48f   :  { %v2851_v10 = vpop.f32.mrf.mxu1 }
 0x490   :  { %v2852_v14 = vadd.f32 %v2851_v10, %v2789_v27  ;;  %v12482_v27 = vld [vmem:[#allocation51_spill] sm:$0xff] }
 0x491   :  { %v2797_v15 = vadd.f32 %v2796_v38, %v12482_v27 }
 0x492   :  { %v2886_v58 = vmax.f32 %v2852_v14, 0.0  ;;  %v10269_v11 = vpop.permute.xlu2 %7814  ;;  %v7863_v14 = vpack.i.bf16 %v3002_v20, %v3001_v44 }
 0x493   :  { %v7817_v61 = vunpack.i.h.bf16 %v10269_v11  ;;  %v7816_v24 = vunpack.i.l.bf16 %v10269_v11  ;;  %v12493_v11 = vld [vmem:[#allocation42_spill] sm:$0xff] }
 0x494   :  { %v2907_v7 = vmul.f32 %v2886_v58, %v9380_v25 }
 0x495   :  { %v3221_v5 = vsel %vm85_vm0, %v2936_v21, %v7816_v24  ;;  %v3222_v29 = vsel %vm85_vm0, %v2937_v39, %v7817_v61  ;;  %v2970_v0 = vld [vmem:[#allocation2 + $0x6f] sm:$0xff]  ;;  %v12483_v21 = vld [vmem:[#allocation48_spill] sm:$0xff] }
 0x496   :  { %2928 = vst.msk [vmem:[#allocation2 + $0x78] sm:$0xff] %vm85_vm0, %v2907_v7  ;;  %v3285_v63 = vpack.c.bf16 %v3222_v29, %v3221_v5  ;;  %v7843_v42 = vpack.i.bf16 %v2970_v0, %v2969_v2  ;;  %v2610_v17 = vadd.f32 %v10026_v8, %v12483_v21  ;;  %v12484_v7 = vld [vmem:[#allocation50_spill] sm:$0xff]  ;;  %v3007_v29 = vld [vmem:[#allocation2 + $0x41] sm:$0xff]  ;;  %v2801_v43 = vpop.f32.mrf.mxu0 }
 0x497   :  { %v2854_v33 = vpop.f32.mrf.mxu1  ;;  %v12485_v2 = vld [vmem:[#allocation53_spill] sm:$0xff]  ;;  %v10322_v21 = vld [vmem:[#allocation2 + $0x10] sm:$0xff] }
 0x498   :  { %v2855_v53 = vadd.f32 %v2854_v33, %v2792_v22  ;;  %7844 = vrot.lane.b32.xlu2 %v7843_v42, %s8161_s5  ;;  %3673 = vmatmul.bf16.vlgmr.msra.gmra.mxu2 %v3285_v63  ;;  %v2673_v39 = vadd.f32 %v12484_v7, %v2610_v17  ;;  %v3006_v63 = vld [vmem:[#allocation2 + $0x39] sm:$0xff]  ;;  %v3012_v4 = vld [vmem:[#allocation2 + $0x69] sm:$0xff] }
 0x499   :  { %v7873_v48 = vpack.i.bf16 %v3007_v29, %v3006_v63  ;;  %v2939_v17 = vld [vmem:[#allocation2 + $0x1e] sm:$0xff] }
 0x49a   :  { %v2887_v41 = vmax.f32 %v2855_v53, 0.0  ;;  %v2736_v0 = vadd.f32 %v12485_v2, %v2673_v39 }
 0x49c   :  { %v2908_v50 = vmul.f32 %v2887_v41, %v12480_v52  ;;  %v2799_v42 = vadd.f32 %v2798_v55, %v2736_v0  ;;  %v12492_v55 = vld [vmem:[#allocation40_spill] sm:$0xff] }
 0x49d   :  { %v2971_v12 = vld [vmem:[#allocation2 + $0x77] sm:$0xff] }
 0x49e   :  { %2929 = vst.msk [vmem:[#allocation2 + $0x80] sm:$0xff] %vm85_vm0, %v2908_v50  ;;  %v3013_v9 = vld [vmem:[#allocation2 + $0x71] sm:$0xff]  ;;  %v2803_v44 = vpop.f32.mrf.mxu0 }
 0x49f   :  { %v2856_v32 = vpop.f32.mrf.mxu1  ;;  %v12488_v50 = vld [vmem:[#allocation55_spill] sm:$0xff] }
 0x4a0   :  { %v2857_v49 = vadd.f32 %v2856_v32, %v2794_v46  ;;  %2111 = vrot.lane.b32.xlu2 %v1916_v34, %s8161_s5  ;;  %v2802_v38 = vadd.f32 %v2801_v43, %v12488_v50  ;;  %v7888_v46 = vpack.i.bf16 %v3013_v9, %v3012_v4  ;;  %v12489_v32 = vld [vmem:[#allocation52_spill] sm:$0xff]  ;;  %v2941_v4 = vld [vmem:[#allocation2 + $0x2e] sm:$0xff] }
 0x4a1   :  { %v10340_v50 = vld [vmem:[#allocation2 + $0x20] sm:$0xff] }
 0x4a2   :  { %v2888_v6 = vmax.f32 %v2857_v49, 0.0  ;;  %v2615_v49 = vadd.f32 %v10026_v8, %v12489_v32  ;;  %v2938_v8 = vld [vmem:[#allocation2 + $0x16] sm:$0xff] }
 0x4a4   :  { %v2909_v40 = vmul.f32 %v2888_v6, %v12481_v62  ;;  %v12490_v6 = vld [vmem:[#allocation54_spill] sm:$0xff] }
 0x4a5   :  { %v2972_v28 = vld [vmem:[#allocation2 + $0x7f] sm:$0xff]  ;;  %v2678_v20 = vadd.f32 %v12490_v6, %v2615_v49 }
 0x4a6   :  { %2930 = vst.msk [vmem:[#allocation2 + $0x88] sm:$0xff] %vm85_vm0, %v2909_v40  ;;  %v7848_v10 = vpack.i.bf16 %v2972_v28, %v2971_v12  ;;  %v2978_v40 = vld [vmem:[#allocation2 + $0x8] sm:$0xff] }
 0x4a7   :  { %v2859_v58 = vpop.f32.mrf.mxu1 }
 0x4a8   :  { %v2860_v24 = vadd.f32 %v2859_v58, %v2797_v15  ;;  %7849 = vrot.lane.b32.xlu0 %v7848_v10, %s8161_s5  ;;  %7864 = vrot.lane.b32.xlu2 %v7863_v14, %s8161_s5  ;;  %v12491_v10 = vld [vmem:[#allocation56_spill] sm:$0xff] }
 0x4a9   :  { %v2741_v14 = vadd.f32 %v12491_v10, %v2678_v20  ;;  %v1937_v10 = vld [vmem:[#allocation2 + $0xba] sm:$0xff] }
 0x4aa   :  { %v2889_v5 = vmax.f32 %v2860_v24, 0.0  ;;  %v3242_v24 = vsel %vm85_vm0, %v2978_v40, %v7817_v61 }
 0x4ab   :  { %v2804_v29 = vadd.f32 %v2803_v44, %v2741_v14  ;;  %v3004_v44 = vld [vmem:[#allocation2 + $0x29] sm:$0xff] }
 0x4ac   :  { %v2910_v22 = vmul.f32 %v2889_v5, %v12486_v30 }
 0x4ad   :  { %v2973_v41 = vld [vmem:[#allocation2 + $0x87] sm:$0xff] }
 0x4ae   :  { %2931 = vst.msk [vmem:[#allocation2 + $0x90] sm:$0xff] %vm85_vm0, %v2910_v22 }
 0x4af   :  { %v2861_v33 = vpop.f32.mrf.mxu1 }
 0x4b0   :  { %v2862_v36 = vadd.f32 %v2861_v33, %v2799_v42  ;;  %7874 = vrot.lane.b32.xlu2 %v7873_v48, %s8161_s5 }
 0x4b2   :  { %v2890_v53 = vmax.f32 %v2862_v36, 0.0 }
 0x4b4   :  { %v2911_v26 = vmul.f32 %v2890_v53, %v12487_v54 }
 0x4b5   :  { %v2974_v45 = vld [vmem:[#allocation2 + $0x8f] sm:$0xff] }
 0x4b6   :  { %2932 = vst.msk [vmem:[#allocation2 + $0x98] sm:$0xff] %vm85_vm0, %v2911_v26  ;;  %v7853_v34 = vpack.i.bf16 %v2974_v45, %v2973_v41  ;;  %v10335_v26 = vld [vmem:[#allocation2 + $0x18] sm:$0xff]  ;;  %v7638_v41 = vld [vmem:[%s12264_s9 + $0xb8] sm:$0xff]  ;;  %v2940_v45 = vld [vmem:[#allocation2 + $0x26] sm:$0xff] }
 0x4b7   :  { %v2864_v16 = vpop.f32.mrf.mxu1  ;;  %3791 = vmatpush.bf16.msra.mxu0 %v7638_v41  ;;  %v10372_v41 = vld [vmem:[#allocation2 + $0x30] sm:$0xff] }
 0x4b8   :  { %v2865_v60 = vadd.f32 %v2864_v16, %v2802_v38  ;;  %7854 = vrot.lane.b32.xlu1 %v7853_v34, %s8161_s5  ;;  %7889 = vrot.lane.b32.xlu2 %v7888_v46, %s8161_s5 }
 0x4ba   :  { %v2891_v12 = vmax.f32 %v2865_v60, 0.0  ;;  %v7820_v28 = vpop.permute.xlu0 %7819 }
 0x4bb   :  { %v7822_v27 = vunpack.i.h.bf16 %v7820_v28  ;;  %v7821_v15 = vunpack.i.l.bf16 %v7820_v28  ;;  %v3005_v28 = vld [vmem:[#allocation2 + $0x31] sm:$0xff] }
 0x4bc   :  { %v2912_v58 = vmul.f32 %v2891_v12, %v12492_v55  ;;  %v3003_v12 = vld [vmem:[#allocation2 + $0x21] sm:$0xff]  ;;  %v7868_v14 = vpack.i.bf16 %v3005_v28, %v3004_v44 }
 0x4bd   :  { %v3243_v7 = vsel %vm85_vm0, %v10322_v21, %v7821_v15  ;;  %v3223_v39 = vsel %vm85_vm0, %v2938_v8, %v7821_v15  ;;  %v3224_v5 = vsel %vm85_vm0, %v2939_v17, %v7822_v27  ;;  %v2975_v61 = vld [vmem:[#allocation2 + $0x97] sm:$0xff]  ;;  %v3244_v49 = vsel %vm85_vm0, %v10335_v26, %v7822_v27  ;;  %v7637_v27 = vld [vmem:[%s12264_s9 + $0xb0] sm:$0xff]  ;;  %v10390_v28 = vld [vmem:[#allocation2 + $0x40] sm:$0xff] }
 0x4be   :  { %2933 = vst.msk [vmem:[#allocation2 + $0xa0] sm:$0xff] %vm85_vm0, %v2912_v58  ;;  %v3286_v2 = vpack.c.bf16 %v3243_v7, %v3242_v24  ;;  %v3290_v0 = vpack.c.bf16 %v3224_v5, %v3223_v39  ;;  %v3009_v15 = vld [vmem:[#allocation2 + $0x51] sm:$0xff]  ;;  %v10354_v58 = vpack.c.bf16 %v1937_v10, %v1937_v10  ;;  %v3008_v17 = vld [vmem:[#allocation2 + $0x49] sm:$0xff]  ;;  %3792 = vmatpush.bf16.msra.mxu0 %v7637_v27  ;;  %v7636_v24 = vld [vmem:[%s12264_s9 + $0xa8] sm:$0xff] }
 0x4bf   :  { %v2866_v22 = vpop.f32.mrf.mxu1  ;;  %v7878_v7 = vpack.i.bf16 %v3009_v15, %v3008_v17  ;;  %v2944_v44 = vld [vmem:[#allocation2 + $0x46] sm:$0xff]  ;;  %v2945_v15 = vld [vmem:[#allocation2 + $0x4e] sm:$0xff]  ;;  %v7631_v27 = vld [vmem:[%s12264_s9 + $0x80] sm:$0xff] }
 0x4c0   :  { %v2867_v63 = vadd.f32 %v2866_v22, %v2804_v29  ;;  %3678 = vmatmul.bf16.gmra.mxu2 %v3290_v0  ;;  %3736 = vmatmul.bf16.vlgmr.msra.gmra.mxu3 %v3286_v2  ;;  %v3011_v29 = vld [vmem:[#allocation2 + $0x61] sm:$0xff]  ;;  %v2942_v2 = vld [vmem:[#allocation2 + $0x36] sm:$0xff] }
 0x4c1   :  { %7023 = vmatmul.msk.bf16.gmra.mxu1 %vm85_vm0, %v10354_v58  ;;  %v10363_v0 = vld [vmem:[#allocation2 + $0x28] sm:$0xff]  ;;  %v3010_v22 = vld [vmem:[#allocation2 + $0x59] sm:$0xff] }
 0x4c2   :  { %v2892_v42 = vmax.f32 %v2867_v63, 0.0  ;;  %v7830_v8 = vpop.permute.xlu2 %7829  ;;  %3793 = vmatpush.bf16.msra.mxu0 %v7636_v24  ;;  %v3015_v63 = vld [vmem:[#allocation2 + $0x81] sm:$0xff] }
 0x4c3   :  { %v7832_v39 = vunpack.i.h.bf16 %v7830_v8  ;;  %v7831_v5 = vunpack.i.l.bf16 %v7830_v8 }
 0x4c4   :  { %v2913_v48 = vmul.f32 %v2892_v42, %v12493_v11  ;;  %v2943_v42 = vld [vmem:[#allocation2 + $0x3e] sm:$0xff] }
 0x4c5   :  { %v2976_v33 = vld [vmem:[#allocation2 + $0x9f] sm:$0xff] }
 0x4c6   :  { %2934 = vst.msk [vmem:[#allocation2 + $0xa8] sm:$0xff] %vm85_vm0, %v2913_v48  ;;  %v7858_v36 = vpack.i.bf16 %v2976_v33, %v2975_v61  ;;  %v3018_v34 = vld [vmem:[#allocation2 + $0x99] sm:$0xff]  ;;  %v7883_v48 = vpack.i.bf16 %v3011_v29, %v3010_v22  ;;  %v3227_v61 = vsel %vm85_vm0, %v2942_v2, %v7831_v5  ;;  %v3228_v33 = vsel %vm85_vm0, %v2943_v42, %v7832_v39 }
 0x4c7   :  { %v10403_v29 = vld [vmem:[#allocation2 + $0xb8] sm:$0xff] }
 0x4c8   :  { %7859 = vrot.lane.b32.xlu0 %v7858_v36, %s8161_s5  ;;  %v3040_v55 = vld [vmem:[#allocation2 + $0x9a] sm:$0xff] }
 0x4ca   :  { %v7825_v43 = vpop.permute.xlu1 %7824 }
 0x4cb   :  { %v7827_v53 = vunpack.i.h.bf16 %v7825_v43  ;;  %v7826_v9 = vunpack.i.l.bf16 %v7825_v43  ;;  %v7635_v43 = vld [vmem:[%s12264_s9 + $0xa0] sm:$0xff] }
 0x4cc   :  { %3794 = vmatpush.bf16.msra.mxu0 %v7635_v43  ;;  %v10409_v43 = vld [vmem:[#allocation2 + $0x50] sm:$0xff] }
 0x4cd   :  { %v2977_v38 = vld [vmem:[#allocation2 + $0xa7] sm:$0xff]  ;;  %v3225_v16 = vsel %vm85_vm0, %v2940_v45, %v7826_v9  ;;  %v3226_v32 = vsel %vm85_vm0, %v2941_v4, %v7827_v53  ;;  %v3245_v60 = vsel %vm85_vm0, %v10340_v50, %v7826_v9  ;;  %v3246_v36 = vsel %vm85_vm0, %v10363_v0, %v7827_v53  ;;  %v3014_v9 = vld [vmem:[#allocation2 + $0x79] sm:$0xff] }
 0x4ce   :  { %v3019_v46 = vld [vmem:[#allocation2 + $0xa1] sm:$0xff]  ;;  %3106 = vrot.lane.b32.xlu1 %v2977_v38, %s8161_s5  ;;  %v3295_v20 = vpack.c.bf16 %v3226_v32, %v3225_v16  ;;  %v3291_v40 = vpack.c.bf16 %v3245_v60, %v3244_v49  ;;  %v7893_v45 = vpack.i.bf16 %v3015_v63, %v3014_v9  ;;  %v3247_v4 = vsel %vm85_vm0, %v10372_v41, %v7831_v5  ;;  %v7634_v38 = vld [vmem:[%s12264_s9 + $0x98] sm:$0xff] }
 0x4cf   :  { %v7903_v6 = vpack.i.bf16 %v3019_v46, %v3018_v34  ;;  %v3300_v34 = vpack.c.bf16 %v3228_v33, %v3227_v61  ;;  %v3296_v53 = vpack.c.bf16 %v3247_v4, %v3246_v36  ;;  %v3017_v46 = vld [vmem:[#allocation2 + $0x91] sm:$0xff]  ;;  %v3016_v16 = vld [vmem:[#allocation2 + $0x89] sm:$0xff]  ;;  %v7632_v60 = vld [vmem:[%s12264_s9 + $0x88] sm:$0xff] }
 0x4d0   :  { %3158 = vrot.lane.b32.xlu0 %v3003_v12, %s8161_s5  ;;  %3683 = vmatmul.bf16.gmra.mxu2 %v3295_v20  ;;  %v7898_v32 = vpack.i.bf16 %v3017_v46, %v3016_v16  ;;  %v7633_v49 = vld [vmem:[%s12264_s9 + $0x90] sm:$0xff]  ;;  %v10388_v12 = vld [vmem:[#allocation2 + $0x38] sm:$0xff]  ;;  %v7646_v16 = vld [vmem:[%s12264_s9 + $0xf8] sm:$0xff] }
 0x4d1   :  { %7904 = vrot.lane.b32.xlu2 %v7903_v6, %s8161_s5  ;;  %3741 = vmatmul.bf16.gmra.mxu3 %v3291_v40  ;;  %v3248_v8 = vsel %vm85_vm0, %v10388_v12, %v7832_v39  ;;  %v10407_v39 = vld [vmem:[#allocation2 + $0x48] sm:$0xff]  ;;  %v2946_v33 = vld [vmem:[#allocation2 + $0x56] sm:$0xff]  ;;  %v2947_v36 = vld [vmem:[#allocation2 + $0x5e] sm:$0xff] }
 0x4d2   :  { %3795 = vmatpush.bf16.msra.mxu0 %v7634_v38  ;;  %3854 = vmatpush.bf16.msrb.mxu1 %v7646_v16  ;;  %v3041_v11 = vld [vmem:[#allocation2 + $0xa2] sm:$0xff] }
 0x4d6   :  { %7869 = vrot.lane.b32.xlu1 %v7868_v14, %s8161_s5  ;;  %3796 = vmatpush.bf16.msra.mxu0 %v7633_v49 }
 0x4d8   :  { %7879 = vrot.lane.b32.xlu0 %v7878_v7, %s8161_s5 }
 0x4da   :  { %3797 = vmatpush.bf16.msra.mxu0 %v7632_v60 }
 0x4de   :  { %7884 = vrot.lane.b32.xlu1 %v7883_v48, %s8161_s5  ;;  %3798 = vmatpush.bf16.msra.mxu0 %v7631_v27  ;;  %v2949_v27 = vld [vmem:[#allocation2 + $0x6e] sm:$0xff] }
 0x4e0   :  { %7894 = vrot.lane.b32.xlu0 %v7893_v45, %s8161_s5  ;;  %3688 = vmatmul.bf16.gmra.mxu2 %v3300_v34 }
 0x4e1   :  { %3746 = vmatmul.bf16.gmra.mxu3 %v3296_v53 }
 0x4e6   :  { %7899 = vrot.lane.b32.xlu1 %v7898_v32, %s8161_s5 }
 0x4ea   :  { %v7835_v6 = vpop.permute.xlu0 %7834 }
 0x4eb   :  { %v7837_v20 = vunpack.i.h.bf16 %v7835_v6  ;;  %v7836_v40 = vunpack.i.l.bf16 %v7835_v6 }
 0x4ed   :  { %v3229_v10 = vsel %vm85_vm0, %v2944_v44, %v7836_v40  ;;  %v3230_v14 = vsel %vm85_vm0, %v2945_v15, %v7837_v20  ;;  %v3249_v17 = vsel %vm85_vm0, %v10390_v28, %v7836_v40  ;;  %v3250_v4 = vsel %vm85_vm0, %v10407_v39, %v7837_v20  ;;  %v10428_v44 = vld [vmem:[#allocation2 + $0x58] sm:$0xff]  ;;  %v2948_v15 = vld [vmem:[#allocation2 + $0x66] sm:$0xff] }
 0x4ee   :  { %v3305_v24 = vpack.c.bf16 %v3230_v14, %v3229_v10  ;;  %v3301_v7 = vpack.c.bf16 %v3249_v17, %v3248_v8  ;;  %v7645_v10 = vld [vmem:[%s12264_s9 + $0xf0] sm:$0xff] }
 0x4ef   :  { %3855 = vmatpush.bf16.msrb.mxu1 %v7645_v10  ;;  %v2952_v10 = vld [vmem:[#allocation2 + $0x86] sm:$0xff] }
 0x4f0   :  { %3693 = vmatmul.bf16.gmra.mxu2 %v3305_v24  ;;  %v10438_v24 = vld [vmem:[#allocation2 + $0x60] sm:$0xff] }
 0x4f1   :  { %3751 = vmatmul.bf16.gmra.mxu3 %v3301_v7  ;;  %v7644_v7 = vld [vmem:[%s12264_s9 + $0xe8] sm:$0xff] }
 0x4f2   :  { %v10401_v5 = vpop.permute.xlu2 %7844 }
 0x4f3   :  { %v7847_v60 = vunpack.i.h.bf16 %v10401_v5  ;;  %v7846_v6 = vunpack.i.l.bf16 %v10401_v5  ;;  %3856 = vmatpush.bf16.msrb.mxu1 %v7644_v7 }
 0x4f5   :  { %v3233_v8 = vsel %vm85_vm0, %v2948_v15, %v7846_v6  ;;  %v3234_v17 = vsel %vm85_vm0, %v2949_v27, %v7847_v60  ;;  %v10470_v27 = vld [vmem:[#allocation2 + $0x78] sm:$0xff] }
 0x4f6   :  { %v3315_v5 = vpack.c.bf16 %v3234_v17, %v3233_v8  ;;  %v10472_v8 = vld [vmem:[#allocation2 + $0x80] sm:$0xff] }
 0x4fa   :  { %v7840_v2 = vpop.permute.xlu1 %7839  ;;  %v2112_v22 = vpop.permute.xlu2 %2111 }
 0x4fb   :  { %v7842_v63 = vunpack.i.h.bf16 %v7840_v2  ;;  %v7841_v42 = vunpack.i.l.bf16 %v7840_v2  ;;  %v2177_v48 = vsel %vm85_vm0, %v10403_v29, %v2112_v22  ;;  %v7643_v22 = vld [vmem:[%s12264_s9 + $0xe0] sm:$0xff] }
 0x4fc   :  { %v2231_v61 = vpack.c.bf16 %v2177_v48, %v2177_v48  ;;  %3857 = vmatpush.bf16.msrb.mxu1 %v7643_v22 }
 0x4fd   :  { %v3231_v9 = vsel %vm85_vm0, %v2946_v33, %v7841_v42  ;;  %v3232_v45 = vsel %vm85_vm0, %v2947_v36, %v7842_v63  ;;  %v3251_v38 = vsel %vm85_vm0, %v10409_v43, %v7841_v42  ;;  %v10451_v33 = vld [vmem:[#allocation2 + $0x68] sm:$0xff] }
 0x4fe   :  { %2805 = vmatmul.bf16.gmra.mxu0 %v2231_v61  ;;  %v3310_v34 = vpack.c.bf16 %v3232_v45, %v3231_v9  ;;  %v3306_v53 = vpack.c.bf16 %v3251_v38, %v3250_v4  ;;  %v7641_v36 = vld [vmem:[%s12264_s9 + $0xd0] sm:$0xff]  ;;  %v2950_v9 = vld [vmem:[#allocation2 + $0x76] sm:$0xff]  ;;  %v2951_v45 = vld [vmem:[#allocation2 + $0x7e] sm:$0xff] }
 0x4ff   :  { %v10456_v4 = vld [vmem:[#allocation2 + $0x70] sm:$0xff] }
 0x500   :  { %3698 = vmatmul.bf16.gmra.mxu2 %v3310_v34 }
 0x501   :  { %3756 = vmatmul.bf16.gmra.mxu3 %v3306_v53  ;;  %v3254_v53 = vsel %vm85_vm0, %v10451_v33, %v7847_v60 }
 0x502   :  { %v7865_v46 = vpop.permute.xlu2 %7864 }
 0x503   :  { %v7867_v32 = vunpack.i.h.bf16 %v7865_v46  ;;  %v7866_v49 = vunpack.i.l.bf16 %v7865_v46 }
 0x505   :  { %v10424_v20 = vsel %vm85_vm0, %v10335_v26, %v7867_v32  ;;  %v3263_v40 = vsel %vm85_vm0, %v10322_v21, %v7866_v49  ;;  %v3252_v26 = vsel %vm85_vm0, %v10428_v44, %v7842_v63  ;;  %v3253_v21 = vsel %vm85_vm0, %v10438_v24, %v7846_v6  ;;  %v7642_v63 = vld [vmem:[%s12264_s9 + $0xd8] sm:$0xff]  ;;  %v7640_v49 = vld [vmem:[%s12264_s9 + $0xc8] sm:$0xff]  ;;  %v7639_v6 = vld [vmem:[%s12264_s9 + $0xc0] sm:$0xff] }
 0x506   :  { %v3287_v14 = vpack.c.bf16 %v10424_v20, %v3263_v40  ;;  %v3311_v2 = vpack.c.bf16 %v3253_v21, %v3252_v26  ;;  %3858 = vmatpush.bf16.msrb.mxu1 %v7642_v63  ;;  %v7650_v63 = vld [vmem:[%s12264_s9 + $0x118] sm:$0xff] }
 0x507   :  { %3921 = vmatpush.bf16.msrb.mxu2 %v7650_v63 }
 0x50a   :  { %3859 = vmatpush.bf16.msrb.mxu1 %v7641_v36 }
 0x50e   :  { %3799 = vmatmul.bf16.vlgmr.msra.gmra.mxu0 %v3287_v14  ;;  %3860 = vmatpush.bf16.msrb.mxu1 %v7640_v49  ;;  %v2953_v14 = vld [vmem:[#allocation2 + $0x8e] sm:$0xff] }
 0x510   :  { %3703 = vmatmul.bf16.gmra.mxu2 %v3315_v5 }
 0x511   :  { %3761 = vmatmul.bf16.gmra.mxu3 %v3311_v2 }
 0x512   :  { %3861 = vmatpush.bf16.msrb.mxu1 %v7639_v6 }
 0x51a   :  { %v7850_v42 = vpop.permute.xlu0 %7849 }
 0x51b   :  { %v7852_v48 = vunpack.i.h.bf16 %v7850_v42  ;;  %v7851_v61 = vunpack.i.l.bf16 %v7850_v42  ;;  %v3674_v22 = vpop.f32.mrf.mxu2  ;;  %v7649_v42 = vld [vmem:[%s12264_s9 + $0x110] sm:$0xff] }
 0x51c   :  { %3922 = vmatpush.bf16.msrb.mxu2 %v7649_v42 }
 0x51d   :  { %v3235_v38 = vsel %vm85_vm0, %v2950_v9, %v7851_v61  ;;  %v3236_v34 = vsel %vm85_vm0, %v2951_v45, %v7852_v48  ;;  %v3255_v46 = vsel %vm85_vm0, %v10456_v4, %v7851_v61  ;;  %v3256_v21 = vsel %vm85_vm0, %v10470_v27, %v7852_v48  ;;  %v7648_v48 = vld [vmem:[%s12264_s9 + $0x108] sm:$0xff] }
 0x51e   :  { %v3320_v16 = vpack.c.bf16 %v3236_v34, %v3235_v38  ;;  %v3316_v32 = vpack.c.bf16 %v3255_v46, %v3254_v53  ;;  %v10491_v38 = vld [vmem:[#allocation2 + $0x88] sm:$0xff]  ;;  %v2954_v34 = vld [vmem:[#allocation2 + $0x96] sm:$0xff]  ;;  %v2955_v53 = vld [vmem:[#allocation2 + $0x9e] sm:$0xff] }
 0x51f   :  { %v10493_v46 = vld [vmem:[#allocation2 + $0x90] sm:$0xff] }
 0x520   :  { %3708 = vmatmul.bf16.gmra.mxu2 %v3320_v16 }
 0x521   :  { %3766 = vmatmul.bf16.gmra.mxu3 %v3316_v32  ;;  %3923 = vmatpush.bf16.msrb.mxu2 %v7648_v48 }
 0x523   :  { %v10489_v36 = vpop.f32.mrf.mxu2 }
 0x52a   :  { %v7855_v40 = vpop.permute.xlu1 %7854 }
 0x52b   :  { %v7857_v60 = vunpack.i.h.bf16 %v7855_v40  ;;  %v7856_v15 = vunpack.i.l.bf16 %v7855_v40  ;;  %v7647_v40 = vld [vmem:[%s12264_s9 + $0x100] sm:$0xff] }
 0x52c   :  { %3924 = vmatpush.bf16.msrb.mxu2 %v7647_v40 }
 0x52d   :  { %v3237_v17 = vsel %vm85_vm0, %v2952_v10, %v7856_v15  ;;  %v3238_v26 = vsel %vm85_vm0, %v2953_v14, %v7857_v60  ;;  %v3257_v7 = vsel %vm85_vm0, %v10472_v8, %v7856_v15  ;;  %v3258_v49 = vsel %vm85_vm0, %v10491_v38, %v7857_v60  ;;  %v10507_v15 = vld [vmem:[%s12265_s10] ss:$0 sm:$0xff] }
 0x52e   :  { %v3325_v5 = vpack.c.bf16 %v3238_v26, %v3237_v17  ;;  %v3321_v2 = vpack.c.bf16 %v3257_v7, %v3256_v21  ;;  %v3675_v60 = vadd.f32 %v10507_v15, %v3674_v22 }
 0x530   :  { %3713 = vmatmul.bf16.gmra.mxu2 %v3325_v5 }
 0x531   :  { %3771 = vmatmul.bf16.gmra.mxu3 %v3321_v2 }
 0x53a   :  { %v7860_v61 = vpop.permute.xlu0 %7859 }
 0x53b   :  { %v7862_v9 = vunpack.i.h.bf16 %v7860_v61  ;;  %v7861_v45 = vunpack.i.l.bf16 %v7860_v61  ;;  %v2956_v61 = vld [vmem:[#allocation2 + $0xa6] sm:$0xff] }
 0x53d   :  { %v3239_v16 = vsel %vm85_vm0, %v2954_v34, %v7861_v45  ;;  %v3240_v32 = vsel %vm85_vm0, %v2955_v53, %v7862_v9  ;;  %v3259_v6 = vsel %vm85_vm0, %v10493_v46, %v7861_v45  ;;  %v10515_v45 = vld [vmem:[#allocation2 + $0xa0] sm:$0xff] }
 0x53e   :  { %v3330_v10 = vpack.c.bf16 %v3240_v32, %v3239_v16  ;;  %v3326_v14 = vpack.c.bf16 %v3259_v6, %v3258_v49  ;;  %v10526_v32 = vld [vmem:[#allocation2 + $0x98] sm:$0xff] }
 0x53f   :  { %v3260_v6 = vsel %vm85_vm0, %v10526_v32, %v7862_v9 }
 0x540   :  { %v3107_v17 = vpop.permute.xlu1 %3106  ;;  %3718 = vmatmul.bf16.gmra.mxu2 %v3330_v10 }
 0x541   :  { %3776 = vmatmul.bf16.gmra.mxu3 %v3326_v14  ;;  %v7875_v14 = vpop.permute.xlu2 %7874 }
 0x542   :  { %v3159_v26 = vpop.permute.xlu0 %3158 }
 0x543   :  { %v3265_v21 = vsel %vm85_vm0, %v10340_v50, %v3159_v26  ;;  %v3679_v7 = vpop.f32.mrf.mxu2  ;;  %v3737_v5 = vpop.f32.mrf.mxu3  ;;  %v3241_v50 = vsel %vm85_vm0, %v2956_v61, %v3107_v17 }
 0x544   :  { %v3288_v2 = vpack.c.bf16 %v3265_v21, %v10424_v20  ;;  %v10513_v63 = vadd.f32 %v3737_v5, %v3675_v60  ;;  %v3261_v20 = vsel %vm85_vm0, %v10515_v45, %v3107_v17  ;;  %v3335_v10 = vpack.c.bf16 %v3241_v50, %v3241_v50 }
 0x545   :  { %v3331_v40 = vpack.c.bf16 %v3261_v20, %v3260_v6  ;;  %v3680_v60 = vadd.f32 %v10507_v15, %v3679_v7  ;;  %v7877_v20 = vunpack.i.h.bf16 %v7875_v14  ;;  %v3024_v7 = vld [vmem:[#allocation2 + $0x1a] sm:$0xff] }
 0x546   :  { %3862 = vmatmul.bf16.vlgmr.msrb.gmra.mxu1 %v3288_v2  ;;  %v2869_v2 = vpop.f32.mrf.mxu1 }
 0x548   :  { %v7870_v42 = vpop.permute.xlu1 %7869 }
 0x549   :  { %v7871_v48 = vunpack.i.l.bf16 %v7870_v42  ;;  %v7872_v49 = vunpack.i.h.bf16 %v7870_v42  ;;  %v7876_v42 = vunpack.i.l.bf16 %v7875_v14 }
 0x54a   :  { %v7880_v6 = vpop.permute.xlu0 %7879 }
 0x54b   :  { %v10517_v34 = vpop.f32.mrf.mxu2  ;;  %v10519_v53 = vpop.f32.mrf.mxu3  ;;  %v3266_v22 = vsel %vm85_vm0, %v10363_v0, %v7871_v48  ;;  %v3267_v0 = vsel %vm85_vm0, %v10372_v41, %v7872_v49  ;;  %v3268_v9 = vsel %vm85_vm0, %v10388_v12, %v7876_v42  ;;  %v3025_v41 = vld [vmem:[#allocation2 + $0x22] sm:$0xff] }
 0x54c   :  { %v3292_v16 = vpack.c.bf16 %v3266_v22, %v3265_v21  ;;  %v3293_v21 = vpack.c.bf16 %v3267_v0, %v3266_v22  ;;  %v3297_v50 = vpack.c.bf16 %v3268_v9, %v3267_v0  ;;  %v3289_v49 = vpack.c.bf16 %v3025_v41, %v3024_v7  ;;  %v3027_v41 = vld [vmem:[#allocation2 + $0x32] sm:$0xff] }
 0x54d   :  { %v3269_v22 = vsel %vm85_vm0, %v10390_v28, %v7877_v20  ;;  %v7882_v28 = vunpack.i.h.bf16 %v7880_v6  ;;  %v3026_v20 = vld [vmem:[#allocation2 + $0x2a] sm:$0xff] }
 0x54e   :  { %3804 = vmatmul.bf16.gmra.mxu0 %v3292_v16  ;;  %v2871_v16 = vpop.f32.mrf.mxu1 }
 0x550   :  { %3723 = vmatmul.bf16.gmra.mxu2 %v3335_v10  ;;  %v7885_v16 = vpop.permute.xlu1 %7884 }
 0x551   :  { %3781 = vmatmul.bf16.gmra.mxu3 %v3331_v40 }
 0x553   :  { %v3684_v26 = vpop.f32.mrf.mxu2 }
 0x554   :  { %v3742_v17 = vpop.f32.mrf.mxu3  ;;  %v3685_v40 = vadd.f32 %v10507_v15, %v3684_v26  ;;  %v3294_v26 = vpack.c.bf16 %v3027_v41, %v3026_v20 }
 0x555   :  { %v10533_v5 = vadd.f32 %v3742_v17, %v3680_v60  ;;  %v3298_v60 = vpack.c.bf16 %v3269_v22, %v3268_v9  ;;  %v7881_v17 = vunpack.i.l.bf16 %v7880_v6  ;;  %v3271_v9 = vsel %vm85_vm0, %v10409_v43, %v7882_v28  ;;  %v3029_v28 = vld [vmem:[#allocation2 + $0x42] sm:$0xff] }
 0x556   :  { %3867 = vmatmul.bf16.gmra.mxu1 %v3293_v21 }
 0x557   :  { %v3270_v0 = vsel %vm85_vm0, %v10407_v39, %v7881_v17 }
 0x55b   :  { %v10537_v48 = vpop.f32.mrf.mxu2 }
 0x55c   :  { %v10539_v61 = vpop.f32.mrf.mxu3 }
 0x55e   :  { %3809 = vmatmul.bf16.gmra.mxu0 %v3297_v50  ;;  %v3302_v50 = vpack.c.bf16 %v3270_v0, %v3269_v22 }
 0x560   :  { %7168 = vmatmul.msk.bf16.vlgmr.msrb.gmra.mxu2 %vm85_vm0, %v3289_v49 }
 0x563   :  { %v3689_v12 = vpop.f32.mrf.mxu2 }
 0x564   :  { %v3747_v10 = vpop.f32.mrf.mxu3  ;;  %v3690_v7 = vadd.f32 %v10507_v15, %v3689_v12  ;;  %v7887_v12 = vunpack.i.h.bf16 %v7885_v16 }
 0x565   :  { %v10545_v21 = vadd.f32 %v3747_v10, %v3685_v40  ;;  %v3303_v40 = vpack.c.bf16 %v3271_v9, %v3270_v0  ;;  %v7886_v10 = vunpack.i.l.bf16 %v7885_v16  ;;  %v3028_v0 = vld [vmem:[#allocation2 + $0x3a] sm:$0xff] }
 0x566   :  { %3872 = vmatmul.bf16.gmra.mxu1 %v3298_v60 }
 0x567   :  { %v3272_v22 = vsel %vm85_vm0, %v10428_v44, %v7886_v10  ;;  %v3273_v44 = vsel %vm85_vm0, %v10438_v24, %v7887_v12 }
 0x568   :  { %v3307_v43 = vpack.c.bf16 %v3272_v22, %v3271_v9 }
 0x56b   :  { %v10549_v14 = vpop.f32.mrf.mxu2 }
 0x56c   :  { %v10551_v42 = vpop.f32.mrf.mxu3 }
 0x56e   :  { %3814 = vmatmul.bf16.gmra.mxu0 %v3302_v50 }
 0x570   :  { %7169 = vmatmul.msk.bf16.gmra.mxu2 %vm85_vm0, %v3294_v26  ;;  %v3299_v26 = vpack.c.bf16 %v3029_v28, %v3028_v0 }
 0x573   :  { %v3694_v49 = vpop.f32.mrf.mxu2 }
 0x574   :  { %v3752_v39 = vpop.f32.mrf.mxu3  ;;  %v3695_v10 = vadd.f32 %v10507_v15, %v3694_v49 }
 0x575   :  { %v10557_v60 = vadd.f32 %v3752_v39, %v3690_v7  ;;  %v12494_v39 = vld [vmem:[#allocation44_spill] sm:$0xff] }
 0x576   :  { %3877 = vmatmul.bf16.gmra.mxu1 %v3303_v40 }
 0x57b   :  { %v2806_v6 = vpop.f32.mrf.mxu0  ;;  %v10562_v50 = vpop.f32.mrf.mxu2 }
 0x57c   :  { %v2807_v17 = vadd.f32 %v2806_v6, %v10169_v23  ;;  %v10564_v41 = vpop.f32.mrf.mxu3  ;;  %v7890_v23 = vpop.permute.xlu2 %7889 }
 0x57e   :  { %v2870_v20 = vadd.f32 %v2869_v2, %v2807_v17  ;;  %3819 = vmatmul.bf16.gmra.mxu0 %v3307_v43  ;;  %v3308_v2 = vpack.c.bf16 %v3273_v44, %v3272_v22  ;;  %v7891_v43 = vunpack.i.l.bf16 %v7890_v23 }
 0x580   :  { %v2893_v7 = vmax.f32 %v2870_v20, 0.0  ;;  %7170 = vmatmul.msk.bf16.gmra.mxu2 %vm85_vm0, %v3299_v26  ;;  %v3274_v24 = vsel %vm85_vm0, %v10451_v33, %v7891_v43  ;;  %v7895_v43 = vpop.permute.xlu0 %7894 }
 0x582   :  { %v2914_v40 = vmul.f32 %v2893_v7, %v12494_v39 }
 0x583   :  { %v2808_v6 = vpop.f32.mrf.mxu0  ;;  %v3699_v9 = vpop.f32.mrf.mxu2 }
 0x584   :  { %2935 = vst.msk [vmem:[#allocation2 + $0xb0] sm:$0xff] %vm85_vm0, %v2914_v40  ;;  %v3757_v16 = vpop.f32.mrf.mxu3  ;;  %v3312_v40 = vpack.c.bf16 %v3274_v24, %v3273_v44  ;;  %v7892_v6 = vunpack.i.h.bf16 %v7890_v23  ;;  %v7896_v44 = vunpack.i.l.bf16 %v7895_v43  ;;  %v3023_v23 = vld [vmem:[#allocation2 + $0xb9] sm:$0xff] }
 0x585   :  { %v10572_v17 = vadd.f32 %v3757_v16, %v3695_v10  ;;  %v3031_v10 = vld [vmem:[#allocation2 + $0x52] sm:$0xff]  ;;  %v3030_v16 = vld [vmem:[#allocation2 + $0x4a] sm:$0xff]  ;;  %3218 = vrot.lane.b32.xlu2 %v3023_v23, %s8161_s5 }
 0x586   :  { %3882 = vmatmul.bf16.gmra.mxu1 %v3308_v2  ;;  %v3304_v2 = vpack.c.bf16 %v3031_v10, %v3030_v16  ;;  %v3275_v33 = vsel %vm85_vm0, %v10456_v4, %v7892_v6  ;;  %v3033_v10 = vld [vmem:[#allocation2 + $0x62] sm:$0xff]  ;;  %v7897_v6 = vunpack.i.h.bf16 %v7895_v43 }
 0x58b   :  { %v3800_v28 = vpop.f32.mrf.mxu0  ;;  %v2999_v20 = vld [vmem:[#allocation2 + $0xaf] sm:$0xff]  ;;  %v10576_v12 = vpop.f32.mrf.mxu2 }
 0x58c   :  { %v3020_v0 = vld [vmem:[#allocation2 + $0xa9] sm:$0xff]  ;;  %v3021_v26 = vld [vmem:[#allocation2 + $0xb1] sm:$0xff]  ;;  %v10578_v49 = vpop.f32.mrf.mxu3  ;;  %v10581_v7 = vadd.f32 %v3800_v28, %v10513_v63  ;;  %3130 = vrot.lane.b32.xlu1 %v2999_v20, %s8161_s5  ;;  %v3700_v63 = vadd.f32 %v10507_v15, %v3699_v9  ;;  %v3032_v9 = vld [vmem:[#allocation2 + $0x5a] sm:$0xff] }
 0x58d   :  { %v7908_v22 = vpack.i.bf16 %v3021_v26, %v3020_v0  ;;  %v3313_v0 = vpack.c.bf16 %v3275_v33, %v3274_v24  ;;  %v3309_v16 = vpack.c.bf16 %v3033_v10, %v3032_v9  ;;  %v3277_v24 = vsel %vm85_vm0, %v10472_v8, %v7897_v6  ;;  %v7905_v6 = vpop.permute.xlu2 %7904 }
 0x58e   :  { %3824 = vmatmul.bf16.gmra.mxu0 %v3312_v40 }
 0x58f   :  { %7909 = vrot.lane.b32.xlu0 %v7908_v22, %s8161_s5  ;;  %v3276_v22 = vsel %vm85_vm0, %v10470_v27, %v7896_v44  ;;  %v3035_v44 = vld [vmem:[#allocation2 + $0x72] sm:$0xff] }
 0x590   :  { %7171 = vmatmul.msk.bf16.gmra.mxu2 %vm85_vm0, %v3304_v2  ;;  %v3317_v4 = vpack.c.bf16 %v3276_v22, %v3275_v33  ;;  %v7900_v2 = vpop.permute.xlu1 %7899 }
 0x591   :  { %v7902_v23 = vunpack.i.h.bf16 %v7900_v2 }
 0x593   :  { %v10589_v28 = vpop.f32.mrf.mxu2  ;;  %v3279_v8 = vsel %vm85_vm0, %v10493_v46, %v7902_v23 }
 0x594   :  { %v3762_v20 = vpop.f32.mrf.mxu3 }
 0x595   :  { %v10591_v26 = vadd.f32 %v3762_v20, %v3700_v63  ;;  %v3318_v20 = vpack.c.bf16 %v3277_v24, %v3276_v22 }
 0x596   :  { %3887 = vmatmul.bf16.gmra.mxu1 %v3313_v0  ;;  %v7901_v0 = vunpack.i.l.bf16 %v7900_v2 }
 0x598   :  { %v3278_v27 = vsel %vm85_vm0, %v10491_v38, %v7901_v0  ;;  %v7907_v0 = vunpack.i.h.bf16 %v7905_v6 }
 0x599   :  { %v3322_v43 = vpack.c.bf16 %v3278_v27, %v3277_v24  ;;  %v3323_v9 = vpack.c.bf16 %v3279_v8, %v3278_v27  ;;  %v10621_v27 = vpop.f32.mrf.mxu0 }
 0x59a   :  { %v10619_v46 = vsel %vm85_vm0, %v10515_v45, %v7907_v0  ;;  %v3038_v45 = vld [vmem:[#allocation2 + $0x8a] sm:$0xff] }
 0x59b   :  { %v10596_v40 = vpop.f32.mrf.mxu2 }
 0x59e   :  { %3829 = vmatmul.bf16.gmra.mxu0 %v3317_v4  ;;  %v3034_v4 = vld [vmem:[#allocation2 + $0x6a] sm:$0xff] }
 0x59f   :  { %v3314_v10 = vpack.c.bf16 %v3035_v44, %v3034_v4 }
 0x5a0   :  { %7172 = vmatmul.msk.bf16.gmra.mxu2 %vm85_vm0, %v3309_v16  ;;  %v7906_v16 = vunpack.i.l.bf16 %v7905_v6 }
 0x5a2   :  { %v3280_v38 = vsel %vm85_vm0, %v10526_v32, %v7906_v16 }
 0x5a3   :  { %v10601_v63 = vpop.f32.mrf.mxu2  ;;  %v3327_v2 = vpack.c.bf16 %v3280_v38, %v3279_v8 }
 0x5a6   :  { %3892 = vmatmul.bf16.gmra.mxu1 %v3318_v20  ;;  %v3037_v20 = vld [vmem:[#allocation2 + $0x82] sm:$0xff] }
 0x5ab   :  { %v10605_v33 = vpop.f32.mrf.mxu2 }
 0x5ae   :  { %3834 = vmatmul.bf16.gmra.mxu0 %v3322_v43  ;;  %v3036_v43 = vld [vmem:[#allocation2 + $0x7a] sm:$0xff] }
 0x5af   :  { %v3319_v44 = vpack.c.bf16 %v3037_v20, %v3036_v43 }
 0x5b0   :  { %7173 = vmatmul.msk.bf16.gmra.mxu2 %vm85_vm0, %v3314_v10  ;;  %v3328_v10 = vpack.c.bf16 %v10619_v46, %v3280_v38 }
 0x5b3   :  { %v10610_v22 = vpop.f32.mrf.mxu2 }
 0x5b6   :  { %3897 = vmatmul.bf16.gmra.mxu1 %v3323_v9 }
 0x5bb   :  { %v10614_v24 = vpop.f32.mrf.mxu2 }
 0x5be   :  { %3839 = vmatmul.bf16.gmra.mxu0 %v3327_v2  ;;  %v3039_v2 = vld [vmem:[#allocation2 + $0x92] sm:$0xff] }
 0x5bf   :  { %v3324_v20 = vpack.c.bf16 %v3039_v2, %v3038_v45 }
 0x5c0   :  { %7174 = vmatmul.msk.bf16.gmra.mxu2 %vm85_vm0, %v3319_v44 }
 0x5c3   :  { %v3863_v23 = vpop.f32.mrf.mxu1  ;;  %v10623_v4 = vpop.f32.mrf.mxu2 }
 0x5c4   :  { %v3864_v32 = vadd.f32 %v3863_v23, %v10581_v7 }
 0x5c6   :  { %3902 = vmatmul.bf16.gmra.mxu1 %v3328_v10 }
 0x5cb   :  { %v3805_v8 = vpop.f32.mrf.mxu0  ;;  %v10627_v6 = vpop.f32.mrf.mxu1 }
 0x5cc   :  { %v10629_v9 = vpop.f32.mrf.mxu2  ;;  %v3806_v16 = vadd.f32 %v3805_v8, %v10533_v5  ;;  %v3329_v5 = vpack.c.bf16 %v3041_v11, %v3040_v55 }
 0x5cd   :  { %12495 = vst [vmem:[#allocation47_spill] sm:$0xff] %v10629_v9 }
 0x5d0   :  { %7175 = vmatmul.msk.bf16.gmra.mxu2 %vm85_vm0, %v3324_v20 }
 0x5d3   :  { %v10633_v0 = vpop.f32.mrf.mxu0  ;;  %v3868_v43 = vpop.f32.mrf.mxu1 }
 0x5d4   :  { %v10635_v44 = vpop.f32.mrf.mxu2  ;;  %v3869_v7 = vadd.f32 %v3868_v43, %v3806_v16 }
 0x5d5   :  { %12496 = vst [vmem:[#allocation12_spill] sm:$0xff] %v10635_v44 }
 0x5db   :  { %v3810_v38 = vpop.f32.mrf.mxu0  ;;  %v10637_v23 = vpop.f32.mrf.mxu1 }
 0x5dc   :  { %v3726_v10 = vpop.f32.mrf.mxu2  ;;  %v3811_v39 = vadd.f32 %v3810_v38, %v10545_v21  ;;  %v3042_v21 = vld [vmem:[#allocation2 + $0xaa] sm:$0xff]  ;;  %v3043_v38 = vld [vmem:[#allocation2 + $0xb2] sm:$0xff] }
 0x5dd   :  { %v3334_v30 = vpack.c.bf16 %v3043_v38, %v3042_v21 }
 0x5e0   :  { %7176 = vmatmul.msk.bf16.gmra.mxu2 %vm85_vm0, %v3329_v5 }
 0x5e3   :  { %v10641_v8 = vpop.f32.mrf.mxu0  ;;  %v3873_v2 = vpop.f32.mrf.mxu1 }
 0x5e4   :  { %v3874_v45 = vadd.f32 %v3873_v2, %v3811_v39  ;;  %v3926_v20 = vpop.f32.mrf.mxu2 }
 0x5e5   :  { %v10643_v54 = vadd.f32 %v3926_v20, %v3864_v32 }
 0x5eb   :  { %v3815_v44 = vpop.f32.mrf.mxu0  ;;  %v10645_v16 = vpop.f32.mrf.mxu1 }
 0x5ec   :  { %v3816_v43 = vadd.f32 %v3815_v44, %v10557_v60  ;;  %v10648_v10 = vpop.f32.mrf.mxu2  ;;  %v2998_v44 = vld [vmem:[#allocation2 + $0xa8] sm:$0xff] }
 0x5f0   :  { %7177 = vmatmul.msk.bf16.gmra.mxu2 %vm85_vm0, %v3334_v30 }
 0x5f3   :  { %v10651_v55 = vpop.f32.mrf.mxu0  ;;  %v3878_v11 = vpop.f32.mrf.mxu1 }
 0x5f4   :  { %v3879_v5 = vadd.f32 %v3878_v11, %v3816_v43  ;;  %v3931_v39 = vpop.f32.mrf.mxu2 }
 0x5f5   :  { %v10653_v2 = vadd.f32 %v3931_v39, %v3869_v7  ;;  %v3000_v7 = vld [vmem:[#allocation2 + $0xb0] sm:$0xff] }
 0x5fb   :  { %v3820_v32 = vpop.f32.mrf.mxu0  ;;  %v10655_v20 = vpop.f32.mrf.mxu1 }
 0x5fc   :  { %v3821_v62 = vadd.f32 %v3820_v32, %v10572_v17  ;;  %v10658_v60 = vpop.f32.mrf.mxu2 }
 0x5fe   :  { %v3131_v52 = vpop.permute.xlu1 %3130 }
 0x5ff   :  { %v3262_v21 = vsel %vm85_vm0, %v2998_v44, %v3131_v52 }
 0x600   :  { %v3336_v38 = vpack.c.bf16 %v3262_v21, %v3262_v21  ;;  %7178 = vmatmul.msk.bf16.gmra.mxu2 %vm85_vm0, %v10354_v58 }
 0x601   :  { %v7910_v30 = vpop.permute.xlu0 %7909 }
 0x602   :  { %v7912_v25 = vunpack.i.h.bf16 %v7910_v30  ;;  %v7911_v47 = vunpack.i.l.bf16 %v7910_v30  ;;  %3786 = vmatmul.bf16.gmra.mxu3 %v3336_v38  ;;  %v3219_v30 = vpop.permute.xlu2 %3218 }
 0x603   :  { %v3883_v43 = vpop.f32.mrf.mxu1  ;;  %v3284_v58 = vsel %vm85_vm0, %v10403_v29, %v3219_v30  ;;  %v10684_v29 = vpop.f32.mrf.mxu3 }
 0x604   :  { %v3282_v11 = vsel %vm85_vm0, %v2998_v44, %v7911_v47  ;;  %v3283_v17 = vsel %vm85_vm0, %v3000_v7, %v7912_v25  ;;  %v3884_v39 = vadd.f32 %v3883_v43, %v3821_v62  ;;  %v3936_v32 = vpop.f32.mrf.mxu2  ;;  %v3338_v38 = vpack.c.bf16 %v3284_v58, %v3284_v58  ;;  %v10676_v62 = vpop.f32.mrf.mxu0 }
 0x605   :  { %v3332_v37 = vpack.c.bf16 %v3282_v11, %v10619_v46  ;;  %v10666_v3 = vadd.f32 %v3936_v32, %v3874_v45  ;;  %v3333_v52 = vpack.c.bf16 %v3283_v17, %v3282_v11  ;;  %v3337_v47 = vpack.c.bf16 %v3283_v17, %v3283_v17 }
 0x607   :  { %3844 = vmatmul.bf16.gmra.mxu0 %v3332_v37  ;;  %3907 = vmatmul.bf16.gmra.mxu1 %v3333_v52 }
 0x60b   :  { %v10678_v46 = vpop.f32.mrf.mxu1  ;;  %v3767_v58 = vpop.f32.mrf.mxu3 }
 0x60c   :  { %v10668_v21 = vpop.f32.mrf.mxu2  ;;  %v3825_v7 = vpop.f32.mrf.mxu0 }
 0x613   :  { %v3888_v43 = vpop.f32.mrf.mxu1 }
 0x614   :  { %v3941_v56 = vpop.f32.mrf.mxu2  ;;  %v10687_v17 = vpop.f32.mrf.mxu0 }
 0x615   :  { %v10672_v44 = vadd.f32 %v3941_v56, %v3879_v5  ;;  %v3826_v56 = vadd.f32 %v3825_v7, %v10591_v26 }
 0x617   :  { %3849 = vmatmul.bf16.gmra.mxu0 %v3337_v47  ;;  %3912 = vmatmul.bf16.gmra.mxu1 %v3338_v38  ;;  %v3889_v5 = vadd.f32 %v3888_v43, %v3826_v56 }
 0x61b   :  { %v10691_v30 = vpop.f32.mrf.mxu1 }
 0x61c   :  { %v10674_v25 = vpop.f32.mrf.mxu2  ;;  %v3830_v47 = vpop.f32.mrf.mxu0 }
 0x623   :  { %v3893_v9 = vpop.f32.mrf.mxu1 }
 0x624   :  { %v3946_v37 = vpop.f32.mrf.mxu2 }
 0x625   :  { %v10680_v45 = vadd.f32 %v3946_v37, %v3884_v39  ;;  %v3705_v39 = vadd.f32 %v10507_v15, %v10589_v28 }
 0x627   :  { %12497 = vst [vmem:[#allocation46_spill] sm:$0xff] %v10680_v45  ;;  %v3768_v37 = vadd.f32 %v3767_v58, %v3705_v39  ;;  %v3769_v45 = vpop.f32.mrf.mxu3  ;;  %v3677_v58 = vadd.f32 %v10507_v15, %v10489_v36  ;;  %v3682_v39 = vadd.f32 %v10507_v15, %v10517_v34  ;;  %v3687_v36 = vadd.f32 %v10507_v15, %v10537_v48 }
 0x629   :  { %v3831_v59 = vadd.f32 %v3830_v47, %v3768_v37  ;;  %v3750_v34 = vadd.f32 %v10551_v42, %v3687_v36 }
 0x62b   :  { %v3894_v26 = vadd.f32 %v3893_v9, %v3831_v59  ;;  %v3740_v59 = vadd.f32 %v10519_v53, %v3677_v58 }
 0x62c   :  { %v10682_v11 = vpop.f32.mrf.mxu2 }
 0x62d   :  { %v3803_v47 = vadd.f32 %v10621_v27, %v3740_v59 }
 0x62f   :  { %v10699_v56 = vpop.f32.mrf.mxu3 }
 0x634   :  { %v3951_v32 = vpop.f32.mrf.mxu2 }
 0x635   :  { %v10689_v52 = vadd.f32 %v3951_v32, %v3889_v5  ;;  %v10703_v32 = vpop.f32.mrf.mxu0 }
 0x637   :  { %12498 = vst [vmem:[#allocation49_spill] sm:$0xff] %v10689_v52  ;;  %v10705_v52 = vpop.f32.mrf.mxu1  ;;  %v10709_v28 = vpop.f32.mrf.mxu3 }
 0x63c   :  { %v10693_v38 = vpop.f32.mrf.mxu2 }
 0x63d   :  { %12499 = vst [vmem:[#allocation51_spill] sm:$0xff] %v10693_v38  ;;  %v10719_v37 = vpop.f32.mrf.mxu0 }
 0x644   :  { %v3956_v7 = vpop.f32.mrf.mxu2 }
 0x645   :  { %v10697_v43 = vadd.f32 %v3956_v7, %v3894_v26  ;;  %v10721_v26 = vpop.f32.mrf.mxu1  ;;  %v3745_v7 = vadd.f32 %v10539_v61, %v3682_v39 }
 0x647   :  { %12500 = vst [vmem:[#allocation48_spill] sm:$0xff] %v10697_v43  ;;  %v3866_v43 = vadd.f32 %v10627_v6, %v3803_v47  ;;  %v3808_v53 = vadd.f32 %v10633_v0, %v3745_v7  ;;  %v3980_v6 = vmul.f32 %v10643_v54, %v12443_v51  ;;  %v3982_v0 = vmul.f32 %v10653_v2, %v12440_v18  ;;  %v12507_v7 = vld [vmem:[#allocation18_spill] sm:$0xff] }
 0x648   :  { %v3692_v54 = vadd.f32 %v10507_v15, %v10549_v14  ;;  %v3697_v2 = vadd.f32 %v10507_v15, %v10562_v50 }
 0x649   :  { %v3929_v58 = vadd.f32 %v10648_v10, %v3866_v43  ;;  %v3871_v27 = vadd.f32 %v10637_v23, %v3808_v53  ;;  %v10743_v10 = vpop.f32.mrf.mxu0  ;;  %v12503_v43 = vld [vmem:[#allocation16_spill] sm:$0xff]  ;;  %v10762_v36 = vadd.f32 %v3982_v0, %v12507_v7  ;;  %v3984_v53 = vmul.f32 %v10666_v3, %v12442_v35 }
 0x64a   :  { %v3760_v14 = vadd.f32 %v10578_v49, %v3697_v2  ;;  %v3707_v3 = vadd.f32 %v10507_v15, %v10596_v40  ;;  %v3710_v49 = vadd.f32 %v10507_v15, %v10601_v63  ;;  %v3986_v2 = vmul.f32 %v10672_v44, %v9272_v57 }
 0x64b   :  { %v3981_v61 = vmul.f32 %v3929_v58, %v12444_v19  ;;  %v3934_v39 = vadd.f32 %v10658_v60, %v3871_v27  ;;  %12508 = vst [vmem:[#allocation54_spill] sm:$0xff] %v10762_v36  ;;  %v3755_v58 = vadd.f32 %v10564_v41, %v3692_v54  ;;  %v4071_v0 = vmul.f32 %v10762_v36, %v10762_v36  ;;  %v12513_v54 = vld [vmem:[#allocation22_spill] sm:$0xff] }
 0x64c   :  { %v10701_v5 = vpop.f32.mrf.mxu2  ;;  %v3770_v40 = vadd.f32 %v3769_v45, %v3707_v3  ;;  %v3823_v44 = vadd.f32 %v10676_v62, %v3760_v14  ;;  %v12515_v14 = vld [vmem:[#allocation24_spill] sm:$0xff] }
 0x64d   :  { %v10745_v42 = vpop.f32.mrf.mxu1  ;;  %v3983_v47 = vmul.f32 %v3934_v39, %v12441_v31 }
 0x651   :  { %v10806_v45 = vpop.f32.mrf.mxu0 }
 0x654   :  { %v10707_v38 = vpop.f32.mrf.mxu2 }
 0x655   :  { %12501 = vst [vmem:[#allocation50_spill] sm:$0xff] %v10707_v38  ;;  %v10724_v38 = vpop.f32.mrf.mxu3 }
 0x65c   :  { %v10714_v9 = vpop.f32.mrf.mxu2 }
 0x65d   :  { %12502 = vst [vmem:[#allocation53_spill] sm:$0xff] %v10714_v9  ;;  %v3813_v9 = vadd.f32 %v10641_v8, %v3750_v34  ;;  %v10747_v23 = vpop.f32.mrf.mxu3  ;;  %v10750_v8 = vadd.f32 %v3981_v61, %v12503_v43  ;;  %v12509_v61 = vld [vmem:[#allocation20_spill] sm:$0xff]  ;;  %v12511_v43 = vld [vmem:[#allocation21_spill] sm:$0xff] }
 0x65e   :  { %v10775_v50 = vadd.f32 %v3983_v47, %v12509_v61  ;;  %v10791_v47 = vadd.f32 %v3984_v53, %v12511_v43  ;;  %v4093_v61 = vsel %vm85_vm0, %v4071_v0, 0.0  ;;  %v3886_v43 = vadd.f32 %v10678_v46, %v3823_v44 }
 0x65f   :  { %v3876_v48 = vadd.f32 %v10645_v16, %v3813_v9  ;;  %12504 = vst [vmem:[#allocation55_spill] sm:$0xff] %v10750_v8  ;;  %v12505_v16 = vld [vmem:[#allocation17_spill] sm:$0xff]  ;;  %v4070_v27 = vmul.f32 %v10750_v8, %v10750_v8  ;;  %v10832_v0 = vadd.f32 %v3986_v2, %v12515_v14 }
 0x660   :  { %v10757_v9 = vadd.f32 %v3980_v6, %v12505_v16  ;;  %12510 = vst [vmem:[#allocation56_spill] sm:$0xff] %v10775_v50  ;;  %v3818_v6 = vadd.f32 %v10651_v55, %v3755_v58  ;;  %v10813_v58 = vpop.f32.mrf.mxu1  ;;  %v3949_v46 = vadd.f32 %v10682_v11, %v3886_v43 }
 0x661   :  { %v3939_v60 = vadd.f32 %v10668_v21, %v3876_v48  ;;  %v3702_v21 = vadd.f32 %v10507_v15, %v10576_v12  ;;  %v3712_v48 = vadd.f32 %v10507_v15, %v10605_v33  ;;  %12512 = vst [vmem:[#allocation16_spill] sm:$0xff] %v10791_v47  ;;  %v4091_v63 = vsel %vm85_vm0, %v4070_v27, 0.0 }
 0x662   :  { %12506 = vst [vmem:[#allocation52_spill] sm:$0xff] %v10757_v9  ;;  %v4069_v12 = vmul.f32 %v10757_v9, %v10757_v9  ;;  %v3881_v55 = vadd.f32 %v10655_v20, %v3818_v6  ;;  %v4072_v33 = vmul.f32 %v10775_v50, %v10775_v50  ;;  %v4022_v7 = vsel %vm85_vm0, %v10757_v9, 0.0 }
 0x663   :  { %v3985_v39 = vmul.f32 %v3939_v60, %v12445_v13  ;;  %v3765_v41 = vadd.f32 %v10684_v29, %v3702_v21  ;;  %v3715_v29 = vadd.f32 %v10507_v15, %v10610_v22  ;;  %v4023_v60 = vsel %vm85_vm0, %v10750_v8, 0.0  ;;  %12516 = vst [vmem:[#allocation18_spill] sm:$0xff] %v10832_v0 }
 0x664   :  { %v10733_v59 = vpop.f32.mrf.mxu2  ;;  %v3773_v22 = vadd.f32 %v10699_v56, %v3710_v49  ;;  %v4090_v20 = vsel %vm85_vm0, %v4069_v12, 0.0  ;;  %v3944_v53 = vadd.f32 %v10674_v25, %v3881_v55  ;;  %v4025_v27 = vsel %vm85_vm0, %v10762_v36, 0.0 }
 0x665   :  { %v10802_v16 = vadd.f32 %v3985_v39, %v12513_v54  ;;  %v3782_v21 = vpop.f32.mrf.mxu3  ;;  %v4073_v56 = vmul.f32 %v10791_v47, %v10791_v47  ;;  %v3717_v39 = vadd.f32 %v10507_v15, %v10614_v24  ;;  %v4024_v3 = vadd.f32 %v4023_v60, %v4022_v7 }
 0x666   :  { %v4092_v12 = vadd.f32 %v4091_v63, %v4090_v20  ;;  %v4027_v25 = vsel %vm85_vm0, %v10775_v50, 0.0  ;;  %v4095_v49 = vsel %vm85_vm0, %v4072_v33, 0.0  ;;  %v3775_v55 = vadd.f32 %v10709_v28, %v3712_v48 }
 0x667   :  { %12514 = vst [vmem:[#allocation17_spill] sm:$0xff] %v10802_v16  ;;  %v4074_v62 = vmul.f32 %v10802_v16, %v10802_v16  ;;  %v4026_v24 = vadd.f32 %v4025_v27, %v4024_v3  ;;  %v3987_v63 = vmul.f32 %v3944_v53, %v9277_v1  ;;  %v4029_v54 = vsel %vm85_vm0, %v10791_v47, 0.0 }
 0x668   :  { %v4094_v60 = vadd.f32 %v4093_v61, %v4092_v12  ;;  %v4097_v7 = vsel %vm85_vm0, %v4073_v56, 0.0  ;;  %v3828_v33 = vadd.f32 %v10687_v17, %v3765_v41  ;;  %v3720_v20 = vadd.f32 %v10507_v15, %v10623_v4  ;;  %v12517_v61 = vld [vmem:[#allocation23_spill] sm:$0xff]  ;;  %v12518_v56 = vld [vmem:[#allocation46_spill] sm:$0xff] }
 0x669   :  { %v4028_v2 = vadd.f32 %v4027_v25, %v4026_v24  ;;  %v4031_v28 = vsel %vm85_vm0, %v10802_v16, 0.0  ;;  %v4099_v48 = vsel %vm85_vm0, %v4074_v62, 0.0  ;;  %v4075_v53 = vmul.f32 %v10832_v0, %v10832_v0  ;;  %v12519_v4 = vld [vmem:[#allocation27_spill] sm:$0xff]  ;;  %v12522_v62 = vld [vmem:[#allocation25_spill] sm:$0xff] }
 0x66a   :  { %v4096_v44 = vadd.f32 %v4095_v49, %v4094_v60  ;;  %v3891_v27 = vadd.f32 %v10691_v30, %v3828_v33  ;;  %v3988_v17 = vmul.f32 %v12518_v56, %v12517_v61  ;;  %v3778_v11 = vadd.f32 %v10724_v38, %v3715_v29  ;;  %v12521_v25 = vld [vmem:[#allocation47_spill] sm:$0xff]  ;;  %v3842_v30 = vpop.f32.mrf.mxu0  ;;  %v3905_v29 = vpop.f32.mrf.mxu1 }
 0x66b   :  { %v4030_v41 = vadd.f32 %v4029_v54, %v4028_v2  ;;  %v10853_v12 = vadd.f32 %v3987_v63, %v12519_v4  ;;  %v3722_v49 = vadd.f32 %v10507_v15, %v12521_v25  ;;  %v3780_v43 = vadd.f32 %v10747_v23, %v3717_v39  ;;  %v12523_v24 = vld [vmem:[#allocation51_spill] sm:$0xff]  ;;  %v12524_v23 = vld [vmem:[#allocation29_spill] sm:$0xff] }
 0x66c   :  { %v10769_v34 = vpop.f32.mrf.mxu2  ;;  %v4098_v3 = vadd.f32 %v4097_v7, %v4096_v44  ;;  %v3989_v14 = vmul.f32 %v3949_v46, %v12522_v62  ;;  %v3954_v60 = vadd.f32 %v12523_v24, %v3891_v27  ;;  %v3783_v33 = vadd.f32 %v3782_v21, %v3720_v20  ;;  %v12526_v20 = vld [vmem:[#allocation26_spill] sm:$0xff]  ;;  %v12527_v44 = vld [vmem:[#allocation49_spill] sm:$0xff] }
 0x66d   :  { %12520 = vst [vmem:[#allocation20_spill] sm:$0xff] %v10853_v12  ;;  %v4032_v13 = vadd.f32 %v4031_v28, %v4030_v41  ;;  %v3833_v38 = vadd.f32 %v10703_v32, %v3770_v40  ;;  %v3784_v63 = vpop.f32.mrf.mxu3  ;;  %v4033_v7 = vsel %vm85_vm0, %v10832_v0, 0.0  ;;  %v4101_v2 = vsel %vm85_vm0, %v4075_v53, 0.0  ;;  %v12530_v41 = vld [vmem:[#allocation28_spill] sm:$0xff] }
 0x66e   :  { %v4100_v56 = vadd.f32 %v4099_v48, %v4098_v3  ;;  %v10867_v39 = vadd.f32 %v3988_v17, %v12524_v23  ;;  %v3836_v46 = vadd.f32 %v10719_v37, %v3773_v22  ;;  %v4035_v21 = vsel %vm85_vm0, %v10853_v12, 0.0  ;;  %v12528_v48 = vld [vmem:[#allocation32_spill] sm:$0xff] }
 0x66f   :  { %v4076_v32 = vmul.f32 %v10853_v12, %v10853_v12  ;;  %v3896_v40 = vadd.f32 %v10705_v52, %v3833_v38  ;;  %v3990_v28 = vmul.f32 %v12527_v44, %v12526_v20  ;;  %v10878_v27 = vadd.f32 %v3989_v14, %v12528_v48  ;;  %v12531_v38 = vld [vmem:[#allocation30_spill] sm:$0xff]  ;;  %v12532_v23 = vld [vmem:[#allocation48_spill] sm:$0xff] }
 0x670   :  { %12525 = vst [vmem:[#allocation21_spill] sm:$0xff] %v10867_v39  ;;  %v3838_v53 = vadd.f32 %v10743_v10, %v3775_v55  ;;  %v3899_v17 = vadd.f32 %v10721_v26, %v3836_v46  ;;  %v3991_v37 = vmul.f32 %v3954_v60, %v12530_v41  ;;  %v3785_v22 = vadd.f32 %v3784_v63, %v3722_v49  ;;  %v12533_v44 = vld [vmem:[#allocation50_spill] sm:$0xff]  ;;  %v12534_v55 = vld [vmem:[#allocation33_spill] sm:$0xff] }
 0x671   :  { %12529 = vst [vmem:[#allocation22_spill] sm:$0xff] %v10878_v27  ;;  %v4034_v3 = vadd.f32 %v4033_v7, %v4032_v13  ;;  %v4102_v4 = vadd.f32 %v4101_v2, %v4100_v56  ;;  %v3959_v25 = vadd.f32 %v10701_v5, %v3896_v40  ;;  %v4077_v52 = vmul.f32 %v10867_v39, %v10867_v39  ;;  %v12538_v63 = vld [vmem:[#allocation53_spill] sm:$0xff] }
 0x672   :  { %v3901_v24 = vadd.f32 %v10745_v42, %v3838_v53  ;;  %v3992_v14 = vmul.f32 %v12532_v23, %v12531_v38  ;;  %v3962_v48 = vadd.f32 %v12533_v44, %v3899_v17  ;;  %v4103_v26 = vsel %vm85_vm0, %v4076_v32, 0.0  ;;  %v12536_v42 = vld [vmem:[#allocation34_spill] sm:$0xff]  ;;  %v12539_v32 = vld [vmem:[#allocation31_spill] sm:$0xff] }
 0x673   :  { %v4036_v10 = vadd.f32 %v4035_v21, %v4034_v3  ;;  %v10892_v60 = vadd.f32 %v3990_v28, %v12534_v55  ;;  %v3841_v13 = vadd.f32 %v10806_v45, %v3778_v11  ;;  %v4037_v5 = vsel %vm85_vm0, %v10867_v39, 0.0  ;;  %v12540_v3 = vld [vmem:[#allocation9_spill] sm:$0xff]  ;;  %v12542_v23 = vld [vmem:[#allocation6_spill] sm:$0xff] }
 0x674   :  { %v10825_v6 = vpop.f32.mrf.mxu2  ;;  %v4078_v49 = vmul.f32 %v10878_v27, %v10878_v27  ;;  %v10900_v56 = vadd.f32 %v3991_v37, %v12536_v42  ;;  %v3964_v7 = vadd.f32 %v12538_v63, %v3901_v24  ;;  %v3843_v46 = vadd.f32 %v3842_v30, %v3780_v43  ;;  %v12544_v63 = vld [vmem:[#allocation36_spill] sm:$0xff] }
 0x675   :  { %12535 = vst [vmem:[#allocation24_spill] sm:$0xff] %v10892_v60  ;;  %v3904_v21 = vadd.f32 %v10813_v58, %v3841_v13  ;;  %v3993_v40 = vmul.f32 %v3959_v25, %v12539_v32  ;;  %v4105_v11 = vsel %vm85_vm0, %v4077_v52, 0.0  ;;  %v4039_v17 = vsel %vm85_vm0, %v10878_v27, 0.0  ;;  %v12543_v13 = vld [vmem:[#allocation35_spill] sm:$0xff] }
 0x676   :  { %12537 = vst [vmem:[#allocation23_spill] sm:$0xff] %v10900_v56  ;;  %v10911_v37 = vadd.f32 %v3992_v14, %v12540_v3  ;;  %v3994_v24 = vmul.f32 %v3962_v48, %v12542_v23  ;;  %v4079_v58 = vmul.f32 %v10892_v60, %v10892_v60  ;;  %v3906_v43 = vadd.f32 %v3905_v29, %v3843_v46 }
 0x677   :  { %v3967_v30 = vadd.f32 %v10733_v59, %v3904_v21  ;;  %v4104_v25 = vadd.f32 %v4103_v26, %v4102_v4  ;;  %v4038_v55 = vadd.f32 %v4037_v5, %v4036_v10  ;;  %v4080_v52 = vmul.f32 %v10900_v56, %v10900_v56  ;;  %v12546_v10 = vld [vmem:[#allocation13_spill] sm:$0xff] }
 0x678   :  { %12541 = vst [vmem:[#allocation46_spill] sm:$0xff] %v10911_v37  ;;  %v3995_v42 = vmul.f32 %v3964_v7, %v12543_v13  ;;  %v4107_v14 = vsel %vm85_vm0, %v4078_v49, 0.0  ;;  %v4041_v48 = vsel %vm85_vm0, %v10892_v60, 0.0  ;;  %v3969_v29 = vadd.f32 %v10769_v34, %v3906_v43  ;;  %v12548_v7 = vld [vmem:[#allocation37_spill] sm:$0xff]  ;;  %v12551_v43 = vld [vmem:[#allocation39_spill] sm:$0xff] }
 0x679   :  { %v4106_v46 = vadd.f32 %v4105_v11, %v4104_v25  ;;  %v4040_v59 = vadd.f32 %v4039_v17, %v4038_v55  ;;  %v4081_v4 = vmul.f32 %v10911_v37, %v10911_v37  ;;  %v10930_v26 = vadd.f32 %v3994_v24, %v12546_v10  ;;  %v12549_v11 = vld [vmem:[#allocation7_spill] sm:$0xff]  ;;  %v12554_v10 = vld [vmem:[#allocation40_spill] sm:$0xff] }
 0x67a   :  { %v4109_v5 = vsel %vm85_vm0, %v4079_v58, 0.0  ;;  %v4043_v49 = vsel %vm85_vm0, %v10900_v56, 0.0  ;;  %v3996_v21 = vmul.f32 %v3967_v30, %v12548_v7  ;;  %v4111_v34 = vsel %vm85_vm0, %v4080_v52, 0.0 }
 0x67b   :  { %12547 = vst [vmem:[#allocation47_spill] sm:$0xff] %v10930_v26  ;;  %v10939_v17 = vadd.f32 %v3995_v42, %v12549_v11  ;;  %v4045_v24 = vsel %vm85_vm0, %v10911_v37, 0.0  ;;  %v3997_v25 = vmul.f32 %v3969_v29, %v12551_v43  ;;  %v4083_v52 = vmul.f32 %v10930_v26, %v10930_v26 }
 0x67c   :  { %v10861_v54 = vpop.f32.mrf.mxu2 }
 0x67d   :  { %12550 = vst [vmem:[#allocation25_spill] sm:$0xff] %v10939_v17 }
 0x684   :  { %v3845_v2 = vpop.f32.mrf.mxu0  ;;  %v3908_v53 = vpop.f32.mrf.mxu1 }
 0x685   :  { %v3846_v28 = vadd.f32 %v3845_v2, %v3783_v33  ;;  %v10905_v45 = vpop.f32.mrf.mxu2  ;;  %v3787_v44 = vpop.f32.mrf.mxu3  ;;  %v10924_v2 = vadd.f32 %v3993_v40, %v12544_v63 }
 0x687   :  { %v3909_v33 = vadd.f32 %v3908_v53, %v3846_v28  ;;  %12545 = vst [vmem:[#allocation27_spill] sm:$0xff] %v10924_v2  ;;  %v4108_v28 = vadd.f32 %v4107_v14, %v4106_v46  ;;  %v4042_v53 = vadd.f32 %v4041_v48, %v4040_v59  ;;  %v4082_v58 = vmul.f32 %v10924_v2, %v10924_v2  ;;  %v12552_v46 = vld [vmem:[#allocation38_spill] sm:$0xff] }
 0x688   :  { %v4113_v14 = vsel %vm85_vm0, %v4081_v4, 0.0  ;;  %v4047_v48 = vsel %vm85_vm0, %v10924_v2, 0.0  ;;  %v10952_v59 = vadd.f32 %v3996_v21, %v12552_v46  ;;  %v4084_v4 = vmul.f32 %v10939_v17, %v10939_v17 }
 0x689   :  { %v3972_v40 = vadd.f32 %v10825_v6, %v3909_v33  ;;  %v4110_v6 = vadd.f32 %v4109_v5, %v4108_v28  ;;  %v4044_v33 = vadd.f32 %v4043_v49, %v4042_v53  ;;  %v4115_v28 = vsel %vm85_vm0, %v4082_v58, 0.0 }
 0x68a   :  { %12553 = vst [vmem:[#allocation51_spill] sm:$0xff] %v10952_v59  ;;  %v4049_v53 = vsel %vm85_vm0, %v10930_v26, 0.0 }
 0x68b   :  { %v3998_v11 = vmul.f32 %v3972_v40, %v12554_v10  ;;  %v4112_v5 = vadd.f32 %v4111_v34, %v4110_v6  ;;  %v4046_v49 = vadd.f32 %v4045_v24, %v4044_v33  ;;  %v4085_v34 = vmul.f32 %v10952_v59, %v10952_v59  ;;  %v12558_v24 = vld [vmem:[#allocation8_spill] sm:$0xff]  ;;  %v12560_v33 = vld [vmem:[#allocation42_spill] sm:$0xff] }
 0x68c   :  { %v3847_v3 = vpop.f32.mrf.mxu0  ;;  %v3910_v30 = vpop.f32.mrf.mxu1 }
 0x68d   :  { %v3848_v55 = vadd.f32 %v3847_v3, %v3785_v22  ;;  %v3978_v63 = vpop.f32.mrf.mxu2  ;;  %v3789_v42 = vpop.f32.mrf.mxu3  ;;  %v12555_v22 = vld [vmem:[#allocation12_spill] sm:$0xff]  ;;  %v4114_v40 = vadd.f32 %v4113_v14, %v4112_v5  ;;  %v10972_v58 = vadd.f32 %v3998_v11, %v12558_v24 }
 0x68e   :  { %v3725_v3 = vadd.f32 %v10507_v15, %v12555_v22  ;;  %v12556_v63 = vld [vmem:[#allocation41_spill] sm:$0xff]  ;;  %v4051_v15 = vsel %vm85_vm0, %v10939_v17, 0.0 }
 0x68f   :  { %v3911_v29 = vadd.f32 %v3910_v30, %v3848_v55  ;;  %v10963_v42 = vadd.f32 %v3997_v25, %v12556_v63  ;;  %v4048_v55 = vadd.f32 %v4047_v48, %v4046_v49  ;;  %v4117_v30 = vsel %vm85_vm0, %v4083_v52, 0.0  ;;  %12559 = vst [vmem:[#allocation26_spill] sm:$0xff] %v10972_v58 }
 0x690   :  { %v3788_v6 = vadd.f32 %v3787_v44, %v3725_v3  ;;  %v4116_v25 = vadd.f32 %v4115_v28, %v4114_v40  ;;  %v4053_v52 = vsel %vm85_vm0, %v10952_v59, 0.0  ;;  %v4121_v3 = vsel %vm85_vm0, %v4085_v34, 0.0 }
 0x691   :  { %12557 = vst [vmem:[#allocation29_spill] sm:$0xff] %v10963_v42  ;;  %v3974_v21 = vadd.f32 %v10861_v54, %v3911_v29  ;;  %v4050_v22 = vadd.f32 %v4049_v53, %v4048_v55  ;;  %v4119_v54 = vsel %vm85_vm0, %v4084_v4, 0.0  ;;  %v4086_v48 = vmul.f32 %v10963_v42, %v10963_v42  ;;  %v12561_v29 = vld [vmem:[#allocation43_spill] sm:$0xff] }
 0x692   :  { %v4118_v63 = vadd.f32 %v4117_v30, %v4116_v25  ;;  %v4055_v28 = vsel %vm85_vm0, %v10963_v42, 0.0  ;;  %v4087_v4 = vmul.f32 %v10972_v58, %v10972_v58  ;;  %v4057_v24 = vsel %vm85_vm0, %v10972_v58, 0.0 }
 0x693   :  { %v3999_v46 = vmul.f32 %v3974_v21, %v12560_v33  ;;  %v4052_v44 = vadd.f32 %v4051_v15, %v4050_v22  ;;  %v4123_v55 = vsel %vm85_vm0, %v4086_v48, 0.0  ;;  %v12563_v22 = vld [vmem:[#allocation44_spill] sm:$0xff] }
 0x694   :  { %v3850_v14 = vpop.f32.mrf.mxu0  ;;  %v3913_v11 = vpop.f32.mrf.mxu1  ;;  %v4120_v21 = vadd.f32 %v4119_v54, %v4118_v63 }
 0x695   :  { %v10981_v5 = vadd.f32 %v3999_v46, %v12561_v29  ;;  %v3851_v49 = vadd.f32 %v3850_v14, %v3788_v6  ;;  %v4054_v40 = vadd.f32 %v4053_v52, %v4052_v44  ;;  %v4125_v46 = vsel %vm85_vm0, %v4087_v4, 0.0 }
 0x696   :  { %v4122_v34 = vadd.f32 %v4121_v3, %v4120_v21 }
 0x697   :  { %12562 = vst [vmem:[#allocation49_spill] sm:$0xff] %v10981_v5  ;;  %v3914_v53 = vadd.f32 %v3913_v11, %v3851_v49  ;;  %v4088_v30 = vmul.f32 %v10981_v5, %v10981_v5  ;;  %v4056_v6 = vadd.f32 %v4055_v28, %v4054_v40  ;;  %v4059_v25 = vsel %vm85_vm0, %v10981_v5, 0.0  ;;  %v12564_v49 = vld [vmem:[#allocation45_spill] sm:$0xff] }
 0x698   :  { %v4124_v14 = vadd.f32 %v4123_v55, %v4122_v34 }
 0x699   :  { %v3977_v15 = vadd.f32 %v10905_v45, %v3914_v53  ;;  %v4058_v52 = vadd.f32 %v4057_v24, %v4056_v6  ;;  %v4127_v29 = vsel %vm85_vm0, %v4088_v30, 0.0 }
 0x69a   :  { %v4126_v44 = vadd.f32 %v4125_v46, %v4124_v14 }
 0x69b   :  { %v4000_v54 = vmul.f32 %v3977_v15, %v12563_v22  ;;  %v4060_v45 = vadd.f32 %v4059_v25, %v4058_v52 }
 0x69c   :  { %v3852_v48 = vpop.f32.mrf.mxu0  ;;  %v3915_v63 = vpop.f32.mrf.mxu1  ;;  %v4128_v4 = vadd.f32 %v4127_v29, %v4126_v44 }
 0x69d   :  { %v11000_v11 = vadd.f32 %v4000_v54, %v12564_v49 }
 0x69f   :  { %12565 = vst [vmem:[#allocation32_spill] sm:$0xff] %v11000_v11  ;;  %v4061_v3 = vsel %vm85_vm0, %v11000_v11, 0.0  ;;  %v4089_v28 = vmul.f32 %v11000_v11, %v11000_v11 }
 0x6a0   :  { %v4062_v53 = vadd.f32 %v4061_v3, %v4060_v45 }
 0x6a1   :  { %v4129_v21 = vsel %vm85_vm0, %v4089_v28, 0.0 }
 0x6a2   :  { %v4063_v40 = vrot.slane %v4062_v53, 4  ;;  %v4130_v55 = vadd.f32 %v4129_v21, %v4128_v4  ;;  %v4141_v21 = vld [vmem:[%s12266_s11] sm:$0x1] }
 0x6a4   :  { %v4064_v24 = vadd.f32 %v4063_v40, %v4062_v53  ;;  %v4131_v30 = vrot.slane %v4130_v55, 4 }
 0x6a6   :  { %v4065_v15 = vrot.slane %v4064_v24, 2  ;;  %v4132_v34 = vadd.f32 %v4131_v30, %v4130_v55 }
 0x6a8   :  { %v4066_v6 = vadd.f32 %v4065_v15, %v4064_v24  ;;  %v4133_v54 = vrot.slane %v4132_v34, 2 }
 0x6aa   :  { %v4067_v46 = vrot.slane %v4066_v6, 1  ;;  %v4134_v25 = vadd.f32 %v4133_v54, %v4132_v34 }
 0x6ac   :  { %v4068_v14 = vadd.f32 %v4067_v46, %v4066_v6  ;;  %v4135_v52 = vrot.slane %v4134_v25, 1 }
 0x6ae   :  { %v4136_v48 = vadd.f32 %v4135_v52, %v4134_v25  ;;  %v4137_v49 = vmul.f32 0.010204081, %v4068_v14 }
 0x6b0   :  { %v4138_v63 = vmul.f32 0.010204081, %v4136_v48  ;;  %v4139_v43 = vmul.f32 %v4137_v49, %v4137_v49 }
 0x6b2   :  { %v4140_v29 = vsub.f32 %v4138_v63, %v4139_v43  ;;  %v4154_v43 = vld [vmem:[%s12267_s12] sm:$0x1] }
 0x6b4   :  { %v4142_v44 = vadd.f32 0.001, %v4140_v29 }
 0x6b6   :  { %8131 = vrsqrt.f32 %v4142_v44  ;;  %vm4149_vm5 = vweird.f32 %v4142_v44 }
 0x6bc   :  { %v8132_v45 = vpop.eup %8131 }
 0x6bd   :  { %v4144_v3 = vmul.f32 %v8132_v45, %v4142_v44  ;;  %vm4150_vm4 = vweird.f32 %v8132_v45 }
 0x6be   :  { %vm4151_vm6 = vmor %vm4149_vm5, %vm4150_vm4 }
 0x6bf   :  { %v4145_v28 = vmul.f32 %v8132_v45, %v4144_v3 }
 0x6c1   :  { %v4146_v4 = vmul.f32 0.5, %v4145_v28 }
 0x6c3   :  { %v4147_v53 = vsub.f32 1.5, %v4146_v4 }
 0x6c5   :  { %v4148_v40 = vmul.f32 %v8132_v45, %v4147_v53 }
 0x6c7   :  { %v4152_v55 = vsel %vm4151_vm6, %v8132_v45, %v4148_v40 }
 0x6c8   :  { %v4153_v24 = vmul.f32 %v4152_v55, %v4141_v21 }
 0x6ca   :  { %v4155_v30 = vmul.f32 %v4153_v24, %v4137_v49  ;;  %v11013_v15 = vperm.slane %v4153_v24, 0 }
 0x6cc   :  { %v4156_v34 = vsub.f32 %v4154_v43, %v4155_v30  ;;  %v4180_v6 = vmul.f32 %v11013_v15, %v11000_v11  ;;  %v4162_v54 = vmul.f32 %v11013_v15, %v10762_v36  ;;  %v4163_v46 = vmul.f32 %v11013_v15, %v10775_v50 }
 0x6cd   :  { %v4164_v25 = vmul.f32 %v11013_v15, %v10791_v47  ;;  %v4160_v14 = vmul.f32 %v11013_v15, %v10757_v9  ;;  %v4161_v52 = vmul.f32 %v11013_v15, %v10750_v8  ;;  %v4168_v49 = vmul.f32 %v11013_v15, %v10867_v39 }
 0x6ce   :  { %v11027_v48 = vperm.slane %v4156_v34, 0  ;;  %v4169_v63 = vmul.f32 %v11013_v15, %v10878_v27  ;;  %v4170_v29 = vmul.f32 %v11013_v15, %v10892_v60  ;;  %v4166_v44 = vmul.f32 %v11013_v15, %v10832_v0 }
 0x6cf   :  { %v4167_v45 = vmul.f32 %v11013_v15, %v10853_v12  ;;  %v4165_v3 = vmul.f32 %v11013_v15, %v10802_v16  ;;  %v4174_v28 = vmul.f32 %v11013_v15, %v10930_v26 }
 0x6d0   :  { %v4204_v4 = vadd.f32 %v11027_v48, %v4180_v6  ;;  %v4186_v53 = vadd.f32 %v11027_v48, %v4162_v54  ;;  %v4187_v21 = vadd.f32 %v11027_v48, %v4163_v46  ;;  %v4188_v40 = vadd.f32 %v11027_v48, %v4164_v25 }
 0x6d1   :  { %v4184_v55 = vadd.f32 %v11027_v48, %v4160_v14  ;;  %v4185_v24 = vadd.f32 %v11027_v48, %v4161_v52  ;;  %v4192_v43 = vadd.f32 %v11027_v48, %v4168_v49  ;;  %v4193_v30 = vadd.f32 %v11027_v48, %v4169_v63 }
 0x6d2   :  { %v4225_v34 = vmax.f32 %v4204_v4, 0.0  ;;  %v4207_v11 = vmax.f32 %v4186_v53, 0.0  ;;  %v4208_v9 = vmax.f32 %v4187_v21, 0.0  ;;  %v4209_v8 = vmax.f32 %v4188_v40, 0.0 }
 0x6d3   :  { %v4205_v36 = vmax.f32 %v4184_v55, 0.0  ;;  %v4206_v6 = vmax.f32 %v4185_v24, 0.0  ;;  %v4194_v54 = vadd.f32 %v11027_v48, %v4170_v29  ;;  %v4213_v50 = vmax.f32 %v4192_v43, 0.0 }
 0x6d4   :  { %v4246_v46 = vmul.f32 %v4225_v34, %v12563_v22  ;;  %v4228_v25 = vmul.f32 %v4207_v11, %v12440_v18  ;;  %v4229_v14 = vmul.f32 %v4208_v9, %v12441_v31  ;;  %v4175_v52 = vmul.f32 %v11013_v15, %v10939_v17 }
 0x6d5   :  { %v4230_v49 = vmul.f32 %v4209_v8, %v12442_v35  ;;  %v4226_v63 = vmul.f32 %v4205_v36, %v12443_v51  ;;  %v4227_v4 = vmul.f32 %v4206_v6, %v12444_v19  ;;  %v4214_v53 = vmax.f32 %v4193_v30, 0.0 }
 0x6d6   :  { %4267 = vst.msk [vmem:[#allocation2 + $0xb0] sm:$0xff] %vm85_vm0, %v4246_v46  ;;  %v4215_v29 = vmax.f32 %v4194_v54, 0.0  ;;  %v4190_v21 = vadd.f32 %v11027_v48, %v4166_v44  ;;  %v4191_v40 = vadd.f32 %v11027_v48, %v4167_v45  ;;  %v4189_v11 = vadd.f32 %v11027_v48, %v4165_v3 }
 0x6d7   :  { %4249 = vst.msk [vmem:[#allocation2 + $0x20] sm:$0xff] %vm85_vm0, %v4228_v25  ;;  %v4234_v9 = vmul.f32 %v4213_v50, %v12517_v61  ;;  %v4235_v8 = vmul.f32 %v4214_v53, %v12522_v62  ;;  %v4176_v36 = vmul.f32 %v11013_v15, %v10952_v59  ;;  %v4198_v55 = vadd.f32 %v11027_v48, %v4174_v28 }
 0x6d8   :  { %4250 = vst.msk [vmem:[#allocation2 + $0x28] sm:$0xff] %vm85_vm0, %v4229_v14  ;;  %v4211_v24 = vmax.f32 %v4190_v21, 0.0  ;;  %v4212_v43 = vmax.f32 %v4191_v40, 0.0  ;;  %v4210_v44 = vmax.f32 %v4189_v11, 0.0  ;;  %v4199_v45 = vadd.f32 %v11027_v48, %v4175_v52 }
 0x6d9   :  { %4251 = vst.msk [vmem:[#allocation2 + $0x30] sm:$0xff] %vm85_vm0, %v4230_v49  ;;  %v4200_v3 = vadd.f32 %v11027_v48, %v4176_v36  ;;  %v4219_v30 = vmax.f32 %v4198_v55, 0.0  ;;  %v4172_v50 = vmul.f32 %v11013_v15, %v10911_v37  ;;  %v4173_v34 = vmul.f32 %v11013_v15, %v10924_v2 }
 0x6da   :  { %4247 = vst.msk [vmem:[#allocation2 + $0x10] sm:$0xff] %vm85_vm0, %v4226_v63  ;;  %v4236_v28 = vmul.f32 %v4215_v29, %v12526_v20  ;;  %v4232_v6 = vmul.f32 %v4211_v24, %v9272_v57  ;;  %v4233_v54 = vmul.f32 %v4212_v43, %v9277_v1  ;;  %v4220_v46 = vmax.f32 %v4199_v45, 0.0  ;;  %v4289_v45 = vld [vmem:[#allocation2 + $0x7] sm:$0xff] }
 0x6db   :  { %4248 = vst.msk [vmem:[#allocation2 + $0x18] sm:$0xff] %vm85_vm0, %v4227_v4  ;;  %v4196_v25 = vadd.f32 %v11027_v48, %v4172_v50  ;;  %v4197_v14 = vadd.f32 %v11027_v48, %v4173_v34  ;;  %v4221_v52 = vmax.f32 %v4200_v3, 0.0  ;;  %v4171_v49 = vmul.f32 %v11013_v15, %v10900_v56  ;;  %v12566_v4 = vld [vmem:[#allocation19_spill] sm:$0xff] }
 0x6dc   :  { %4255 = vst.msk [vmem:[#allocation2 + $0x50] sm:$0xff] %vm85_vm0, %v4234_v9  ;;  %v4178_v63 = vmul.f32 %v11013_v15, %v10972_v58  ;;  %v4179_v53 = vmul.f32 %v11013_v15, %v10981_v5  ;;  %v4231_v29 = vmul.f32 %v4210_v44, %v12566_v4  ;;  %v4240_v21 = vmul.f32 %v4219_v30, %v12542_v23 }
 0x6dd   :  { %4256 = vst.msk [vmem:[#allocation2 + $0x58] sm:$0xff] %vm85_vm0, %v4235_v8  ;;  %v4217_v40 = vmax.f32 %v4196_v25, 0.0  ;;  %v4177_v11 = vmul.f32 %v11013_v15, %v10963_v42  ;;  %v4218_v9 = vmax.f32 %v4197_v14, 0.0  ;;  %v4195_v36 = vadd.f32 %v11027_v48, %v4171_v49 }
 0x6de   :  { %4257 = vst.msk [vmem:[#allocation2 + $0x60] sm:$0xff] %vm85_vm0, %v4236_v28  ;;  %v4202_v55 = vadd.f32 %v11027_v48, %v4178_v63  ;;  %v4203_v24 = vadd.f32 %v11027_v48, %v4179_v53  ;;  %v4241_v8 = vmul.f32 %v4220_v46, %v12543_v13  ;;  %v4242_v15 = vmul.f32 %v4221_v52, %v12548_v7 }
 0x6df   :  { %v4293_v43 = vld [vmem:[#allocation2 + $0x27] sm:$0xff]  ;;  %4253 = vst.msk [vmem:[#allocation2 + $0x40] sm:$0xff] %vm85_vm0, %v4232_v6  ;;  %v4201_v44 = vadd.f32 %v11027_v48, %v4177_v11  ;;  %v4216_v30 = vmax.f32 %v4195_v36, 0.0  ;;  %v4238_v25 = vmul.f32 %v4217_v40, %v12531_v38  ;;  %v4239_v48 = vmul.f32 %v4218_v9, %v12539_v32  ;;  %v12567_v11 = vld [vmem:[#allocation39_spill] sm:$0xff] }
 0x6e0   :  { %v4294_v3 = vld [vmem:[#allocation2 + $0x2f] sm:$0xff]  ;;  %4254 = vst.msk [vmem:[#allocation2 + $0x48] sm:$0xff] %vm85_vm0, %v4233_v54  ;;  %v4223_v50 = vmax.f32 %v4202_v55, 0.0  ;;  %v4224_v14 = vmax.f32 %v4203_v24, 0.0  ;;  %v4272_v37 = vld [vmem:[#allocation2 + $0x26] sm:$0xff] }
 0x6e1   :  { %v7923_v34 = vpack.i.bf16 %v4294_v3, %v4293_v43  ;;  %v4290_v28 = vld [vmem:[#allocation2 + $0xf] sm:$0xff]  ;;  %4252 = vst.msk [vmem:[#allocation2 + $0x38] sm:$0xff] %vm85_vm0, %v4231_v29  ;;  %v4222_v46 = vmax.f32 %v4201_v44, 0.0  ;;  %v4237_v52 = vmul.f32 %v4216_v30, %v12530_v41 }
 0x6e2   :  { %v4291_v49 = vld [vmem:[#allocation2 + $0x17] sm:$0xff]  ;;  %v4292_v6 = vld [vmem:[#allocation2 + $0x1f] sm:$0xff]  ;;  %v7913_v63 = vpack.i.bf16 %v4290_v28, %v4289_v45  ;;  %4261 = vst.msk [vmem:[#allocation2 + $0x80] sm:$0xff] %vm85_vm0, %v4240_v21  ;;  %v4244_v53 = vmul.f32 %v4223_v50, %v12554_v10  ;;  %v4245_v29 = vmul.f32 %v4224_v14, %v12560_v33  ;;  %v4273_v2 = vld [vmem:[#allocation2 + $0x2e] sm:$0xff] }
 0x6e3   :  { %7924 = vrot.lane.b32.xlu2 %v7923_v34, %s8161_s5  ;;  %v7918_v54 = vpack.i.bf16 %v4292_v6, %v4291_v49  ;;  %4262 = vst.msk [vmem:[#allocation2 + $0x88] sm:$0xff] %vm85_vm0, %v4241_v8  ;;  %v4243_v9 = vmul.f32 %v4222_v46, %v12567_v11  ;;  %v4334_v6 = vld [vmem:[#allocation2 + $0x19] sm:$0xff]  ;;  %v4314_v11 = vld [vmem:[#allocation2 + $0x28] sm:$0xff] }
 0x6e4   :  { %7914 = vrot.lane.b32.xlu0 %v7913_v63, %s8161_s5  ;;  %4263 = vst.msk [vmem:[#allocation2 + $0x90] sm:$0xff] %vm85_vm0, %v4242_v15  ;;  %v4299_v21 = vld [vmem:[#allocation2 + $0x57] sm:$0xff]  ;;  %v4335_v63 = vld [vmem:[#allocation2 + $0x21] sm:$0xff] }
 0x6e5   :  { %7919 = vrot.lane.b32.xlu1 %v7918_v54, %s8161_s5  ;;  %4259 = vst.msk [vmem:[#allocation2 + $0x70] sm:$0xff] %vm85_vm0, %v4238_v25  ;;  %v4300_v40 = vld [vmem:[#allocation2 + $0x5f] sm:$0xff]  ;;  %v7963_v54 = vpack.i.bf16 %v4335_v63, %v4334_v6 }
 0x6e6   :  { %4260 = vst.msk [vmem:[#allocation2 + $0x78] sm:$0xff] %vm85_vm0, %v4239_v48  ;;  %v7938_v45 = vpack.i.bf16 %v4300_v40, %v4299_v21  ;;  %v7666_v21 = vld [vmem:[%s12268_s13 + $0x78] sm:$0xff] }
 0x6e7   :  { %v4297_v36 = vld [vmem:[#allocation2 + $0x47] sm:$0xff]  ;;  %4258 = vst.msk [vmem:[#allocation2 + $0x68] sm:$0xff] %vm85_vm0, %v4237_v52  ;;  %v4298_v55 = vld [vmem:[#allocation2 + $0x4f] sm:$0xff]  ;;  %5060 = vmatpush.bf16.msrb.mxu0 %v7666_v21 }
 0x6e8   :  { %v4295_v24 = vld [vmem:[#allocation2 + $0x37] sm:$0xff]  ;;  %v4296_v43 = vld [vmem:[#allocation2 + $0x3f] sm:$0xff]  ;;  %4265 = vst.msk [vmem:[#allocation2 + $0xa0] sm:$0xff] %vm85_vm0, %v4244_v53  ;;  %v7933_v44 = vpack.i.bf16 %v4298_v55, %v4297_v36  ;;  %v4336_v55 = vld [vmem:[#allocation2 + $0x29] sm:$0xff] }
 0x6e9   :  { %4266 = vst.msk [vmem:[#allocation2 + $0xa8] sm:$0xff] %vm85_vm0, %v4245_v29  ;;  %v7928_v8 = vpack.i.bf16 %v4296_v43, %v4295_v24  ;;  %v7658_v29 = vld [vmem:[%s12268_s13 + $0x38] sm:$0xff]  ;;  %v4339_v36 = vld [vmem:[#allocation2 + $0x41] sm:$0xff] }
 0x6ea   :  { %4264 = vst.msk [vmem:[#allocation2 + $0x98] sm:$0xff] %vm85_vm0, %v4243_v9  ;;  %v4305_v3 = vld [vmem:[#allocation2 + $0x87] sm:$0xff]  ;;  %v7682_v40 = vld [vmem:[%s12268_s13 + $0xf8] sm:$0xff]  ;;  %v4338_v9 = vld [vmem:[#allocation2 + $0x39] sm:$0xff]  ;;  %4997 = vmatpush.bf16.msrb.mxu3 %v7658_v29 }
 0x6eb   :  { %7939 = vrot.lane.b32.xlu2 %v7938_v45, %s8161_s5  ;;  %v4306_v15 = vld [vmem:[#allocation2 + $0x8f] sm:$0xff]  ;;  %5186 = vmatpush.bf16.msra.mxu2 %v7682_v40  ;;  %v7973_v43 = vpack.i.bf16 %v4339_v36, %v4338_v9  ;;  %v11317_v58 = vld [vmem:[#allocation2 + $0x80] sm:$0xff] }
 0x6ec   :  { %7929 = vrot.lane.b32.xlu0 %v7928_v8, %s8161_s5  ;;  %v7953_v25 = vpack.i.bf16 %v4306_v15, %v4305_v3  ;;  %v4337_v24 = vld [vmem:[#allocation2 + $0x31] sm:$0xff]  ;;  %v4340_v15 = vld [vmem:[#allocation2 + $0x49] sm:$0xff] }
 0x6ed   :  { %7934 = vrot.lane.b32.xlu1 %v7933_v44, %s8161_s5  ;;  %v4303_v34 = vld [vmem:[#allocation2 + $0x77] sm:$0xff]  ;;  %v4304_v28 = vld [vmem:[#allocation2 + $0x7f] sm:$0xff]  ;;  %v7968_v45 = vpack.i.bf16 %v4337_v24, %v4336_v55  ;;  %v7657_v55 = vld [vmem:[%s12268_s13 + $0x30] sm:$0xff] }
 0x6ee   :  { %v4301_v30 = vld [vmem:[#allocation2 + $0x67] sm:$0xff]  ;;  %v4302_v50 = vld [vmem:[#allocation2 + $0x6f] sm:$0xff]  ;;  %v7948_v49 = vpack.i.bf16 %v4304_v28, %v4303_v34  ;;  %v4346_v63 = vld [vmem:[#allocation2 + $0x79] sm:$0xff]  ;;  %4998 = vmatpush.bf16.msrb.mxu3 %v7657_v55 }
 0x6ef   :  { %v7943_v14 = vpack.i.bf16 %v4302_v50, %v4301_v30  ;;  %v4333_v8 = vld [vmem:[#allocation2 + $0x11] sm:$0xff]  ;;  %v4344_v44 = vld [vmem:[#allocation2 + $0x69] sm:$0xff]  ;;  %v4342_v50 = vld [vmem:[#allocation2 + $0x59] sm:$0xff] }
 0x6f0   :  { %v4309_v53 = vld [vmem:[#allocation2 + $0xa7] sm:$0xff]  ;;  %v4345_v3 = vld [vmem:[#allocation2 + $0x71] sm:$0xff] }
 0x6f1   :  { %v4307_v48 = vld [vmem:[#allocation2 + $0x97] sm:$0xff]  ;;  %v4308_v46 = vld [vmem:[#allocation2 + $0x9f] sm:$0xff]  ;;  %v7988_v28 = vpack.i.bf16 %v4345_v3, %v4344_v44  ;;  %v4352_v21 = vld [vmem:[#allocation2 + $0xa9] sm:$0xff] }
 0x6f2   :  { %v7958_v52 = vpack.i.bf16 %v4308_v46, %v4307_v48  ;;  %v4341_v30 = vld [vmem:[#allocation2 + $0x51] sm:$0xff]  ;;  %v4343_v34 = vld [vmem:[#allocation2 + $0x61] sm:$0xff]  ;;  %v4348_v46 = vld [vmem:[#allocation2 + $0x89] sm:$0xff] }
 0x6f3   :  { %7954 = vrot.lane.b32.xlu2 %v7953_v25, %s8161_s5  ;;  %v7978_v25 = vpack.i.bf16 %v4341_v30, %v4340_v15  ;;  %v4351_v6 = vld [vmem:[#allocation2 + $0xa1] sm:$0xff]  ;;  %v4353_v40 = vld [vmem:[#allocation2 + $0xb1] sm:$0xff] }
 0x6f4   :  { %7944 = vrot.lane.b32.xlu0 %v7943_v14, %s8161_s5  ;;  %v7983_v14 = vpack.i.bf16 %v4343_v34, %v4342_v50  ;;  %v4347_v48 = vld [vmem:[#allocation2 + $0x81] sm:$0xff]  ;;  %v8008_v9 = vpack.i.bf16 %v4353_v40, %v4352_v21  ;;  %v4331_v36 = vld [vmem:[#allocation2 + $0xaf] sm:$0xff]  ;;  %v7655_v3 = vld [vmem:[%s12268_s13 + $0x20] sm:$0xff] }
 0x6f5   :  { %7949 = vrot.lane.b32.xlu1 %v7948_v49, %s8161_s5  ;;  %v4350_v49 = vld [vmem:[#allocation2 + $0x99] sm:$0xff]  ;;  %v7665_v24 = vld [vmem:[%s12268_s13 + $0x70] sm:$0xff]  ;;  %v7654_v50 = vld [vmem:[%s12268_s13 + $0x18] sm:$0xff] }
 0x6f6   :  { %5061 = vmatpush.bf16.msrb.mxu0 %v7665_v24  ;;  %v7680_v44 = vld [vmem:[%s12268_s13 + $0xe8] sm:$0xff]  ;;  %v7663_v15 = vld [vmem:[%s12268_s13 + $0x60] sm:$0xff]  ;;  %v7662_v34 = vld [vmem:[%s12268_s13 + $0x58] sm:$0xff] }
 0x6f7   :  { %v7679_v30 = vld [vmem:[%s12268_s13 + $0xe0] sm:$0xff]  ;;  %v7673_v21 = vld [vmem:[%s12268_s13 + $0xb0] sm:$0xff]  ;;  %v7672_v40 = vld [vmem:[%s12268_s13 + $0xa8] sm:$0xff] }
 0x6f8   :  { %v7670_v55 = vld [vmem:[%s12268_s13 + $0x98] sm:$0xff]  ;;  %v11315_v42 = vld [vmem:[#allocation2 + $0x78] sm:$0xff]  ;;  %v11342_v16 = vld [vmem:[#allocation2 + $0x88] sm:$0xff] }
 0x6f9   :  { %v11344_v0 = vld [vmem:[#allocation2 + $0x90] sm:$0xff]  ;;  %v4373_v32 = vld [vmem:[#allocation2 + $0xa2] sm:$0xff] }
 0x6fb   :  { %7964 = vrot.lane.b32.xlu2 %v7963_v54, %s8161_s5  ;;  %v4349_v54 = vld [vmem:[#allocation2 + $0x91] sm:$0xff] }
 0x6fc   :  { %7959 = vrot.lane.b32.xlu0 %v7958_v52, %s8161_s5  ;;  %v8003_v52 = vpack.i.bf16 %v4351_v6, %v4350_v49  ;;  %v7998_v29 = vpack.i.bf16 %v4349_v54, %v4348_v46  ;;  %v7677_v49 = vld [vmem:[%s12268_s13 + $0xd0] sm:$0xff]  ;;  %v7652_v6 = vld [vmem:[%s12268_s13 + $0x8] sm:$0xff]  ;;  %v7651_v46 = vld [vmem:[%s12268_s13] sm:$0xff] }
 0x6fd   :  { %4438 = vrot.lane.b32.xlu1 %v4309_v53, %s8161_s5  ;;  %v7993_v53 = vpack.i.bf16 %v4347_v48, %v4346_v63  ;;  %v7660_v63 = vld [vmem:[%s12268_s13 + $0x48] sm:$0xff]  ;;  %v7659_v54 = vld [vmem:[%s12268_s13 + $0x40] sm:$0xff] }
 0x6fe   :  { %v7676_v48 = vld [vmem:[%s12268_s13 + $0xc8] sm:$0xff] }
 0x703   :  { %7974 = vrot.lane.b32.xlu2 %v7973_v43, %s8161_s5  ;;  %v7681_v43 = vld [vmem:[%s12268_s13 + $0xf0] sm:$0xff] }
 0x704   :  { %4486 = vrot.lane.b32.xlu0 %v4333_v8, %s8161_s5  ;;  %v7664_v8 = vld [vmem:[%s12268_s13 + $0x68] sm:$0xff]  ;;  %5187 = vmatpush.bf16.msra.mxu2 %v7681_v43  ;;  %v7669_v43 = vld [vmem:[%s12268_s13 + $0x90] sm:$0xff] }
 0x705   :  { %7969 = vrot.lane.b32.xlu1 %v7968_v45, %s8161_s5  ;;  %v7656_v45 = vld [vmem:[%s12268_s13 + $0x28] sm:$0xff]  ;;  %5062 = vmatpush.bf16.msrb.mxu0 %v7664_v8 }
 0x706   :  { %4999 = vmatpush.bf16.msrb.mxu3 %v7656_v45  ;;  %v7668_v45 = vld [vmem:[%s12268_s13 + $0x88] sm:$0xff] }
 0x708   :  { %5188 = vmatpush.bf16.msra.mxu2 %v7680_v44 }
 0x709   :  { %5063 = vmatpush.bf16.msrb.mxu0 %v7663_v15  ;;  %v4268_v15 = vld [vmem:[#allocation2 + $0x6] sm:$0xff] }
 0x70a   :  { %5000 = vmatpush.bf16.msrb.mxu3 %v7655_v3 }
 0x70b   :  { %7989 = vrot.lane.b32.xlu2 %v7988_v28, %s8161_s5  ;;  %v7678_v28 = vld [vmem:[%s12268_s13 + $0xd8] sm:$0xff] }
 0x70c   :  { %7979 = vrot.lane.b32.xlu0 %v7978_v25, %s8161_s5  ;;  %5189 = vmatpush.bf16.msra.mxu2 %v7679_v30  ;;  %v7653_v25 = vld [vmem:[%s12268_s13 + $0x10] sm:$0xff] }
 0x70d   :  { %7984 = vrot.lane.b32.xlu1 %v7983_v14, %s8161_s5  ;;  %5064 = vmatpush.bf16.msrb.mxu0 %v7662_v34  ;;  %v7661_v14 = vld [vmem:[%s12268_s13 + $0x50] sm:$0xff]  ;;  %v4313_v34 = vld [vmem:[#allocation2 + $0x20] sm:$0xff] }
 0x70e   :  { %5001 = vmatpush.bf16.msrb.mxu3 %v7654_v50  ;;  %v4310_v30 = vld [vmem:[#allocation2 + $0x8] sm:$0xff] }
 0x710   :  { %5190 = vmatpush.bf16.msra.mxu2 %v7678_v28  ;;  %v4312_v28 = vld [vmem:[#allocation2 + $0x18] sm:$0xff] }
 0x711   :  { %5065 = vmatpush.bf16.msrb.mxu0 %v7661_v14 }
 0x712   :  { %5002 = vmatpush.bf16.msrb.mxu3 %v7653_v25 }
 0x713   :  { %8004 = vrot.lane.b32.xlu2 %v8003_v52, %s8161_s5  ;;  %v7675_v52 = vld [vmem:[%s12268_s13 + $0xc0] sm:$0xff] }
 0x714   :  { %7994 = vrot.lane.b32.xlu0 %v7993_v53, %s8161_s5  ;;  %5191 = vmatpush.bf16.msra.mxu2 %v7677_v49  ;;  %v7674_v53 = vld [vmem:[%s12268_s13 + $0xb8] sm:$0xff] }
 0x715   :  { %7999 = vrot.lane.b32.xlu1 %v7998_v29, %s8161_s5  ;;  %5066 = vmatpush.bf16.msrb.mxu0 %v7660_v63 }
 0x716   :  { %5003 = vmatpush.bf16.msrb.mxu3 %v7652_v6  ;;  %5123 = vmatpush.bf16.msra.mxu1 %v7674_v53  ;;  %v11255_v53 = vld [vmem:[#allocation2 + $0x10] sm:$0xff] }
 0x718   :  { %5192 = vmatpush.bf16.msra.mxu2 %v7676_v48 }
 0x719   :  { %5067 = vmatpush.bf16.msrb.mxu0 %v7659_v54  ;;  %v7667_v54 = vld [vmem:[%s12268_s13 + $0x80] sm:$0xff] }
 0x71a   :  { %5004 = vmatpush.bf16.msrb.mxu3 %v7651_v46  ;;  %5124 = vmatpush.bf16.msra.mxu1 %v7673_v21  ;;  %v4269_v46 = vld [vmem:[#allocation2 + $0xe] sm:$0xff] }
 0x71c   :  { %8009 = vrot.lane.b32.xlu0 %v8008_v9, %s8161_s5  ;;  %5193 = vmatpush.bf16.msra.mxu2 %v7675_v52 }
 0x71d   :  { %4462 = vrot.lane.b32.xlu1 %v4331_v36, %s8161_s5  ;;  %v7671_v36 = vld [vmem:[%s12268_s13 + $0xa0] sm:$0xff] }
 0x71e   :  { %5125 = vmatpush.bf16.msra.mxu1 %v7672_v40 }
 0x722   :  { %5126 = vmatpush.bf16.msra.mxu1 %v7671_v36 }
 0x726   :  { %5127 = vmatpush.bf16.msra.mxu1 %v7670_v55 }
 0x72a   :  { %5128 = vmatpush.bf16.msra.mxu1 %v7669_v43 }
 0x72e   :  { %5129 = vmatpush.bf16.msra.mxu1 %v7668_v45 }
 0x732   :  { %5130 = vmatpush.bf16.msra.mxu1 %v7667_v54 }
 0x73d   :  { %v11220_v29 = vpop.permute.xlu2 %7924 }
 0x73e   :  { %v7927_v27 = vunpack.i.h.bf16 %v11220_v29 }
 0x740   :  { %v4558_v22 = vsel %vm85_vm0, %v4273_v2, %v7927_v27  ;;  %v4578_v13 = vsel %vm85_vm0, %v4314_v11, %v7927_v27 }
 0x745   :  { %v11228_v9 = vpop.permute.xlu2 %7939 }
 0x746   :  { %v12568_v54 = vunpack.i.h.bf16 %v11228_v9 }
 0x74d   :  { %v11236_v24 = vpop.permute.xlu2 %7954 }
 0x755   :  { %v7965_v8 = vpop.permute.xlu2 %7964 }
 0x756   :  { %v7967_v44 = vunpack.i.h.bf16 %v7965_v8  ;;  %v7966_v3 = vunpack.i.l.bf16 %v7965_v8  ;;  %v7915_v50 = vpop.permute.xlu0 %7914 }
 0x757   :  { %v7920_v25 = vpop.permute.xlu1 %7919  ;;  %v7917_v14 = vunpack.i.h.bf16 %v7915_v50  ;;  %v7916_v49 = vunpack.i.l.bf16 %v7915_v50  ;;  %v11282_v50 = vld [vmem:[#allocation2 + $0x60] sm:$0xff] }
 0x758   :  { %v11245_v6 = vsel %vm85_vm0, %v4313_v34, %v7967_v44  ;;  %v11248_v63 = vsel %vm85_vm0, %v4312_v28, %v7966_v3  ;;  %v7921_v48 = vunpack.i.l.bf16 %v7920_v25  ;;  %v7922_v3 = vunpack.i.h.bf16 %v7920_v25 }
 0x759   :  { %v4620_v52 = vpack.c.bf16 %v11245_v6, %v11248_v63  ;;  %v4574_v21 = vsel %vm85_vm0, %v4310_v30, %v7917_v14  ;;  %v4553_v40 = vsel %vm85_vm0, %v4268_v15, %v7916_v49  ;;  %v4554_v36 = vsel %vm85_vm0, %v4269_v46, %v7917_v14  ;;  %v4270_v49 = vld [vmem:[#allocation2 + $0x16] sm:$0xff]  ;;  %v4271_v46 = vld [vmem:[#allocation2 + $0x1e] sm:$0xff]  ;;  %v11284_v30 = vld [vmem:[#allocation2 + $0x68] sm:$0xff] }
 0x75a   :  { %v4575_v55 = vsel %vm85_vm0, %v11255_v53, %v7921_v48  ;;  %v4617_v43 = vpack.c.bf16 %v4554_v36, %v4553_v40  ;;  %v7926_v15 = vunpack.i.l.bf16 %v11220_v29  ;;  %v4555_v40 = vsel %vm85_vm0, %v4270_v49, %v7921_v48 }
 0x75b   :  { %v4618_v45 = vpack.c.bf16 %v4575_v55, %v4574_v21  ;;  %5194 = vmatmul.bf16.vlgmr.msra.gmra.mxu2 %v4620_v52  ;;  %v4556_v25 = vsel %vm85_vm0, %v4271_v46, %v7922_v3  ;;  %v11298_v46 = vld [vmem:[#allocation2 + $0x70] sm:$0xff] }
 0x75c   :  { %5005 = vmatmul.bf16.vlgmr.msrb.gmra.mxu3 %v4617_v43  ;;  %v4576_v43 = vsel %vm85_vm0, %v4312_v28, %v7922_v3  ;;  %v4622_v36 = vpack.c.bf16 %v4556_v25, %v4555_v40  ;;  %v4577_v55 = vsel %vm85_vm0, %v4313_v34, %v7926_v15  ;;  %v12573_v25 = vunpack.i.l.bf16 %v11236_v24 }
 0x75d   :  { %5068 = vmatmul.bf16.vlgmr.msrb.gmra.mxu0 %v4618_v45  ;;  %v11280_v45 = vld [vmem:[#allocation2 + $0x58] sm:$0xff]  ;;  %v4623_v5 = vpack.c.bf16 %v4577_v55, %v4576_v43  ;;  %v12360_v55 = vunpack.i.h.bf16 %v11236_v24  ;;  %v4557_v17 = vsel %vm85_vm0, %v4272_v37, %v7926_v15  ;;  %v7975_v2 = vpop.permute.xlu2 %7974 }
 0x75e   :  { %v11262_v8 = vpop.permute.xlu0 %7929  ;;  %v11290_v52 = vsel %vm85_vm0, %v11280_v45, %v12568_v54  ;;  %v11360_v54 = vld [vmem:[#allocation2 + $0x98] sm:$0xff]  ;;  %v4627_v7 = vpack.c.bf16 %v4558_v22, %v4557_v17 }
 0x75f   :  { %v11264_v44 = vpop.permute.xlu1 %7934  ;;  %v7931_v60 = vunpack.i.l.bf16 %v11262_v8  ;;  %v4275_v17 = vld [vmem:[#allocation2 + $0x3e] sm:$0xff] }
 0x760   :  { %v7936_v15 = vunpack.i.l.bf16 %v11264_v44  ;;  %v4316_v22 = vld [vmem:[#allocation2 + $0x38] sm:$0xff] }
 0x766   :  { %v11269_v14 = vpop.permute.xlu0 %7944 }
 0x767   :  { %v11271_v21 = vpop.permute.xlu1 %7949  ;;  %v12569_v48 = vunpack.i.l.bf16 %v11269_v14  ;;  %v12570_v28 = vunpack.i.h.bf16 %v11269_v14 }
 0x768   :  { %v12571_v59 = vunpack.i.l.bf16 %v11271_v21  ;;  %v12572_v40 = vunpack.i.h.bf16 %v11271_v21 }
 0x769   :  { %v11296_v49 = vsel %vm85_vm0, %v11282_v50, %v12569_v48  ;;  %v11304_v3 = vsel %vm85_vm0, %v11284_v30, %v12570_v28 }
 0x76a   :  { %v11313_v48 = vsel %vm85_vm0, %v11298_v46, %v12571_v59  ;;  %v11325_v34 = vsel %vm85_vm0, %v11315_v42, %v12572_v40  ;;  %v11331_v59 = vsel %vm85_vm0, %v11317_v58, %v12573_v25  ;;  %v11346_v25 = vld [vmem:[#allocation2 + $0xa0] sm:$0xff] }
 0x76c   :  { %5010 = vmatmul.bf16.gmra.mxu3 %v4622_v36  ;;  %v11352_v36 = vsel %vm85_vm0, %v11342_v16, %v12360_v55 }
 0x76d   :  { %5073 = vmatmul.bf16.gmra.mxu0 %v4623_v5 }
 0x76e   :  { %v11336_v43 = vpop.permute.xlu0 %7959 }
 0x76f   :  { %v11338_v28 = vpop.permute.xlu1 %4438  ;;  %v12362_v47 = vunpack.i.l.bf16 %v11336_v43  ;;  %v12574_v39 = vunpack.i.h.bf16 %v11336_v43 }
 0x770   :  { %v11365_v40 = vsel %vm85_vm0, %v11346_v25, %v11338_v28 }
 0x771   :  { %v11358_v5 = vsel %vm85_vm0, %v11344_v0, %v12362_v47  ;;  %v11373_v55 = vsel %vm85_vm0, %v11360_v54, %v12574_v39  ;;  %v4315_v39 = vld [vmem:[#allocation2 + $0x30] sm:$0xff] }
 0x772   :  { %v4579_v47 = vsel %vm85_vm0, %v4315_v39, %v7931_v60 }
 0x776   :  { %v4487_v56 = vpop.permute.xlu0 %4486 }
 0x777   :  { %v7970_v26 = vpop.permute.xlu1 %7969  ;;  %v4595_v12 = vsel %vm85_vm0, %v11255_v53, %v4487_v56  ;;  %v4628_v53 = vpack.c.bf16 %v4579_v47, %v4578_v13 }
 0x778   :  { %v7972_v33 = vunpack.i.h.bf16 %v7970_v26  ;;  %v7971_v10 = vunpack.i.l.bf16 %v7970_v26  ;;  %v4619_v29 = vpack.c.bf16 %v11248_v63, %v4595_v12  ;;  %v7976_v26 = vunpack.i.l.bf16 %v7975_v2 }
 0x779   :  { %v7932_v12 = vunpack.i.h.bf16 %v11262_v8  ;;  %v7977_v63 = vunpack.i.h.bf16 %v7975_v2  ;;  %v7937_v2 = vunpack.i.h.bf16 %v11264_v44 }
 0x77a   :  { %5131 = vmatmul.bf16.vlgmr.msra.gmra.mxu1 %v4619_v29  ;;  %v4598_v23 = vsel %vm85_vm0, %v4314_v11, %v7971_v10  ;;  %v4599_v56 = vsel %vm85_vm0, %v4315_v39, %v7972_v33  ;;  %v4274_v29 = vld [vmem:[#allocation2 + $0x36] sm:$0xff]  ;;  %v4317_v33 = vld [vmem:[#allocation2 + $0x40] sm:$0xff]  ;;  %v4600_v47 = vsel %vm85_vm0, %v4316_v22, %v7976_v26 }
 0x77b   :  { %v4625_v37 = vpack.c.bf16 %v4599_v56, %v4598_v23  ;;  %v4559_v27 = vsel %vm85_vm0, %v4274_v29, %v7931_v60  ;;  %v4560_v10 = vsel %vm85_vm0, %v4275_v17, %v7932_v12  ;;  %v4624_v13 = vpack.c.bf16 %v4598_v23, %v11245_v6  ;;  %v4276_v6 = vld [vmem:[#allocation2 + $0x46] sm:$0xff] }
 0x77c   :  { %5015 = vmatmul.bf16.gmra.mxu3 %v4627_v7  ;;  %v4580_v7 = vsel %vm85_vm0, %v4316_v22, %v7932_v12  ;;  %v4581_v11 = vsel %vm85_vm0, %v4317_v33, %v7936_v15  ;;  %v4601_v8 = vsel %vm85_vm0, %v4317_v33, %v7977_v63  ;;  %v4632_v39 = vpack.c.bf16 %v4560_v10, %v4559_v27  ;;  %v4277_v12 = vld [vmem:[#allocation2 + $0x4e] sm:$0xff] }
 0x77d   :  { %5078 = vmatmul.bf16.gmra.mxu0 %v4628_v53  ;;  %5199 = vmatmul.bf16.gmra.mxu2 %v4625_v37  ;;  %v4633_v53 = vpack.c.bf16 %v4581_v11, %v4580_v7  ;;  %v4630_v37 = vpack.c.bf16 %v4601_v8, %v4600_v47  ;;  %v7941_v23 = vunpack.i.l.bf16 %v11228_v9  ;;  %v4561_v17 = vsel %vm85_vm0, %v4276_v6, %v7936_v15  ;;  %v4318_v22 = vld [vmem:[#allocation2 + $0x48] sm:$0xff]  ;;  %v4319_v27 = vld [vmem:[#allocation2 + $0x50] sm:$0xff] }
 0x77e   :  { %v7980_v60 = vpop.permute.xlu0 %7979  ;;  %v4562_v63 = vsel %vm85_vm0, %v4277_v12, %v7937_v2  ;;  %v4629_v10 = vpack.c.bf16 %v4600_v47, %v4599_v56  ;;  %v4582_v33 = vsel %vm85_vm0, %v4318_v22, %v7937_v2  ;;  %v4278_v6 = vld [vmem:[#allocation2 + $0x56] sm:$0xff]  ;;  %v4279_v56 = vld [vmem:[#allocation2 + $0x5e] sm:$0xff]  ;;  %v12575_v2 = vunpack.i.h.bf16 %v11228_v9 }
 0x77f   :  { %v7982_v29 = vunpack.i.h.bf16 %v7980_v60  ;;  %v7981_v26 = vunpack.i.l.bf16 %v7980_v60  ;;  %v4637_v44 = vpack.c.bf16 %v4562_v63, %v4561_v17  ;;  %v4583_v11 = vsel %vm85_vm0, %v4319_v27, %v7941_v23  ;;  %v7985_v15 = vpop.permute.xlu1 %7984 }
 0x780   :  { %v7986_v60 = vunpack.i.l.bf16 %v7985_v15  ;;  %v4563_v47 = vsel %vm85_vm0, %v4278_v6, %v7941_v23  ;;  %v7990_v23 = vpop.permute.xlu2 %7989  ;;  %v4282_v6 = vld [vmem:[#allocation2 + $0x76] sm:$0xff] }
 0x781   :  { %v4603_v7 = vsel %vm85_vm0, %v4319_v27, %v7982_v29  ;;  %v4564_v29 = vsel %vm85_vm0, %v4279_v56, %v12575_v2  ;;  %v12576_v27 = vpack.c.bf16 %v11296_v49, %v11290_v52  ;;  %v7992_v9 = vunpack.i.h.bf16 %v7990_v23 }
 0x782   :  { %v4604_v12 = vsel %vm85_vm0, %v11280_v45, %v7986_v60  ;;  %v4642_v63 = vpack.c.bf16 %v4564_v29, %v4563_v47  ;;  %v12580_v56 = vunpack.i.l.bf16 %v11271_v21 }
 0x783   :  { %v4607_v52 = vsel %vm85_vm0, %v11298_v46, %v7992_v9  ;;  %v12581_v46 = vunpack.i.h.bf16 %v11271_v21 }
 0x78a   :  { %5136 = vmatmul.bf16.gmra.mxu1 %v4624_v13  ;;  %v4602_v13 = vsel %vm85_vm0, %v4318_v22, %v7981_v26 }
 0x78b   :  { %v4634_v26 = vpack.c.bf16 %v4602_v13, %v4601_v8  ;;  %v4281_v8 = vld [vmem:[#allocation2 + $0x6e] sm:$0xff] }
 0x78c   :  { %5020 = vmatmul.bf16.gmra.mxu3 %v4632_v39  ;;  %v4638_v39 = vpack.c.bf16 %v4583_v11, %v4582_v33  ;;  %v4280_v33 = vld [vmem:[#allocation2 + $0x66] sm:$0xff]  ;;  %v4639_v11 = vpack.c.bf16 %v4604_v12, %v4603_v7 }
 0x78d   :  { %5083 = vmatmul.bf16.gmra.mxu0 %v4633_v53  ;;  %5204 = vmatmul.bf16.gmra.mxu2 %v4630_v37  ;;  %v4635_v53 = vpack.c.bf16 %v4603_v7, %v4602_v13  ;;  %v7987_v37 = vunpack.i.h.bf16 %v7985_v15  ;;  %v12577_v13 = vunpack.i.l.bf16 %v11269_v14  ;;  %v12579_v15 = vpack.c.bf16 %v11313_v48, %v11304_v3  ;;  %v4283_v7 = vld [vmem:[#allocation2 + $0x7e] sm:$0xff] }
 0x78e   :  { %v4568_v47 = vsel %vm85_vm0, %v4283_v7, %v12581_v46 }
 0x78f   :  { %v4605_v17 = vsel %vm85_vm0, %v11282_v50, %v7987_v37  ;;  %v4565_v45 = vsel %vm85_vm0, %v4280_v33, %v12577_v13  ;;  %v12578_v50 = vunpack.i.h.bf16 %v11269_v14  ;;  %v7995_v37 = vpop.permute.xlu0 %7994 }
 0x790   :  { %v4640_v22 = vpack.c.bf16 %v4605_v17, %v4604_v12  ;;  %v7997_v14 = vunpack.i.h.bf16 %v7995_v37  ;;  %v7996_v60 = vunpack.i.l.bf16 %v7995_v37  ;;  %v12582_v12 = vpack.c.bf16 %v11331_v59, %v11325_v34 }
 0x792   :  { %v4608_v29 = vsel %vm85_vm0, %v11315_v42, %v7996_v60  ;;  %v4609_v3 = vsel %vm85_vm0, %v11317_v58, %v7997_v14  ;;  %v12584_v58 = vunpack.i.h.bf16 %v11236_v24  ;;  %v12586_v14 = vunpack.i.l.bf16 %v11336_v43 }
 0x79a   :  { %5141 = vmatmul.bf16.gmra.mxu1 %v4629_v10  ;;  %v7991_v10 = vunpack.i.l.bf16 %v7990_v23  ;;  %v12583_v23 = vunpack.i.l.bf16 %v11236_v24  ;;  %v12585_v24 = vpack.c.bf16 %v11358_v5, %v11352_v36  ;;  %v7684_v5 = vld [vmem:[%s12268_s13 + $0x108] sm:$0xff] }
 0x79c   :  { %5025 = vmatmul.bf16.gmra.mxu3 %v4637_v44  ;;  %v4566_v44 = vsel %vm85_vm0, %v4281_v8, %v12578_v50 }
 0x79d   :  { %5088 = vmatmul.bf16.gmra.mxu0 %v4638_v39  ;;  %5209 = vmatmul.bf16.gmra.mxu2 %v4635_v53  ;;  %v4606_v39 = vsel %vm85_vm0, %v11284_v30, %v7991_v10  ;;  %v4647_v49 = vpack.c.bf16 %v4566_v44, %v4565_v45  ;;  %v4567_v30 = vsel %vm85_vm0, %v4282_v6, %v12580_v56  ;;  %v11455_v45 = vld [vmem:[%s12269_s14] ss:$0 sm:$0xff]  ;;  %v8005_v44 = vpop.permute.xlu2 %8004  ;;  %v12587_v6 = vunpack.i.h.bf16 %v11336_v43 }
 0x79e   :  { %v4645_v53 = vpack.c.bf16 %v4607_v52, %v4606_v39  ;;  %v4644_v2 = vpack.c.bf16 %v4606_v39, %v4605_v17  ;;  %v4652_v48 = vpack.c.bf16 %v4568_v47, %v4567_v30  ;;  %v4285_v17 = vld [vmem:[#allocation2 + $0x8e] sm:$0xff]  ;;  %v4649_v10 = vpack.c.bf16 %v4608_v29, %v4607_v52 }
 0x79f   :  { %v4570_v9 = vsel %vm85_vm0, %v4285_v17, %v12584_v58  ;;  %v7685_v52 = vld [vmem:[%s12268_s13 + $0x110] sm:$0xff]  ;;  %v8006_v36 = vunpack.i.l.bf16 %v8005_v44  ;;  %v12588_v43 = vpack.c.bf16 %v11365_v40, %v11373_v55  ;;  %v4332_v58 = vld [vmem:[#allocation2 + $0xb0] sm:$0xff] }
 0x7a1   :  { %v4612_v30 = vsel %vm85_vm0, %v11360_v54, %v8006_v36  ;;  %v4357_v36 = vld [vmem:[#allocation2 + $0x22] sm:$0xff] }
 0x7aa   :  { %5146 = vmatmul.bf16.gmra.mxu1 %v4634_v26  ;;  %v4650_v26 = vpack.c.bf16 %v4609_v3, %v4608_v29  ;;  %v7683_v29 = vld [vmem:[%s12268_s13 + $0x100] sm:$0xff] }
 0x7ac   :  { %5030 = vmatmul.bf16.gmra.mxu3 %v4642_v63  ;;  %v8000_v63 = vpop.permute.xlu1 %7999 }
 0x7ad   :  { %5093 = vmatmul.bf16.gmra.mxu0 %v12576_v27  ;;  %5214 = vmatmul.bf16.gmra.mxu2 %v4640_v22  ;;  %v8002_v21 = vunpack.i.h.bf16 %v8000_v63  ;;  %v8001_v22 = vunpack.i.l.bf16 %v8000_v63  ;;  %v4284_v27 = vld [vmem:[#allocation2 + $0x86] sm:$0xff] }
 0x7ae   :  { %v4569_v42 = vsel %vm85_vm0, %v4284_v27, %v12583_v23  ;;  %v4288_v27 = vld [vmem:[#allocation2 + $0xa6] sm:$0xff] }
 0x7af   :  { %v4610_v33 = vsel %vm85_vm0, %v11342_v16, %v8001_v22  ;;  %v4611_v34 = vsel %vm85_vm0, %v11344_v0, %v8002_v21  ;;  %v4657_v8 = vpack.c.bf16 %v4570_v9, %v4569_v42  ;;  %v7686_v16 = vld [vmem:[%s12268_s13 + $0x118] sm:$0xff]  ;;  %v4573_v17 = vsel %vm85_vm0, %v4288_v27, %v11338_v28  ;;  %v4330_v23 = vld [vmem:[#allocation2 + $0xa8] sm:$0xff]  ;;  %s12659_s13 = sld [smem:[#allocation59_spill]] }
 0x7b0   :  { %v4655_v13 = vpack.c.bf16 %v4611_v34, %v4610_v33  ;;  %5253 = vmatpush.bf16.msra.mxu3 %v7686_v16  ;;  %v4654_v56 = vpack.c.bf16 %v4610_v33, %v4609_v3  ;;  %v4659_v40 = vpack.c.bf16 %v4612_v30, %v4611_v34 }
 0x7b4   :  { %5254 = vmatpush.bf16.msra.mxu3 %v7685_v52  ;;  %v4463_v22 = vpop.permute.xlu1 %4462 }
 0x7b5   :  { %v4594_v9 = vsel %vm85_vm0, %v4330_v23, %v4463_v22 }
 0x7b8   :  { %5255 = vmatpush.bf16.msra.mxu3 %v7684_v5 }
 0x7ba   :  { %5151 = vmatmul.bf16.gmra.mxu1 %v4639_v11 }
 0x7bc   :  { %5035 = vmatmul.bf16.gmra.mxu3 %v4647_v49  ;;  %v8007_v49 = vunpack.i.h.bf16 %v8005_v44 }
 0x7bd   :  { %5098 = vmatmul.bf16.gmra.mxu0 %v12579_v15  ;;  %5219 = vmatmul.bf16.gmra.mxu2 %v4645_v53  ;;  %v4286_v53 = vld [vmem:[#allocation2 + $0x96] sm:$0xff]  ;;  %v4287_v15 = vld [vmem:[#allocation2 + $0x9e] sm:$0xff] }
 0x7be   :  { %v4571_v60 = vsel %vm85_vm0, %v4286_v53, %v12586_v14  ;;  %v4572_v7 = vsel %vm85_vm0, %v4287_v15, %v12587_v6  ;;  %v4613_v46 = vsel %vm85_vm0, %v11346_v25, %v8007_v49  ;;  %5256 = vmatpush.bf16.msra.mxu3 %v7683_v29  ;;  %v8010_v25 = vpop.permute.xlu0 %8009  ;;  %v4356_v49 = vld [vmem:[#allocation2 + $0x1a] sm:$0xff]  ;;  %v4358_v29 = vld [vmem:[#allocation2 + $0x2a] sm:$0xff] }
 0x7bf   :  { %v8012_v63 = vunpack.i.h.bf16 %v8010_v25  ;;  %v8011_v21 = vunpack.i.l.bf16 %v8010_v25  ;;  %v4621_v14 = vpack.c.bf16 %v4357_v36, %v4356_v49 }
 0x7c1   :  { %v4614_v33 = vsel %vm85_vm0, %v4330_v23, %v8011_v21  ;;  %v4360_v23 = vld [vmem:[#allocation2 + $0x3a] sm:$0xff] }
 0x7c2   :  { %v4664_v53 = vpack.c.bf16 %v4614_v33, %v4613_v46 }
 0x7ca   :  { %5156 = vmatmul.bf16.gmra.mxu1 %v4644_v2  ;;  %v4662_v2 = vpack.c.bf16 %v4572_v7, %v4571_v60 }
 0x7cc   :  { %5040 = vmatmul.bf16.gmra.mxu3 %v4652_v48  ;;  %v4660_v48 = vpack.c.bf16 %v4613_v46, %v4612_v30 }
 0x7cd   :  { %5103 = vmatmul.bf16.gmra.mxu0 %v12582_v12  ;;  %5224 = vmatmul.bf16.gmra.mxu2 %v4650_v26 }
 0x7da   :  { %v5069_v59 = vpop.f32.mrf.mxu0  ;;  %5161 = vmatmul.bf16.gmra.mxu1 %v4649_v10 }
 0x7dc   :  { %5045 = vmatmul.bf16.gmra.mxu3 %v4657_v8  ;;  %v4667_v8 = vpack.c.bf16 %v4573_v17, %v4573_v17 }
 0x7dd   :  { %5108 = vmatmul.bf16.gmra.mxu0 %v12585_v24  ;;  %5229 = vmatmul.bf16.gmra.mxu2 %v4655_v13  ;;  %v4668_v24 = vpack.c.bf16 %v4594_v9, %v4594_v9 }
 0x7df   :  { %v5006_v0 = vpop.f32.mrf.mxu3 }
 0x7e0   :  { %v5007_v50 = vadd.f32 %v11455_v45, %v5006_v0 }
 0x7e2   :  { %v11464_v11 = vpop.f32.mrf.mxu0  ;;  %v5070_v39 = vadd.f32 %v5069_v59, %v5007_v50  ;;  %v4615_v59 = vsel %vm85_vm0, %v4332_v58, %v8012_v63 }
 0x7e3   :  { %v4665_v16 = vpack.c.bf16 %v4615_v59, %v4614_v33  ;;  %v4669_v46 = vpack.c.bf16 %v4615_v59, %v4615_v59 }
 0x7e7   :  { %v11472_v37 = vpop.f32.mrf.mxu3 }
 0x7ea   :  { %v5074_v47 = vpop.f32.mrf.mxu0  ;;  %5166 = vmatmul.bf16.gmra.mxu1 %v4654_v56 }
 0x7ec   :  { %5050 = vmatmul.bf16.gmra.mxu3 %v4662_v2 }
 0x7ed   :  { %5113 = vmatmul.bf16.gmra.mxu0 %v12588_v43  ;;  %5234 = vmatmul.bf16.gmra.mxu2 %v4660_v48  ;;  %v4359_v48 = vld [vmem:[#allocation2 + $0x32] sm:$0xff] }
 0x7ef   :  { %v5011_v54 = vpop.f32.mrf.mxu3 }
 0x7f0   :  { %v5012_v3 = vadd.f32 %v11455_v45, %v5011_v54 }
 0x7f2   :  { %v11491_v26 = vpop.f32.mrf.mxu0  ;;  %v5075_v12 = vadd.f32 %v5074_v47, %v5012_v3  ;;  %v4626_v3 = vpack.c.bf16 %v4359_v48, %v4358_v29  ;;  %v4364_v29 = vld [vmem:[#allocation2 + $0x5a] sm:$0xff]  ;;  %v4365_v48 = vld [vmem:[#allocation2 + $0x62] sm:$0xff] }
 0x7f7   :  { %v11495_v42 = vpop.f32.mrf.mxu3  ;;  %v5132_v55 = vpop.f32.mrf.mxu1 }
 0x7f8   :  { %v11498_v10 = vadd.f32 %v5132_v55, %v5070_v39  ;;  %v4361_v55 = vld [vmem:[#allocation2 + $0x42] sm:$0xff] }
 0x7f9   :  { %v4631_v9 = vpack.c.bf16 %v4361_v55, %v4360_v23 }
 0x7fa   :  { %v5079_v13 = vpop.f32.mrf.mxu0  ;;  %5171 = vmatmul.bf16.gmra.mxu1 %v4659_v40 }
 0x7fc   :  { %5055 = vmatmul.bf16.gmra.mxu3 %v4667_v8 }
 0x7fd   :  { %5118 = vmatmul.bf16.gmra.mxu0 %v4668_v24  ;;  %5239 = vmatmul.bf16.gmra.mxu2 %v4665_v16 }
 0x7ff   :  { %v5016_v28 = vpop.f32.mrf.mxu3  ;;  %v11502_v0 = vpop.f32.mrf.mxu1 }
 0x800   :  { %v5017_v34 = vadd.f32 %v11455_v45, %v5016_v28 }
 0x802   :  { %v11505_v50 = vpop.f32.mrf.mxu0  ;;  %v5080_v44 = vadd.f32 %v5079_v13, %v5017_v34  ;;  %v4362_v34 = vld [vmem:[#allocation2 + $0x4a] sm:$0xff] }
 0x807   :  { %v11507_v39 = vpop.f32.mrf.mxu3  ;;  %v5137_v52 = vpop.f32.mrf.mxu1 }
 0x808   :  { %v11509_v5 = vadd.f32 %v5137_v52, %v5075_v12 }
 0x80a   :  { %v5084_v15 = vpop.f32.mrf.mxu0  ;;  %5176 = vmatmul.bf16.gmra.mxu1 %v4664_v53 }
 0x80c   :  { %7323 = vmatmul.msk.bf16.vlgmr.msra.gmra.mxu3 %vm85_vm0, %v4621_v14 }
 0x80f   :  { %v5021_v60 = vpop.f32.mrf.mxu3  ;;  %v11512_v6 = vpop.f32.mrf.mxu1 }
 0x810   :  { %v5022_v7 = vadd.f32 %v11455_v45, %v5021_v60 }
 0x812   :  { %v11515_v56 = vpop.f32.mrf.mxu0  ;;  %v5085_v30 = vadd.f32 %v5084_v15, %v5022_v7 }
 0x817   :  { %v11517_v47 = vpop.f32.mrf.mxu3  ;;  %v5142_v2 = vpop.f32.mrf.mxu1 }
 0x818   :  { %v11519_v43 = vadd.f32 %v5142_v2, %v5080_v44  ;;  %v4363_v44 = vld [vmem:[#allocation2 + $0x52] sm:$0xff] }
 0x819   :  { %v4636_v36 = vpack.c.bf16 %v4363_v44, %v4362_v34 }
 0x81a   :  { %v5089_v54 = vpop.f32.mrf.mxu0  ;;  %5181 = vmatmul.bf16.gmra.mxu1 %v4669_v46 }
 0x81c   :  { %7324 = vmatmul.msk.bf16.gmra.mxu3 %vm85_vm0, %v4626_v3  ;;  %v4641_v3 = vpack.c.bf16 %v4365_v48, %v4364_v29  ;;  %v4368_v29 = vld [vmem:[#allocation2 + $0x7a] sm:$0xff]  ;;  %v4369_v48 = vld [vmem:[#allocation2 + $0x82] sm:$0xff] }
 0x81f   :  { %v5026_v25 = vpop.f32.mrf.mxu3  ;;  %v11522_v12 = vpop.f32.mrf.mxu1 }
 0x820   :  { %v5027_v63 = vadd.f32 %v11455_v45, %v5026_v25 }
 0x822   :  { %v11525_v21 = vpop.f32.mrf.mxu0  ;;  %v5090_v22 = vadd.f32 %v5089_v54, %v5027_v63 }
 0x827   :  { %v11527_v27 = vpop.f32.mrf.mxu3  ;;  %v5147_v17 = vpop.f32.mrf.mxu1 }
 0x828   :  { %v11529_v40 = vadd.f32 %v5147_v17, %v5085_v30 }
 0x82a   :  { %v5094_v58 = vpop.f32.mrf.mxu0 }
 0x82c   :  { %7325 = vmatmul.msk.bf16.gmra.mxu3 %vm85_vm0, %v4631_v9  ;;  %v4366_v9 = vld [vmem:[#allocation2 + $0x6a] sm:$0xff] }
 0x82f   :  { %v5031_v33 = vpop.f32.mrf.mxu3  ;;  %v11532_v59 = vpop.f32.mrf.mxu1 }
 0x830   :  { %v5032_v8 = vadd.f32 %v11455_v45, %v5031_v33  ;;  %v4367_v33 = vld [vmem:[#allocation2 + $0x72] sm:$0xff] }
 0x832   :  { %v11535_v13 = vpop.f32.mrf.mxu0  ;;  %v5095_v24 = vadd.f32 %v5094_v58, %v5032_v8 }
 0x837   :  { %v11537_v16 = vpop.f32.mrf.mxu3  ;;  %v5152_v28 = vpop.f32.mrf.mxu1 }
 0x838   :  { %v11539_v52 = vadd.f32 %v5152_v28, %v5090_v22  ;;  %v4646_v28 = vpack.c.bf16 %v4367_v33, %v4366_v9 }
 0x83a   :  { %v5099_v49 = vpop.f32.mrf.mxu0 }
 0x83c   :  { %7326 = vmatmul.msk.bf16.gmra.mxu3 %vm85_vm0, %v4636_v36 }
 0x83f   :  { %v5036_v53 = vpop.f32.mrf.mxu3  ;;  %v11542_v15 = vpop.f32.mrf.mxu1 }
 0x840   :  { %v5037_v14 = vadd.f32 %v11455_v45, %v5036_v53 }
 0x842   :  { %v11545_v60 = vpop.f32.mrf.mxu0  ;;  %v5100_v7 = vadd.f32 %v5099_v49, %v5037_v14 }
 0x847   :  { %v11547_v30 = vpop.f32.mrf.mxu3  ;;  %v5157_v2 = vpop.f32.mrf.mxu1 }
 0x848   :  { %v11549_v46 = vadd.f32 %v5157_v2, %v5095_v24 }
 0x84a   :  { %v5104_v54 = vpop.f32.mrf.mxu0 }
 0x84c   :  { %7327 = vmatmul.msk.bf16.gmra.mxu3 %vm85_vm0, %v4641_v3 }
 0x84f   :  { %v5041_v25 = vpop.f32.mrf.mxu3  ;;  %v11552_v63 = vpop.f32.mrf.mxu1 }
 0x850   :  { %v5042_v22 = vadd.f32 %v11455_v45, %v5041_v25  ;;  %v4651_v25 = vpack.c.bf16 %v4369_v48, %v4368_v29 }
 0x852   :  { %v11555_v17 = vpop.f32.mrf.mxu0  ;;  %v5105_v23 = vadd.f32 %v5104_v54, %v5042_v22  ;;  %v5195_v54 = vpop.f32.mrf.mxu2 }
 0x853   :  { %12589 = vst [vmem:[#allocation28_spill] sm:$0xff] %v11555_v17 }
 0x857   :  { %v11557_v55 = vpop.f32.mrf.mxu3  ;;  %v5162_v58 = vpop.f32.mrf.mxu1 }
 0x858   :  { %v11559_v8 = vadd.f32 %v5162_v58, %v5100_v7 }
 0x85a   :  { %v5109_v24 = vpop.f32.mrf.mxu0  ;;  %v5197_v33 = vpop.f32.mrf.mxu2 }
 0x85c   :  { %7328 = vmatmul.msk.bf16.gmra.mxu3 %vm85_vm0, %v4646_v28 }
 0x85f   :  { %v5046_v34 = vpop.f32.mrf.mxu3  ;;  %v11562_v44 = vpop.f32.mrf.mxu1 }
 0x860   :  { %v5047_v49 = vadd.f32 %v11455_v45, %v5046_v34 }
 0x862   :  { %v11565_v36 = vpop.f32.mrf.mxu0  ;;  %v5110_v53 = vadd.f32 %v5109_v24, %v5047_v49 }
 0x863   :  { %12590 = vst [vmem:[#allocation30_spill] sm:$0xff] %v11565_v36  ;;  %v4370_v36 = vld [vmem:[#allocation2 + $0x8a] sm:$0xff] }
 0x867   :  { %v11567_v14 = vpop.f32.mrf.mxu3  ;;  %v5167_v2 = vpop.f32.mrf.mxu1 }
 0x868   :  { %12591 = vst [vmem:[#allocation48_spill] sm:$0xff] %v11567_v14  ;;  %v11569_v7 = vadd.f32 %v5167_v2, %v5105_v23  ;;  %v4371_v14 = vld [vmem:[#allocation2 + $0x92] sm:$0xff]  ;;  %v5200_v2 = vpop.f32.mrf.mxu2 }
 0x869   :  { %v4656_v48 = vpack.c.bf16 %v4371_v14, %v4370_v36  ;;  %v5009_v36 = vadd.f32 %v11455_v45, %v11472_v37 }
 0x86a   :  { %12592 = vst [vmem:[#allocation50_spill] sm:$0xff] %v11569_v7  ;;  %v5114_v3 = vpop.f32.mrf.mxu0  ;;  %v4372_v7 = vld [vmem:[#allocation2 + $0x9a] sm:$0xff] }
 0x86c   :  { %7329 = vmatmul.msk.bf16.gmra.mxu3 %vm85_vm0, %v4651_v25 }
 0x86f   :  { %v5051_v22 = vpop.f32.mrf.mxu3  ;;  %v11572_v58 = vpop.f32.mrf.mxu1 }
 0x870   :  { %12593 = vst [vmem:[#allocation33_spill] sm:$0xff] %v11572_v58  ;;  %v5052_v9 = vadd.f32 %v11455_v45, %v5051_v22 }
 0x872   :  { %v11575_v28 = vpop.f32.mrf.mxu0  ;;  %v5115_v24 = vadd.f32 %v5114_v3, %v5052_v9  ;;  %v5202_v9 = vpop.f32.mrf.mxu2 }
 0x873   :  { %12594 = vst [vmem:[#allocation34_spill] sm:$0xff] %v11575_v28 }
 0x877   :  { %v11577_v34 = vpop.f32.mrf.mxu3  ;;  %v5172_v49 = vpop.f32.mrf.mxu1 }
 0x878   :  { %12595 = vst [vmem:[#allocation53_spill] sm:$0xff] %v11577_v34  ;;  %v11579_v23 = vadd.f32 %v5172_v49, %v5110_v53  ;;  %v4661_v49 = vpack.c.bf16 %v4373_v32, %v4372_v7 }
 0x87a   :  { %v5119_v29 = vpop.f32.mrf.mxu0  ;;  %v5205_v14 = vpop.f32.mrf.mxu2 }
 0x87c   :  { %7330 = vmatmul.msk.bf16.gmra.mxu3 %vm85_vm0, %v4656_v48  ;;  %v5196_v48 = vadd.f32 %v5195_v54, %v11498_v10 }
 0x87f   :  { %v5056_v25 = vpop.f32.mrf.mxu3  ;;  %v11582_v58 = vpop.f32.mrf.mxu1 }
 0x880   :  { %12596 = vst [vmem:[#allocation9_spill] sm:$0xff] %v11582_v58  ;;  %v5057_v22 = vadd.f32 %v11455_v45, %v5056_v25  ;;  %v5396_v58 = vld [vmem:[#allocation2 + $0x7] sm:$0xff] }
 0x882   :  { %v11585_v17 = vadd.f32 %v5119_v29, %v5057_v22  ;;  %v5121_v3 = vpop.f32.mrf.mxu0  ;;  %v5072_v22 = vadd.f32 %v11464_v11, %v5009_v36  ;;  %v5207_v54 = vpop.f32.mrf.mxu2  ;;  %v5014_v11 = vadd.f32 %v11455_v45, %v11495_v42 }
 0x884   :  { %12597 = vst [vmem:[#allocation36_spill] sm:$0xff] %v11585_v17  ;;  %v5135_v3 = vadd.f32 %v11502_v0, %v5072_v22  ;;  %v5077_v22 = vadd.f32 %v11491_v26, %v5014_v11 }
 0x886   :  { %v5198_v32 = vadd.f32 %v5197_v33, %v5135_v3  ;;  %v5201_v33 = vadd.f32 %v5200_v2, %v11509_v5  ;;  %v5140_v3 = vadd.f32 %v11512_v6, %v5077_v22  ;;  %v5206_v6 = vadd.f32 %v5205_v14, %v11519_v43 }
 0x887   :  { %v5058_v28 = vpop.f32.mrf.mxu3  ;;  %v5177_v34 = vpop.f32.mrf.mxu1  ;;  %v5024_v43 = vadd.f32 %v11455_v45, %v11517_v47 }
 0x888   :  { %v11587_v53 = vadd.f32 %v5177_v34, %v5115_v24  ;;  %v4374_v34 = vld [vmem:[#allocation2 + $0xaa] sm:$0xff] }
 0x88a   :  { %12598 = vst [vmem:[#allocation13_spill] sm:$0xff] %v11587_v53 }
 0x88c   :  { %7331 = vmatmul.msk.bf16.gmra.mxu3 %vm85_vm0, %v4661_v49  ;;  %v4375_v49 = vld [vmem:[#allocation2 + $0xb2] sm:$0xff] }
 0x88d   :  { %v4666_v53 = vpack.c.bf16 %v4375_v49, %v4374_v34 }
 0x88f   :  { %v11593_v25 = vpop.f32.mrf.mxu1  ;;  %v5258_v29 = vpop.f32.mrf.mxu3 }
 0x890   :  { %12599 = vst [vmem:[#allocation7_spill] sm:$0xff] %v11593_v25  ;;  %v5259_v28 = vadd.f32 %v5258_v29, %v5196_v48 }
 0x892   :  { %v5312_v17 = vmax.f32 %v5259_v28, 0.0 }
 0x894   :  { %v5333_v24 = vmul.f32 %v5312_v17, %v12443_v51 }
 0x896   :  { %5354 = vst.msk [vmem:[#allocation2 + $0x10] sm:$0xff] %vm85_vm0, %v5333_v24  ;;  %v5210_v24 = vpop.f32.mrf.mxu2 }
 0x897   :  { %v11599_v37 = vpop.f32.mrf.mxu1  ;;  %v5260_v7 = vpop.f32.mrf.mxu3 }
 0x898   :  { %v5261_v10 = vadd.f32 %v5260_v7, %v5198_v32 }
 0x89a   :  { %v5313_v25 = vmax.f32 %v5261_v10, 0.0 }
 0x89c   :  { %v5334_v0 = vmul.f32 %v5313_v25, %v12444_v19  ;;  %7332 = vmatmul.msk.bf16.gmra.mxu3 %vm85_vm0, %v4666_v53  ;;  %v5203_v53 = vadd.f32 %v5202_v9, %v5140_v3 }
 0x89d   :  { %v5397_v17 = vld [vmem:[#allocation2 + $0xf] sm:$0xff] }
 0x89e   :  { %5355 = vst.msk [vmem:[#allocation2 + $0x18] sm:$0xff] %vm85_vm0, %v5334_v0  ;;  %v8013_v36 = vpack.i.bf16 %v5397_v17, %v5396_v58  ;;  %v5019_v58 = vadd.f32 %v11455_v45, %v11507_v39  ;;  %v5212_v2 = vpop.f32.mrf.mxu2 }
 0x89f   :  { %v5184_v48 = vpop.f32.mrf.mxu1  ;;  %v5263_v29 = vpop.f32.mrf.mxu3 }
 0x8a0   :  { %v5264_v28 = vadd.f32 %v5263_v29, %v5201_v33  ;;  %8014 = vrot.lane.b32.xlu2 %v8013_v36, %s8161_s5  ;;  %v5082_v0 = vadd.f32 %v11505_v50, %v5019_v58 }
 0x8a2   :  { %v5314_v42 = vmax.f32 %v5264_v28, 0.0  ;;  %v5145_v17 = vadd.f32 %v11522_v12, %v5082_v0  ;;  %v5211_v12 = vadd.f32 %v5210_v24, %v11529_v40  ;;  %v7694_v40 = vld [vmem:[%s12270_s15 + $0x38] sm:$0xff] }
 0x8a3   :  { %6104 = vmatpush.bf16.msra.mxu0 %v7694_v40 }
 0x8a4   :  { %v5335_v25 = vmul.f32 %v5314_v42, %v12440_v18  ;;  %v5208_v36 = vadd.f32 %v5207_v54, %v5145_v17 }
 0x8a5   :  { %v5398_v34 = vld [vmem:[#allocation2 + $0x17] sm:$0xff] }
 0x8a6   :  { %5356 = vst.msk [vmem:[#allocation2 + $0x20] sm:$0xff] %vm85_vm0, %v5335_v25  ;;  %v5215_v48 = vpop.f32.mrf.mxu2 }
 0x8a7   :  { %v5265_v32 = vpop.f32.mrf.mxu3 }
 0x8a8   :  { %v5266_v7 = vadd.f32 %v5265_v32, %v5203_v53  ;;  %v5087_v53 = vadd.f32 %v11515_v56, %v5024_v43  ;;  %v7693_v56 = vld [vmem:[%s12270_s15 + $0x30] sm:$0xff] }
 0x8a9   :  { %6105 = vmatpush.bf16.msra.mxu0 %v7693_v56 }
 0x8aa   :  { %v5315_v5 = vmax.f32 %v5266_v7, 0.0  ;;  %v5150_v7 = vadd.f32 %v11532_v59, %v5087_v53  ;;  %v5029_v59 = vadd.f32 %v11455_v45, %v11527_v27  ;;  %v7691_v27 = vld [vmem:[%s12270_s15 + $0x20] sm:$0xff] }
 0x8ac   :  { %v5336_v26 = vmul.f32 %v5315_v5, %v12441_v31  ;;  %v5213_v58 = vadd.f32 %v5212_v2, %v5150_v7 }
 0x8ad   :  { %v5399_v49 = vld [vmem:[#allocation2 + $0x1f] sm:$0xff] }
 0x8ae   :  { %5357 = vst.msk [vmem:[#allocation2 + $0x28] sm:$0xff] %vm85_vm0, %v5336_v26  ;;  %v8018_v10 = vpack.i.bf16 %v5399_v49, %v5398_v34  ;;  %v5217_v32 = vpop.f32.mrf.mxu2 }
 0x8af   :  { %v5268_v11 = vpop.f32.mrf.mxu3 }
 0x8b0   :  { %v5269_v9 = vadd.f32 %v5268_v11, %v5206_v6  ;;  %8019 = vrot.lane.b32.xlu0 %v8018_v10, %s8161_s5  ;;  %v5216_v11 = vadd.f32 %v5215_v48, %v11539_v52 }
 0x8b2   :  { %v5316_v33 = vmax.f32 %v5269_v9, 0.0  ;;  %v7692_v9 = vld [vmem:[%s12270_s15 + $0x28] sm:$0xff] }
 0x8b3   :  { %6106 = vmatpush.bf16.msra.mxu0 %v7692_v9 }
 0x8b4   :  { %v5337_v39 = vmul.f32 %v5316_v33, %v12442_v35  ;;  %v5092_v33 = vadd.f32 %v11525_v21, %v5029_v59  ;;  %v7690_v21 = vld [vmem:[%s12270_s15 + $0x18] sm:$0xff] }
 0x8b5   :  { %v5400_v14 = vld [vmem:[#allocation2 + $0x27] sm:$0xff] }
 0x8b6   :  { %5358 = vst.msk [vmem:[#allocation2 + $0x30] sm:$0xff] %vm85_vm0, %v5337_v39  ;;  %v5220_v49 = vpop.f32.mrf.mxu2 }
 0x8b7   :  { %v5270_v29 = vpop.f32.mrf.mxu3  ;;  %6107 = vmatpush.bf16.msra.mxu0 %v7691_v27 }
 0x8b8   :  { %v5271_v22 = vadd.f32 %v5270_v29, %v5208_v36  ;;  %v5155_v36 = vadd.f32 %v11542_v15, %v5092_v33 }
 0x8ba   :  { %v5317_v28 = vmax.f32 %v5271_v22, 0.0  ;;  %v5218_v22 = vadd.f32 %v5217_v32, %v5155_v36  ;;  %v4355_v36 = vld [vmem:[#allocation2 + $0xb9] sm:$0xff] }
 0x8bb   :  { %6108 = vmatpush.bf16.msra.mxu0 %v7690_v21  ;;  %v5375_v21 = vld [vmem:[#allocation2 + $0x6] sm:$0xff] }
 0x8bc   :  { %v5338_v50 = vmul.f32 %v5317_v28, %v12566_v4 }
 0x8bd   :  { %v5401_v3 = vld [vmem:[#allocation2 + $0x2f] sm:$0xff] }
 0x8be   :  { %5359 = vst.msk [vmem:[#allocation2 + $0x38] sm:$0xff] %vm85_vm0, %v5338_v50  ;;  %v8023_v42 = vpack.i.bf16 %v5401_v3, %v5400_v14  ;;  %v5222_v48 = vpop.f32.mrf.mxu2  ;;  %v7689_v50 = vld [vmem:[%s12270_s15 + $0x10] sm:$0xff]  ;;  %v5034_v14 = vadd.f32 %v11455_v45, %v11537_v16  ;;  %v7687_v16 = vld [vmem:[%s12270_s15] sm:$0xff] }
 0x8bf   :  { %v5273_v25 = vpop.f32.mrf.mxu3  ;;  %6109 = vmatpush.bf16.msra.mxu0 %v7689_v50 }
 0x8c0   :  { %v5274_v54 = vadd.f32 %v5273_v25, %v5211_v12  ;;  %8024 = vrot.lane.b32.xlu1 %v8023_v42, %s8161_s5  ;;  %v5221_v25 = vadd.f32 %v5220_v49, %v11549_v46  ;;  %v5039_v49 = vadd.f32 %v11455_v45, %v11547_v30  ;;  %v7701_v30 = vld [vmem:[%s12270_s15 + $0x70] sm:$0xff] }
 0x8c2   :  { %v5318_v5 = vmax.f32 %v5274_v54, 0.0  ;;  %v7688_v54 = vld [vmem:[%s12270_s15 + $0x8] sm:$0xff]  ;;  %v5102_v9 = vadd.f32 %v11545_v60, %v5039_v49  ;;  %v12604_v49 = vld [vmem:[#allocation6_spill] sm:$0xff] }
 0x8c3   :  { %6110 = vmatpush.bf16.msra.mxu0 %v7688_v54  ;;  %v7700_v60 = vld [vmem:[%s12270_s15 + $0x68] sm:$0xff] }
 0x8c4   :  { %v5339_v47 = vmul.f32 %v5318_v5, %v9272_v57  ;;  %v5097_v5 = vadd.f32 %v11535_v13, %v5034_v14  ;;  %v5165_v33 = vadd.f32 %v11562_v44, %v5102_v9  ;;  %v7699_v44 = vld [vmem:[%s12270_s15 + $0x60] sm:$0xff] }
 0x8c5   :  { %v5402_v2 = vld [vmem:[#allocation2 + $0x37] sm:$0xff] }
 0x8c6   :  { %5360 = vst.msk [vmem:[#allocation2 + $0x40] sm:$0xff] %vm85_vm0, %v5339_v47  ;;  %v5225_v32 = vpop.f32.mrf.mxu2  ;;  %v12600_v14 = vld [vmem:[#allocation31_spill] sm:$0xff] }
 0x8c7   :  { %v5275_v24 = vpop.f32.mrf.mxu3  ;;  %6111 = vmatpush.bf16.msra.mxu0 %v7687_v16 }
 0x8c8   :  { %v5276_v26 = vadd.f32 %v5275_v24, %v5213_v58  ;;  %v5160_v58 = vadd.f32 %v11552_v63, %v5097_v5  ;;  %v5226_v63 = vadd.f32 %v5225_v32, %v11559_v8  ;;  %v12601_v5 = vld [vmem:[#allocation50_spill] sm:$0xff] }
 0x8ca   :  { %v5319_v34 = vmax.f32 %v5276_v26, 0.0  ;;  %v5223_v24 = vadd.f32 %v5222_v48, %v5160_v58 }
 0x8cc   :  { %v5340_v6 = vmul.f32 %v5319_v34, %v9277_v1 }
 0x8cd   :  { %v5403_v10 = vld [vmem:[#allocation2 + $0x3f] sm:$0xff] }
 0x8ce   :  { %5361 = vst.msk [vmem:[#allocation2 + $0x48] sm:$0xff] %vm85_vm0, %v5340_v6  ;;  %v8028_v0 = vpack.i.bf16 %v5403_v10, %v5402_v2  ;;  %v5227_v13 = vpop.f32.mrf.mxu2 }
 0x8cf   :  { %v5278_v17 = vpop.f32.mrf.mxu3 }
 0x8d0   :  { %v5279_v39 = vadd.f32 %v5278_v17, %v5216_v11  ;;  %8029 = vrot.lane.b32.xlu2 %v8028_v0, %s8161_s5  ;;  %v7702_v11 = vld [vmem:[%s12270_s15 + $0x78] sm:$0xff] }
 0x8d1   :  { %6167 = vmatpush.bf16.msrb.mxu1 %v7702_v11 }
 0x8d2   :  { %v5320_v29 = vmax.f32 %v5279_v39, 0.0 }
 0x8d4   :  { %v5341_v52 = vmul.f32 %v5320_v29, %v12517_v61  ;;  %v5228_v29 = vadd.f32 %v5227_v13, %v5165_v33  ;;  %v12606_v33 = vld [vmem:[#allocation35_spill] sm:$0xff] }
 0x8d5   :  { %v5404_v12 = vld [vmem:[#allocation2 + $0x47] sm:$0xff]  ;;  %6168 = vmatpush.bf16.msrb.mxu1 %v7701_v30 }
 0x8d6   :  { %5362 = vst.msk [vmem:[#allocation2 + $0x50] sm:$0xff] %vm85_vm0, %v5341_v52  ;;  %v5230_v8 = vpop.f32.mrf.mxu2 }
 0x8d7   :  { %v5280_v28 = vpop.f32.mrf.mxu3 }
 0x8d8   :  { %v5281_v43 = vadd.f32 %v5280_v28, %v5218_v22 }
 0x8d9   :  { %6169 = vmatpush.bf16.msrb.mxu1 %v7700_v60 }
 0x8da   :  { %v5321_v15 = vmax.f32 %v5281_v43, 0.0 }
 0x8dc   :  { %v5342_v3 = vmul.f32 %v5321_v15, %v12522_v62  ;;  %v5044_v15 = vadd.f32 %v11455_v45, %v11557_v55  ;;  %v7698_v55 = vld [vmem:[%s12270_s15 + $0x58] sm:$0xff] }
 0x8dd   :  { %v5405_v42 = vld [vmem:[#allocation2 + $0x4f] sm:$0xff]  ;;  %6170 = vmatpush.bf16.msrb.mxu1 %v7699_v44 }
 0x8de   :  { %5363 = vst.msk [vmem:[#allocation2 + $0x58] sm:$0xff] %vm85_vm0, %v5342_v3  ;;  %v8033_v53 = vpack.i.bf16 %v5405_v42, %v5404_v12  ;;  %v5376_v12 = vld [vmem:[#allocation2 + $0xe] sm:$0xff]  ;;  %v5232_v42 = vpop.f32.mrf.mxu2 }
 0x8df   :  { %v5283_v7 = vpop.f32.mrf.mxu3 }
 0x8e0   :  { %v5284_v47 = vadd.f32 %v5283_v7, %v5221_v25  ;;  %8034 = vrot.lane.b32.xlu0 %v8033_v53, %s8161_s5 }
 0x8e1   :  { %6171 = vmatpush.bf16.msrb.mxu1 %v7698_v55 }
 0x8e2   :  { %v5322_v46 = vmax.f32 %v5284_v47, 0.0  ;;  %v5231_v47 = vadd.f32 %v5230_v8, %v12601_v5  ;;  %v12611_v5 = vld [vmem:[#allocation39_spill] sm:$0xff] }
 0x8e4   :  { %v5343_v40 = vmul.f32 %v5322_v46, %v12526_v20  ;;  %v12602_v46 = vld [vmem:[#allocation28_spill] sm:$0xff] }
 0x8e5   :  { %v5406_v6 = vld [vmem:[#allocation2 + $0x57] sm:$0xff] }
 0x8e6   :  { %5364 = vst.msk [vmem:[#allocation2 + $0x60] sm:$0xff] %vm85_vm0, %v5343_v40  ;;  %v5107_v40 = vadd.f32 %v12602_v46, %v5044_v15 }
 0x8e7   :  { %v5285_v26 = vpop.f32.mrf.mxu3 }
 0x8e8   :  { %v5286_v56 = vadd.f32 %v5285_v26, %v5223_v24  ;;  %v7697_v26 = vld [vmem:[%s12270_s15 + $0x50] sm:$0xff] }
 0x8e9   :  { %6172 = vmatpush.bf16.msrb.mxu1 %v7697_v26  ;;  %v12613_v26 = vld [vmem:[#allocation34_spill] sm:$0xff] }
 0x8ea   :  { %v5323_v34 = vmax.f32 %v5286_v56, 0.0  ;;  %v12603_v56 = vld [vmem:[#allocation33_spill] sm:$0xff] }
 0x8eb   :  { %v5170_v13 = vadd.f32 %v12603_v56, %v5107_v40 }
 0x8ec   :  { %v5344_v59 = vmul.f32 %v5323_v34, %v12530_v41 }
 0x8ed   :  { %v5407_v2 = vld [vmem:[#allocation2 + $0x5f] sm:$0xff] }
 0x8ee   :  { %5365 = vst.msk [vmem:[#allocation2 + $0x68] sm:$0xff] %vm85_vm0, %v5344_v59  ;;  %v8038_v10 = vpack.i.bf16 %v5407_v2, %v5406_v6  ;;  %v5233_v6 = vadd.f32 %v5232_v42, %v5170_v13  ;;  %v7696_v2 = vld [vmem:[%s12270_s15 + $0x48] sm:$0xff] }
 0x8ef   :  { %v5288_v0 = vpop.f32.mrf.mxu3  ;;  %6173 = vmatpush.bf16.msrb.mxu1 %v7696_v2 }
 0x8f0   :  { %v5289_v17 = vadd.f32 %v5288_v0, %v5226_v63  ;;  %8039 = vrot.lane.b32.xlu1 %v8038_v10, %s8161_s5  ;;  %v5235_v63 = vpop.f32.mrf.mxu2  ;;  %v7695_v0 = vld [vmem:[%s12270_s15 + $0x40] sm:$0xff] }
 0x8f2   :  { %v5324_v39 = vmax.f32 %v5289_v17, 0.0  ;;  %v12605_v17 = vld [vmem:[#allocation48_spill] sm:$0xff] }
 0x8f3   :  { %v5049_v30 = vadd.f32 %v11455_v45, %v12605_v17  ;;  %6174 = vmatpush.bf16.msrb.mxu1 %v7695_v0  ;;  %v12615_v0 = vld [vmem:[#allocation40_spill] sm:$0xff]  ;;  %v11748_v17 = vld [vmem:[#allocation2 + $0x10] sm:$0xff] }
 0x8f4   :  { %v5345_v27 = vmul.f32 %v5324_v39, %v12531_v38 }
 0x8f5   :  { %v5408_v54 = vld [vmem:[#allocation2 + $0x67] sm:$0xff] }
 0x8f6   :  { %5366 = vst.msk [vmem:[#allocation2 + $0x70] sm:$0xff] %vm85_vm0, %v5345_v27 }
 0x8f7   :  { %v5290_v52 = vpop.f32.mrf.mxu3 }
 0x8f8   :  { %v5291_v48 = vadd.f32 %v5290_v52, %v5228_v29  ;;  %4550 = vrot.lane.b32.xlu1 %v4355_v36, %s8161_s5  ;;  %v5236_v36 = vadd.f32 %v5235_v63, %v11579_v23  ;;  %v12607_v52 = vld [vmem:[#allocation30_spill] sm:$0xff] }
 0x8fa   :  { %v5325_v22 = vmax.f32 %v5291_v48, 0.0  ;;  %v11699_v28 = vpop.permute.xlu2 %8014  ;;  %v5112_v48 = vadd.f32 %v12607_v52, %v5049_v30  ;;  %v5377_v30 = vld [vmem:[#allocation2 + $0x16] sm:$0xff] }
 0x8fb   :  { %v8017_v43 = vunpack.i.h.bf16 %v11699_v28  ;;  %v8016_v50 = vunpack.i.l.bf16 %v11699_v28 }
 0x8fc   :  { %v5346_v3 = vmul.f32 %v5325_v22, %v12600_v14  ;;  %v5237_v22 = vpop.f32.mrf.mxu2 }
 0x8fd   :  { %v5660_v25 = vsel %vm85_vm0, %v5375_v21, %v8016_v50  ;;  %v5661_v53 = vsel %vm85_vm0, %v5376_v12, %v8017_v43  ;;  %v5409_v32 = vld [vmem:[#allocation2 + $0x6f] sm:$0xff]  ;;  %v12608_v21 = vld [vmem:[#allocation9_spill] sm:$0xff] }
 0x8fe   :  { %5367 = vst.msk [vmem:[#allocation2 + $0x78] sm:$0xff] %vm85_vm0, %v5346_v3  ;;  %v5724_v7 = vpack.c.bf16 %v5661_v53, %v5660_v25  ;;  %v8043_v16 = vpack.i.bf16 %v5409_v32, %v5408_v54  ;;  %v5175_v50 = vadd.f32 %v12608_v21, %v5112_v48  ;;  %v12609_v3 = vld [vmem:[#allocation37_spill] sm:$0xff] }
 0x8ff   :  { %v5293_v58 = vpop.f32.mrf.mxu3  ;;  %v12610_v32 = vld [vmem:[#allocation53_spill] sm:$0xff] }
 0x900   :  { %v5294_v24 = vadd.f32 %v5293_v58, %v5231_v47  ;;  %8044 = vrot.lane.b32.xlu2 %v8043_v16, %s8161_s5  ;;  %6112 = vmatmul.bf16.vlgmr.msra.gmra.mxu0 %v5724_v7  ;;  %v5238_v42 = vadd.f32 %v5237_v22, %v5175_v50  ;;  %v5054_v7 = vadd.f32 %v11455_v45, %v12610_v32  ;;  %v12612_v58 = vld [vmem:[#allocation13_spill] sm:$0xff] }
 0x902   :  { %v5326_v34 = vmax.f32 %v5294_v24, 0.0  ;;  %v5117_v56 = vadd.f32 %v12613_v26, %v5054_v7  ;;  %v5380_v26 = vld [vmem:[#allocation2 + $0x2e] sm:$0xff] }
 0x904   :  { %v5347_v59 = vmul.f32 %v5326_v34, %v12604_v49  ;;  %v5240_v23 = vpop.f32.mrf.mxu2  ;;  %v12614_v34 = vld [vmem:[#allocation7_spill] sm:$0xff] }
 0x905   :  { %v5410_v8 = vld [vmem:[#allocation2 + $0x77] sm:$0xff]  ;;  %v5241_v46 = vadd.f32 %v5240_v23, %v12612_v58 }
 0x906   :  { %5368 = vst.msk [vmem:[#allocation2 + $0x80] sm:$0xff] %vm85_vm0, %v5347_v59  ;;  %v5180_v59 = vadd.f32 %v12614_v34, %v5117_v56  ;;  %v11763_v58 = vld [vmem:[#allocation2 + $0x18] sm:$0xff]  ;;  %v5443_v34 = vld [vmem:[#allocation2 + $0x29] sm:$0xff] }
 0x907   :  { %v5295_v10 = vpop.f32.mrf.mxu3 }
 0x908   :  { %v5296_v11 = vadd.f32 %v5295_v10, %v5233_v6  ;;  %v5417_v6 = vld [vmem:[#allocation2 + $0x8] sm:$0xff] }
 0x90a   :  { %v5327_v9 = vmax.f32 %v5296_v11, 0.0  ;;  %v5442_v11 = vld [vmem:[#allocation2 + $0x21] sm:$0xff] }
 0x90c   :  { %v5348_v39 = vmul.f32 %v5327_v9, %v12606_v33 }
 0x90d   :  { %v5411_v27 = vld [vmem:[#allocation2 + $0x7f] sm:$0xff] }
 0x90e   :  { %5369 = vst.msk [vmem:[#allocation2 + $0x88] sm:$0xff] %vm85_vm0, %v5348_v39  ;;  %v8048_v29 = vpack.i.bf16 %v5411_v27, %v5410_v8  ;;  %v5378_v39 = vld [vmem:[#allocation2 + $0x1e] sm:$0xff]  ;;  %v5242_v8 = vpop.f32.mrf.mxu2  ;;  %v5681_v27 = vsel %vm85_vm0, %v5417_v6, %v8017_v43  ;;  %v5448_v43 = vld [vmem:[#allocation2 + $0x51] sm:$0xff] }
 0x90f   :  { %v5298_v60 = vpop.f32.mrf.mxu3 }
 0x910   :  { %v5299_v44 = vadd.f32 %v5298_v60, %v5236_v36  ;;  %8049 = vrot.lane.b32.xlu0 %v8048_v29, %s8161_s5  ;;  %v5441_v29 = vld [vmem:[#allocation2 + $0x19] sm:$0xff] }
 0x911   :  { %v8068_v22 = vpack.i.bf16 %v5442_v11, %v5441_v29  ;;  %v5445_v29 = vld [vmem:[#allocation2 + $0x39] sm:$0xff] }
 0x912   :  { %v5328_v15 = vmax.f32 %v5299_v44, 0.0  ;;  %v5243_v44 = vadd.f32 %v5242_v8, %v5180_v59 }
 0x914   :  { %v5349_v12 = vmul.f32 %v5328_v15, %v12609_v3 }
 0x915   :  { %v5412_v16 = vld [vmem:[#allocation2 + $0x87] sm:$0xff] }
 0x916   :  { %5370 = vst.msk [vmem:[#allocation2 + $0x90] sm:$0xff] %vm85_vm0, %v5349_v12  ;;  %v12616_v12 = vld [vmem:[#allocation42_spill] sm:$0xff] }
 0x917   :  { %v5300_v25 = vpop.f32.mrf.mxu3 }
 0x918   :  { %v5301_v53 = vadd.f32 %v5300_v25, %v5238_v42 }
 0x91a   :  { %v5329_v54 = vmax.f32 %v5301_v53, 0.0 }
 0x91c   :  { %v5350_v47 = vmul.f32 %v5329_v54, %v12611_v5  ;;  %v5447_v54 = vld [vmem:[#allocation2 + $0x49] sm:$0xff] }
 0x91d   :  { %v5413_v55 = vld [vmem:[#allocation2 + $0x8f] sm:$0xff]  ;;  %v8083_v32 = vpack.i.bf16 %v5448_v43, %v5447_v54  ;;  %v4376_v43 = vld [vmem:[#allocation2 + $0xba] sm:$0xff] }
 0x91e   :  { %5371 = vst.msk [vmem:[#allocation2 + $0x98] sm:$0xff] %vm85_vm0, %v5350_v47  ;;  %v8053_v40 = vpack.i.bf16 %v5413_v55, %v5412_v16  ;;  %v5444_v55 = vld [vmem:[#allocation2 + $0x31] sm:$0xff]  ;;  %v11782_v54 = vpack.c.bf16 %v4376_v43, %v4376_v43  ;;  %v11826_v43 = vld [vmem:[#allocation2 + $0x48] sm:$0xff] }
 0x91f   :  { %v5303_v24 = vpop.f32.mrf.mxu3  ;;  %v8073_v11 = vpack.i.bf16 %v5444_v55, %v5443_v34  ;;  %v7717_v34 = vld [vmem:[%s12270_s15 + $0xf0] sm:$0xff] }
 0x920   :  { %v5304_v13 = vadd.f32 %v5303_v24, %v5241_v46  ;;  %8054 = vrot.lane.b32.xlu2 %v8053_v40, %s8161_s5  ;;  %v11765_v46 = vld [vmem:[#allocation2 + $0x20] sm:$0xff]  ;;  %7333 = vmatmul.msk.bf16.gmra.mxu3 %vm85_vm0, %v11782_v54 }
 0x921   :  { %v5454_v40 = vld [vmem:[#allocation2 + $0x81] sm:$0xff] }
 0x922   :  { %v5330_v2 = vmax.f32 %v5304_v13, 0.0  ;;  %v8020_v45 = vpop.permute.xlu0 %8019  ;;  %v5379_v24 = vld [vmem:[#allocation2 + $0x26] sm:$0xff]  ;;  %v5440_v13 = vld [vmem:[#allocation2 + $0x11] sm:$0xff] }
 0x923   :  { %v8022_v63 = vunpack.i.h.bf16 %v8020_v45  ;;  %v8021_v10 = vunpack.i.l.bf16 %v8020_v45 }
 0x924   :  { %v5351_v9 = vmul.f32 %v5330_v2, %v12615_v0 }
 0x925   :  { %v5682_v36 = vsel %vm85_vm0, %v11748_v17, %v8021_v10  ;;  %v5662_v60 = vsel %vm85_vm0, %v5377_v30, %v8021_v10  ;;  %v5663_v52 = vsel %vm85_vm0, %v5378_v39, %v8022_v63  ;;  %v5414_v25 = vld [vmem:[#allocation2 + $0x97] sm:$0xff]  ;;  %v5683_v2 = vsel %vm85_vm0, %v11763_v58, %v8022_v63 }
 0x926   :  { %5372 = vst.msk [vmem:[#allocation2 + $0xa0] sm:$0xff] %vm85_vm0, %v5351_v9  ;;  %v5725_v48 = vpack.c.bf16 %v5682_v36, %v5681_v27  ;;  %v5729_v21 = vpack.c.bf16 %v5663_v52, %v5662_v60  ;;  %v5453_v9 = vld [vmem:[#allocation2 + $0x79] sm:$0xff]  ;;  %v5446_v27 = vld [vmem:[#allocation2 + $0x41] sm:$0xff] }
 0x927   :  { %v5305_v50 = vpop.f32.mrf.mxu3  ;;  %v8098_v8 = vpack.i.bf16 %v5454_v40, %v5453_v9  ;;  %v5450_v36 = vld [vmem:[#allocation2 + $0x61] sm:$0xff]  ;;  %v5449_v60 = vld [vmem:[#allocation2 + $0x59] sm:$0xff]  ;;  %v8078_v52 = vpack.i.bf16 %v5446_v27, %v5445_v29  ;;  %v11786_v40 = vld [vmem:[#allocation2 + $0x30] sm:$0xff] }
 0x928   :  { %v5306_v15 = vadd.f32 %v5305_v50, %v5243_v44  ;;  %8069 = vrot.lane.b32.xlu2 %v8068_v22, %s8161_s5  ;;  %6117 = vmatmul.bf16.gmra.mxu0 %v5729_v21  ;;  %v5381_v21 = vld [vmem:[#allocation2 + $0x36] sm:$0xff]  ;;  %v5382_v50 = vld [vmem:[#allocation2 + $0x3e] sm:$0xff] }
 0x929   :  { %6175 = vmatmul.bf16.vlgmr.msrb.gmra.mxu1 %v5725_v48  ;;  %v8088_v48 = vpack.i.bf16 %v5450_v36, %v5449_v60  ;;  %v11804_v9 = vld [vmem:[#allocation2 + $0x38] sm:$0xff] }
 0x92a   :  { %v5331_v28 = vmax.f32 %v5306_v15, 0.0  ;;  %v8030_v63 = vpop.permute.xlu2 %8029  ;;  %v5452_v15 = vld [vmem:[#allocation2 + $0x71] sm:$0xff] }
 0x92b   :  { %v8032_v44 = vunpack.i.h.bf16 %v8030_v63  ;;  %v8031_v22 = vunpack.i.l.bf16 %v8030_v63  ;;  %v7715_v27 = vld [vmem:[%s12270_s15 + $0xe0] sm:$0xff] }
 0x92c   :  { %v5352_v42 = vmul.f32 %v5331_v28, %v12616_v12  ;;  %v5456_v28 = vld [vmem:[#allocation2 + $0x91] sm:$0xff] }
 0x92d   :  { %v5415_v53 = vld [vmem:[#allocation2 + $0x9f] sm:$0xff]  ;;  %v5687_v29 = vsel %vm85_vm0, %v11804_v9, %v8032_v44 }
 0x92e   :  { %5373 = vst.msk [vmem:[#allocation2 + $0xa8] sm:$0xff] %vm85_vm0, %v5352_v42  ;;  %v8058_v23 = vpack.i.bf16 %v5415_v53, %v5414_v25  ;;  %v5666_v42 = vsel %vm85_vm0, %v5381_v21, %v8031_v22  ;;  %v5667_v25 = vsel %vm85_vm0, %v5382_v50, %v8032_v44  ;;  %v11780_v53 = vld [vmem:[#allocation2 + $0x28] sm:$0xff]  ;;  %v7712_v44 = vld [vmem:[%s12270_s15 + $0xc8] sm:$0xff] }
 0x92f   :  { %v7713_v21 = vld [vmem:[%s12270_s15 + $0xd0] sm:$0xff] }
 0x930   :  { %8059 = vrot.lane.b32.xlu0 %v8058_v23, %s8161_s5  ;;  %8084 = vrot.lane.b32.xlu2 %v8083_v32, %s8161_s5  ;;  %v5451_v23 = vld [vmem:[#allocation2 + $0x69] sm:$0xff] }
 0x931   :  { %v5455_v32 = vld [vmem:[#allocation2 + $0x89] sm:$0xff] }
 0x932   :  { %v8025_v7 = vpop.permute.xlu1 %8024  ;;  %v8103_v55 = vpack.i.bf16 %v5456_v28, %v5455_v32 }
 0x933   :  { %v8027_v47 = vunpack.i.h.bf16 %v8025_v7  ;;  %v8026_v16 = vunpack.i.l.bf16 %v8025_v7 }
 0x935   :  { %v5416_v56 = vld [vmem:[#allocation2 + $0xa7] sm:$0xff]  ;;  %v5664_v59 = vsel %vm85_vm0, %v5379_v24, %v8026_v16  ;;  %v5665_v6 = vsel %vm85_vm0, %v5380_v26, %v8027_v47  ;;  %v5684_v45 = vsel %vm85_vm0, %v11765_v46, %v8026_v16  ;;  %v5685_v7 = vsel %vm85_vm0, %v11780_v53, %v8027_v47  ;;  %v7718_v47 = vld [vmem:[%s12270_s15 + $0xf8] sm:$0xff] }
 0x936   :  { %v8063_v10 = vpack.i.bf16 %v5440_v13, %v5416_v56  ;;  %v5734_v30 = vpack.c.bf16 %v5665_v6, %v5664_v59  ;;  %v5730_v39 = vpack.c.bf16 %v5684_v45, %v5683_v2  ;;  %v8093_v16 = vpack.i.bf16 %v5452_v15, %v5451_v23  ;;  %v5458_v13 = vld [vmem:[#allocation2 + $0xa1] sm:$0xff]  ;;  %6293 = vmatpush.bf16.msrb.mxu3 %v7718_v47  ;;  %v5457_v59 = vld [vmem:[#allocation2 + $0x99] sm:$0xff]  ;;  %v11828_v23 = vld [vmem:[#allocation2 + $0x50] sm:$0xff] }
 0x937   :  { %v5739_v24 = vpack.c.bf16 %v5667_v25, %v5666_v42  ;;  %v5686_v26 = vsel %vm85_vm0, %v11786_v40, %v8031_v22  ;;  %v8108_v6 = vpack.i.bf16 %v5458_v13, %v5457_v59  ;;  %v7716_v2 = vld [vmem:[%s12270_s15 + $0xe8] sm:$0xff]  ;;  %v7714_v22 = vld [vmem:[%s12270_s15 + $0xd8] sm:$0xff]  ;;  %v11839_v47 = vld [vmem:[#allocation2 + $0xb8] sm:$0xff] }
 0x938   :  { %8064 = vrot.lane.b32.xlu1 %v8063_v10, %s8161_s5  ;;  %8074 = vrot.lane.b32.xlu0 %v8073_v11, %s8161_s5  ;;  %v5735_v56 = vpack.c.bf16 %v5686_v26, %v5685_v7  ;;  %v5385_v42 = vld [vmem:[#allocation2 + $0x56] sm:$0xff]  ;;  %v5386_v25 = vld [vmem:[#allocation2 + $0x5e] sm:$0xff] }
 0x939   :  { %8099 = vrot.lane.b32.xlu2 %v8098_v8, %s8161_s5  ;;  %6122 = vmatmul.bf16.gmra.mxu0 %v5734_v30  ;;  %v11806_v30 = vld [vmem:[#allocation2 + $0x40] sm:$0xff]  ;;  %v5384_v8 = vld [vmem:[#allocation2 + $0x4e] sm:$0xff] }
 0x93a   :  { %6180 = vmatmul.bf16.gmra.mxu1 %v5730_v39  ;;  %6294 = vmatpush.bf16.msrb.mxu3 %v7717_v34  ;;  %v5383_v39 = vld [vmem:[#allocation2 + $0x46] sm:$0xff]  ;;  %v7710_v59 = vld [vmem:[%s12270_s15 + $0xb8] sm:$0xff] }
 0x93b   :  { %6230 = vmatpush.bf16.msrb.mxu2 %v7710_v59  ;;  %v11880_v59 = vld [vmem:[#allocation2 + $0x68] sm:$0xff] }
 0x93e   :  { %6295 = vmatpush.bf16.msrb.mxu3 %v7716_v2 }
 0x940   :  { %8079 = vrot.lane.b32.xlu1 %v8078_v52, %s8161_s5  ;;  %8089 = vrot.lane.b32.xlu0 %v8088_v48, %s8161_s5 }
 0x942   :  { %6296 = vmatpush.bf16.msrb.mxu3 %v7715_v27 }
 0x946   :  { %6297 = vmatpush.bf16.msrb.mxu3 %v7714_v22 }
 0x948   :  { %8094 = vrot.lane.b32.xlu1 %v8093_v16, %s8161_s5  ;;  %8104 = vrot.lane.b32.xlu0 %v8103_v55, %s8161_s5 }
 0x949   :  { %6127 = vmatmul.bf16.gmra.mxu0 %v5739_v24 }
 0x94a   :  { %6185 = vmatmul.bf16.gmra.mxu1 %v5735_v56  ;;  %6298 = vmatpush.bf16.msrb.mxu3 %v7713_v21  ;;  %v7711_v56 = vld [vmem:[%s12270_s15 + $0xc0] sm:$0xff] }
 0x94e   :  { %6299 = vmatpush.bf16.msrb.mxu3 %v7712_v44  ;;  %v7708_v44 = vld [vmem:[%s12270_s15 + $0xa8] sm:$0xff] }
 0x950   :  { %8109 = vrot.lane.b32.xlu1 %v8108_v6, %s8161_s5 }
 0x952   :  { %v8035_v45 = vpop.permute.xlu0 %8034  ;;  %6300 = vmatpush.bf16.msrb.mxu3 %v7711_v56 }
 0x953   :  { %v8037_v10 = vunpack.i.h.bf16 %v8035_v45  ;;  %v8036_v11 = vunpack.i.l.bf16 %v8035_v45 }
 0x955   :  { %v5668_v36 = vsel %vm85_vm0, %v5383_v39, %v8036_v11  ;;  %v5669_v63 = vsel %vm85_vm0, %v5384_v8, %v8037_v10  ;;  %v5688_v60 = vsel %vm85_vm0, %v11806_v30, %v8036_v11  ;;  %v5689_v16 = vsel %vm85_vm0, %v11826_v43, %v8037_v10  ;;  %v5387_v11 = vld [vmem:[#allocation2 + $0x66] sm:$0xff]  ;;  %v5388_v39 = vld [vmem:[#allocation2 + $0x6e] sm:$0xff] }
 0x956   :  { %v5744_v52 = vpack.c.bf16 %v5669_v63, %v5668_v36  ;;  %v5740_v48 = vpack.c.bf16 %v5688_v60, %v5687_v29  ;;  %v11848_v36 = vld [vmem:[#allocation2 + $0x58] sm:$0xff]  ;;  %v7709_v63 = vld [vmem:[%s12270_s15 + $0xb0] sm:$0xff]  ;;  %v11855_v60 = vld [vmem:[#allocation2 + $0x60] sm:$0xff] }
 0x957   :  { %6231 = vmatpush.bf16.msrb.mxu2 %v7709_v63 }
 0x959   :  { %6132 = vmatmul.bf16.gmra.mxu0 %v5744_v52 }
 0x95a   :  { %6190 = vmatmul.bf16.gmra.mxu1 %v5740_v48  ;;  %v8045_v2 = vpop.permute.xlu2 %8044 }
 0x95b   :  { %v8047_v45 = vunpack.i.h.bf16 %v8045_v2  ;;  %v8046_v10 = vunpack.i.l.bf16 %v8045_v2  ;;  %6232 = vmatpush.bf16.msrb.mxu2 %v7708_v44 }
 0x95d   :  { %v5672_v8 = vsel %vm85_vm0, %v5387_v11, %v8046_v10  ;;  %v5673_v27 = vsel %vm85_vm0, %v5388_v39, %v8047_v45  ;;  %v5692_v48 = vsel %vm85_vm0, %v11855_v60, %v8046_v10  ;;  %v7705_v39 = vld [vmem:[%s12270_s15 + $0x90] sm:$0xff] }
 0x95e   :  { %v5754_v52 = vpack.c.bf16 %v5673_v27, %v5672_v8  ;;  %v7704_v27 = vld [vmem:[%s12270_s15 + $0x88] sm:$0xff] }
 0x962   :  { %v8040_v50 = vpop.permute.xlu1 %8039 }
 0x963   :  { %v8042_v15 = vunpack.i.h.bf16 %v8040_v50  ;;  %v8041_v28 = vunpack.i.l.bf16 %v8040_v50  ;;  %v7707_v50 = vld [vmem:[%s12270_s15 + $0xa0] sm:$0xff] }
 0x964   :  { %6233 = vmatpush.bf16.msrb.mxu2 %v7707_v50 }
 0x965   :  { %v5670_v32 = vsel %vm85_vm0, %v5385_v42, %v8041_v28  ;;  %v5671_v7 = vsel %vm85_vm0, %v5386_v25, %v8042_v15  ;;  %v5690_v55 = vsel %vm85_vm0, %v11828_v23, %v8041_v28  ;;  %v5691_v29 = vsel %vm85_vm0, %v11848_v36, %v8042_v15  ;;  %v7706_v15 = vld [vmem:[%s12270_s15 + $0x98] sm:$0xff] }
 0x966   :  { %v5749_v24 = vpack.c.bf16 %v5671_v7, %v5670_v32  ;;  %v5745_v26 = vpack.c.bf16 %v5690_v55, %v5689_v16  ;;  %v5750_v22 = vpack.c.bf16 %v5692_v48, %v5691_v29  ;;  %v5389_v55 = vld [vmem:[#allocation2 + $0x76] sm:$0xff] }
 0x968   :  { %6234 = vmatpush.bf16.msrb.mxu2 %v7706_v15 }
 0x969   :  { %6137 = vmatmul.bf16.gmra.mxu0 %v5749_v24  ;;  %v5390_v24 = vld [vmem:[#allocation2 + $0x7e] sm:$0xff] }
 0x96a   :  { %6195 = vmatmul.bf16.gmra.mxu1 %v5745_v26  ;;  %v4551_v13 = vpop.permute.xlu1 %4550 }
 0x96b   :  { %v4616_v34 = vsel %vm85_vm0, %v11839_v47, %v4551_v13 }
 0x96c   :  { %v4670_v6 = vpack.c.bf16 %v4616_v34, %v4616_v34  ;;  %6235 = vmatpush.bf16.msrb.mxu2 %v7705_v39  ;;  %v7721_v39 = vld [vmem:[%s12270_s15 + $0x110] sm:$0xff] }
 0x96e   :  { %5244 = vmatmul.bf16.gmra.mxu2 %v4670_v6  ;;  %v11882_v6 = vld [vmem:[#allocation2 + $0x70] sm:$0xff] }
 0x970   :  { %6236 = vmatpush.bf16.msrb.mxu2 %v7704_v27 }
 0x979   :  { %6142 = vmatmul.bf16.gmra.mxu0 %v5754_v52 }
 0x97a   :  { %6200 = vmatmul.bf16.gmra.mxu1 %v5750_v22  ;;  %v11859_v21 = vpop.permute.xlu2 %8054  ;;  %v7703_v22 = vld [vmem:[%s12270_s15 + $0x80] sm:$0xff] }
 0x97b   :  { %v8057_v44 = vunpack.i.h.bf16 %v11859_v21  ;;  %v8056_v50 = vunpack.i.l.bf16 %v11859_v21  ;;  %6237 = vmatpush.bf16.msrb.mxu2 %v7703_v22 }
 0x97d   :  { %v6113_v15 = vpop.f32.mrf.mxu0 }
 0x982   :  { %v8050_v28 = vpop.permute.xlu0 %8049  ;;  %v8070_v42 = vpop.permute.xlu2 %8069 }
 0x983   :  { %v8052_v25 = vunpack.i.h.bf16 %v8050_v28  ;;  %v8051_v32 = vunpack.i.l.bf16 %v8050_v28  ;;  %v8072_v7 = vunpack.i.h.bf16 %v8070_v42  ;;  %v8071_v16 = vunpack.i.l.bf16 %v8070_v42  ;;  %v5392_v42 = vld [vmem:[#allocation2 + $0x8e] sm:$0xff] }
 0x985   :  { %v11872_v26 = vsel %vm85_vm0, %v11765_v46, %v8072_v7  ;;  %v11876_v56 = vsel %vm85_vm0, %v11763_v58, %v8071_v16  ;;  %v5674_v13 = vsel %vm85_vm0, %v5389_v55, %v8051_v32  ;;  %v5675_v34 = vsel %vm85_vm0, %v5390_v24, %v8052_v25  ;;  %v5431_v55 = vld [vmem:[#allocation2 + $0x78] sm:$0xff]  ;;  %v5432_v24 = vld [vmem:[#allocation2 + $0x80] sm:$0xff] }
 0x986   :  { %v5727_v2 = vpack.c.bf16 %v11872_v26, %v11876_v56  ;;  %v5759_v10 = vpack.c.bf16 %v5675_v34, %v5674_v13  ;;  %v5693_v46 = vsel %vm85_vm0, %v11880_v59, %v8047_v45  ;;  %v5694_v11 = vsel %vm85_vm0, %v11882_v6, %v8051_v32 }
 0x987   :  { %v5755_v58 = vpack.c.bf16 %v5694_v11, %v5693_v46  ;;  %v5677_v16 = vsel %vm85_vm0, %v5392_v42, %v8057_v44  ;;  %v5695_v13 = vsel %vm85_vm0, %v5431_v55, %v8052_v25  ;;  %v11926_v25 = vpop.f32.mrf.mxu0  ;;  %v5434_v42 = vld [vmem:[#allocation2 + $0x90] sm:$0xff] }
 0x988   :  { %6301 = vmatmul.bf16.vlgmr.msrb.gmra.mxu3 %v5727_v2 }
 0x989   :  { %6147 = vmatmul.bf16.gmra.mxu0 %v5759_v10  ;;  %v5696_v10 = vsel %vm85_vm0, %v5432_v24, %v8056_v50 }
 0x98a   :  { %6205 = vmatmul.bf16.gmra.mxu1 %v5755_v58  ;;  %v8085_v8 = vpop.permute.xlu2 %8084  ;;  %v5760_v11 = vpack.c.bf16 %v5696_v10, %v5695_v13  ;;  %v7722_v58 = vld [vmem:[%s12270_s15 + $0x118] sm:$0xff] }
 0x98b   :  { %v8087_v63 = vunpack.i.h.bf16 %v8085_v8  ;;  %v8086_v29 = vunpack.i.l.bf16 %v8085_v8  ;;  %6360 = vmatpush.bf16.msrb.mxu0 %v7722_v58  ;;  %v11934_v8 = vld [vmem:[%s12271_s16] ss:$0 sm:$0xff] }
 0x98c   :  { %v7719_v58 = vld [vmem:[%s12270_s15 + $0x100] sm:$0xff] }
 0x98d   :  { %v11898_v45 = vsel %vm85_vm0, %v11826_v43, %v8086_v29  ;;  %v11902_v52 = vsel %vm85_vm0, %v11828_v23, %v8087_v63  ;;  %v5391_v43 = vld [vmem:[#allocation2 + $0x86] sm:$0xff] }
 0x98e   :  { %v5676_v23 = vsel %vm85_vm0, %v5391_v43, %v8056_v50  ;;  %v7720_v63 = vld [vmem:[%s12270_s15 + $0x108] sm:$0xff]  ;;  %v5433_v50 = vld [vmem:[#allocation2 + $0x88] sm:$0xff] }
 0x98f   :  { %v5764_v2 = vpack.c.bf16 %v5677_v16, %v5676_v23  ;;  %6361 = vmatpush.bf16.msrb.mxu0 %v7721_v39  ;;  %v5394_v43 = vld [vmem:[#allocation2 + $0x9e] sm:$0xff] }
 0x993   :  { %v8100_v28 = vpop.permute.xlu2 %8099  ;;  %6362 = vmatpush.bf16.msrb.mxu0 %v7720_v63 }
 0x994   :  { %v8102_v32 = vunpack.i.h.bf16 %v8100_v28  ;;  %v8101_v7 = vunpack.i.l.bf16 %v8100_v28  ;;  %v5393_v28 = vld [vmem:[#allocation2 + $0x96] sm:$0xff] }
 0x996   :  { %v11915_v34 = vsel %vm85_vm0, %v5431_v55, %v8101_v7  ;;  %v11918_v21 = vsel %vm85_vm0, %v5432_v24, %v8102_v32  ;;  %v5697_v32 = vsel %vm85_vm0, %v5433_v50, %v8057_v44  ;;  %v6114_v7 = vadd.f32 %v11934_v8, %v6113_v15 }
 0x997   :  { %6363 = vmatpush.bf16.msrb.mxu0 %v7719_v58 }
 0x999   :  { %6152 = vmatmul.bf16.gmra.mxu0 %v5764_v2 }
 0x99a   :  { %6210 = vmatmul.bf16.gmra.mxu1 %v5760_v11 }
 0x9a2   :  { %v8060_v27 = vpop.permute.xlu0 %8059 }
 0x9a3   :  { %v8062_v29 = vunpack.i.h.bf16 %v8060_v27  ;;  %v8061_v22 = vunpack.i.l.bf16 %v8060_v27 }
 0x9a5   :  { %v6118_v23 = vpop.f32.mrf.mxu0  ;;  %v5678_v16 = vsel %vm85_vm0, %v5393_v28, %v8061_v22  ;;  %v5679_v55 = vsel %vm85_vm0, %v5394_v43, %v8062_v29  ;;  %v5698_v24 = vsel %vm85_vm0, %v5434_v42, %v8061_v22 }
 0x9a6   :  { %v6176_v13 = vpop.f32.mrf.mxu1  ;;  %v5769_v2 = vpack.c.bf16 %v5679_v55, %v5678_v16  ;;  %v5765_v10 = vpack.c.bf16 %v5698_v24, %v5697_v32 }
 0x9a7   :  { %v11944_v11 = vadd.f32 %v6176_v13, %v6114_v7 }
 0x9a9   :  { %6157 = vmatmul.bf16.gmra.mxu0 %v5769_v2 }
 0x9aa   :  { %6215 = vmatmul.bf16.gmra.mxu1 %v5765_v10  ;;  %v8065_v44 = vpop.permute.xlu1 %8064  ;;  %v8075_v15 = vpop.permute.xlu0 %8074 }
 0x9ab   :  { %v8067_v39 = vunpack.i.h.bf16 %v8065_v44  ;;  %v8077_v27 = vunpack.i.h.bf16 %v8075_v15  ;;  %v8076_v28 = vunpack.i.l.bf16 %v8075_v15  ;;  %v8066_v24 = vunpack.i.l.bf16 %v8065_v44 }
 0x9ad   :  { %v5702_v22 = vsel %vm85_vm0, %v11748_v17, %v8067_v39  ;;  %v6120_v43 = vpop.f32.mrf.mxu0  ;;  %v5705_v63 = vsel %vm85_vm0, %v11780_v53, %v8076_v28  ;;  %v11955_v32 = vsel %vm85_vm0, %v11786_v40, %v8077_v27  ;;  %v5395_v17 = vld [vmem:[#allocation2 + $0xa6] sm:$0xff]  ;;  %v5435_v39 = vld [vmem:[#allocation2 + $0x98] sm:$0xff] }
 0x9ae   :  { %v5726_v7 = vpack.c.bf16 %v11876_v56, %v5702_v22  ;;  %v11958_v16 = vpop.f32.mrf.mxu1  ;;  %v5732_v55 = vpack.c.bf16 %v11955_v32, %v5705_v63  ;;  %v5680_v10 = vsel %vm85_vm0, %v5395_v17, %v8066_v24  ;;  %v11964_v53 = vld [vmem:[#allocation2 + $0xa0] sm:$0xff]  ;;  %v6119_v56 = vadd.f32 %v11934_v8, %v6118_v23 }
 0x9af   :  { %v5700_v40 = vsel %vm85_vm0, %v11964_v53, %v8066_v24  ;;  %v5774_v28 = vpack.c.bf16 %v5680_v10, %v5680_v10  ;;  %v5699_v22 = vsel %vm85_vm0, %v5435_v39, %v8062_v29  ;;  %v6121_v29 = vadd.f32 %v11934_v8, %v6120_v43 }
 0x9b0   :  { %6238 = vmatmul.bf16.vlgmr.msrb.gmra.mxu2 %v5726_v7  ;;  %6306 = vmatmul.bf16.gmra.mxu3 %v5732_v55  ;;  %v5770_v55 = vpack.c.bf16 %v5700_v40, %v5699_v22 }
 0x9b2   :  { %v8080_v13 = vpop.permute.xlu1 %8079  ;;  %v11961_v2 = vpop.permute.xlu0 %8089 }
 0x9b3   :  { %v8081_v58 = vunpack.i.l.bf16 %v8080_v13  ;;  %v8082_v27 = vunpack.i.h.bf16 %v8080_v13 }
 0x9b5   :  { %v5707_v24 = vsel %vm85_vm0, %v11804_v9, %v8081_v58  ;;  %v5708_v13 = vsel %vm85_vm0, %v11806_v30, %v8082_v27  ;;  %v5731_v58 = vpack.c.bf16 %v5705_v63, %v11872_v26  ;;  %v5464_v26 = vld [vmem:[#allocation2 + $0x22] sm:$0xff] }
 0x9b6   :  { %v6123_v15 = vpop.f32.mrf.mxu0 }
 0x9b7   :  { %v6181_v44 = vpop.f32.mrf.mxu1 }
 0x9b8   :  { %v11970_v7 = vadd.f32 %v6181_v44, %v6119_v56  ;;  %v5737_v44 = vpack.c.bf16 %v5708_v13, %v5707_v24 }
 0x9b9   :  { %6162 = vmatmul.bf16.gmra.mxu0 %v5774_v28  ;;  %v5463_v28 = vld [vmem:[#allocation2 + $0x1a] sm:$0xff] }
 0x9ba   :  { %6220 = vmatmul.bf16.gmra.mxu1 %v5770_v55  ;;  %v11972_v17 = vpop.permute.xlu1 %8094  ;;  %v8105_v46 = vpop.permute.xlu0 %8104 }
 0x9bb   :  { %v8097_v23 = vunpack.i.h.bf16 %v11972_v17  ;;  %v8107_v48 = vunpack.i.h.bf16 %v8105_v46  ;;  %v8106_v3 = vunpack.i.l.bf16 %v8105_v46 }
 0x9bd   :  { %v11982_v10 = vsel %vm85_vm0, %v11882_v6, %v8097_v23  ;;  %v11985_v40 = vsel %vm85_vm0, %v5433_v50, %v8106_v3  ;;  %v11988_v56 = vsel %vm85_vm0, %v5434_v42, %v8107_v48  ;;  %v6124_v42 = vadd.f32 %v11934_v8, %v6123_v15 }
 0x9be   :  { %v6125_v9 = vpop.f32.mrf.mxu0  ;;  %v5728_v23 = vpack.c.bf16 %v5464_v26, %v5463_v28  ;;  %v12617_v15 = vpack.c.bf16 %v11902_v52, %v11898_v45  ;;  %v5466_v26 = vld [vmem:[#allocation2 + $0x32] sm:$0xff] }
 0x9bf   :  { %v6183_v43 = vpop.f32.mrf.mxu1 }
 0x9c0   :  { %v11997_v27 = vadd.f32 %v6183_v43, %v6121_v29  ;;  %6243 = vmatmul.bf16.gmra.mxu2 %v5731_v58  ;;  %6311 = vmatmul.bf16.gmra.mxu3 %v5737_v44  ;;  %v5308_v58 = vpop.f32.mrf.mxu3  ;;  %v6126_v44 = vadd.f32 %v11934_v8, %v6125_v9  ;;  %v8091_v9 = vunpack.i.l.bf16 %v11961_v2 }
 0x9c2   :  { %v11999_v3 = vpop.permute.xlu1 %8109 }
 0x9c3   :  { %v8111_v48 = vunpack.i.l.bf16 %v11999_v3 }
 0x9c5   :  { %v12003_v50 = vsel %vm85_vm0, %v5435_v39, %v8111_v48  ;;  %v5736_v39 = vpack.c.bf16 %v5707_v24, %v11955_v32 }
 0x9c6   :  { %v6128_v63 = vpop.f32.mrf.mxu0 }
 0x9c7   :  { %v6186_v55 = vpop.f32.mrf.mxu1 }
 0x9c8   :  { %v12008_v29 = vadd.f32 %v6186_v55, %v6124_v42  ;;  %v5310_v22 = vpop.f32.mrf.mxu3  ;;  %v6129_v42 = vadd.f32 %v11934_v8, %v6128_v63  ;;  %v5465_v55 = vld [vmem:[#allocation2 + $0x2a] sm:$0xff] }
 0x9c9   :  { %7478 = vmatmul.msk.bf16.vlgmr.msrb.gmra.mxu0 %vm85_vm0, %v5728_v23  ;;  %v8092_v23 = vunpack.i.h.bf16 %v11961_v2  ;;  %v5733_v32 = vpack.c.bf16 %v5466_v26, %v5465_v55 }
 0x9cb   :  { %v5712_v22 = vsel %vm85_vm0, %v11855_v60, %v8092_v23  ;;  %v8096_v60 = vunpack.i.l.bf16 %v11972_v17 }
 0x9ce   :  { %v6130_v43 = vpop.f32.mrf.mxu0 }
 0x9cf   :  { %v6188_v48 = vpop.f32.mrf.mxu1  ;;  %v6131_v63 = vadd.f32 %v11934_v8, %v6130_v43 }
 0x9d0   :  { %v12013_v6 = vadd.f32 %v6188_v48, %v6126_v44  ;;  %6248 = vmatmul.bf16.gmra.mxu2 %v5736_v39  ;;  %6316 = vmatmul.bf16.gmra.mxu3 %v12617_v15  ;;  %v5711_v44 = vsel %vm85_vm0, %v11848_v36, %v8091_v9  ;;  %v5741_v48 = vpack.c.bf16 %v11898_v45, %v5708_v13  ;;  %v5467_v36 = vld [vmem:[#allocation2 + $0x3a] sm:$0xff] }
 0x9d1   :  { %v5747_v15 = vpack.c.bf16 %v5712_v22, %v5711_v44  ;;  %v5713_v45 = vsel %vm85_vm0, %v11880_v59, %v8096_v60  ;;  %v5746_v9 = vpack.c.bf16 %v5711_v44, %v11902_v52  ;;  %v12619_v60 = vld [vmem:[#allocation44_spill] sm:$0xff] }
 0x9d6   :  { %v6133_v28 = vpop.f32.mrf.mxu0 }
 0x9d7   :  { %v6191_v30 = vpop.f32.mrf.mxu1  ;;  %v6134_v26 = vadd.f32 %v11934_v8, %v6133_v28  ;;  %v5752_v28 = vpack.c.bf16 %v11982_v10, %v5713_v45 }
 0x9d8   :  { %v12021_v24 = vadd.f32 %v6191_v30, %v6129_v42  ;;  %v5468_v30 = vld [vmem:[#allocation2 + $0x42] sm:$0xff] }
 0x9d9   :  { %7479 = vmatmul.msk.bf16.gmra.mxu0 %vm85_vm0, %v5733_v32  ;;  %v5738_v43 = vpack.c.bf16 %v5468_v30, %v5467_v36  ;;  %v12618_v32 = vld [vmem:[#allocation36_spill] sm:$0xff]  ;;  %v5469_v36 = vld [vmem:[#allocation2 + $0x4a] sm:$0xff] }
 0x9de   :  { %v12029_v39 = vpop.f32.mrf.mxu0 }
 0x9df   :  { %v6193_v2 = vpop.f32.mrf.mxu1 }
 0x9e0   :  { %v12032_v46 = vadd.f32 %v6193_v2, %v6131_v63  ;;  %6253 = vmatmul.bf16.gmra.mxu2 %v5741_v48  ;;  %6321 = vmatmul.bf16.gmra.mxu3 %v5747_v15  ;;  %v5183_v63 = vadd.f32 %v11599_v37, %v12618_v32  ;;  %v5470_v2 = vld [vmem:[#allocation2 + $0x52] sm:$0xff]  ;;  %v5751_v37 = vpack.c.bf16 %v5713_v45, %v5712_v22 }
 0x9e1   :  { %v5743_v59 = vpack.c.bf16 %v5470_v2, %v5469_v36  ;;  %v5471_v2 = vld [vmem:[#allocation2 + $0x5a] sm:$0xff]  ;;  %v12622_v36 = vpack.c.bf16 %v11988_v56, %v11985_v40 }
 0x9e6   :  { %v12035_v42 = vpop.f32.mrf.mxu0 }
 0x9e7   :  { %v6196_v55 = vpop.f32.mrf.mxu1 }
 0x9e8   :  { %v12038_v23 = vadd.f32 %v6196_v55, %v6134_v26 }
 0x9e9   :  { %7480 = vmatmul.msk.bf16.gmra.mxu0 %vm85_vm0, %v5738_v43  ;;  %v5462_v43 = vld [vmem:[#allocation2 + $0xb9] sm:$0xff] }
 0x9ee   :  { %v12043_v13 = vpop.f32.mrf.mxu0 }
 0x9f0   :  { %6258 = vmatmul.bf16.gmra.mxu2 %v5746_v9  ;;  %6326 = vmatmul.bf16.gmra.mxu3 %v5752_v28 }
 0x9f1   :  { %v5245_v17 = vpop.f32.mrf.mxu2 }
 0x9f2   :  { %v5246_v48 = vadd.f32 %v5245_v17, %v5183_v63 }
 0x9f4   :  { %v5309_v15 = vadd.f32 %v5308_v58, %v5246_v48  ;;  %v12620_v58 = vpack.c.bf16 %v11918_v21, %v11915_v34  ;;  %v5472_v48 = vld [vmem:[#allocation2 + $0x62] sm:$0xff] }
 0x9f5   :  { %v5748_v22 = vpack.c.bf16 %v5472_v48, %v5471_v2  ;;  %v12627_v2 = vpack.c.bf16 %v12003_v50, %v11988_v56 }
 0x9f6   :  { %v5332_v30 = vmax.f32 %v5309_v15, 0.0  ;;  %v12049_v26 = vpop.f32.mrf.mxu0 }
 0x9f8   :  { %v5353_v55 = vmul.f32 %v5332_v30, %v12619_v60  ;;  %v12621_v30 = vpack.c.bf16 %v11915_v34, %v11982_v10  ;;  %v12624_v10 = vpack.c.bf16 %v11985_v40, %v11918_v21  ;;  %v5478_v40 = vld [vmem:[#allocation2 + $0x92] sm:$0xff] }
 0x9f9   :  { %7481 = vmatmul.msk.bf16.gmra.mxu0 %vm85_vm0, %v5743_v59  ;;  %v5247_v52 = vpop.f32.mrf.mxu2  ;;  %v5474_v59 = vld [vmem:[#allocation2 + $0x72] sm:$0xff] }
 0x9fa   :  { %5374 = vst.msk [vmem:[#allocation2 + $0xb0] sm:$0xff] %vm85_vm0, %v5353_v55  ;;  %v5473_v52 = vld [vmem:[#allocation2 + $0x6a] sm:$0xff] }
 0x9fe   :  { %v12054_v44 = vpop.f32.mrf.mxu0 }
 0xa00   :  { %6263 = vmatmul.bf16.gmra.mxu2 %v5751_v37  ;;  %6331 = vmatmul.bf16.gmra.mxu3 %v12620_v58  ;;  %v8112_v37 = vunpack.i.h.bf16 %v11999_v3 }
 0xa01   :  { %v5438_v9 = vld [vmem:[#allocation2 + $0xaf] sm:$0xff] }
 0xa02   :  { %v5459_v28 = vld [vmem:[#allocation2 + $0xa9] sm:$0xff]  ;;  %v5460_v32 = vld [vmem:[#allocation2 + $0xb1] sm:$0xff]  ;;  %v8118_v63 = vpack.i.bf16 %v5438_v9, %v5462_v43  ;;  %v5753_v43 = vpack.c.bf16 %v5474_v59, %v5473_v52  ;;  %v12078_v58 = vsel %vm85_vm0, %v11964_v53, %v8112_v37  ;;  %v6116_v37 = vadd.f32 %v11934_v8, %v11926_v25 }
 0xa03   :  { %v8113_v17 = vpack.i.bf16 %v5460_v32, %v5459_v28  ;;  %v5767_v34 = vpack.c.bf16 %v12078_v58, %v12003_v50  ;;  %v5476_v28 = vld [vmem:[#allocation2 + $0x82] sm:$0xff] }
 0xa04   :  { %8119 = vrot.lane.b32.xlu0 %v8118_v63, %s8161_s5  ;;  %v5475_v63 = vld [vmem:[#allocation2 + $0x7a] sm:$0xff] }
 0xa05   :  { %8114 = vrot.lane.b32.xlu2 %v8113_v17, %s8161_s5  ;;  %v5758_v17 = vpack.c.bf16 %v5476_v28, %v5475_v63 }
 0xa06   :  { %v12061_v15 = vpop.f32.mrf.mxu0 }
 0xa07   :  { %v6149_v60 = vadd.f32 %v11934_v8, %v12061_v15 }
 0xa09   :  { %7482 = vmatmul.msk.bf16.gmra.mxu0 %vm85_vm0, %v5748_v22 }
 0xa0b   :  { %v6302_v32 = vpop.f32.mrf.mxu3 }
 0xa0e   :  { %v12064_v45 = vpop.f32.mrf.mxu0 }
 0xa10   :  { %6268 = vmatmul.bf16.gmra.mxu2 %v12621_v30  ;;  %6336 = vmatmul.bf16.gmra.mxu3 %v12622_v36  ;;  %v5477_v36 = vld [vmem:[#allocation2 + $0x8a] sm:$0xff] }
 0xa11   :  { %v5763_v52 = vpack.c.bf16 %v5478_v40, %v5477_v36 }
 0xa13   :  { %v6304_v48 = vpop.f32.mrf.mxu3 }
 0xa16   :  { %v12072_v55 = vpop.f32.mrf.mxu0 }
 0xa19   :  { %7483 = vmatmul.msk.bf16.gmra.mxu0 %vm85_vm0, %v5753_v43 }
 0xa1e   :  { %v12080_v9 = vpop.f32.mrf.mxu0 }
 0xa1f   :  { %12623 = vst [vmem:[#allocation38_spill] sm:$0xff] %v12080_v9  ;;  %v6146_v9 = vadd.f32 %v11934_v8, %v12054_v44  ;;  %v6139_v44 = vadd.f32 %v11934_v8, %v12035_v42 }
 0xa20   :  { %6273 = vmatmul.bf16.gmra.mxu2 %v12624_v10  ;;  %6341 = vmatmul.bf16.gmra.mxu3 %v5767_v34  ;;  %v6179_v34 = vadd.f32 %v11958_v16, %v6116_v37 }
 0xa26   :  { %v12087_v3 = vpop.f32.mrf.mxu0 }
 0xa27   :  { %12625 = vst [vmem:[#allocation12_spill] sm:$0xff] %v12087_v3 }
 0xa29   :  { %7484 = vmatmul.msk.bf16.gmra.mxu0 %vm85_vm0, %v5758_v17 }
 0xa2e   :  { %v12090_v53 = vpop.f32.mrf.mxu0 }
 0xa2f   :  { %12626 = vst [vmem:[#allocation41_spill] sm:$0xff] %v12090_v53 }
 0xa30   :  { %6278 = vmatmul.bf16.gmra.mxu2 %v12627_v2  ;;  %v5480_v2 = vld [vmem:[#allocation2 + $0xa2] sm:$0xff] }
 0xa33   :  { %v6239_v22 = vpop.f32.mrf.mxu2  ;;  %v6307_v43 = vpop.f32.mrf.mxu3 }
 0xa34   :  { %v6240_v21 = vadd.f32 %v6239_v22, %v11944_v11 }
 0xa36   :  { %v12096_v30 = vpop.f32.mrf.mxu0  ;;  %v6303_v59 = vadd.f32 %v6302_v32, %v6240_v21  ;;  %v5479_v32 = vld [vmem:[#allocation2 + $0x9a] sm:$0xff] }
 0xa37   :  { %12628 = vst [vmem:[#allocation8_spill] sm:$0xff] %v12096_v30  ;;  %v5768_v25 = vpack.c.bf16 %v5480_v2, %v5479_v32  ;;  %v6151_v30 = vadd.f32 %v11934_v8, %v12064_v45 }
 0xa39   :  { %7485 = vmatmul.msk.bf16.gmra.mxu0 %vm85_vm0, %v5763_v52 }
 0xa3b   :  { %v6241_v10 = vpop.f32.mrf.mxu2  ;;  %v6309_v63 = vpop.f32.mrf.mxu3 }
 0xa3c   :  { %v6242_v56 = vadd.f32 %v6241_v10, %v6179_v34 }
 0xa3e   :  { %v6165_v50 = vpop.f32.mrf.mxu0  ;;  %v6305_v28 = vadd.f32 %v6304_v48, %v6242_v56  ;;  %v5481_v56 = vld [vmem:[#allocation2 + $0xaa] sm:$0xff] }
 0xa3f   :  { %v5482_v50 = vld [vmem:[#allocation2 + $0xb2] sm:$0xff] }
 0xa40   :  { %v5773_v2 = vpack.c.bf16 %v5482_v50, %v5481_v56 }
 0xa43   :  { %v6244_v11 = vpop.f32.mrf.mxu2  ;;  %v6312_v52 = vpop.f32.mrf.mxu3 }
 0xa44   :  { %v6245_v17 = vadd.f32 %v6244_v11, %v11970_v7 }
 0xa46   :  { %v6365_v22 = vpop.f32.mrf.mxu0  ;;  %v6308_v21 = vadd.f32 %v6307_v43, %v6245_v17 }
 0xa47   :  { %v12103_v40 = vadd.f32 %v6365_v22, %v6303_v59 }
 0xa49   :  { %12629 = vst [vmem:[#allocation43_spill] sm:$0xff] %v12103_v40  ;;  %7486 = vmatmul.msk.bf16.gmra.mxu0 %vm85_vm0, %v5768_v25  ;;  %v6144_v40 = vadd.f32 %v11934_v8, %v12049_v26  ;;  %v6136_v26 = vadd.f32 %v11934_v8, %v12029_v39 }
 0xa4b   :  { %v6246_v36 = vpop.f32.mrf.mxu2  ;;  %v6314_v11 = vpop.f32.mrf.mxu3 }
 0xa4c   :  { %v6247_v16 = vadd.f32 %v6246_v36, %v11997_v27 }
 0xa4e   :  { %v6367_v37 = vpop.f32.mrf.mxu0  ;;  %v6310_v34 = vadd.f32 %v6309_v63, %v6247_v16 }
 0xa4f   :  { %v12107_v48 = vadd.f32 %v6367_v37, %v6305_v28  ;;  %v5437_v37 = vld [vmem:[#allocation2 + $0xa8] sm:$0xff] }
 0xa51   :  { %12630 = vst [vmem:[#allocation45_spill] sm:$0xff] %v12107_v48 }
 0xa53   :  { %v6249_v10 = vpop.f32.mrf.mxu2  ;;  %v6317_v16 = vpop.f32.mrf.mxu3 }
 0xa54   :  { %v6250_v7 = vadd.f32 %v6249_v10, %v12008_v29  ;;  %v5439_v10 = vld [vmem:[#allocation2 + $0xb0] sm:$0xff] }
 0xa56   :  { %v6370_v43 = vpop.f32.mrf.mxu0  ;;  %v6313_v59 = vadd.f32 %v6312_v52, %v6250_v7 }
 0xa57   :  { %v12110_v17 = vadd.f32 %v6370_v43, %v6308_v21 }
 0xa59   :  { %12631 = vst [vmem:[#allocation19_spill] sm:$0xff] %v12110_v17  ;;  %7487 = vmatmul.msk.bf16.gmra.mxu0 %vm85_vm0, %v5773_v2  ;;  %v6141_v17 = vadd.f32 %v11934_v8, %v12043_v13 }
 0xa5b   :  { %v6251_v22 = vpop.f32.mrf.mxu2  ;;  %v6319_v2 = vpop.f32.mrf.mxu3 }
 0xa5c   :  { %v6252_v27 = vadd.f32 %v6251_v22, %v12013_v6 }
 0xa5e   :  { %v6372_v32 = vpop.f32.mrf.mxu0  ;;  %v6315_v28 = vadd.f32 %v6314_v11, %v6252_v27 }
 0xa5f   :  { %v8115_v63 = vpop.permute.xlu2 %8114  ;;  %v12114_v25 = vadd.f32 %v6372_v32, %v6310_v34 }
 0xa60   :  { %v8117_v36 = vunpack.i.h.bf16 %v8115_v63  ;;  %v8116_v29 = vunpack.i.l.bf16 %v8115_v63 }
 0xa61   :  { %12632 = vst [vmem:[#allocation31_spill] sm:$0xff] %v12114_v25 }
 0xa62   :  { %v5721_v52 = vsel %vm85_vm0, %v5437_v37, %v8116_v29  ;;  %v5722_v21 = vsel %vm85_vm0, %v5439_v10, %v8117_v36 }
 0xa63   :  { %v5771_v7 = vpack.c.bf16 %v5721_v52, %v12078_v58  ;;  %v5772_v56 = vpack.c.bf16 %v5722_v21, %v5721_v52  ;;  %v6254_v50 = vpop.f32.mrf.mxu2  ;;  %v5776_v36 = vpack.c.bf16 %v5722_v21, %v5722_v21 }
 0xa64   :  { %v6255_v6 = vadd.f32 %v6254_v50, %v12021_v24  ;;  %v6322_v24 = vpop.f32.mrf.mxu3 }
 0xa65   :  { %6283 = vmatmul.bf16.gmra.mxu2 %v5771_v7  ;;  %6346 = vmatmul.bf16.gmra.mxu3 %v5772_v56 }
 0xa66   :  { %v6375_v11 = vpop.f32.mrf.mxu0  ;;  %v6318_v34 = vadd.f32 %v6317_v16, %v6255_v6  ;;  %v12128_v16 = vpop.f32.mrf.mxu1 }
 0xa67   :  { %v12120_v43 = vadd.f32 %v6375_v11, %v6313_v59 }
 0xa69   :  { %12633 = vst [vmem:[#allocation50_spill] sm:$0xff] %v12120_v43  ;;  %7488 = vmatmul.msk.bf16.gmra.mxu0 %vm85_vm0, %v11782_v54 }
 0xa6b   :  { %v6256_v22 = vpop.f32.mrf.mxu2 }
 0xa6c   :  { %v6257_v27 = vadd.f32 %v6256_v22, %v12032_v46 }
 0xa6e   :  { %v6377_v32 = vpop.f32.mrf.mxu0  ;;  %v6320_v63 = vadd.f32 %v6319_v2, %v6257_v27  ;;  %v6201_v22 = vpop.f32.mrf.mxu1 }
 0xa6f   :  { %v12125_v58 = vadd.f32 %v6377_v32, %v6315_v28 }
 0xa73   :  { %v6259_v29 = vpop.f32.mrf.mxu2 }
 0xa74   :  { %v6260_v10 = vadd.f32 %v6259_v29, %v12038_v23  ;;  %v12137_v23 = vpop.f32.mrf.mxu3 }
 0xa75   :  { %6288 = vmatmul.bf16.gmra.mxu2 %v5776_v36 }
 0xa76   :  { %v6380_v59 = vpop.f32.mrf.mxu0  ;;  %v8120_v52 = vpop.permute.xlu0 %8119  ;;  %v6323_v7 = vadd.f32 %v6322_v24, %v6260_v10 }
 0xa77   :  { %v12130_v54 = vadd.f32 %v6380_v59, %v6318_v34  ;;  %v8122_v56 = vunpack.i.h.bf16 %v8120_v52  ;;  %v8121_v50 = vunpack.i.l.bf16 %v8120_v52  ;;  %v6203_v29 = vpop.f32.mrf.mxu1 }
 0xa78   :  { %v6204_v31 = vadd.f32 %v6203_v29, %v6141_v17 }
 0xa79   :  { %v5701_v46 = vsel %vm85_vm0, %v5437_v37, %v8122_v56  ;;  %v5723_v28 = vsel %vm85_vm0, %v11839_v47, %v8121_v50 }
 0xa7a   :  { %v5775_v21 = vpack.c.bf16 %v5701_v46, %v5701_v46  ;;  %v5777_v6 = vpack.c.bf16 %v5723_v28, %v5723_v28 }
 0xa7b   :  { %v12135_v11 = vpop.f32.mrf.mxu2 }
 0xa7c   :  { %6225 = vmatmul.bf16.gmra.mxu1 %v5775_v21  ;;  %6351 = vmatmul.bf16.gmra.mxu3 %v5777_v6  ;;  %v6327_v37 = vpop.f32.mrf.mxu3 }
 0xa7e   :  { %v6382_v2 = vpop.f32.mrf.mxu0 }
 0xa7f   :  { %v12139_v27 = vadd.f32 %v6382_v2, %v6320_v63  ;;  %v6206_v59 = vpop.f32.mrf.mxu1 }
 0xa80   :  { %v6207_v18 = vadd.f32 %v6206_v59, %v6144_v40 }
 0xa83   :  { %v6264_v34 = vpop.f32.mrf.mxu2 }
 0xa84   :  { %v6329_v10 = vpop.f32.mrf.mxu3 }
 0xa86   :  { %v6385_v32 = vpop.f32.mrf.mxu0 }
 0xa87   :  { %v12141_v36 = vadd.f32 %v6385_v32, %v6323_v7  ;;  %v6208_v46 = vpop.f32.mrf.mxu1 }
 0xa88   :  { %v6209_v51 = vadd.f32 %v6208_v46, %v6146_v9 }
 0xa8b   :  { %v6266_v24 = vpop.f32.mrf.mxu2 }
 0xa8c   :  { %v6332_v50 = vpop.f32.mrf.mxu3  ;;  %v6267_v9 = vadd.f32 %v6266_v24, %v6204_v31 }
 0xa8e   :  { %v12143_v47 = vpop.f32.mrf.mxu0  ;;  %v6330_v39 = vadd.f32 %v6329_v10, %v6267_v9  ;;  %v12635_v10 = vld [vmem:[#allocation47_spill] sm:$0xff]  ;;  %v12643_v9 = vld [vmem:[#allocation50_spill] sm:$0xff] }
 0xa8f   :  { %v6211_v2 = vpop.f32.mrf.mxu1 }
 0xa90   :  { %v6212_v3 = vadd.f32 %v6211_v2, %v6149_v60 }
 0xa93   :  { %v6269_v52 = vpop.f32.mrf.mxu2 }
 0xa94   :  { %v6334_v6 = vpop.f32.mrf.mxu3  ;;  %v6270_v60 = vadd.f32 %v6269_v52, %v6207_v18 }
 0xa96   :  { %v6390_v56 = vpop.f32.mrf.mxu0  ;;  %v6333_v29 = vadd.f32 %v6332_v50, %v6270_v60 }
 0xa97   :  { %v6213_v32 = vpop.f32.mrf.mxu1 }
 0xa98   :  { %v6214_v48 = vadd.f32 %v6213_v32, %v6151_v30 }
 0xa9b   :  { %v6271_v21 = vpop.f32.mrf.mxu2 }
 0xa9c   :  { %v6337_v7 = vpop.f32.mrf.mxu3  ;;  %v6272_v15 = vadd.f32 %v6271_v21, %v6209_v51 }
 0xa9e   :  { %v6392_v28 = vpop.f32.mrf.mxu0  ;;  %v6335_v13 = vadd.f32 %v6334_v6, %v6272_v15 }
 0xa9f   :  { %v6216_v45 = vpop.f32.mrf.mxu1 }
 0xaa3   :  { %v6274_v5 = vpop.f32.mrf.mxu2 }
 0xaa4   :  { %v6275_v19 = vadd.f32 %v6274_v5, %v6212_v3  ;;  %v6339_v43 = vpop.f32.mrf.mxu3  ;;  %v6154_v5 = vadd.f32 %v11934_v8, %v12072_v55  ;;  %v6202_v3 = vadd.f32 %v6201_v22, %v6139_v44 }
 0xaa6   :  { %v6395_v63 = vpop.f32.mrf.mxu0  ;;  %v6338_v2 = vadd.f32 %v6337_v7, %v6275_v19  ;;  %v6217_v40 = vadd.f32 %v6216_v45, %v6154_v5  ;;  %v6265_v42 = vadd.f32 %v6264_v34, %v6202_v3  ;;  %v12638_v7 = vld [vmem:[#allocation23_spill] sm:$0xff]  ;;  %v6426_v45 = vmul.f32 %v12139_v27, %v9277_v1  ;;  %v12644_v1 = vld [vmem:[#allocation18_spill] sm:$0xff] }
 0xaa7   :  { %v6396_v52 = vadd.f32 %v6395_v63, %v6333_v29  ;;  %v6423_v3 = vmul.f32 %v12643_v9, %v12442_v35  ;;  %v12652_v29 = vld [vmem:[#allocation45_spill] sm:$0xff]  ;;  %v7723_v9 = vld [vmem:[%s12272_s17] sm:$0xff] }
 0xaa9   :  { %v6431_v50 = vmul.f32 %v6396_v52, %v12531_v38  ;;  %v12655_v52 = vld [vmem:[#allocation43_spill] sm:$0xff] }
 0xaab   :  { %v6276_v12 = vpop.f32.mrf.mxu2 }
 0xaac   :  { %v6277_v25 = vadd.f32 %v6276_v12, %v6214_v48  ;;  %v6199_v12 = vadd.f32 %v12128_v16, %v6136_v26  ;;  %v12634_v16 = vld [vmem:[#allocation25_spill] sm:$0xff]  ;;  %v6342_v24 = vpop.f32.mrf.mxu3 }
 0xaae   :  { %v6397_v0 = vpop.f32.mrf.mxu0  ;;  %v6340_v51 = vadd.f32 %v6339_v43, %v6277_v25  ;;  %v6262_v59 = vadd.f32 %v12135_v11, %v6199_v12  ;;  %v6393_v25 = vadd.f32 %v6392_v28, %v6330_v39  ;;  %v12654_v39 = vld [vmem:[#allocation10_spill] sm:$0xff] }
 0xaaf   :  { %v6398_v18 = vadd.f32 %v6397_v0, %v6335_v13 }
 0xab0   :  { %v6325_v34 = vadd.f32 %v12137_v23, %v6262_v59  ;;  %v6218_v59 = vpop.f32.mrf.mxu1 }
 0xab1   :  { %v6432_v43 = vmul.f32 %v6398_v18, %v12600_v14  ;;  %v12636_v14 = vld [vmem:[#allocation27_spill] sm:$0xff]  ;;  %v12653_v18 = vld [vmem:[#allocation56_spill] sm:$0xff] }
 0xab3   :  { %v6279_v48 = vpop.f32.mrf.mxu2  ;;  %v6453_v28 = vadd.f32 %v6432_v43, %v12636_v14  ;;  %v12657_v43 = vld [vmem:[#allocation55_spill] sm:$0xff] }
 0xab4   :  { %v6280_v46 = vadd.f32 %v6279_v48, %v6217_v40  ;;  %v12648_v40 = vld [vmem:[#allocation11_spill] sm:$0xff] }
 0xab5   :  { %v12649_v48 = vld [vmem:[#allocation19_spill] sm:$0xff] }
 0xab6   :  { %v6400_v53 = vpop.f32.mrf.mxu0  ;;  %v6343_v11 = vadd.f32 %v6342_v24, %v6280_v46  ;;  %v6419_v46 = vmul.f32 %v12655_v52, %v12654_v39  ;;  %v6344_v24 = vpop.f32.mrf.mxu3  ;;  %v12667_v39 = vld [vmem:[#allocation32_spill] sm:$0xff] }
 0xab7   :  { %v6401_v30 = vadd.f32 %v6400_v53, %v6338_v2  ;;  %v6328_v53 = vadd.f32 %v6327_v37, %v6265_v42  ;;  %v12641_v2 = vld [vmem:[#allocation21_spill] sm:$0xff]  ;;  %v12651_v42 = vld [vmem:[#allocation14_spill] sm:$0xff] }
 0xab8   :  { %v6420_v35 = vmul.f32 %v12652_v29, %v12651_v42  ;;  %v12664_v42 = vld [vmem:[#allocation42_spill] sm:$0xff] }
 0xab9   :  { %v6433_v31 = vmul.f32 %v6401_v30, %v12604_v49  ;;  %v6391_v0 = vadd.f32 %v6390_v56, %v6328_v53  ;;  %v6388_v49 = vadd.f32 %v12143_v47, %v6325_v34  ;;  %v12637_v56 = vld [vmem:[#allocation46_spill] sm:$0xff]  ;;  %v6427_v47 = vmul.f32 %v12141_v36, %v12517_v61  ;;  %v12642_v36 = vld [vmem:[#allocation20_spill] sm:$0xff]  ;;  %v12645_v30 = vld [vmem:[#allocation15_spill] sm:$0xff] }
 0xaba   :  { %v6452_v63 = vadd.f32 %v6431_v50, %v12637_v56  ;;  %v6424_v61 = vmul.f32 %v12125_v58, %v12566_v4  ;;  %v6447_v5 = vadd.f32 %v6426_v45, %v12642_v36  ;;  %v6421_v4 = vmul.f32 %v12649_v48, %v12648_v40  ;;  %v12650_v58 = vld [vmem:[#allocation16_spill] sm:$0xff]  ;;  %v6221_v50 = vpop.f32.mrf.mxu1 }
 0xabb   :  { %v6454_v21 = vadd.f32 %v6433_v31, %v12635_v10  ;;  %v6429_v23 = vmul.f32 %v6391_v0, %v12526_v20  ;;  %v6428_v38 = vmul.f32 %v6388_v49, %v12522_v62  ;;  %v12640_v20 = vld [vmem:[#allocation22_spill] sm:$0xff]  ;;  %v6425_v62 = vmul.f32 %v12130_v54, %v9272_v57  ;;  %v12647_v54 = vld [vmem:[#allocation17_spill] sm:$0xff] }
 0xabc   :  { %v6448_v26 = vadd.f32 %v6427_v47, %v12641_v2  ;;  %v6445_v12 = vadd.f32 %v6424_v61, %v12647_v54  ;;  %v12656_v31 = vld [vmem:[#allocation54_spill] sm:$0xff] }
 0xabd   :  { %v6449_v60 = vadd.f32 %v6428_v38, %v12640_v20  ;;  %v6446_v27 = vadd.f32 %v6425_v62, %v12644_v1  ;;  %v7726_v49 = vld [vmem:[%s12272_s17 + $0x18] sm:$0xff] }
 0xabe   :  { %v6402_v17 = vpop.f32.mrf.mxu0  ;;  %6554 = vmatpush.bf16.msra.mxu3 %v7726_v49 }
 0xabf   :  { %v6403_v19 = vadd.f32 %v6402_v17, %v6340_v51  ;;  %v12646_v51 = vld [vmem:[#allocation31_spill] sm:$0xff]  ;;  %v6444_v17 = vadd.f32 %v6423_v3, %v12650_v58 }
 0xac0   :  { %v6422_v57 = vmul.f32 %v12646_v51, %v12645_v30 }
 0xac1   :  { %v6434_v55 = vmul.f32 %v6403_v19, %v12606_v33  ;;  %v6430_v33 = vmul.f32 %v6393_v25, %v12530_v41  ;;  %v12639_v41 = vld [vmem:[#allocation24_spill] sm:$0xff]  ;;  %v6281_v25 = vpop.f32.mrf.mxu2 }
 0xac2   :  { %v6450_v15 = vadd.f32 %v6429_v23, %v12639_v41  ;;  %v6443_v19 = vadd.f32 %v6422_v57, %v12653_v18  ;;  %v6223_v14 = vpop.f32.mrf.mxu1  ;;  %v12660_v23 = vld [vmem:[#allocation41_spill] sm:$0xff] }
 0xac3   :  { %v6455_v22 = vadd.f32 %v6434_v55, %v12634_v16  ;;  %v6451_v32 = vadd.f32 %v6430_v33, %v12638_v7  ;;  %v6442_v55 = vadd.f32 %v6421_v4, %v12656_v31  ;;  %v6441_v16 = vadd.f32 %v6420_v35, %v12657_v43  ;;  %v6461_v33 = vld [vmem:[%s12659_s13] sm:$0xf]  ;;  %v12670_v43 = vld [vmem:[#allocation37_spill] sm:$0xff] }
 0xac4   :  { %6463 = vst [vmem:[#allocation1] ss:$4 sm:$0xff] %v6461_v33  ;;  %v6161_v56 = vadd.f32 %v11934_v8, %v12660_v23  ;;  %v12665_v35 = vld [vmem:[#allocation44_spill] sm:$0xff]  ;;  %v12668_v31 = vld [vmem:[#allocation39_spill] sm:$0xff] }
 0xac5   :  { %6470 = vmatpush.msra.mxu1 %v6455_v22  ;;  %v12658_v22 = vld [vmem:[#allocation52_spill] sm:$0xff] }
 0xac6   :  { %v6405_v6 = vpop.f32.mrf.mxu0  ;;  %v6440_v34 = vadd.f32 %v6419_v46, %v12658_v22  ;;  %v6224_v7 = vadd.f32 %v6223_v14, %v6161_v56  ;;  %v12672_v22 = vld [vmem:[#allocation29_spill] sm:$0xff] }
 0xac7   :  { %v12172_v37 = vadd.f32 %v6405_v6, %v6343_v11  ;;  %6471 = vmatpush.msra.mxu1 %v6454_v21 }
 0xac9   :  { %6472 = vmatpush.msra.mxu1 %v6453_v28  ;;  %v7725_v28 = vld [vmem:[%s12272_s17 + $0x10] sm:$0xff] }
 0xaca   :  { %6555 = vmatpush.bf16.msra.mxu3 %v7725_v28 }
 0xacb   :  { %6473 = vmatpush.msra.mxu1 %v6452_v63  ;;  %v12661_v63 = vld [vmem:[#allocation12_spill] sm:$0xff] }
 0xacc   :  { %v6159_v38 = vadd.f32 %v11934_v8, %v12661_v63  ;;  %v6464_v62 = vld.sshfl [vmem:[#allocation1] sm:$0xff pattern:$0x73625140] }
 0xacd   :  { %6474 = vmatpush.msra.mxu1 %v6451_v32  ;;  %v7724_v32 = vld [vmem:[%s12272_s17 + $0x8] sm:$0xff] }
 0xace   :  { %v12182_v44 = vpop.f32.mrf.mxu0  ;;  %v6222_v20 = vadd.f32 %v6221_v50, %v6159_v38  ;;  %6556 = vmatpush.bf16.msra.mxu3 %v7724_v32  ;;  %v6465_v50 = vld.sshfl [vmem:[#allocation1 + $0x8] sm:$0xff pattern:$0x73625140] }
 0xacf   :  { %6475 = vmatpush.msra.mxu1 %v6450_v15  ;;  %v12662_v15 = vld [vmem:[#allocation8_spill] sm:$0xff] }
 0xad0   :  { %v6164_v45 = vadd.f32 %v11934_v8, %v12662_v15 }
 0xad1   :  { %6476 = vmatpush.msra.mxu1 %v6449_v60 }
 0xad2   :  { %6557 = vmatpush.bf16.msra.mxu3 %v7723_v9 }
 0xad3   :  { %6477 = vmatpush.msra.mxu1 %v6448_v26  ;;  %v12663_v26 = vld [vmem:[#allocation38_spill] sm:$0xff] }
 0xad4   :  { %v6156_v61 = vadd.f32 %v11934_v8, %v12663_v26 }
 0xad5   :  { %6478 = vmatpush.msra.mxu1 %v6447_v5 }
 0xad6   :  { %v12196_v13 = vpop.f32.mrf.mxu0  ;;  %v6219_v3 = vadd.f32 %v6218_v59, %v6156_v61 }
 0xad7   :  { %6479 = vmatpush.msra.mxu1 %v6446_v27 }
 0xad8   :  { %v6282_v27 = vadd.f32 %v6281_v25, %v6219_v3 }
 0xad9   :  { %6480 = vmatpush.msra.mxu1 %v6445_v12 }
 0xada   :  { %v6345_v4 = vadd.f32 %v6344_v24, %v6282_v27  ;;  %v12673_v24 = vld [vmem:[#allocation51_spill] sm:$0xff] }
 0xadb   :  { %6481 = vmatpush.msra.mxu1 %v6444_v17 }
 0xadc   :  { %v6408_v17 = vadd.f32 %v12182_v44, %v6345_v4 }
 0xadd   :  { %6482 = vmatpush.msra.mxu1 %v6443_v19  ;;  %v12666_v19 = vld [vmem:[#allocation40_spill] sm:$0xff] }
 0xade   :  { %v6412_v53 = vpop.f32.mrf.mxu0 }
 0xadf   :  { %6483 = vmatpush.msra.mxu1 %v6442_v55  ;;  %v6436_v55 = vmul.f32 %v6408_v17, %v12668_v31 }
 0xae1   :  { %6484 = vmatpush.msra.mxu1 %v6441_v16  ;;  %v12671_v16 = vld [vmem:[#allocation26_spill] sm:$0xff] }
 0xae3   :  { %6485 = vmatpush.msra.mxu1 %v6440_v34  ;;  %v6457_v34 = vadd.f32 %v6436_v55, %v12672_v22 }
 0xae4   :  { %6486 = vmatmul.f32.vlgmr.msra.gmra.mxu1 %v6464_v62 }
 0xae6   :  { %v6415_v0 = vpop.f32.mrf.mxu0 }
 0xae8   :  { %v6284_v11 = vpop.f32.mrf.mxu2  ;;  %v6347_v10 = vpop.f32.mrf.mxu3 }
 0xae9   :  { %v6285_v36 = vadd.f32 %v6284_v11, %v6222_v20 }
 0xaeb   :  { %v6348_v30 = vadd.f32 %v6347_v10, %v6285_v36 }
 0xaed   :  { %v6411_v8 = vadd.f32 %v12196_v13, %v6348_v30  ;;  %v6435_v13 = vmul.f32 %v12172_v37, %v12670_v43  ;;  %v8128_v37 = vld [vmem:[%s12273_s18] ss:$0 sm:$0xff] }
 0xaee   :  { %v6417_v21 = vpop.f32.mrf.mxu0 }
 0xaef   :  { %v6437_v59 = vmul.f32 %v6411_v8, %v12666_v19 }
 0xaf0   :  { %v6286_v6 = vpop.f32.mrf.mxu2  ;;  %v6349_v47 = vpop.f32.mrf.mxu3 }
 0xaf1   :  { %v6287_v60 = vadd.f32 %v6286_v6, %v6224_v7  ;;  %v6458_v44 = vadd.f32 %v6437_v59, %v12671_v16 }
 0xaf3   :  { %v6350_v1 = vadd.f32 %v6349_v47, %v6287_v60 }
 0xaf5   :  { %v6413_v12 = vadd.f32 %v6412_v53, %v6350_v1  ;;  %v12669_v53 = vld [vmem:[#allocation49_spill] sm:$0xff] }
 0xaf7   :  { %v6438_v29 = vmul.f32 %v6413_v12, %v12664_v42 }
 0xaf8   :  { %v6289_v41 = vpop.f32.mrf.mxu2 }
 0xaf9   :  { %v6226_v2 = vpop.f32.mrf.mxu1  ;;  %v6459_v25 = vadd.f32 %v6438_v29, %v12669_v53 }
 0xafa   :  { %v6227_v5 = vadd.f32 %v6226_v2, %v6164_v45 }
 0xafc   :  { %v6290_v51 = vadd.f32 %v6289_v41, %v6227_v5 }
 0xaff   :  { %v6352_v54 = vpop.f32.mrf.mxu3 }
 0xb00   :  { %v6291_v57 = vpop.f32.mrf.mxu2  ;;  %v6353_v40 = vadd.f32 %v6352_v54, %v6290_v51 }
 0xb01   :  { %v6228_v48 = vpop.f32.mrf.mxu1 }
 0xb02   :  { %v6416_v58 = vadd.f32 %v6415_v0, %v6353_v40  ;;  %v6456_v0 = vadd.f32 %v6435_v13, %v12673_v24 }
 0xb04   :  { %v6439_v18 = vmul.f32 %v6416_v58, %v12665_v35 }
 0xb06   :  { %v6460_v52 = vadd.f32 %v6439_v18, %v12667_v39 }
 0xb07   :  { %v6354_v46 = vpop.f32.mrf.mxu3 }
 0xb08   :  { %6501 = vmatpush.msra.mxu2 %v6460_v52 }
 0xb0a   :  { %6502 = vmatpush.msra.mxu2 %v6459_v25 }
 0xb0c   :  { %6503 = vmatpush.msra.mxu2 %v6458_v44 }
 0xb0e   :  { %6504 = vmatpush.msra.mxu2 %v6457_v34 }
 0xb10   :  { %6505 = vmatpush.msra.mxu2 %v6456_v0 }
 0xb11   :  { %7489 = vmatmul.msk.f32.vlgmr.msra.gmra.mxu2 %vm6467_vm7, %v6465_v50 }
 0xb61   :  { %v6487_v11 = vpop.f32.mrf.mxu1 }
 0xb94   :  { %v6507_v10 = vpop.f32.mrf.mxu2 }
 0xb95   :  { %v6508_v21 = vadd.f32 %v6507_v10, %v6487_v11 }
 0xb97   :  { %v6510_v6 = vpack.c.bf16 %v6508_v21, %v6508_v21 }
 0xb99   :  { %7506 = vmatmul.msk.bf16.vlgmr.msra.gmra.mxu3 %vm85_vm0, %v6510_v6 }
 0xc1c   :  { %v6559_v49 = vpop.f32.mrf.mxu3 }
 0xc1d   :  { %v6560_v33 = vadd.f32 %v8128_v37, %v6559_v49 }
 0xc1f   :  { %6564 = vst.msk [vmem:[#allocation3] sm:$0x3] %vm6563_vm8, %v6560_v33 }
 0xc20   :  { %6575 = dma.vmem_to_hbm [thread:$0]  %s6571_s0, 32, %s6573_s8, [#allocation4]  }
 0xc24   :  { %v6561_v14 = vpop.f32.mrf.mxu3 }
 0xc25   :  { %8157 = dma.done.wait [#allocation4], 32  }
 0xc26   :  { %8158 = vsyncadd [#allocation4], 4294967264 }
 0xc27   :  { %6580 = vsyncpa [#allocation4], 1 }

</bundles_post_ra>
